<compile_context>
chip_gen: v6e
topology: v6e:2x2x1
jax: 0.10.0
libtpu: 0.0.40
codegen_flags: <defaults>
</compile_context>

<pallas_src>
import functools

import jax
import jax.numpy as jnp
from jax.experimental import pallas as pl
from jax.experimental.pallas import tpu as pltpu


def _attention_kernel(enc_ref, dec_ref, we_t_ref, be_ref, wd_t_ref, bd_ref, wf_ref,
                      awe_ref, alpha_ref):
    """One grid step == one chunk of Bb batch rows.

    Ref shapes (per block):
      enc_ref  : (Bb, P, E)
      dec_ref  : (Bb, D)
      we_t_ref : (E, A)   be_ref : (1, A)
      wd_t_ref : (D, A)   bd_ref : (1, A)
      wf_ref   : (1, A)
      awe_ref  : (Bb, E)
      alpha_ref: (Bb, P)
    """
    Bb, P, E = enc_ref.shape
    A = we_t_ref.shape[1]

    enc = enc_ref[...]                                   # (Bb, P, E), native dtype (f32/bf16)
    dec = dec_ref[...]                                   # (Bb, D)

    # att1 = encoder_att(encoder_out): ONE big MXU matmul over all Bb*P pixel rows.
    # Collapsing the two leading dims keeps E on lanes -> layout no-op reshape.
    att1 = jnp.dot(enc.reshape(Bb * P, E), we_t_ref[...],
                   preferred_element_type=jnp.float32)   # (Bb*P, A), f32 accumulation
    att1 = att1.reshape(Bb, P, A) + be_ref[...]          # + bias, broadcast over (Bb, P)

    # att2 = decoder_att(decoder_hidden): (Bb, A), broadcast over pixels.
    att2 = jnp.dot(dec, wd_t_ref[...],
                   preferred_element_type=jnp.float32) + bd_ref[...]

    # relu(att1 + att2.unsqueeze(1))
    h = jnp.maximum(att1 + att2[:, None, :], 0.0)        # (Bb, P, A), f32

    # full_att(.) squeezed: contract A on the VPU/XLU (no transpose, no N=1 matmul).
    # NOTE: full_att's bias is a uniform shift -> softmax-invariant -> dropped.
    scores = jnp.sum(h * wf_ref[...], axis=-1)           # (Bb, P), f32

    # softmax over the pixel dimension (PyTorch dim=1)
    m = jnp.max(scores, axis=-1, keepdims=True)
    e = jnp.exp(scores - m)
    s = jnp.sum(e, axis=-1, keepdims=True)
    inv = pl.reciprocal(s, approx=True)                  # EUP slot (otherwise idle)
    inv = inv * (2.0 - s * inv)                          # one Newton step -> ~f32 accuracy
    alpha = e * inv                                      # (Bb, P), f32
    alpha_ref[...] = alpha.astype(alpha_ref.dtype)

    # (encoder_out * alpha.unsqueeze(2)).sum(dim=1): VPU multiply + sublane reduce.
    awe = jnp.sum(enc.astype(jnp.float32) * alpha[..., None], axis=1)   # (Bb, E), f32
    awe_ref[...] = awe.astype(awe_ref.dtype)


def _pick_batch_chunk(B, P, E, itemsize, block_b):
    """Sublane-full batch chunk that keeps the double-buffered encoder stream in VMEM."""
    if B < 8:
        return B
    # Budget ~16 MiB for the 2x-buffered encoder chunk (safe on v7x's 64 MiB VMEM and
    # well under the default scoped limit elsewhere); everything else is tiny.
    budget = 16 * 1024 * 1024
    vmem_cap = max(1, budget // (2 * P * E * itemsize))
    bb = min(block_b, B, vmem_cap)
    bb = max(8, (bb // 8) * 8)
    return bb


@functools.partial(jax.jit, static_argnames=("block_b",))
def attention_forward(encoder_out, decoder_hidden, params, block_b=8):
    """params: dict with PyTorch-convention weights:
         we (A, E), be (A,), wd (A, D), bd (A,), wf (1, A), bf (1,)
    """
    B, P, E = encoder_out.shape
    D = decoder_hidden.shape[1]
    A = params["we"].shape[0]
    act_dtype = encoder_out.dtype

    Bb = _pick_batch_chunk(B, P, E, jnp.dtype(act_dtype).itemsize, block_b)
    Bpad = -(-B // Bb) * Bb
    if Bpad != B:
        encoder_out_p = jnp.pad(encoder_out, ((0, Bpad - B), (0, 0), (0, 0)))
        decoder_hidden_p = jnp.pad(decoder_hidden, ((0, Bpad - B), (0, 0)))
    else:
        encoder_out_p = encoder_out
        decoder_hidden_p = decoder_hidden

    # Glue: pre-transpose weights (cast to activation dtype so the MXU runs bf16 when
    # callers pass bf16 activations); keep biases / wf in f32 (they combine with the
    # f32 accumulator inside the kernel).
    we_t = params["we"].T.astype(act_dtype)              # (E, A)
    wd_t = params["wd"].T.astype(decoder_hidden.dtype)   # (D, A)
    be = params["be"].reshape(1, A).astype(jnp.float32)
    bd = params["bd"].reshape(1, A).astype(jnp.float32)
    wf = params["wf"].reshape(1, A).astype(jnp.float32)
    # bf is intentionally NOT passed: softmax is shift-invariant, so it is dead work.

    grid = (Bpad // Bb,)
    awe, alpha = pl.pallas_call(
        _attention_kernel,
        out_shape=(
            jax.ShapeDtypeStruct((Bpad, E), act_dtype),     # attention_weighted_encoding
            jax.ShapeDtypeStruct((Bpad, P), jnp.float32),   # alpha (kept f32)
        ),
        grid_spec=pltpu.PrefetchScalarGridSpec(
            num_scalar_prefetch=0,
            grid=grid,
            in_specs=[
                pl.BlockSpec((Bb, P, E), lambda b: (b, 0, 0)),  # encoder_out (streamed)
                pl.BlockSpec((Bb, D), lambda b: (b, 0)),        # decoder_hidden (streamed)
                pl.BlockSpec((E, A), lambda b: (0, 0)),         # We^T  (resident)
                pl.BlockSpec((1, A), lambda b: (0, 0)),         # be
                pl.BlockSpec((D, A), lambda b: (0, 0)),         # Wd^T
                pl.BlockSpec((1, A), lambda b: (0, 0)),         # bd
                pl.BlockSpec((1, A), lambda b: (0, 0)),         # Wf
            ],
            out_specs=[
                pl.BlockSpec((Bb, E), lambda b: (b, 0)),
                pl.BlockSpec((Bb, P), lambda b: (b, 0)),
            ],
        ),
        compiler_params=pltpu.CompilerParams(
            dimension_semantics=("parallel",)),
    )(encoder_out_p, decoder_hidden_p, we_t, be, wd_t, bd, wf)

    return awe[:B], alpha[:B]


def _reference_forward(encoder_out, decoder_hidden, params):
    """Pure-JAX reference mirroring the PyTorch module exactly."""
    att1 = encoder_out @ params["we"].T + params["be"]                 # (B, P, A)
    att2 = decoder_hidden @ params["wd"].T + params["bd"]              # (B, A)
    h = jax.nn.relu(att1 + att2[:, None, :])                           # (B, P, A)
    att = (h @ params["wf"].T + params["bf"])[..., 0]                  # (B, P)
    alpha = jax.nn.softmax(att, axis=1)                                # (B, P)
    awe = (encoder_out * alpha[:, :, None]).sum(axis=1)                # (B, E)
    return awe, alpha


if __name__ == "__main__":
    # Small shapes consistent with the module's forward; P and E kept at 128 so both
    # output blocks are lane-dense (unmasked stores), B=16 with Bb=8 -> 2 parallel
    # grid steps (feeds both TensorCores on v7x).
    B, P = 16, 128          # batch, num_pixels
    E, D, A = 128, 64, 64   # encoder_dim, decoder_dim, attention_dim

    key = jax.random.PRNGKey(0)
    k_enc, k_dec, k_we, k_be, k_wd, k_bd, k_wf, k_bf = jax.random.split(key, 8)

    encoder_out = jax.random.normal(k_enc, (B, P, E), dtype=jnp.float32)
    decoder_hidden = jax.random.normal(k_dec, (B, D), dtype=jnp.float32)

    # Deterministic synthetic parameters (shapes from nn.Linear in __init__).
    params = {
        "we": 0.1 * jax.random.normal(k_we, (A, E), dtype=jnp.float32),
        "be": 0.1 * jax.random.normal(k_be, (A,), dtype=jnp.float32),
        "wd": 0.1 * jax.random.normal(k_wd, (A, D), dtype=jnp.float32),
        "bd": 0.1 * jax.random.normal(k_bd, (A,), dtype=jnp.float32),
        "wf": 0.1 * jax.random.normal(k_wf, (1, A), dtype=jnp.float32),
        "bf": 0.1 * jax.random.normal(k_bf, (1,), dtype=jnp.float32),
    }

    awe, alpha = attention_forward(encoder_out, decoder_hidden, params)
    jax.block_until_ready((awe, alpha))

    awe_ref, alpha_ref = _reference_forward(encoder_out, decoder_hidden, params)
    assert awe.shape == (B, E) and alpha.shape == (B, P)
    assert jnp.allclose(alpha, alpha_ref, atol=1e-4, rtol=1e-4)
    assert jnp.allclose(awe, awe_ref, atol=1e-4, rtol=1e-4)

    print("KERNEL_OK")
</pallas_src>

<mosaic_0001>
module attributes {stable_mosaic.version = 11 : i64} {
  func.func @_attention_kernel(%arg0: i32, %arg1: memref<8x128x128xf32, #tpu.memory_space<vmem>>, %arg2: memref<8x64xf32, #tpu.memory_space<vmem>>, %arg3: memref<128x64xf32, #tpu.memory_space<vmem>>, %arg4: memref<1x64xf32, #tpu.memory_space<vmem>>, %arg5: memref<64x64xf32, #tpu.memory_space<vmem>>, %arg6: memref<1x64xf32, #tpu.memory_space<vmem>>, %arg7: memref<1x64xf32, #tpu.memory_space<vmem>>, %arg8: memref<8x128xf32, #tpu.memory_space<vmem>>, %arg9: memref<8x128xf32, #tpu.memory_space<vmem>>) attributes {dimension_semantics = [#tpu.dimension_semantics<parallel>], iteration_bounds = array<i64: 2>, scalar_prefetch = 0 : i64, scratch_operands = 0 : i64, tpu.core_type = #tpu.core_type<tc>, window_params = [{transform_indices = @transform_0, window_bounds = array<i64: 8, 128, 128>}, {transform_indices = @transform_1, window_bounds = array<i64: 8, 64>}, {pipeline_mode = #tpu.pipeline_mode<synchronous>, transform_indices = @transform_2, window_bounds = array<i64: 128, 64>}, {pipeline_mode = #tpu.pipeline_mode<synchronous>, transform_indices = @transform_3, window_bounds = array<i64: 1, 64>}, {pipeline_mode = #tpu.pipeline_mode<synchronous>, transform_indices = @transform_4, window_bounds = array<i64: 64, 64>}, {pipeline_mode = #tpu.pipeline_mode<synchronous>, transform_indices = @transform_5, window_bounds = array<i64: 1, 64>}, {pipeline_mode = #tpu.pipeline_mode<synchronous>, transform_indices = @transform_6, window_bounds = array<i64: 1, 64>}, {transform_indices = @transform_7, window_bounds = array<i64: 8, 128>}, {transform_indices = @transform_8, window_bounds = array<i64: 8, 128>}]} {
    %c0 = arith.constant 0 : index
    %c0_0 = arith.constant 0 : index
    %c0_1 = arith.constant 0 : index
    %0 = vector.load %arg1[%c0, %c0_0, %c0_1] : memref<8x128x128xf32, #tpu.memory_space<vmem>>, vector<8x128x128xf32>
    %c0_2 = arith.constant 0 : index
    %c0_3 = arith.constant 0 : index
    %1 = vector.load %arg2[%c0_2, %c0_3] : memref<8x64xf32, #tpu.memory_space<vmem>>, vector<8x64xf32>
    %2 = vector.shape_cast %0 : vector<8x128x128xf32> to vector<1024x128xf32>
    %c0_4 = arith.constant 0 : index
    %c0_5 = arith.constant 0 : index
    %3 = vector.load %arg3[%c0_4, %c0_5] : memref<128x64xf32, #tpu.memory_space<vmem>>, vector<128x64xf32>
    %cst = arith.constant dense<0.000000e+00> : vector<1024x64xf32>
    %4 = tpu.matmul %2, %3, %cst {dimension_numbers = #tpu.dot_dimension_numbers<[1], [0], [0], [1], [0, 0, 1, 1], [], []>} : vector<1024x128xf32>, vector<128x64xf32>, vector<1024x64xf32> -> vector<1024x64xf32>
    %5 = vector.shape_cast %4 : vector<1024x64xf32> to vector<8x128x64xf32>
    %c0_6 = arith.constant 0 : index
    %c0_7 = arith.constant 0 : index
    %6 = vector.load %arg4[%c0_6, %c0_7] : memref<1x64xf32, #tpu.memory_space<vmem>>, vector<1x64xf32>
    %7 = vector.shape_cast %6 : vector<1x64xf32> to vector<1x1x64xf32>
    %8 = vector.broadcast %7 : vector<1x1x64xf32> to vector<8x128x64xf32>
    %9 = arith.addf %5, %8 : vector<8x128x64xf32>
    %c0_8 = arith.constant 0 : index
    %c0_9 = arith.constant 0 : index
    %10 = vector.load %arg5[%c0_8, %c0_9] : memref<64x64xf32, #tpu.memory_space<vmem>>, vector<64x64xf32>
    %cst_10 = arith.constant dense<0.000000e+00> : vector<8x64xf32>
    %11 = tpu.matmul %1, %10, %cst_10 {dimension_numbers = #tpu.dot_dimension_numbers<[1], [0], [0], [1], [0, 0, 1, 1], [], []>} : vector<8x64xf32>, vector<64x64xf32>, vector<8x64xf32> -> vector<8x64xf32>
    %c0_11 = arith.constant 0 : index
    %c0_12 = arith.constant 0 : index
    %12 = vector.load %arg6[%c0_11, %c0_12] : memref<1x64xf32, #tpu.memory_space<vmem>>, vector<1x64xf32>
    %13 = vector.broadcast %12 : vector<1x64xf32> to vector<8x64xf32>
    %14 = arith.addf %11, %13 : vector<8x64xf32>
    %15 = vector.shape_cast %14 : vector<8x64xf32> to vector<8x1x64xf32>
    %16 = vector.broadcast %15 : vector<8x1x64xf32> to vector<8x128x64xf32>
    %17 = arith.addf %9, %16 : vector<8x128x64xf32>
    %cst_13 = arith.constant 0.000000e+00 : f32
    %18 = vector.broadcast %cst_13 : f32 to vector<8x128x64xf32>
    %19 = arith.maximumf %17, %18 : vector<8x128x64xf32>
    %c0_14 = arith.constant 0 : index
    %c0_15 = arith.constant 0 : index
    %20 = vector.load %arg7[%c0_14, %c0_15] : memref<1x64xf32, #tpu.memory_space<vmem>>, vector<1x64xf32>
    %21 = vector.shape_cast %20 : vector<1x64xf32> to vector<1x1x64xf32>
    %22 = vector.broadcast %21 : vector<1x1x64xf32> to vector<8x128x64xf32>
    %23 = arith.mulf %19, %22 : vector<8x128x64xf32>
    %cst_16 = arith.constant dense<0.000000e+00> : vector<8x128xf32>
    %24 = vector.multi_reduction <add>, %23, %cst_16 [2] : vector<8x128x64xf32> to vector<8x128xf32>
    %cst_17 = arith.constant dense<0xFF800000> : vector<8xf32>
    %25 = vector.multi_reduction <maximumf>, %24, %cst_17 [1] : vector<8x128xf32> to vector<8xf32>
    %26 = vector.shape_cast %25 : vector<8xf32> to vector<8x1xf32>
    %27 = vector.broadcast %26 : vector<8x1xf32> to vector<8x128xf32>
    %28 = arith.subf %24, %27 : vector<8x128xf32>
    %29 = math.exp %28 : vector<8x128xf32>
    %cst_18 = arith.constant dense<0.000000e+00> : vector<8xf32>
    %30 = vector.multi_reduction <add>, %29, %cst_18 [1] : vector<8x128xf32> to vector<8xf32>
    %31 = vector.shape_cast %30 : vector<8xf32> to vector<8x1xf32>
    %32 = tpu.reciprocal %31 {approx = true} : vector<8x1xf32> -> vector<8x1xf32>
    %33 = arith.mulf %31, %32 : vector<8x1xf32>
    %cst_19 = arith.constant 2.000000e+00 : f32
    %34 = vector.broadcast %cst_19 : f32 to vector<8x1xf32>
    %35 = arith.subf %34, %33 : vector<8x1xf32>
    %36 = arith.mulf %32, %35 : vector<8x1xf32>
    %37 = vector.broadcast %36 : vector<8x1xf32> to vector<8x128xf32>
    %38 = arith.mulf %29, %37 : vector<8x128xf32>
    %c0_20 = arith.constant 0 : index
    %c0_21 = arith.constant 0 : index
    %39 = vector.load %arg9[%c0_20, %c0_21] : memref<8x128xf32, #tpu.memory_space<vmem>>, vector<8x128xf32>
    tpu.vector_store %arg9[%c0_20, %c0_21], %38 {strides = array<i32>} : memref<8x128xf32, #tpu.memory_space<vmem>>, vector<8x128xf32>,
    %40 = vector.shape_cast %38 : vector<8x128xf32> to vector<8x128x1xf32>
    %41 = vector.broadcast %40 : vector<8x128x1xf32> to vector<8x128x128xf32>
    %42 = arith.mulf %0, %41 : vector<8x128x128xf32>
    %cst_22 = arith.constant dense<0.000000e+00> : vector<8x128xf32>
    %43 = vector.multi_reduction <add>, %42, %cst_22 [1] : vector<8x128x128xf32> to vector<8x128xf32>
    %c0_23 = arith.constant 0 : index
    %c0_24 = arith.constant 0 : index
    %44 = vector.load %arg8[%c0_23, %c0_24] : memref<8x128xf32, #tpu.memory_space<vmem>>, vector<8x128xf32>
    tpu.vector_store %arg8[%c0_23, %c0_24], %43 {strides = array<i32>} : memref<8x128xf32, #tpu.memory_space<vmem>>, vector<8x128xf32>,
    return
  }
  func.func @transform_0(%arg0: i32) -> (i32, i32, i32) {
    %c0_i32 = arith.constant 0 : i32
    %c0_i32_0 = arith.constant 0 : i32
    %c0_i32_1 = arith.constant 0 : i32
    return %arg0, %c0_i32, %c0_i32_0 : i32, i32, i32
  }
  func.func @transform_1(%arg0: i32) -> (i32, i32) {
    %c0_i32 = arith.constant 0 : i32
    %c0_i32_0 = arith.constant 0 : i32
    return %arg0, %c0_i32 : i32, i32
  }
  func.func @transform_2(%arg0: i32) -> (i32, i32) {
    %c0_i32 = arith.constant 0 : i32
    %c0_i32_0 = arith.constant 0 : i32
    %c0_i32_1 = arith.constant 0 : i32
    return %c0_i32, %c0_i32_0 : i32, i32
  }
  func.func @transform_3(%arg0: i32) -> (i32, i32) {
    %c0_i32 = arith.constant 0 : i32
    %c0_i32_0 = arith.constant 0 : i32
    %c0_i32_1 = arith.constant 0 : i32
    return %c0_i32, %c0_i32_0 : i32, i32
  }
  func.func @transform_4(%arg0: i32) -> (i32, i32) {
    %c0_i32 = arith.constant 0 : i32
    %c0_i32_0 = arith.constant 0 : i32
    %c0_i32_1 = arith.constant 0 : i32
    return %c0_i32, %c0_i32_0 : i32, i32
  }
  func.func @transform_5(%arg0: i32) -> (i32, i32) {
    %c0_i32 = arith.constant 0 : i32
    %c0_i32_0 = arith.constant 0 : i32
    %c0_i32_1 = arith.constant 0 : i32
    return %c0_i32, %c0_i32_0 : i32, i32
  }
  func.func @transform_6(%arg0: i32) -> (i32, i32) {
    %c0_i32 = arith.constant 0 : i32
    %c0_i32_0 = arith.constant 0 : i32
    %c0_i32_1 = arith.constant 0 : i32
    return %c0_i32, %c0_i32_0 : i32, i32
  }
  func.func @transform_7(%arg0: i32) -> (i32, i32) {
    %c0_i32 = arith.constant 0 : i32
    %c0_i32_0 = arith.constant 0 : i32
    return %arg0, %c0_i32 : i32, i32
  }
  func.func @transform_8(%arg0: i32) -> (i32, i32) {
    %c0_i32 = arith.constant 0 : i32
    %c0_i32_0 = arith.constant 0 : i32
    return %arg0, %c0_i32 : i32, i32
  }
}

</mosaic_0001>

<bundles_post_ra>
// kernel: attention_forward.1
= control target key start
LH: loop header
LB: loop body
LE: loop exit
PB: predicated region body
PF: predicated region fallthrough
CT: control target
= control target key end

     0   :  { %14 = vsyncpa [#allocation3], 0  ;;  %s12333_s0 = inlined_call_operand.hbm [shape: f32[16,128,128], index: 0, kind: input, shape index: {}]   ;;  %s12334_s1 = inlined_call_operand.vmem [shape: f32[16,64], index: 1, kind: input, shape index: {}]   ;;  %s12335_s2 = inlined_call_operand.vmem [shape: f32[128,64], index: 2, kind: input, shape index: {}]   ;;  %s12336_s3 = inlined_call_operand.vmem [shape: f32[1,64], index: 3, kind: input, shape index: {}]   ;;  %s12337_s4 = inlined_call_operand.vmem [shape: f32[64,64], index: 4, kind: input, shape index: {}]   ;;  %s12338_s5 = inlined_call_operand.vmem [shape: f32[1,64], index: 5, kind: input, shape index: {}]   ;;  %s12339_s6 = inlined_call_operand.vmem [shape: f32[1,64], index: 6, kind: input, shape index: {}]   ;;  %s12340_s7 = inlined_call_operand.hbm [shape: f32[16,128], index: 7, kind: output, shape index: {0}]   ;;  %s12341_s8 = inlined_call_operand.hbm [shape: f32[16,128], index: 8, kind: output, shape index: {1}]  }
   0x1   :  { %16 = vsyncpa [#allocation3 + $0x1], 0 }
   0x2   :  { %17 = vsyncpa [#allocation4], 0 }
   0x3   :  { %19 = vsyncpa [#allocation4 + $0x1], 0 }
   0x4   :  { %20 = vsyncpa [#allocation7], 0 }
   0x5   :  { %22 = vsyncpa [#allocation7 + $0x1], 0  ;;  %s7671_s27 = smov 0   ;;  %s7673_s28 = smov 0  }
   0x6   :  { %s7675_s29 = smov 0   ;;  %s7677_s30 = smov 0  }
   0x7 LB: > { %s7692_s9 = sadd.s32 4294967295, %s7615_s30   ;;  %s6594_s10 = sadd.s32 4294967294, %s7615_s30   ;;  %s7615_s30 = sphi %s7677_s30, %s13594_s30   ;;  %s7611_s29 = sphi %s7675_s29, %s13593_s29   ;;  %s7607_s28 = sphi %s7673_s28, %s13592_s28   ;;  %s7603_s27 = sphi %s7671_s27, %s13591_s27  }
   0x8   : > { %s7696_s11 = sadd.s32 1, %s7615_s30   ;;  %s35_s12 = sadd.s32 1, %s7611_s29 }
   0x9   : > { %s32_s13 = ssub.s32 %s7615_s30, %s7696_s11  ;;  %p42_p0 = scmp.ne.s32.totalorder %s7611_s29, %s7607_s28 }
   0xa   : > { %p33_p1 = scmp.eq.s32.totalorder %s32_s13, 0  ;;  %p43_p2 = scmp.eq.s32.totalorder %s7615_s30, 0 }
   0xb   : > { %p48_p3 = scmp.ne.s32.totalorder %s7607_s28, %s7603_s27  ;;  %p49_p4 = scmp.eq.s32.totalorder %s7692_s9, 0 }
   0xc   : > { %s7708_s14 = scalar_select %p33_p1, %s7611_s29, %s35_s12  }
   0xd   : > { %p7710_p5 = por %p43_p2, %p42_p0  ;;  %p7714_p6 = por %p49_p4, %p48_p3 }
   0xe   : > { %12649 = sst [smem:[#allocation11_spill]] %s7708_s14  ;;  %p203_p7 = scmp.eq.s32.totalorder %s7692_s9, 1 }
   0xf   : > { %s12651_s16 = scalar_select %p7714_p6, 1, 0 }
  0x10   : > { %p209_p8 = scmp.eq.s32.totalorder %s6594_s10, 1  ;;  %p7063_p10 = scmp.lt.s32.totalorder %s7615_s30, 2 }
  0x11   : > { %p7721_p11 = por %p203_p7, %p42_p0  ;;  %s270_s19 = sand.u32 1, %s7611_s29  }
  0x12   : > { %p7725_p12 = por %p209_p8, %p48_p3  ;;  %s6617_s20 = sshll.u32 %s7615_s30, 14 }
  0x13   : > { %s12652_s17 = scalar_select %p7721_p11, 1, 0 }
  0x14   : > { %s12653_s18 = scalar_select %p7725_p12, 1, 0 }
  0x15   : > { %s6597_s21 = sshll.u32 %s270_s19, 10  ;;  %s7734_s24 = scalar_lea.hbm %s12333_s0, %s6617_s20 }
  0x16   : > { %s274_s25 = scalar_lea.vmem [#allocation2], %s6597_s21  ;;  %p7738_p13 = pnand %p7063_p10, %p7710_p5 }
  0x17   : > { %s282_s26 = sshll.u32 %s274_s25, 4  ;;  %s7744_s12 = scalar_lea.sflag [#allocation3], %s270_s19  ;;  %s7742_s26 = int_to_ptr.vmem [resolvable:$true] %s282_s26 }
  0x18   : > { %s7493_s13 = scalar_lea.hbm %s7734_s24, 16384  ;;  %p7495_p1 = pneg %p7738_p13 }
  0x19   : > { %p7494_p0 = scmp.ne.s32.totalorder %s7734_s24, %s7493_s13  ;;  %s7498_s21 = scalar_lea.hbm %s12333_s0, 32768 }
  0x1a   : > { %p7499_p4 = scmp.lt.s32.totalorder %s7734_s24, %s12333_s0  ;;  %p7500_p5 = scmp.lt.s32.totalorder %s7498_s21, %s7493_s13 }
  0x1b   : > { %p7496_p2 = pnand %p7495_p1, %p7494_p0 }
  0x1c   : > { %p7501_p7 = por %p7500_p5, %p7499_p4 }
  0x1d   : > { %p7497_p3 = pneg %p7496_p2 }
  0x1f   : > { %p7502_p8 = pnand %p7501_p7, %p7497_p3 }
  0x21   : > { %7505 = shalt.err (!%p7502_p8)
}
  0x22   : > { %s7506_s19 = scalar_lea.vmem %s7742_s26, 16384  ;;  %s7617_s25 = smov [#allocation2]  }
  0x23   : > { %p7507_p10 = scmp.ne.s32.totalorder %s7742_s26, %s7506_s19  ;;  %s7511_s14 = sshll.u32 %s7617_s25, 4  ;;  %s7512_s14 = int_to_ptr.vmem [resolvable:$false] %s7511_s14 }
  0x24   : > { %s7513_s20 = scalar_lea.vmem %s7512_s14, 32768  ;;  %p7514_p2 = scmp.lt.s32.totalorder %s7742_s26, %s7512_s14 }
  0x25   : > { %p7509_p9 = pnand %p7507_p10, %p7495_p1  ;;  %p7515_p12 = scmp.lt.s32.totalorder %s7513_s20, %s7506_s19 }
  0x27   : > { %p7510_p0 = pneg %p7509_p9  ;;  %p7516_p11 = por %p7515_p12, %p7514_p2 }
  0x29   : > { %p7517_p6 = pnand %p7516_p11, %p7510_p0 }
  0x2b   : > { %7520 = shalt.err (!%p7517_p6)
}
  0x2c   : > { %s7618_s13 = smov 128   ;;  %s7619_s22 = smov 8  }
  0x2d   : > { %7055 = dma.hbm_to_vmem [thread:$0]  (!%p7738_p13), %s7734_s24, 16384, %s7742_s26, %s7744_s12, %s7618_s13, %s7618_s13, %s7619_s22  }
  0x2e   : > { %p6601_p9 = scmp.ge.s32.totalorder %s7615_s30, 1  ;;  %p297_p1 = scmp.lt.s32.totalorder %s7615_s30, 3 }
  0x30   : > { %p298_p3 = pnand %p6601_p9, %p297_p1 }
  0x32   : > { %301 = sbr.rel (%p298_p3) target bundleno = 1979 (0x7bb), region = 48 }
  0x37   : > { %s7768_s14 = sand.u32 1, %s7607_s28   ;;  %p12655_p6 = scmp.ne.s32.totalorder %s12651_s16, 0 }
  0x38   : > { %s6602_s21 = sshll.u32 %s7768_s14, 10  ;;  %s304_s15 = scalar_lea.sflag [#allocation3], %s7768_s14 }
  0x39   : > { %s7772_s23 = scalar_lea.vmem [#allocation2], %s6602_s21 }
  0x3a   : > { %7590 = dma.done.wait (%p12655_p6), %s304_s15, 16384  }
  0x3b   : > { %7592 = vsyncadd (%p12655_p6), %s304_s15, 4294950912  ;;  %v498_v0 = vld [vmem:[%s12335_s2 + $0x78] sm:$0xff]  ;;  %v497_v1 = vld [vmem:[%s12335_s2 + $0x70] sm:$0xff]  ;;  %v7620_v21 = vmov 0.0   ;;  %p350_p11 = scmp.lt.s32.totalorder %s7692_s9, 1  ;;  %vm7621_vm0 = vmmov 0  }
  0x3c   : > { %7014 = vmatprep.subr.mxu1 %v498_v0  ;;  %6771 = vmatprep.subr.mxu0 %v498_v0  ;;  %v496_v2 = vld [vmem:[%s12335_s2 + $0x68] sm:$0xff]  ;;  %v495_v3 = vld [vmem:[%s12335_s2 + $0x60] sm:$0xff]  ;;  %v494_v4 = vld [vmem:[%s12335_s2 + $0x58] sm:$0xff]  ;;  %vm1354_vm1 = vcmask 523264   ;;  %vm2432_vm2 = vcmask 130112   ;;  %vm2439_vm3 = vcmask 195712  }
  0x3d   : > { %7030 = vmatpush3.msra.mxu1 %v498_v0  ;;  %6772 = vmatpush3.msra.mxu0 %v498_v0  ;;  %v493_v5 = vld [vmem:[%s12335_s2 + $0x50] sm:$0xff]  ;;  %v492_v6 = vld [vmem:[%s12335_s2 + $0x48] sm:$0xff]  ;;  %v491_v7 = vld [vmem:[%s12335_s2 + $0x40] sm:$0xff]  ;;  %s351_s24 = scalar_select %p350_p11, %s7692_s9, 1  ;;  %vm2446_vm4 = vcmask 261312   ;;  %vm2453_vm5 = vcmask 326912  }
  0x3e   : > { %7015 = vmatprep.subr.mxu1 %v497_v1  ;;  %6773 = vmatprep.subr.mxu0 %v497_v1  ;;  %v490_v8 = vld [vmem:[%s12335_s2 + $0x38] sm:$0xff]  ;;  %v489_v9 = vld [vmem:[%s12335_s2 + $0x30] sm:$0xff]  ;;  %v488_v10 = vld [vmem:[%s12335_s2 + $0x28] sm:$0xff]  ;;  %vm2460_vm6 = vcmask 392512   ;;  %vm12638_vm7 = vcmask 458112   ;;  %vm12637_vm8 = vcmask 523712  }
  0x3f   : > { %7031 = vmatpush3.msra.mxu1 %v497_v1  ;;  %6774 = vmatpush3.msra.mxu0 %v497_v1  ;;  %v487_v11 = vld [vmem:[%s12335_s2 + $0x20] sm:$0xff]  ;;  %v486_v12 = vld [vmem:[%s12335_s2 + $0x18] sm:$0xff]  ;;  %v485_v13 = vld [vmem:[%s12335_s2 + $0x10] sm:$0xff]  ;;  %s6605_s26 = sshll.u32 %s351_s24, 3  ;;  %vm2481_vm9 = vcmask 589312   ;;  %vm12487_vm10 = vcmask 654912  }
  0x40   : > { %7016 = vmatprep.subr.mxu1 %v496_v2  ;;  %6775 = vmatprep.subr.mxu0 %v496_v2  ;;  %v484_v14 = vld [vmem:[%s12335_s2 + $0x8] sm:$0xff]  ;;  %v420_v15 = vld [vmem:[%s7772_s23 + $0x210] sm:$0xff]  ;;  %v483_v16 = vld [vmem:[%s12335_s2] sm:$0xff]  ;;  %s353_s19 = scalar_lea.vmem %s12334_s1, %s6605_s26  ;;  %vm12489_vm11 = vcmask 720512   ;;  %vm12490_vm12 = vcmask 786112   ;;  %vm2509_vm13 = vcmask 851712  }
  0x41   : > { %7032 = vmatpush3.msra.mxu1 %v496_v2  ;;  %6776 = vmatpush3.msra.mxu0 %v496_v2  ;;  %v421_v17 = vld [vmem:[%s7772_s23 + $0x218] sm:$0xff]  ;;  %v354_v19 = vld [vmem:[%s7772_s23] sm:$0xff]  ;;  %v355_v22 = vld [vmem:[%s7772_s23 + $0x8] sm:$0xff]  ;;  %vm2516_vm14 = vcmask 917312   ;;  %vm2523_vm15 = vcmask 982912   ;;  %s6603_s12 = sshll.u32 %s7768_s14, 3 }
  0x42   : > { %7017 = vmatprep.subr.mxu1 %v495_v3  ;;  %6777 = vmatprep.subr.mxu0 %v495_v3  ;;  %v1346_v18 = vld [vmem:[%s12337_s4 + $0x38] sm:$0xff]  ;;  %v422_v20 = vld [vmem:[%s7772_s23 + $0x220] sm:$0xff]  ;;  %v423_v23 = vld [vmem:[%s7772_s23 + $0x228] sm:$0xff]  ;;  %s348_s25 = scalar_lea.vmem [#allocation6], %s6603_s12  ;;  %p13583_p13 = scmp.ne.s32.totalorder %s12652_s17, 0 }
  0x43   : > { %7033 = vmatpush3.msra.mxu1 %v495_v3  ;;  %6778 = vmatpush3.msra.mxu0 %v495_v3  ;;  %v356_v24 = vld [vmem:[%s7772_s23 + $0x10] sm:$0xff]  ;;  %v357_v27 = vld [vmem:[%s7772_s23 + $0x18] sm:$0xff]  ;;  %v1344_v28 = vld [vmem:[%s12337_s4 + $0x28] sm:$0xff]  ;;  %s6480_s16 = sshll.u32 %s348_s25, 4  ;;  %s7624_s15 = smov [#allocation6]   ;;  %s12261_s16 = int_to_ptr.vmem [resolvable:$true] %s6480_s16 }
  0x44   : > { %7018 = vmatprep.subr.mxu1 %v494_v4  ;;  %6779 = vmatprep.subr.mxu0 %v494_v4  ;;  %v424_v25 = vld [vmem:[%s7772_s23 + $0x230] sm:$0xff]  ;;  %v425_v29 = vld [vmem:[%s7772_s23 + $0x238] sm:$0xff]  ;;  %v358_v30 = vld [vmem:[%s7772_s23 + $0x20] sm:$0xff]  ;;  %s7521_s21 = scalar_lea.vmem %s12261_s16, 128  ;;  %s7525_s24 = sshll.u32 %s7624_s15, 4  ;;  %s7526_s24 = int_to_ptr.vmem [resolvable:$false] %s7525_s24 }
  0x45   : > { %7034 = vmatpush3.msra.mxu1 %v494_v4  ;;  %6780 = vmatpush3.msra.mxu0 %v494_v4  ;;  %v1345_v26 = vld [vmem:[%s12337_s4 + $0x30] sm:$0xff]  ;;  %v426_v31 = vld [vmem:[%s7772_s23 + $0x240] sm:$0xff]  ;;  %v359_v33 = vld [vmem:[%s7772_s23 + $0x28] sm:$0xff]  ;;  %p7522_p12 = scmp.ne.s32.totalorder %s12261_s16, %s7521_s21  ;;  %s7527_s26 = scalar_lea.vmem %s7526_s24, 256 }
  0x46   : > { %7019 = vmatprep.subr.mxu1 %v493_v5  ;;  %6781 = vmatprep.subr.mxu0 %v493_v5  ;;  %v1343_v32 = vld [vmem:[%s12337_s4 + $0x20] sm:$0xff]  ;;  %v427_v34 = vld [vmem:[%s7772_s23 + $0x248] sm:$0xff]  ;;  %v360_v35 = vld [vmem:[%s7772_s23 + $0x30] sm:$0xff]  ;;  %p7528_p7 = scmp.lt.s32.totalorder %s12261_s16, %s7526_s24  ;;  %p7529_p8 = scmp.lt.s32.totalorder %s7527_s26, %s7521_s21 }
  0x47   : > { %7035 = vmatpush3.msra.mxu1 %v493_v5  ;;  %6782 = vmatpush3.msra.mxu0 %v493_v5  ;;  %v428_v36 = vld [vmem:[%s7772_s23 + $0x250] sm:$0xff]  ;;  %v1342_v37 = vld [vmem:[%s12337_s4 + $0x18] sm:$0xff]  ;;  %v362_v41 = vld [vmem:[%s7772_s23 + $0x40] sm:$0xff]  ;;  %p7523_p4 = pnand %p7522_p12, %p13583_p13 }
  0x48   : > { %7020 = vmatprep.subr.mxu1 %v492_v6  ;;  %6783 = vmatprep.subr.mxu0 %v492_v6  ;;  %v361_v38 = vld [vmem:[%s7772_s23 + $0x38] sm:$0xff]  ;;  %v1341_v39 = vld [vmem:[%s12337_s4 + $0x10] sm:$0xff]  ;;  %v430_v42 = vld [vmem:[%s7772_s23 + $0x260] sm:$0xff]  ;;  %p7530_p10 = por %p7529_p8, %p7528_p7 }
  0x49   : > { %7036 = vmatpush3.msra.mxu1 %v492_v6  ;;  %6784 = vmatpush3.msra.mxu0 %v492_v6  ;;  %v429_v40 = vld [vmem:[%s7772_s23 + $0x258] sm:$0xff]  ;;  %v1340_v43 = vld [vmem:[%s12337_s4 + $0x8] sm:$0xff]  ;;  %v364_v46 = vld [vmem:[%s7772_s23 + $0x50] sm:$0xff]  ;;  %p7524_p5 = pneg %p7523_p4 }
  0x4a   : > { %7021 = vmatprep.subr.mxu1 %v491_v7  ;;  %6785 = vmatprep.subr.mxu0 %v491_v7  ;;  %v363_v44 = vld [vmem:[%s7772_s23 + $0x48] sm:$0xff]  ;;  %v432_v47 = vld [vmem:[%s7772_s23 + $0x270] sm:$0xff]  ;;  %v1339_v48 = vld [vmem:[%s12337_s4] sm:$0xff] }
  0x4b   : > { %7037 = vmatpush3.msra.mxu1 %v491_v7  ;;  %6786 = vmatpush3.msra.mxu0 %v491_v7  ;;  %v431_v45 = vld [vmem:[%s7772_s23 + $0x268] sm:$0xff]  ;;  %v365_v49 = vld [vmem:[%s7772_s23 + $0x58] sm:$0xff]  ;;  %v366_v51 = vld [vmem:[%s7772_s23 + $0x60] sm:$0xff]  ;;  %p7531_p0 = pnand %p7530_p10, %p7524_p5 }
  0x4c   : > { %7022 = vmatprep.subr.mxu1 %v490_v8  ;;  %6787 = vmatprep.subr.mxu0 %v490_v8  ;;  %v433_v50 = vld [vmem:[%s7772_s23 + $0x278] sm:$0xff]  ;;  %v434_v52 = vld [vmem:[%s7772_s23 + $0x280] sm:$0xff]  ;;  %v367_v53 = vld [vmem:[%s7772_s23 + $0x68] sm:$0xff] }
  0x4d   : > { %7038 = vmatpush3.msra.mxu1 %v490_v8  ;;  %6788 = vmatpush3.msra.mxu0 %v490_v8  ;;  %v435_v54 = vld [vmem:[%s7772_s23 + $0x288] sm:$0xff]  ;;  %v368_v55 = vld [vmem:[%s7772_s23 + $0x70] sm:$0xff]  ;;  %v369_v57 = vld [vmem:[%s7772_s23 + $0x78] sm:$0xff] }
  0x4e   : > { %7023 = vmatprep.subr.mxu1 %v489_v9  ;;  %6789 = vmatprep.subr.mxu0 %v489_v9  ;;  %v436_v56 = vld [vmem:[%s7772_s23 + $0x290] sm:$0xff]  ;;  %v437_v58 = vld [vmem:[%s7772_s23 + $0x298] sm:$0xff]  ;;  %v370_v59 = vld [vmem:[%s7772_s23 + $0x80] sm:$0xff] }
  0x4f   : > { %7039 = vmatpush3.msra.mxu1 %v489_v9  ;;  %6790 = vmatpush3.msra.mxu0 %v489_v9  ;;  %v438_v60 = vld [vmem:[%s7772_s23 + $0x2a0] sm:$0xff]  ;;  %v371_v61 = vld [vmem:[%s7772_s23 + $0x88] sm:$0xff]  ;;  %v372_v63 = vld [vmem:[%s7772_s23 + $0x90] sm:$0xff] }
  0x50   : > { %7024 = vmatprep.subr.mxu1 %v488_v10  ;;  %6791 = vmatprep.subr.mxu0 %v488_v10  ;;  %v439_v62 = vld [vmem:[%s7772_s23 + $0x2a8] sm:$0xff]  ;;  %v440_v0 = vld [vmem:[%s7772_s23 + $0x2b0] sm:$0xff]  ;;  %v373_v1 = vld [vmem:[%s7772_s23 + $0x98] sm:$0xff] }
  0x51   : > { %7040 = vmatpush3.msra.mxu1 %v488_v10  ;;  %6792 = vmatpush3.msra.mxu0 %v488_v10  ;;  %v441_v2 = vld [vmem:[%s7772_s23 + $0x2b8] sm:$0xff]  ;;  %v374_v3 = vld [vmem:[%s7772_s23 + $0xa0] sm:$0xff]  ;;  %v375_v5 = vld [vmem:[%s7772_s23 + $0xa8] sm:$0xff] }
  0x52   : > { %7025 = vmatprep.subr.mxu1 %v487_v11  ;;  %6793 = vmatprep.subr.mxu0 %v487_v11  ;;  %v442_v4 = vld [vmem:[%s7772_s23 + $0x2c0] sm:$0xff]  ;;  %v443_v6 = vld [vmem:[%s7772_s23 + $0x2c8] sm:$0xff]  ;;  %v376_v7 = vld [vmem:[%s7772_s23 + $0xb0] sm:$0xff] }
  0x53   : > { %7041 = vmatpush3.msra.mxu1 %v487_v11  ;;  %6794 = vmatpush3.msra.mxu0 %v487_v11  ;;  %v444_v8 = vld [vmem:[%s7772_s23 + $0x2d0] sm:$0xff]  ;;  %v377_v9 = vld [vmem:[%s7772_s23 + $0xb8] sm:$0xff]  ;;  %v378_v11 = vld [vmem:[%s7772_s23 + $0xc0] sm:$0xff] }
  0x54   : > { %7026 = vmatprep.subr.mxu1 %v486_v12  ;;  %6795 = vmatprep.subr.mxu0 %v486_v12  ;;  %v445_v10 = vld [vmem:[%s7772_s23 + $0x2d8] sm:$0xff] }
  0x55   : > { %7042 = vmatpush3.msra.mxu1 %v486_v12  ;;  %6796 = vmatpush3.msra.mxu0 %v486_v12  ;;  %v446_v12 = vld [vmem:[%s7772_s23 + $0x2e0] sm:$0xff] }
  0x56   : > { %7027 = vmatprep.subr.mxu1 %v485_v13  ;;  %6797 = vmatprep.subr.mxu0 %v485_v13 }
  0x57   : > { %7043 = vmatpush3.msra.mxu1 %v485_v13  ;;  %6798 = vmatpush3.msra.mxu0 %v485_v13  ;;  %v379_v13 = vld [vmem:[%s7772_s23 + $0xc8] sm:$0xff] }
  0x58   : > { %7028 = vmatprep.subr.mxu1 %v484_v14  ;;  %6799 = vmatprep.subr.mxu0 %v484_v14 }
  0x59   : > { %7044 = vmatpush3.msra.mxu1 %v484_v14  ;;  %6902 = vmatprep.mubr.f32.mxu1 %v420_v15  ;;  %v380_v15 = vld [vmem:[%s7772_s23 + $0xd0] sm:$0xff] }
  0x5a   : > { %7029 = vmatprep.subr.mxu1 %v483_v16  ;;  %6800 = vmatpush3.msra.mxu0 %v484_v14  ;;  %v447_v14 = vld [vmem:[%s7772_s23 + $0x2e8] sm:$0xff] }
  0x5b   : > { %7045 = vmatpush3.msra.mxu1 %v483_v16  ;;  %6801 = vmatprep.subr.mxu0 %v483_v16 }
  0x5c   : > { %6903 = vmatmul.mubr.f32.vlgmr.msra.gmra.mxu1 %v421_v17  ;;  %6995 = vmatprep.subr.mxu1 %v7620_v21  ;;  %v381_v17 = vld [vmem:[%s7772_s23 + $0xd8] sm:$0xff] }
  0x5d   : > { %6996 = vmatpush3.msra.mxu1 %v1346_v18  ;;  %6802 = vmatpush3.msra.mxu0 %v483_v16  ;;  %v448_v16 = vld [vmem:[%s7772_s23 + $0x2f0] sm:$0xff]  ;;  %v449_v18 = vld [vmem:[%s7772_s23 + $0x2f8] sm:$0xff] }
  0x5e   : > { %6803 = vmatprep.mubr.f32.mxu0 %v354_v19  ;;  %6905 = vmatprep.mubr.f32.mxu1 %v422_v20  ;;  %v382_v19 = vld [vmem:[%s7772_s23 + $0xe0] sm:$0xff] }
  0x5f   : > { %6804 = vmatmul.mubr.f32.vlgmr.msra.gmra.mxu0 %v355_v22  ;;  %6997 = vmatprep.subr.mxu1 %v7620_v21  ;;  %v450_v20 = vld [vmem:[%s7772_s23 + $0x300] sm:$0xff]  ;;  %v383_v22 = vld [vmem:[%s7772_s23 + $0xe8] sm:$0xff] }
  0x60   : > { %6906 = vmatmul.mubr.f32.gmra.mxu1 %v423_v23  ;;  %6806 = vmatprep.mubr.f32.mxu0 %v356_v24  ;;  %v451_v23 = vld [vmem:[%s7772_s23 + $0x308] sm:$0xff]  ;;  %v384_v24 = vld [vmem:[%s7772_s23 + $0xf0] sm:$0xff] }
  0x61   : > { %6908 = vmatprep.mubr.f32.mxu1 %v424_v25  ;;  %6998 = vmatpush3.msra.mxu1 %v1345_v26  ;;  %v452_v25 = vld [vmem:[%s7772_s23 + $0x310] sm:$0xff]  ;;  %v385_v26 = vld [vmem:[%s7772_s23 + $0xf8] sm:$0xff] }
  0x62   : > { %6999 = vmatprep.subr.mxu1 %v7620_v21 }
  0x63   : > { %6807 = vmatmul.mubr.f32.gmra.mxu0 %v357_v27  ;;  %7000 = vmatpush3.msra.mxu1 %v1344_v28  ;;  %v453_v27 = vld [vmem:[%s7772_s23 + $0x318] sm:$0xff]  ;;  %v386_v28 = vld [vmem:[%s7772_s23 + $0x100] sm:$0xff] }
  0x64   : > { %6909 = vmatmul.mubr.f32.gmra.mxu1 %v425_v29  ;;  %6809 = vmatprep.mubr.f32.mxu0 %v358_v30  ;;  %v454_v29 = vld [vmem:[%s7772_s23 + $0x320] sm:$0xff]  ;;  %v387_v30 = vld [vmem:[%s7772_s23 + $0x108] sm:$0xff] }
  0x65   : > { %6911 = vmatprep.mubr.f32.mxu1 %v426_v31  ;;  %7001 = vmatprep.subr.mxu1 %v7620_v21  ;;  %v455_v31 = vld [vmem:[%s7772_s23 + $0x328] sm:$0xff] }
  0x66   : > { %7002 = vmatpush3.msra.mxu1 %v1343_v32  ;;  %v388_v32 = vld [vmem:[%s7772_s23 + $0x110] sm:$0xff] }
  0x67   : > { %6810 = vmatmul.mubr.f32.gmra.mxu0 %v359_v33  ;;  %7003 = vmatprep.subr.mxu1 %v7620_v21  ;;  %v456_v33 = vld [vmem:[%s7772_s23 + $0x330] sm:$0xff] }
  0x68   : > { %6912 = vmatmul.mubr.f32.gmra.mxu1 %v427_v34  ;;  %6812 = vmatprep.mubr.f32.mxu0 %v360_v35  ;;  %v389_v34 = vld [vmem:[%s7772_s23 + $0x118] sm:$0xff] }
  0x69   : > { %6914 = vmatprep.mubr.f32.mxu1 %v428_v36  ;;  %7004 = vmatpush3.msra.mxu1 %v1342_v37  ;;  %v457_v35 = vld [vmem:[%s7772_s23 + $0x338] sm:$0xff]  ;;  %v390_v36 = vld [vmem:[%s7772_s23 + $0x120] sm:$0xff] }
  0x6a   : > { %7005 = vmatprep.subr.mxu1 %v7620_v21  ;;  %v458_v37 = vld [vmem:[%s7772_s23 + $0x340] sm:$0xff] }
  0x6b   : > { %6813 = vmatmul.mubr.f32.gmra.mxu0 %v361_v38  ;;  %7006 = vmatpush3.msra.mxu1 %v1341_v39  ;;  %v391_v38 = vld [vmem:[%s7772_s23 + $0x128] sm:$0xff] }
  0x6c   : > { %6915 = vmatmul.mubr.f32.gmra.mxu1 %v429_v40  ;;  %6815 = vmatprep.mubr.f32.mxu0 %v362_v41  ;;  %v459_v39 = vld [vmem:[%s7772_s23 + $0x348] sm:$0xff]  ;;  %v392_v40 = vld [vmem:[%s7772_s23 + $0x130] sm:$0xff] }
  0x6d   : > { %6917 = vmatprep.mubr.f32.mxu1 %v430_v42  ;;  %7007 = vmatprep.subr.mxu1 %v7620_v21  ;;  %v460_v41 = vld [vmem:[%s7772_s23 + $0x350] sm:$0xff]  ;;  %v393_v42 = vld [vmem:[%s7772_s23 + $0x138] sm:$0xff] }
  0x6e   : > { %7008 = vmatpush3.msra.mxu1 %v1340_v43  ;;  %v461_v43 = vld [vmem:[%s7772_s23 + $0x358] sm:$0xff] }
  0x6f   : > { %6816 = vmatmul.mubr.f32.gmra.mxu0 %v363_v44  ;;  %7009 = vmatprep.subr.mxu1 %v7620_v21  ;;  %v394_v44 = vld [vmem:[%s7772_s23 + $0x140] sm:$0xff] }
  0x70   : > { %6918 = vmatmul.mubr.f32.gmra.mxu1 %v431_v45  ;;  %6818 = vmatprep.mubr.f32.mxu0 %v364_v46  ;;  %v462_v45 = vld [vmem:[%s7772_s23 + $0x360] sm:$0xff]  ;;  %v395_v46 = vld [vmem:[%s7772_s23 + $0x148] sm:$0xff] }
  0x71   : > { %6920 = vmatprep.mubr.f32.mxu1 %v432_v47  ;;  %7010 = vmatpush3.msra.mxu1 %v1339_v48  ;;  %v463_v47 = vld [vmem:[%s7772_s23 + $0x368] sm:$0xff]  ;;  %v396_v48 = vld [vmem:[%s7772_s23 + $0x150] sm:$0xff] }
  0x73   : > { %6819 = vmatmul.mubr.f32.gmra.mxu0 %v365_v49  ;;  %v464_v49 = vld [vmem:[%s7772_s23 + $0x370] sm:$0xff] }
  0x74   : > { %6921 = vmatmul.mubr.f32.gmra.mxu1 %v433_v50  ;;  %6821 = vmatprep.mubr.f32.mxu0 %v366_v51  ;;  %v397_v50 = vld [vmem:[%s7772_s23 + $0x158] sm:$0xff] }
  0x75   : > { %6923 = vmatprep.mubr.f32.mxu1 %v434_v52  ;;  %v465_v51 = vld [vmem:[%s7772_s23 + $0x378] sm:$0xff]  ;;  %v398_v52 = vld [vmem:[%s7772_s23 + $0x160] sm:$0xff] }
  0x77   : > { %6822 = vmatmul.mubr.f32.gmra.mxu0 %v367_v53  ;;  %v466_v53 = vld [vmem:[%s7772_s23 + $0x380] sm:$0xff] }
  0x78   : > { %6924 = vmatmul.mubr.f32.gmra.mxu1 %v435_v54  ;;  %6824 = vmatprep.mubr.f32.mxu0 %v368_v55  ;;  %v399_v54 = vld [vmem:[%s7772_s23 + $0x168] sm:$0xff] }
  0x79   : > { %6926 = vmatprep.mubr.f32.mxu1 %v436_v56  ;;  %v467_v55 = vld [vmem:[%s7772_s23 + $0x388] sm:$0xff]  ;;  %v400_v56 = vld [vmem:[%s7772_s23 + $0x170] sm:$0xff] }
  0x7b   : > { %6825 = vmatmul.mubr.f32.gmra.mxu0 %v369_v57  ;;  %v468_v57 = vld [vmem:[%s7772_s23 + $0x390] sm:$0xff] }
  0x7c   : > { %6927 = vmatmul.mubr.f32.gmra.mxu1 %v437_v58  ;;  %6827 = vmatprep.mubr.f32.mxu0 %v370_v59  ;;  %v401_v58 = vld [vmem:[%s7772_s23 + $0x178] sm:$0xff] }
  0x7d   : > { %6929 = vmatprep.mubr.f32.mxu1 %v438_v60  ;;  %v469_v59 = vld [vmem:[%s7772_s23 + $0x398] sm:$0xff]  ;;  %v402_v60 = vld [vmem:[%s7772_s23 + $0x180] sm:$0xff] }
  0x7f   : > { %6828 = vmatmul.mubr.f32.gmra.mxu0 %v371_v61  ;;  %v470_v61 = vld [vmem:[%s7772_s23 + $0x3a0] sm:$0xff] }
  0x80   : > { %6930 = vmatmul.mubr.f32.gmra.mxu1 %v439_v62  ;;  %6830 = vmatprep.mubr.f32.mxu0 %v372_v63  ;;  %v403_v62 = vld [vmem:[%s7772_s23 + $0x188] sm:$0xff] }
  0x81   : > { %6932 = vmatprep.mubr.f32.mxu1 %v440_v0  ;;  %v471_v63 = vld [vmem:[%s7772_s23 + $0x3a8] sm:$0xff]  ;;  %v404_v0 = vld [vmem:[%s7772_s23 + $0x190] sm:$0xff] }
  0x83   : > { %6831 = vmatmul.mubr.f32.gmra.mxu0 %v373_v1  ;;  %v472_v1 = vld [vmem:[%s7772_s23 + $0x3b0] sm:$0xff] }
  0x84   : > { %6933 = vmatmul.mubr.f32.gmra.mxu1 %v441_v2  ;;  %6833 = vmatprep.mubr.f32.mxu0 %v374_v3  ;;  %v405_v2 = vld [vmem:[%s7772_s23 + $0x198] sm:$0xff] }
  0x85   : > { %6935 = vmatprep.mubr.f32.mxu1 %v442_v4  ;;  %v473_v3 = vld [vmem:[%s7772_s23 + $0x3b8] sm:$0xff]  ;;  %v406_v4 = vld [vmem:[%s7772_s23 + $0x1a0] sm:$0xff] }
  0x87   : > { %6834 = vmatmul.mubr.f32.gmra.mxu0 %v375_v5  ;;  %v474_v5 = vld [vmem:[%s7772_s23 + $0x3c0] sm:$0xff] }
  0x88   : > { %6936 = vmatmul.mubr.f32.gmra.mxu1 %v443_v6  ;;  %6836 = vmatprep.mubr.f32.mxu0 %v376_v7  ;;  %v407_v6 = vld [vmem:[%s7772_s23 + $0x1a8] sm:$0xff] }
  0x89   : > { %6938 = vmatprep.mubr.f32.mxu1 %v444_v8  ;;  %v475_v7 = vld [vmem:[%s7772_s23 + $0x3c8] sm:$0xff]  ;;  %v408_v8 = vld [vmem:[%s7772_s23 + $0x1b0] sm:$0xff] }
  0x8b   : > { %6837 = vmatmul.mubr.f32.gmra.mxu0 %v377_v9  ;;  %v476_v9 = vld [vmem:[%s7772_s23 + $0x3d0] sm:$0xff] }
  0x8c   : > { %6939 = vmatmul.mubr.f32.gmra.mxu1 %v445_v10  ;;  %6839 = vmatprep.mubr.f32.mxu0 %v378_v11  ;;  %v409_v10 = vld [vmem:[%s7772_s23 + $0x1b8] sm:$0xff] }
  0x8d   : > { %6941 = vmatprep.mubr.f32.mxu1 %v446_v12  ;;  %v477_v11 = vld [vmem:[%s7772_s23 + $0x3d8] sm:$0xff]  ;;  %v410_v12 = vld [vmem:[%s7772_s23 + $0x1c0] sm:$0xff] }
  0x8f   : > { %6840 = vmatmul.mubr.f32.gmra.mxu0 %v379_v13  ;;  %v478_v13 = vld [vmem:[%s7772_s23 + $0x3e0] sm:$0xff] }
  0x90   : > { %6942 = vmatmul.mubr.f32.gmra.mxu1 %v447_v14  ;;  %6842 = vmatprep.mubr.f32.mxu0 %v380_v15  ;;  %v411_v14 = vld [vmem:[%s7772_s23 + $0x1c8] sm:$0xff] }
  0x91   : > { %6944 = vmatprep.mubr.f32.mxu1 %v448_v16  ;;  %v479_v15 = vld [vmem:[%s7772_s23 + $0x3e8] sm:$0xff]  ;;  %v412_v16 = vld [vmem:[%s7772_s23 + $0x1d0] sm:$0xff] }
  0x93   : > { %6843 = vmatmul.mubr.f32.gmra.mxu0 %v381_v17  ;;  %v480_v17 = vld [vmem:[%s7772_s23 + $0x3f0] sm:$0xff] }
  0x94   : > { %6945 = vmatmul.mubr.f32.gmra.mxu1 %v449_v18  ;;  %6845 = vmatprep.mubr.f32.mxu0 %v382_v19  ;;  %v413_v18 = vld [vmem:[%s7772_s23 + $0x1d8] sm:$0xff] }
  0x95   : > { %6947 = vmatprep.mubr.f32.mxu1 %v450_v20  ;;  %v481_v19 = vld [vmem:[%s7772_s23 + $0x3f8] sm:$0xff]  ;;  %v414_v20 = vld [vmem:[%s7772_s23 + $0x1e0] sm:$0xff] }
  0x97   : > { %6846 = vmatmul.mubr.f32.gmra.mxu0 %v383_v22  ;;  %v415_v22 = vld [vmem:[%s7772_s23 + $0x1e8] sm:$0xff] }
  0x98   : > { %6948 = vmatmul.mubr.f32.gmra.mxu1 %v451_v23  ;;  %6848 = vmatprep.mubr.f32.mxu0 %v384_v24  ;;  %v482_v23 = vld [vmem:[%s353_s19] sm:$0xff]  ;;  %v416_v24 = vld [vmem:[%s7772_s23 + $0x1f0] sm:$0xff]  ;;  %s12648_s19 = sshll.u32 %s7692_s9, 7 }
  0x99   : > { %6950 = vmatprep.mubr.f32.mxu1 %v452_v25  ;;  %v417_v25 = vld [vmem:[%s7772_s23 + $0x1f8] sm:$0xff]  ;;  %s12259_s22 = scalar_lea.hbm %s12341_s8, %s12648_s19 }
  0x9b   : > { %6849 = vmatmul.mubr.f32.gmra.mxu0 %v385_v26  ;;  %v418_v26 = vld [vmem:[%s7772_s23 + $0x200] sm:$0xff] }
  0x9c   : > { %6951 = vmatmul.mubr.f32.gmra.mxu1 %v453_v27  ;;  %6851 = vmatprep.mubr.f32.mxu0 %v386_v28  ;;  %v419_v27 = vld [vmem:[%s7772_s23 + $0x208] sm:$0xff] }
  0x9d   : > { %6953 = vmatprep.mubr.f32.mxu1 %v454_v29 }
  0x9f   : > { %6852 = vmatmul.mubr.f32.gmra.mxu0 %v387_v30 }
  0xa0   : > { %6954 = vmatmul.mubr.f32.gmra.mxu1 %v455_v31  ;;  %6854 = vmatprep.mubr.f32.mxu0 %v388_v32 }
  0xa1   : > { %6956 = vmatprep.mubr.f32.mxu1 %v456_v33 }
  0xa3   : > { %6855 = vmatmul.mubr.f32.gmra.mxu0 %v389_v34 }
  0xa4   : > { %6957 = vmatmul.mubr.f32.gmra.mxu1 %v457_v35  ;;  %6857 = vmatprep.mubr.f32.mxu0 %v390_v36 }
  0xa5   : > { %6959 = vmatprep.mubr.f32.mxu1 %v458_v37 }
  0xa7   : > { %6858 = vmatmul.mubr.f32.gmra.mxu0 %v391_v38 }
  0xa8   : > { %6960 = vmatmul.mubr.f32.gmra.mxu1 %v459_v39  ;;  %6860 = vmatprep.mubr.f32.mxu0 %v392_v40 }
  0xa9   : > { %6962 = vmatprep.mubr.f32.mxu1 %v460_v41 }
  0xab   : > { %6861 = vmatmul.mubr.f32.gmra.mxu0 %v393_v42 }
  0xac   : > { %6963 = vmatmul.mubr.f32.gmra.mxu1 %v461_v43  ;;  %6863 = vmatprep.mubr.f32.mxu0 %v394_v44 }
  0xad   : > { %6965 = vmatprep.mubr.f32.mxu1 %v462_v45 }
  0xaf   : > { %6864 = vmatmul.mubr.f32.gmra.mxu0 %v395_v46 }
  0xb0   : > { %6966 = vmatmul.mubr.f32.gmra.mxu1 %v463_v47  ;;  %6866 = vmatprep.mubr.f32.mxu0 %v396_v48 }
  0xb1   : > { %6968 = vmatprep.mubr.f32.mxu1 %v464_v49 }
  0xb3   : > { %6867 = vmatmul.mubr.f32.gmra.mxu0 %v397_v50 }
  0xb4   : > { %6969 = vmatmul.mubr.f32.gmra.mxu1 %v465_v51  ;;  %6869 = vmatprep.mubr.f32.mxu0 %v398_v52 }
  0xb5   : > { %6971 = vmatprep.mubr.f32.mxu1 %v466_v53 }
  0xb7   : > { %6870 = vmatmul.mubr.f32.gmra.mxu0 %v399_v54 }
  0xb8   : > { %6972 = vmatmul.mubr.f32.gmra.mxu1 %v467_v55  ;;  %6872 = vmatprep.mubr.f32.mxu0 %v400_v56 }
  0xb9   : > { %6974 = vmatprep.mubr.f32.mxu1 %v468_v57 }
  0xbb   : > { %6873 = vmatmul.mubr.f32.gmra.mxu0 %v401_v58 }
  0xbc   : > { %6975 = vmatmul.mubr.f32.gmra.mxu1 %v469_v59  ;;  %6875 = vmatprep.mubr.f32.mxu0 %v402_v60 }
  0xbd   : > { %6977 = vmatprep.mubr.f32.mxu1 %v470_v61 }
  0xbf   : > { %6876 = vmatmul.mubr.f32.gmra.mxu0 %v403_v62 }
  0xc0   : > { %6978 = vmatmul.mubr.f32.gmra.mxu1 %v471_v63  ;;  %6878 = vmatprep.mubr.f32.mxu0 %v404_v0 }
  0xc1   : > { %6980 = vmatprep.mubr.f32.mxu1 %v472_v1 }
  0xc3   : > { %6879 = vmatmul.mubr.f32.gmra.mxu0 %v405_v2 }
  0xc4   : > { %6981 = vmatmul.mubr.f32.gmra.mxu1 %v473_v3  ;;  %6881 = vmatprep.mubr.f32.mxu0 %v406_v4 }
  0xc5   : > { %6983 = vmatprep.mubr.f32.mxu1 %v474_v5 }
  0xc7   : > { %6882 = vmatmul.mubr.f32.gmra.mxu0 %v407_v6 }
  0xc8   : > { %6984 = vmatmul.mubr.f32.gmra.mxu1 %v475_v7  ;;  %6884 = vmatprep.mubr.f32.mxu0 %v408_v8 }
  0xc9   : > { %6986 = vmatprep.mubr.f32.mxu1 %v476_v9 }
  0xcb   : > { %6885 = vmatmul.mubr.f32.gmra.mxu0 %v409_v10 }
  0xcc   : > { %6987 = vmatmul.mubr.f32.gmra.mxu1 %v477_v11  ;;  %6887 = vmatprep.mubr.f32.mxu0 %v410_v12 }
  0xcd   : > { %6989 = vmatprep.mubr.f32.mxu1 %v478_v13 }
  0xcf   : > { %6888 = vmatmul.mubr.f32.gmra.mxu0 %v411_v14 }
  0xd0   : > { %6990 = vmatmul.mubr.f32.gmra.mxu1 %v479_v15  ;;  %6890 = vmatprep.mubr.f32.mxu0 %v412_v16 }
  0xd1   : > { %6992 = vmatprep.mubr.f32.mxu1 %v480_v17 }
  0xd3   : > { %6891 = vmatmul.mubr.f32.gmra.mxu0 %v413_v18 }
  0xd4   : > { %6993 = vmatmul.mubr.f32.gmra.mxu1 %v481_v19  ;;  %6893 = vmatprep.mubr.f32.mxu0 %v414_v20 }
  0xd5   : > { %7011 = vmatprep.mubr.msk.f32.mxu1 %vm7621_vm0, %v7620_v21  ;;  %vm2530_vm0 = vcmask 1048512  }
  0xd7   : > { %6894 = vmatmul.mubr.f32.gmra.mxu0 %v415_v22 }
  0xd8   : > { %7012 = vmatmul.mubr.msk.f32.vlgmr.msra.gmra.mxu1 %vm1354_vm1, %v482_v23  ;;  %6896 = vmatprep.mubr.f32.mxu0 %v416_v24 }
  0xdb   : > { %6897 = vmatmul.mubr.f32.gmra.mxu0 %v417_v25 }
  0xdc   : > { %6899 = vmatprep.mubr.f32.mxu0 %v418_v26 }
  0xdf   : > { %6900 = vmatmul.mubr.f32.gmra.mxu0 %v419_v27 }
 0x11c   : > { %v7993_v28 = vpop.f32.mrf.mxu1 }
 0x11e   : > { %v7995_v29 = vpop.f32.mrf.mxu1 }
 0x11f   : > { %v7997_v30 = vpop.f32.mrf.mxu0 }
 0x120   : > { %v7999_v21 = vpop.f32.mrf.mxu1 }
 0x121   : > { %v8001_v31 = vpop.f32.mrf.mxu0 }
 0x122   : > { %v8003_v32 = vpop.f32.mrf.mxu1 }
 0x123   : > { %v8005_v33 = vpop.f32.mrf.mxu0 }
 0x124   : > { %v8007_v34 = vpop.f32.mrf.mxu1 }
 0x125   : > { %v8009_v35 = vpop.f32.mrf.mxu0 }
 0x126   : > { %v8011_v36 = vpop.f32.mrf.mxu1 }
 0x127   : > { %v8013_v37 = vpop.f32.mrf.mxu0 }
 0x128   : > { %v8015_v38 = vpop.f32.mrf.mxu1 }
 0x129   : > { %v8017_v39 = vpop.f32.mrf.mxu0 }
 0x12a   : > { %v8019_v40 = vpop.f32.mrf.mxu1 }
 0x12b   : > { %v8021_v41 = vpop.f32.mrf.mxu0 }
 0x12c   : > { %v8023_v42 = vpop.f32.mrf.mxu1 }
 0x12d   : > { %v8025_v43 = vpop.f32.mrf.mxu0 }
 0x12e   : > { %v8027_v44 = vpop.f32.mrf.mxu1 }
 0x12f   : > { %v8029_v45 = vpop.f32.mrf.mxu0 }
 0x130   : > { %v8031_v46 = vpop.f32.mrf.mxu1 }
 0x131   : > { %v8033_v47 = vpop.f32.mrf.mxu0 }
 0x132   : > { %v8035_v48 = vpop.f32.mrf.mxu1 }
 0x133   : > { %v8037_v49 = vpop.f32.mrf.mxu0 }
 0x134   : > { %v8039_v50 = vpop.f32.mrf.mxu1 }
 0x135   : > { %v8041_v51 = vpop.f32.mrf.mxu0 }
 0x136   : > { %v8043_v52 = vpop.f32.mrf.mxu1 }
 0x137   : > { %12656 = vst [vmem:[#allocation12_spill] sm:$0xff] %v8043_v52  ;;  %v8045_v53 = vpop.f32.mrf.mxu0 }
 0x138   : > { %v8047_v54 = vpop.f32.mrf.mxu1 }
 0x139   : > { %12657 = vst [vmem:[#allocation13_spill] sm:$0xff] %v8047_v54  ;;  %v8049_v55 = vpop.f32.mrf.mxu0 }
 0x13a   : > { %v8051_v56 = vpop.f32.mrf.mxu1 }
 0x13b   : > { %12658 = vst [vmem:[#allocation14_spill] sm:$0xff] %v8051_v56  ;;  %v8053_v57 = vpop.f32.mrf.mxu0 }
 0x13c   : > { %v8055_v58 = vpop.f32.mrf.mxu1 }
 0x13d   : > { %12659 = vst [vmem:[#allocation15_spill] sm:$0xff] %v8055_v58  ;;  %v8057_v59 = vpop.f32.mrf.mxu0 }
 0x13e   : > { %v8059_v60 = vpop.f32.mrf.mxu1 }
 0x13f   : > { %12660 = vst [vmem:[#allocation16_spill] sm:$0xff] %v8059_v60  ;;  %v8061_v61 = vpop.f32.mrf.mxu0 }
 0x140   : > { %v8063_v62 = vpop.f32.mrf.mxu1 }
 0x141   : > { %12661 = vst [vmem:[#allocation17_spill] sm:$0xff] %v8063_v62  ;;  %v8065_v63 = vpop.f32.mrf.mxu0 }
 0x142   : > { %v8067_v0 = vpop.f32.mrf.mxu1 }
 0x143   : > { %12662 = vst [vmem:[#allocation18_spill] sm:$0xff] %v8067_v0  ;;  %v8069_v1 = vpop.f32.mrf.mxu0 }
 0x144   : > { %v8071_v2 = vpop.f32.mrf.mxu1 }
 0x145   : > { %12663 = vst [vmem:[#allocation19_spill] sm:$0xff] %v8071_v2  ;;  %v8073_v3 = vpop.f32.mrf.mxu0 }
 0x146   : > { %v8075_v4 = vpop.f32.mrf.mxu1 }
 0x147   : > { %12664 = vst [vmem:[#allocation20_spill] sm:$0xff] %v8075_v4  ;;  %v8077_v5 = vpop.f32.mrf.mxu0 }
 0x148   : > { %v8079_v6 = vpop.f32.mrf.mxu1 }
 0x149   : > { %12665 = vst [vmem:[#allocation21_spill] sm:$0xff] %v8079_v6  ;;  %v8081_v7 = vpop.f32.mrf.mxu0 }
 0x14a   : > { %v8083_v8 = vpop.f32.mrf.mxu1 }
 0x14b   : > { %12666 = vst [vmem:[#allocation22_spill] sm:$0xff] %v8083_v8  ;;  %v8085_v9 = vpop.f32.mrf.mxu0 }
 0x14c   : > { %v8087_v10 = vpop.f32.mrf.mxu1 }
 0x14d   : > { %12667 = vst [vmem:[#allocation23_spill] sm:$0xff] %v8087_v10  ;;  %v8089_v11 = vpop.f32.mrf.mxu0 }
 0x14e   : > { %v8091_v12 = vpop.f32.mrf.mxu1 }
 0x14f   : > { %12668 = vst [vmem:[#allocation24_spill] sm:$0xff] %v8091_v12  ;;  %v8093_v13 = vpop.f32.mrf.mxu0 }
 0x150   : > { %v8095_v14 = vpop.f32.mrf.mxu1 }
 0x151   : > { %12669 = vst [vmem:[#allocation25_spill] sm:$0xff] %v8095_v14  ;;  %v8097_v15 = vpop.f32.mrf.mxu0 }
 0x152   : > { %v8099_v16 = vpop.f32.mrf.mxu1 }
 0x153   : > { %12670 = vst [vmem:[#allocation26_spill] sm:$0xff] %v8099_v16  ;;  %v8101_v17 = vpop.f32.mrf.mxu0 }
 0x154   : > { %v8103_v18 = vpop.f32.mrf.mxu1 }
 0x155   : > { %12671 = vst [vmem:[#allocation27_spill] sm:$0xff] %v8103_v18  ;;  %v8105_v19 = vpop.f32.mrf.mxu0 }
 0x156   : > { %v8107_v20 = vpop.f32.mrf.mxu1 }
 0x157   : > { %12672 = vst [vmem:[#allocation28_spill] sm:$0xff] %v8107_v20  ;;  %v8109_v22 = vpop.f32.mrf.mxu0 }
 0x158   : > { %v8111_v23 = vpop.f32.mrf.mxu1 }
 0x159   : > { %12673 = vst [vmem:[#allocation29_spill] sm:$0xff] %v8111_v23  ;;  %v8113_v24 = vpop.f32.mrf.mxu0 }
 0x15a   : > { %v8115_v25 = vpop.f32.mrf.mxu1 }
 0x15b   : > { %12674 = vst [vmem:[#allocation30_spill] sm:$0xff] %v8115_v25  ;;  %v8117_v26 = vpop.f32.mrf.mxu0 }
 0x15c   : > { %v8119_v27 = vpop.f32.mrf.mxu1 }
 0x15d   : > { %12675 = vst [vmem:[#allocation31_spill] sm:$0xff] %v8119_v27  ;;  %v8121_v16 = vpop.f32.mrf.mxu0 }
 0x15e   : > { %v8123_v14 = vpop.f32.mrf.mxu1 }
 0x15f   : > { %12676 = vst [vmem:[#allocation32_spill] sm:$0xff] %v8123_v14  ;;  %v8125_v18 = vpop.f32.mrf.mxu0 }
 0x160   : > { %12677 = vst [vmem:[#allocation33_spill] sm:$0xff] %v8125_v18  ;;  %v8127_v12 = vpop.f32.mrf.mxu1 }
 0x161   : > { %12678 = vst [vmem:[#allocation34_spill] sm:$0xff] %v8127_v12  ;;  %v8129_v20 = vpop.f32.mrf.mxu0 }
 0x162   : > { %12679 = vst [vmem:[#allocation35_spill] sm:$0xff] %v8129_v20  ;;  %v8131_v10 = vpop.f32.mrf.mxu1 }
 0x163   : > { %12680 = vst [vmem:[#allocation36_spill] sm:$0xff] %v8131_v10  ;;  %v8133_v23 = vpop.f32.mrf.mxu0 }
 0x164   : > { %12681 = vst [vmem:[#allocation37_spill] sm:$0xff] %v8133_v23  ;;  %v8135_v8 = vpop.f32.mrf.mxu1 }
 0x165   : > { %12682 = vst [vmem:[#allocation38_spill] sm:$0xff] %v8135_v8  ;;  %v8137_v25 = vpop.f32.mrf.mxu0 }
 0x166   : > { %12683 = vst [vmem:[#allocation39_spill] sm:$0xff] %v8137_v25  ;;  %v8139_v6 = vpop.f32.mrf.mxu1 }
 0x167   : > { %12684 = vst [vmem:[#allocation40_spill] sm:$0xff] %v8139_v6  ;;  %v8141_v27 = vpop.f32.mrf.mxu0 }
 0x168   : > { %12685 = vst [vmem:[#allocation41_spill] sm:$0xff] %v8141_v27  ;;  %v8143_v4 = vpop.f32.mrf.mxu1 }
 0x169   : > { %12686 = vst [vmem:[#allocation42_spill] sm:$0xff] %v8143_v4  ;;  %v8145_v14 = vpop.f32.mrf.mxu0 }
 0x16a   : > { %12687 = vst [vmem:[#allocation43_spill] sm:$0xff] %v8145_v14  ;;  %v8147_v2 = vpop.f32.mrf.mxu1 }
 0x16b   : > { %12688 = vst [vmem:[#allocation44_spill] sm:$0xff] %v8147_v2  ;;  %v8149_v12 = vpop.f32.mrf.mxu0 }
 0x16c   : > { %12689 = vst [vmem:[#allocation45_spill] sm:$0xff] %v8149_v12  ;;  %v8151_v0 = vpop.f32.mrf.mxu1 }
 0x16d   : > { %12690 = vst [vmem:[#allocation46_spill] sm:$0xff] %v8151_v0  ;;  %v8153_v10 = vpop.f32.mrf.mxu0 }
 0x16e   : > { %12691 = vst [vmem:[#allocation47_spill] sm:$0xff] %v8153_v10  ;;  %v8155_v62 = vpop.f32.mrf.mxu1 }
 0x16f   : > { %12692 = vst [vmem:[#allocation48_spill] sm:$0xff] %v8155_v62  ;;  %v8157_v8 = vpop.f32.mrf.mxu0 }
 0x170   : > { %12693 = vst [vmem:[#allocation49_spill] sm:$0xff] %v8157_v8  ;;  %v8159_v60 = vpop.f32.mrf.mxu1 }
 0x171   : > { %12694 = vst [vmem:[#allocation50_spill] sm:$0xff] %v8159_v60  ;;  %v8161_v6 = vpop.f32.mrf.mxu0 }
 0x172   : > { %12695 = vst [vmem:[#allocation51_spill] sm:$0xff] %v8161_v6  ;;  %v8163_v58 = vpop.f32.mrf.mxu1 }
 0x173   : > { %12696 = vst [vmem:[#allocation52_spill] sm:$0xff] %v8163_v58  ;;  %v8165_v4 = vpop.f32.mrf.mxu0 }
 0x174   : > { %12697 = vst [vmem:[#allocation53_spill] sm:$0xff] %v8165_v4  ;;  %v8167_v56 = vpop.f32.mrf.mxu1 }
 0x175   : > { %12698 = vst [vmem:[#allocation54_spill] sm:$0xff] %v8167_v56  ;;  %v8169_v2 = vpop.f32.mrf.mxu0 }
 0x176   : > { %12699 = vst [vmem:[#allocation55_spill] sm:$0xff] %v8169_v2  ;;  %v8171_v54 = vpop.f32.mrf.mxu1 }
 0x177   : > { %12700 = vst [vmem:[#allocation56_spill] sm:$0xff] %v8171_v54  ;;  %v8173_v0 = vpop.f32.mrf.mxu0 }
 0x178   : > { %12701 = vst [vmem:[#allocation57_spill] sm:$0xff] %v8173_v0  ;;  %v8175_v10 = vpop.f32.mrf.mxu1 }
 0x179   : > { %12702 = vst [vmem:[#allocation58_spill] sm:$0xff] %v8175_v10  ;;  %v8177_v62 = vpop.f32.mrf.mxu0 }
 0x17a   : > { %12703 = vst [vmem:[#allocation59_spill] sm:$0xff] %v8177_v62  ;;  %v8179_v8 = vpop.f32.mrf.mxu1 }
 0x17b   : > { %12704 = vst [vmem:[#allocation60_spill] sm:$0xff] %v8179_v8  ;;  %v8181_v60 = vpop.f32.mrf.mxu0 }
 0x17c   : > { %12705 = vst [vmem:[#allocation61_spill] sm:$0xff] %v8181_v60  ;;  %v8183_v6 = vpop.f32.mrf.mxu1 }
 0x17d   : > { %12706 = vst [vmem:[#allocation62_spill] sm:$0xff] %v8183_v6  ;;  %v8185_v58 = vpop.f32.mrf.mxu0 }
 0x17e   : > { %12707 = vst [vmem:[#allocation63_spill] sm:$0xff] %v8185_v58  ;;  %v8187_v4 = vpop.f32.mrf.mxu1 }
 0x17f   : > { %12708 = vst [vmem:[#allocation64_spill] sm:$0xff] %v8187_v4  ;;  %v8189_v56 = vpop.f32.mrf.mxu0 }
 0x180   : > { %12709 = vst [vmem:[#allocation65_spill] sm:$0xff] %v8189_v56  ;;  %v8191_v2 = vpop.f32.mrf.mxu1  ;;  %v12344_v56 = vlaneseq }
 0x181   : > { %12710 = vst [vmem:[#allocation66_spill] sm:$0xff] %v8191_v2  ;;  %v8193_v54 = vpop.f32.mrf.mxu0 }
 0x182   : > { %12711 = vst [vmem:[#allocation67_spill] sm:$0xff] %v8193_v54  ;;  %v8195_v0 = vpop.f32.mrf.mxu1 }
 0x183   : > { %12712 = vst [vmem:[#allocation68_spill] sm:$0xff] %v8195_v0  ;;  %v8197_v10 = vpop.f32.mrf.mxu0 }
 0x184   : > { %12713 = vst [vmem:[#allocation69_spill] sm:$0xff] %v8197_v10  ;;  %v8199_v62 = vpop.f32.mrf.mxu1 }
 0x185   : > { %12714 = vst [vmem:[#allocation70_spill] sm:$0xff] %v8199_v62  ;;  %v8201_v8 = vpop.f32.mrf.mxu0 }
 0x186   : > { %12715 = vst [vmem:[#allocation71_spill] sm:$0xff] %v8201_v8  ;;  %v8203_v60 = vpop.f32.mrf.mxu1  ;;  %v7622_v8 = vmov 1966171168  }
 0x187   : > { %12716 = vst [vmem:[#allocation72_spill] sm:$0xff] %v8203_v60  ;;  %v8205_v6 = vpop.f32.mrf.mxu0  ;;  %v1431_v60 = vunpack.c.l.s4 %v7622_v8  ;;  %v6607_v8 = vld [vmem:[%s12338_s5] ss:$0 sm:$0xff] }
 0x188   : > { %12717 = vst [vmem:[#allocation73_spill] sm:$0xff] %v8205_v6  ;;  %v8207_v58 = vpop.f32.mrf.mxu1 }
 0x189   : > { %12718 = vst [vmem:[#allocation74_spill] sm:$0xff] %v8207_v58  ;;  %v8209_v4 = vpop.f32.mrf.mxu0 }
 0x18a   : > { %12719 = vst [vmem:[#allocation75_spill] sm:$0xff] %v8209_v4  ;;  %v8211_v12 = vpop.f32.mrf.mxu1 }
 0x18b   : > { %12720 = vst [vmem:[#allocation76_spill] sm:$0xff] %v8211_v12  ;;  %v8213_v2 = vpop.f32.mrf.mxu0 }
 0x18c   : > { %12721 = vst [vmem:[#allocation77_spill] sm:$0xff] %v8213_v2  ;;  %v8215_v54 = vpop.f32.mrf.mxu1  ;;  %v1432_v2 = vunpack.c.0.s8 %v1431_v60 }
 0x18d   : > { %12722 = vst [vmem:[#allocation78_spill] sm:$0xff] %v8215_v54  ;;  %v8217_v0 = vpop.f32.mrf.mxu0  ;;  %v8232_v54 = vshrl.u32 %v12344_v56, 7 }
 0x18e   : > { %12723 = vst [vmem:[#allocation79_spill] sm:$0xff] %v8217_v0  ;;  %v8219_v10 = vpop.f32.mrf.mxu1 }
 0x18f   : > { %12724 = vst [vmem:[#allocation80_spill] sm:$0xff] %v8219_v10  ;;  %v8221_v62 = vpop.f32.mrf.mxu0  ;;  %12730 = vst [vmem:[#allocation86_spill] sm:$0xff] %v8232_v54 }
 0x190   : > { %12725 = vst [vmem:[#allocation81_spill] sm:$0xff] %v8221_v62  ;;  %v8223_v6 = vpop.f32.mrf.mxu1 }
 0x191   : > { %12726 = vst [vmem:[#allocation82_spill] sm:$0xff] %v8223_v6  ;;  %v8225_v58 = vpop.f32.mrf.mxu0 }
 0x192   : > { %12727 = vst [vmem:[#allocation83_spill] sm:$0xff] %v8225_v58  ;;  %v8227_v4 = vpop.f32.mrf.mxu1 }
 0x193   : > { %12728 = vst [vmem:[#allocation84_spill] sm:$0xff] %v8227_v4  ;;  %v8229_v12 = vpop.f32.mrf.mxu0  ;;  %v1435_v4 = vsub.s32 %v1432_v2, %v8232_v54 }
 0x194   : > { %12729 = vst [vmem:[#allocation85_spill] sm:$0xff] %v8229_v12  ;;  %v8234_v0 = vpop.f32.mrf.mxu1 }
 0x195   : > { %12731 = vst [vmem:[#allocation87_spill] sm:$0xff] %v8234_v0  ;;  %v8236_v10 = vpop.f32.mrf.mxu0  ;;  %v8247_v0 = vsub.s32 0, %v8232_v54 }
 0x196   : > { %12732 = vst [vmem:[#allocation88_spill] sm:$0xff] %v8236_v10  ;;  %v8238_v62 = vpop.f32.mrf.mxu1 }
 0x197   : > { %12733 = vst [vmem:[#allocation89_spill] sm:$0xff] %v8238_v62  ;;  %v8243_v6 = vpop.f32.mrf.mxu0  ;;  %12735 = vst [vmem:[#allocation91_spill] sm:$0xff] %v8247_v0 }
 0x198   : > { %12734 = vst [vmem:[#allocation90_spill] sm:$0xff] %v8243_v6  ;;  %v1424_v58 = vpop.f32.mrf.mxu1  ;;  %v8254_v6 = vld [vmem:[%s12336_s3] ss:$0 sm:$0xff] }
 0x199   : > { %v1425_v12 = vadd.f32 %v6607_v8, %v1424_v58  ;;  %v865_v60 = vpop.f32.mrf.mxu0  ;;  %v1213_v20 = vadd.f32 %v8254_v6, %v8009_v35 }
 0x19a   : > { %v7013_v14 = vpop.f32.mrf.mxu1 }
 0x19b   : > { %v1429_v56 = vcombine.high %v1425_v12, %v1425_v12  ;;  %v1436_v27 = vrot.slane %v1425_v12, %v1435_v4  ;;  %v6898_v10 = vpop.f32.mrf.mxu0  ;;  %v1211_v12 = vadd.f32 %v8254_v6, %v8001_v31 }
 0x19d   : > { %v1443_v25 = vrot.slane %v1429_v56, %v1435_v4  ;;  %v1444_v62 = vcombine.high %v1436_v27, %v1436_v27  ;;  %v8249_v23 = vrot.slane %v1436_v27, %v1435_v4  ;;  %v1271_v56 = vadd.f32 %v8254_v6, %v865_v60  ;;  %v875_v27 = vpop.f32.mrf.mxu0 }
 0x19f   : > { %v1445_v2 = vcombine.high %v1443_v25, %v1443_v25  ;;  %v8256_v52 = vrot.slane %v1443_v25, %v1435_v4  ;;  %v8258_v58 = vrot.slane %v1444_v62, %v1435_v4  ;;  %v8264_v14 = vrot.slane %v8249_v23, %v8247_v0 }
 0x1a0   : > { %v1274_v25 = vadd.f32 %v6898_v10, %v8254_v6  ;;  %v1273_v62 = vadd.f32 %v8254_v6, %v875_v27  ;;  %v1212_v10 = vadd.f32 %v7997_v30, %v8254_v6  ;;  %v1215_v30 = vadd.f32 %v8254_v6, %v8017_v39 }
 0x1a1   : > { %v8267_v8 = vrot.slane %v1445_v2, %v1435_v4  ;;  %v1476_v54 = vcombine.high %v8258_v58, %v8258_v58  ;;  %v1518_v31 = vadd.f32 %v8264_v14, %v1211_v12  ;;  %v8282_v4 = vld [vmem:[%s12339_s6] ss:$0 sm:$0xff]  ;;  %v1520_v2 = vadd.f32 %v8264_v14, %v1213_v20 }
 0x1a2   : > { %v1214_v12 = vadd.f32 %v8005_v33, %v8254_v6  ;;  %v1522_v39 = vadd.f32 %v8264_v14, %v1215_v30 }
 0x1a3   : > { %12736 = vst [vmem:[#allocation92_spill] sm:$0xff] %v8267_v8  ;;  %v8277_v18 = vrot.slane %v1476_v54, %v8247_v0  ;;  %v1646_v60 = vmax.f32 %v1518_v31, 0.0  ;;  %v1216_v31 = vadd.f32 %v8013_v37, %v8254_v6  ;;  %v1648_v8 = vmax.f32 %v1520_v2, 0.0 }
 0x1a4   : > { %v1521_v37 = vadd.f32 %v8264_v14, %v1214_v12  ;;  %v1650_v12 = vmax.f32 %v1522_v39, 0.0 }
 0x1a5   : > { %v8288_v27 = vadd.f32 %v8277_v18, %v1271_v56  ;;  %v8291_v35 = vadd.f32 %v8277_v18, %v1274_v25  ;;  %v8294_v54 = vadd.f32 %v8277_v18, %v1273_v62  ;;  %v1781_v20 = vmul.f32 %v8282_v4, %v1646_v60 }
 0x1a6   : > { %v1218_v56 = vadd.f32 %v8021_v41, %v8254_v6  ;;  %v1217_v25 = vadd.f32 %v8254_v6, %v8025_v43  ;;  %v1519_v62 = vadd.f32 %v8264_v14, %v1212_v10  ;;  %v1783_v33 = vmul.f32 %v8282_v4, %v1648_v8 }
 0x1a7   : > { %12737 = vst [vmem:[#allocation93_spill] sm:$0xff] %v8288_v27  ;;  %12738 = vst [vmem:[#allocation94_spill] sm:$0xff] %v8291_v35  ;;  %v1909_v35 = vsel %vm1354_vm1, %v1781_v20, 0.0  ;;  %v1523_v60 = vadd.f32 %v8264_v14, %v1216_v31  ;;  %v1649_v27 = vmax.f32 %v1521_v37, 0.0  ;;  %v1219_v20 = vadd.f32 %v8254_v6, %v8033_v47 }
 0x1a8   : > { %12739 = vst [vmem:[#allocation95_spill] sm:$0xff] %v8294_v54  ;;  %1910 = vadd.xlane.f32.xlu0 %v1909_v35  ;;  %v1647_v2 = vmax.f32 %v1519_v62, 0.0  ;;  %v1524_v54 = vadd.f32 %v8264_v14, %v1217_v25  ;;  %v1915_v41 = vsel %vm1354_vm1, %v1783_v33, 0.0  ;;  %v1525_v10 = vadd.f32 %v8264_v14, %v1218_v56 }
 0x1a9   : > { %v1651_v43 = vmax.f32 %v1523_v60, 0.0  ;;  %1916 = vadd.xlane.f32.xlu1 %v1915_v41  ;;  %v1220_v35 = vadd.f32 %v8029_v45, %v8254_v6  ;;  %v1784_v31 = vmul.f32 %v8282_v4, %v1649_v27  ;;  %v1785_v25 = vmul.f32 %v8282_v4, %v1650_v12 }
 0x1aa   : > { %v1782_v8 = vmul.f32 %v8282_v4, %v1647_v2  ;;  %v1652_v62 = vmax.f32 %v1524_v54, 0.0  ;;  %v1526_v33 = vadd.f32 %v8264_v14, %v1219_v20  ;;  %v1653_v37 = vmax.f32 %v1525_v10, 0.0 }
 0x1ab   : > { %v1918_v56 = vsel %vm1354_vm1, %v1784_v31, 0.0  ;;  %v1786_v47 = vmul.f32 %v8282_v4, %v1651_v43  ;;  %v1527_v60 = vadd.f32 %v8264_v14, %v1220_v35  ;;  %v1221_v45 = vadd.f32 %v8254_v6, %v8041_v51 }
 0x1ac   : > { %v1912_v30 = vsel %vm1354_vm1, %v1782_v8, 0.0  ;;  %v1222_v27 = vadd.f32 %v8037_v49, %v8254_v6  ;;  %v1921_v2 = vsel %vm1354_vm1, %v1785_v25, 0.0  ;;  %v1787_v54 = vmul.f32 %v8282_v4, %v1652_v62 }
 0x1ad   : > { %1913 = vadd.xlane.f32.xlu0 %v1912_v30  ;;  %1919 = vadd.xlane.f32.xlu1 %v1918_v56  ;;  %v1654_v39 = vmax.f32 %v1526_v33, 0.0  ;;  %v1528_v41 = vadd.f32 %v8264_v14, %v1221_v45  ;;  %v1924_v20 = vsel %vm1354_vm1, %v1786_v47, 0.0  ;;  %v1788_v43 = vmul.f32 %v8282_v4, %v1653_v37 }
 0x1ae   : > { %v1655_v10 = vmax.f32 %v1527_v60, 0.0  ;;  %v1529_v8 = vadd.f32 %v8264_v14, %v1222_v27  ;;  %v1223_v51 = vadd.f32 %v8254_v6, %v8049_v55  ;;  %v1224_v49 = vadd.f32 %v8045_v53, %v8254_v6 }
 0x1af   : > { %v1927_v12 = vsel %vm1354_vm1, %v1787_v54, 0.0  ;;  %v1789_v35 = vmul.f32 %v8282_v4, %v1654_v39  ;;  %v1656_v31 = vmax.f32 %v1528_v41, 0.0  ;;  %v1930_v25 = vsel %vm1354_vm1, %v1788_v43, 0.0 }
 0x1b0   : > { %v1530_v30 = vadd.f32 %v8264_v14, %v1223_v51  ;;  %v1790_v62 = vmul.f32 %v8282_v4, %v1655_v10  ;;  %v1657_v33 = vmax.f32 %v1529_v8, 0.0  ;;  %v1531_v56 = vadd.f32 %v8264_v14, %v1224_v49 }
 0x1b1   : > { %1922 = vadd.xlane.f32.xlu0 %v1921_v2  ;;  %1925 = vadd.xlane.f32.xlu1 %v1924_v20  ;;  %v1225_v55 = vadd.f32 %v8254_v6, %v8057_v59  ;;  %v1226_v53 = vadd.f32 %v8053_v57, %v8254_v6  ;;  %v8354_v47 = vrot.slane %v8258_v58, %v8247_v0  ;;  %v1933_v37 = vsel %vm1354_vm1, %v1789_v35, 0.0 }
 0x1b2   : > { %v1791_v60 = vmul.f32 %v8282_v4, %v1656_v31  ;;  %v1658_v45 = vmax.f32 %v1530_v30, 0.0  ;;  %v1936_v2 = vsel %vm1354_vm1, %v1790_v62, 0.0  ;;  %v1792_v59 = vmul.f32 %v8282_v4, %v1657_v33 }
 0x1b3   : > { %v1532_v27 = vadd.f32 %v8264_v14, %v1225_v55  ;;  %v1659_v54 = vmax.f32 %v1531_v56, 0.0  ;;  %v1533_v39 = vadd.f32 %v8264_v14, %v1226_v53  ;;  %v1227_v57 = vadd.f32 %v8254_v6, %v8065_v63 }
 0x1b4   : > { %v1228_v58 = vadd.f32 %v8061_v61, %v8254_v6  ;;  %v1230_v41 = vadd.f32 %v8069_v1, %v8254_v6  ;;  %v1229_v20 = vadd.f32 %v8254_v6, %v8073_v3  ;;  %v1939_v43 = vsel %vm1354_vm1, %v1791_v60, 0.0 }
 0x1b5   : > { %1928 = vadd.xlane.f32.xlu0 %v1927_v12  ;;  %1931 = vadd.xlane.f32.xlu1 %v1930_v25  ;;  %v1793_v10 = vmul.f32 %v8282_v4, %v1658_v45  ;;  %v1660_v8 = vmax.f32 %v1532_v27, 0.0  ;;  %v1534_v14 = vadd.f32 %v8354_v47, %v1227_v57  ;;  %v1942_v51 = vsel %vm1354_vm1, %v1792_v59, 0.0 }
 0x1b6   : > { %v1794_v63 = vmul.f32 %v8282_v4, %v1659_v54  ;;  %v1661_v49 = vmax.f32 %v1533_v39, 0.0  ;;  %v1535_v61 = vadd.f32 %v8354_v47, %v1228_v58  ;;  %v1232_v1 = vadd.f32 %v8077_v5, %v8254_v6 }
 0x1b7   : > { %v1231_v3 = vadd.f32 %v8254_v6, %v8081_v7  ;;  %v1945_v12 = vsel %vm1354_vm1, %v1793_v10, 0.0  ;;  %v1795_v35 = vmul.f32 %v8282_v4, %v1660_v8  ;;  %v1662_v31 = vmax.f32 %v1534_v14, 0.0 }
 0x1b8   : > { %v1536_v30 = vadd.f32 %v8354_v47, %v1229_v20  ;;  %v1948_v25 = vsel %vm1354_vm1, %v1794_v63, 0.0  ;;  %v1796_v62 = vmul.f32 %v8282_v4, %v1661_v49  ;;  %v1663_v33 = vmax.f32 %v1535_v61, 0.0 }
 0x1b9   : > { %1934 = vadd.xlane.f32.xlu0 %v1933_v37  ;;  %1937 = vadd.xlane.f32.xlu1 %v1936_v2  ;;  %v1537_v56 = vadd.f32 %v8354_v47, %v1230_v41  ;;  %v1234_v5 = vadd.f32 %v8085_v9, %v8254_v6  ;;  %v1233_v7 = vadd.f32 %v8254_v6, %v8089_v11  ;;  %v1951_v55 = vsel %vm1354_vm1, %v1795_v35, 0.0 }
 0x1ba   : > { %v1797_v53 = vmul.f32 %v8282_v4, %v1662_v31  ;;  %v1664_v37 = vmax.f32 %v1536_v30, 0.0  ;;  %v1538_v60 = vadd.f32 %v8354_v47, %v1231_v3  ;;  %v1954_v45 = vsel %vm1354_vm1, %v1796_v62, 0.0 }
 0x1bb   : > { %v1798_v27 = vmul.f32 %v8282_v4, %v1663_v33  ;;  %v1665_v2 = vmax.f32 %v1537_v56, 0.0  ;;  %v1539_v59 = vadd.f32 %v8354_v47, %v1232_v1  ;;  %v1235_v9 = vadd.f32 %v8254_v6, %v8097_v15 }
 0x1bc   : > { %v1236_v11 = vadd.f32 %v8093_v13, %v8254_v6  ;;  %v1957_v54 = vsel %vm1354_vm1, %v1797_v53, 0.0  ;;  %v1799_v39 = vmul.f32 %v8282_v4, %v1664_v37  ;;  %v1666_v57 = vmax.f32 %v1538_v60, 0.0  ;;  %v12740_v60 = vld [vmem:[#allocation33_spill] sm:$0xff] }
 0x1bd   : > { %1940 = vadd.xlane.f32.xlu0 %v1939_v43  ;;  %1943 = vadd.xlane.f32.xlu1 %v1942_v51  ;;  %v1540_v58 = vadd.f32 %v8354_v47, %v1233_v7  ;;  %v1960_v41 = vsel %vm1354_vm1, %v1798_v27, 0.0  ;;  %v1800_v20 = vmul.f32 %v8282_v4, %v1665_v2  ;;  %v1667_v43 = vmax.f32 %v1539_v59, 0.0  ;;  %v12741_v27 = vld [vmem:[#allocation35_spill] sm:$0xff] }
 0x1be   : > { %v1541_v10 = vadd.f32 %v8354_v47, %v1234_v5  ;;  %v1278_v15 = vadd.f32 %v7993_v28, %v8254_v6  ;;  %v1277_v13 = vadd.f32 %v8254_v6, %v7995_v29  ;;  %v1280_v8 = vadd.f32 %v7999_v21, %v8254_v6 }
 0x1bf   : > { %v1542_v14 = vadd.f32 %v8354_v47, %v1235_v9  ;;  %v1279_v51 = vadd.f32 %v8254_v6, %v8003_v32  ;;  %v1282_v63 = vadd.f32 %v8007_v34, %v8254_v6  ;;  %v1281_v49 = vadd.f32 %v8254_v6, %v8011_v36 }
 0x1c0   : > { %v1237_v28 = vadd.f32 %v8254_v6, %v8105_v19  ;;  %v1963_v29 = vsel %vm1354_vm1, %v1799_v39, 0.0  ;;  %v1801_v61 = vmul.f32 %v8282_v4, %v1666_v57  ;;  %v1668_v21 = vmax.f32 %v1540_v58, 0.0 }
 0x1c1   : > { %1946 = vadd.xlane.f32.xlu0 %v1945_v12  ;;  %1949 = vadd.xlane.f32.xlu1 %v1948_v25  ;;  %v1543_v1 = vadd.f32 %v8354_v47, %v1236_v11  ;;  %v1238_v3 = vadd.f32 %v8101_v17, %v8254_v6  ;;  %v1966_v32 = vsel %vm1354_vm1, %v1800_v20, 0.0  ;;  %v1802_v34 = vmul.f32 %v8282_v4, %v1667_v43 }
 0x1c2   : > { %v1669_v12 = vmax.f32 %v1541_v10, 0.0  ;;  %v1284_v36 = vadd.f32 %v8015_v38, %v8254_v6  ;;  %v1283_v19 = vadd.f32 %v8254_v6, %v8019_v40  ;;  %v8434_v35 = vadd.f32 %v8023_v42, %v8254_v6 }
 0x1c3   : > { %v1670_v31 = vmax.f32 %v1542_v14, 0.0  ;;  %v8438_v17 = vadd.f32 %v8254_v6, %v8027_v44  ;;  %v8442_v30 = vadd.f32 %v8031_v46, %v8254_v6  ;;  %v1240_v38 = vadd.f32 %v8109_v22, %v8254_v6 }
 0x1c4   : > { %v1239_v40 = vadd.f32 %v8254_v6, %v8113_v24  ;;  %v1969_v25 = vsel %vm1354_vm1, %v1801_v61, 0.0  ;;  %v1803_v42 = vmul.f32 %v8282_v4, %v1668_v21  ;;  %v1671_v62 = vmax.f32 %v1543_v1, 0.0  ;;  %v12742_v61 = vld [vmem:[#allocation12_spill] sm:$0xff] }
 0x1c5   : > { %1952 = vadd.xlane.f32.xlu0 %v1951_v55  ;;  %1955 = vadd.xlane.f32.xlu1 %v1954_v45  ;;  %v1544_v33 = vadd.f32 %v8354_v47, %v1237_v28  ;;  %v8453_v44 = vrot.slane %v8256_v52, %v8247_v0  ;;  %v1972_v46 = vsel %vm1354_vm1, %v1802_v34, 0.0  ;;  %v1804_v56 = vmul.f32 %v8282_v4, %v1669_v12  ;;  %v12744_v12 = vld [vmem:[#allocation39_spill] sm:$0xff] }
 0x1c6   : > { %v1545_v22 = vadd.f32 %v8354_v47, %v1238_v3  ;;  %v1287_v24 = vadd.f32 %v8254_v6, %v8035_v48  ;;  %v1241_v5 = vadd.f32 %v8254_v6, %v8121_v16  ;;  %v1474_v7 = vcombine.high %v8249_v23, %v8249_v23 }
 0x1c7   : > { %v1805_v55 = vmul.f32 %v8282_v4, %v1670_v31  ;;  %v1290_v53 = vadd.f32 %v8039_v50, %v8254_v6  ;;  %v1242_v37 = vadd.f32 %v8117_v26, %v8254_v6  ;;  %v1244_v45 = vadd.f32 %v12740_v60, %v8254_v6 }
 0x1c8   : > { %v1546_v48 = vadd.f32 %v8354_v47, %v1239_v40  ;;  %v1243_v16 = vadd.f32 %v8254_v6, %v12741_v27  ;;  %v1975_v2 = vsel %vm1354_vm1, %v1803_v42, 0.0  ;;  %v1806_v23 = vmul.f32 %v8282_v4, %v1671_v62  ;;  %v12748_v62 = vld [vmem:[#allocation67_spill] sm:$0xff] }
 0x1c9   : > { %1958 = vadd.xlane.f32.xlu0 %v1957_v54  ;;  %1961 = vadd.xlane.f32.xlu1 %v1960_v41  ;;  %v1672_v59 = vmax.f32 %v1544_v33, 0.0  ;;  %v1978_v9 = vsel %vm1354_vm1, %v1804_v56, 0.0  ;;  %v1673_v50 = vmax.f32 %v1545_v22, 0.0  ;;  %v1547_v11 = vadd.f32 %v8354_v47, %v1240_v38  ;;  %v12746_v38 = vld [vmem:[#allocation43_spill] sm:$0xff] }
 0x1ca   : > { %v8479_v26 = vadd.f32 %v8453_v44, %v1278_v15  ;;  %v8482_v54 = vrot.slane %v1474_v7, %v8247_v0  ;;  %v1981_v39 = vsel %vm1354_vm1, %v1805_v55, 0.0  ;;  %v1548_v57 = vadd.f32 %v8354_v47, %v1241_v5 }
 0x1cb   : > { %v8487_v58 = vadd.f32 %v8453_v44, %v1277_v13  ;;  %v1674_v41 = vmax.f32 %v1546_v48, 0.0  ;;  %v8490_v20 = vadd.f32 %v8453_v44, %v1280_v8  ;;  %v8493_v43 = vadd.f32 %v8453_v44, %v1279_v51 }
 0x1cc   : > { %v8496_v10 = vadd.f32 %v8453_v44, %v1282_v63  ;;  %v1807_v15 = vmul.f32 %v8282_v4, %v1672_v59  ;;  %v8500_v14 = vadd.f32 %v8453_v44, %v1281_v49  ;;  %v8503_v28 = vadd.f32 %v8453_v44, %v1284_v36 }
 0x1cd   : > { %1964 = vadd.xlane.f32.xlu0 %v1963_v29  ;;  %1967 = vadd.xlane.f32.xlu1 %v1966_v32  ;;  %v8506_v13 = vadd.f32 %v8453_v44, %v1283_v19  ;;  %v1984_v8 = vsel %vm1354_vm1, %v1806_v23, 0.0  ;;  %v1808_v51 = vmul.f32 %v8282_v4, %v1673_v50  ;;  %v1675_v29 = vmax.f32 %v1547_v11, 0.0  ;;  %v12743_v32 = vld [vmem:[#allocation37_spill] sm:$0xff] }
 0x1ce   : > { %v1549_v63 = vadd.f32 %v8354_v47, %v1242_v37  ;;  %v1289_v21 = vadd.f32 %v8254_v6, %v12742_v61  ;;  %v1676_v49 = vmax.f32 %v1548_v57, 0.0  ;;  %v1551_v1 = vadd.f32 %v8482_v54, %v1244_v45  ;;  %v12745_v19 = vld [vmem:[#allocation41_spill] sm:$0xff]  ;;  %v12751_v57 = vld [vmem:[#allocation47_spill] sm:$0xff] }
 0x1cf   : > { %v1550_v3 = vadd.f32 %v8482_v54, %v1243_v16  ;;  %v1246_v34 = vadd.f32 %v12743_v32, %v8254_v6  ;;  %v1245_v36 = vadd.f32 %v8254_v6, %v12744_v12  ;;  %v1248_v31 = vadd.f32 %v12745_v19, %v8254_v6  ;;  %v12750_v11 = vld [vmem:[#allocation45_spill] sm:$0xff] }
 0x1d0   : > { %v1809_v47 = vmul.f32 %v8282_v4, %v1674_v41  ;;  %v1247_v40 = vadd.f32 %v8254_v6, %v12746_v38  ;;  %v1259_v33 = vadd.f32 %v8254_v6, %v12748_v62  ;;  %v1990_v56 = vsel %vm1354_vm1, %v1808_v51, 0.0  ;;  %v12753_v51 = vld [vmem:[#allocation73_spill] sm:$0xff] }
 0x1d1   : > { %1970 = vadd.xlane.f32.xlu0 %v1969_v25  ;;  %1973 = vadd.xlane.f32.xlu1 %v1972_v46  ;;  %v12747_v25 = vld [vmem:[#allocation65_spill] sm:$0xff]  ;;  %v1987_v46 = vsel %vm1354_vm1, %v1807_v15, 0.0  ;;  %v1810_v22 = vmul.f32 %v8282_v4, %v1675_v29  ;;  %v1677_v5 = vmax.f32 %v1549_v63, 0.0  ;;  %v8533_v7 = vadd.f32 %v8453_v44, %v8434_v35  ;;  %v12752_v15 = vld [vmem:[#allocation71_spill] sm:$0xff] }
 0x1d2   : > { %v1260_v42 = vadd.f32 %v12747_v25, %v8254_v6  ;;  %v1811_v55 = vmul.f32 %v8282_v4, %v1676_v49  ;;  %v1679_v37 = vmax.f32 %v1551_v1, 0.0  ;;  %v1678_v60 = vmax.f32 %v1550_v3, 0.0  ;;  %v12754_v63 = vld [vmem:[#allocation75_spill] sm:$0xff]  ;;  %v12757_v62 = vld [vmem:[#allocation49_spill] sm:$0xff] }
 0x1d3   : > { %v8538_v45 = vadd.f32 %v8453_v44, %v8438_v17  ;;  %v1993_v48 = vsel %vm1354_vm1, %v1809_v47, 0.0  ;;  %v8543_v27 = vadd.f32 %v8453_v44, %v8442_v30  ;;  %v8546_v16 = vadd.f32 %v8453_v44, %v1287_v24  ;;  %v12749_v30 = vld [vmem:[#allocation69_spill] sm:$0xff]  ;;  %v12756_v1 = vld [vmem:[#allocation79_spill] sm:$0xff] }
 0x1d4   : > { %v8549_v35 = vadd.f32 %v8453_v44, %v1290_v53  ;;  %v8553_v23 = vadd.f32 %v8453_v44, %v1289_v21  ;;  %v8556_v17 = vadd.f32 %v8277_v18, %v1260_v42  ;;  %v8559_v59 = vadd.f32 %v8277_v18, %v1259_v33  ;;  %v12755_v21 = vld [vmem:[#allocation77_spill] sm:$0xff] }
 0x1d5   : > { %1976 = vadd.xlane.f32.xlu0 %v1975_v2  ;;  %1979 = vadd.xlane.f32.xlu1 %v1978_v9  ;;  %v1552_v2 = vadd.f32 %v8482_v54, %v1245_v36  ;;  %v1262_v9 = vadd.f32 %v12749_v30, %v8254_v6  ;;  %v1996_v24 = vsel %vm1354_vm1, %v1810_v22, 0.0  ;;  %v1812_v53 = vmul.f32 %v8282_v4, %v1677_v5 }
 0x1d6   : > { %v1553_v50 = vadd.f32 %v8482_v54, %v1246_v34  ;;  %v1249_v41 = vadd.f32 %v8254_v6, %v12751_v57  ;;  %v1264_v29 = vadd.f32 %v12753_v51, %v8254_v6  ;;  %v1263_v61 = vadd.f32 %v8254_v6, %v12754_v63  ;;  %v12760_v57 = vld [vmem:[#allocation81_spill] sm:$0xff]  ;;  %v12762_v51 = vld [vmem:[#allocation83_spill] sm:$0xff] }
 0x1d7   : > { %v1266_v49 = vadd.f32 %v12755_v21, %v8254_v6  ;;  %v1265_v3 = vadd.f32 %v8254_v6, %v12756_v1  ;;  %v1813_v32 = vmul.f32 %v8282_v4, %v1678_v60  ;;  %v1999_v34 = vsel %vm1354_vm1, %v1811_v55, 0.0  ;;  %v12763_v21 = vld [vmem:[#allocation85_spill] sm:$0xff] }
 0x1d8   : > { %v1814_v12 = vmul.f32 %v8282_v4, %v1679_v37  ;;  %v1680_v36 = vmax.f32 %v1552_v2, 0.0  ;;  %v1554_v19 = vadd.f32 %v8482_v54, %v1247_v40  ;;  %v2002_v47 = vsel %vm1354_vm1, %v1812_v53, 0.0 }
 0x1d9   : > { %1982 = vadd.xlane.f32.xlu0 %v1981_v39  ;;  %1985 = vadd.xlane.f32.xlu1 %v1984_v8  ;;  %v1250_v39 = vadd.f32 %v12750_v11, %v8254_v6  ;;  %v1261_v8 = vadd.f32 %v8254_v6, %v12752_v15  ;;  %v1681_v38 = vmax.f32 %v1553_v50, 0.0  ;;  %v1555_v25 = vadd.f32 %v8482_v54, %v1248_v31  ;;  %v12759_v50 = vld [vmem:[#allocation53_spill] sm:$0xff]  ;;  %v12761_v15 = vld [vmem:[#allocation55_spill] sm:$0xff] }
 0x1da   : > { %v8587_v42 = vadd.f32 %v8277_v18, %v1262_v9  ;;  %v1252_v33 = vadd.f32 %v12757_v62, %v8254_v6  ;;  %v2005_v40 = vsel %vm1354_vm1, %v1813_v32, 0.0  ;;  %v1556_v5 = vadd.f32 %v8482_v54, %v1249_v41 }
 0x1db   : > { %v8594_v22 = vadd.f32 %v8277_v18, %v1261_v8  ;;  %v8599_v55 = vadd.f32 %v8277_v18, %v1264_v29  ;;  %v8602_v31 = vadd.f32 %v8277_v18, %v1263_v61  ;;  %v1815_v37 = vmul.f32 %v8282_v4, %v1680_v36 }
 0x1dc   : > { %v1682_v60 = vmax.f32 %v1554_v19, 0.0  ;;  %v8609_v2 = vadd.f32 %v8277_v18, %v1265_v3  ;;  %v2008_v30 = vsel %vm1354_vm1, %v1814_v12, 0.0  ;;  %v1816_v9 = vmul.f32 %v8282_v4, %v1681_v38 }
 0x1dd   : > { %1988 = vadd.xlane.f32.xlu0 %v1987_v46  ;;  %1991 = vadd.xlane.f32.xlu1 %v1990_v56  ;;  %v12758_v46 = vld [vmem:[#allocation51_spill] sm:$0xff]  ;;  %v1557_v53 = vadd.f32 %v8482_v54, %v1250_v39  ;;  %v1254_v11 = vadd.f32 %v12759_v50, %v8254_v6  ;;  %v1268_v41 = vadd.f32 %v12760_v57, %v8254_v6  ;;  %v1684_v63 = vmax.f32 %v1556_v5, 0.0  ;;  %v12764_v39 = vld [vmem:[#allocation88_spill] sm:$0xff] }
 0x1de   : > { %v1251_v56 = vadd.f32 %v8254_v6, %v12758_v46  ;;  %v1253_v8 = vadd.f32 %v8254_v6, %v12761_v15  ;;  %v1267_v29 = vadd.f32 %v8254_v6, %v12762_v51  ;;  %v1269_v1 = vadd.f32 %v8254_v6, %v12764_v39  ;;  %v12768_v51 = vld [vmem:[#allocation61_spill] sm:$0xff] }
 0x1df   : > { %v2011_v3 = vsel %vm1354_vm1, %v1815_v37, 0.0  ;;  %v1817_v32 = vmul.f32 %v8282_v4, %v1682_v60  ;;  %v1685_v36 = vmax.f32 %v1557_v53, 0.0  ;;  %v1559_v19 = vadd.f32 %v8482_v54, %v1252_v33  ;;  %v6901_v33 = vpop.f32.mrf.mxu0 }
 0x1e0   : > { %v1558_v61 = vadd.f32 %v8482_v54, %v1251_v56  ;;  %v8637_v46 = vadd.f32 %v8277_v18, %v1268_v41  ;;  %v12767_v56 = vld [vmem:[#allocation90_spill] sm:$0xff]  ;;  %v1819_v5 = vmul.f32 %v8282_v4, %v1684_v63  ;;  %v8643_v60 = vadd.f32 %v8277_v18, %v1267_v29  ;;  %v12769_v63 = vld [vmem:[#allocation63_spill] sm:$0xff] }
 0x1e1   : > { %1994 = vadd.xlane.f32.xlu0 %v1993_v48  ;;  %1997 = vadd.xlane.f32.xlu1 %v1996_v24  ;;  %v8606_v48 = vadd.f32 %v8277_v18, %v1266_v49  ;;  %v1683_v24 = vmax.f32 %v1555_v25, 0.0  ;;  %v1270_v49 = vadd.f32 %v12763_v21, %v8254_v6  ;;  %v12766_v25 = vld [vmem:[#allocation59_spill] sm:$0xff]  ;;  %v8651_v53 = vadd.f32 %v8277_v18, %v1269_v1  ;;  %v885_v21 = vpop.f32.mrf.mxu0 }
 0x1e2   : > { %v1255_v62 = vadd.f32 %v8254_v6, %v12766_v25  ;;  %v1686_v37 = vmax.f32 %v1558_v61, 0.0  ;;  %v1820_v57 = vmul.f32 %v8282_v4, %v1685_v36  ;;  %v1687_v41 = vmax.f32 %v1559_v19, 0.0  ;;  %v12770_v36 = vld [vmem:[#allocation13_spill] sm:$0xff] }
 0x1e3   : > { %v1818_v12 = vmul.f32 %v8282_v4, %v1683_v24  ;;  %v8648_v24 = vadd.f32 %v8277_v18, %v1270_v49  ;;  %v1561_v15 = vadd.f32 %v8482_v54, %v1254_v11  ;;  %v1258_v29 = vadd.f32 %v12768_v51, %v8254_v6  ;;  %v12774_v51 = vld [vmem:[#allocation16_spill] sm:$0xff] }
 0x1e4   : > { %v2023_v61 = vsel %vm1354_vm1, %v1819_v5, 0.0  ;;  %v1821_v49 = vmul.f32 %v8282_v4, %v1686_v37  ;;  %v1562_v1 = vadd.f32 %v8482_v54, %v1255_v62  ;;  %v2026_v11 = vsel %vm1354_vm1, %v1820_v57, 0.0  ;;  %v12772_v62 = vld [vmem:[#allocation92_spill] sm:$0xff] }
 0x1e5   : > { %2000 = vadd.xlane.f32.xlu0 %v1999_v34  ;;  %2003 = vadd.xlane.f32.xlu1 %v2002_v47  ;;  %v2014_v34 = vsel %vm1354_vm1, %v1816_v9, 0.0  ;;  %v12765_v47 = vld [vmem:[#allocation57_spill] sm:$0xff]  ;;  %v1560_v9 = vadd.f32 %v8482_v54, %v1253_v8  ;;  %v2020_v50 = vsel %vm1354_vm1, %v1818_v12, 0.0  ;;  %v1257_v8 = vadd.f32 %v8254_v6, %v12769_v63 }
 0x1e6   : > { %v1256_v38 = vadd.f32 %v12765_v47, %v8254_v6  ;;  %v1292_v19 = vadd.f32 %v12770_v36, %v8254_v6  ;;  %v12771_v47 = vld [vmem:[#allocation14_spill] sm:$0xff]  ;;  %v2029_v5 = vsel %vm1354_vm1, %v1821_v49, 0.0  ;;  %v1293_v63 = vadd.f32 %v8254_v6, %v12774_v51 }
 0x1e7   : > { %v1688_v39 = vmax.f32 %v1560_v9, 0.0  ;;  %v1291_v25 = vadd.f32 %v8254_v6, %v12771_v47 }
 0x1e8   : > { %v1563_v12 = vadd.f32 %v8482_v54, %v1256_v38  ;;  %v1690_v38 = vmax.f32 %v1562_v1, 0.0 }
 0x1e9   : > { %2006 = vadd.xlane.f32.xlu0 %v2005_v40  ;;  %2009 = vadd.xlane.f32.xlu1 %v2008_v30  ;;  %v1272_v40 = vadd.f32 %v12767_v56, %v8254_v6  ;;  %v2017_v30 = vsel %vm1354_vm1, %v1817_v32, 0.0  ;;  %v1822_v32 = vmul.f32 %v8282_v4, %v1687_v41  ;;  %v8675_v56 = vrot.slane %v12772_v62, %v8247_v0 }
 0x1ea   : > { %v1823_v37 = vmul.f32 %v8282_v4, %v1688_v39  ;;  %v1691_v57 = vmax.f32 %v1563_v12, 0.0  ;;  %v1565_v41 = vadd.f32 %v8482_v54, %v1258_v29  ;;  %v12775_v12 = vld [vmem:[#allocation17_spill] sm:$0xff] }
 0x1eb   : > { %v2032_v9 = vsel %vm1354_vm1, %v1822_v32, 0.0  ;;  %v8695_v49 = vadd.f32 %v8675_v56, %v1291_v25  ;;  %v1296_v36 = vadd.f32 %v12775_v12, %v8254_v6  ;;  %v12777_v25 = vld [vmem:[#allocation19_spill] sm:$0xff] }
 0x1ec   : > { %v2035_v39 = vsel %vm1354_vm1, %v1823_v37, 0.0  ;;  %v1826_v32 = vmul.f32 %v8282_v4, %v1691_v57  ;;  %v12779_v37 = vld [vmem:[#allocation21_spill] sm:$0xff] }
 0x1ed   : > { %2012 = vadd.xlane.f32.xlu0 %v2011_v3  ;;  %2015 = vadd.xlane.f32.xlu1 %v2014_v34  ;;  %v8664_v3 = vadd.f32 %v8277_v18, %v1272_v40  ;;  %v1689_v34 = vmax.f32 %v1561_v15, 0.0  ;;  %v1276_v18 = vadd.f32 %v6901_v33, %v8254_v6  ;;  %v1275_v40 = vadd.f32 %v8254_v6, %v885_v21  ;;  %v12773_v15 = vld [vmem:[#allocation15_spill] sm:$0xff] }
 0x1ee   : > { %v1294_v33 = vadd.f32 %v12773_v15, %v8254_v6  ;;  %v12781_v15 = vld [vmem:[#allocation23_spill] sm:$0xff] }
 0x1ef   : > { %v1582_v21 = vadd.f32 %v8453_v44, %v1275_v40  ;;  %v12778_v40 = vld [vmem:[#allocation20_spill] sm:$0xff] }
 0x1f0   : > { %v8700_v1 = vadd.f32 %v8675_v56, %v1294_v33  ;;  %v1302_v33 = vadd.f32 %v12781_v15, %v8254_v6 }
 0x1f1   : > { %2018 = vadd.xlane.f32.xlu0 %v2017_v30  ;;  %2021 = vadd.xlane.f32.xlu1 %v2020_v50  ;;  %v1564_v30 = vadd.f32 %v8482_v54, %v1257_v8  ;;  %v1824_v50 = vmul.f32 %v8282_v4, %v1689_v34  ;;  %v8692_v8 = vadd.f32 %v8675_v56, %v1292_v19  ;;  %v12776_v19 = vld [vmem:[#allocation18_spill] sm:$0xff] }
 0x1f2   : > { %v1825_v54 = vmul.f32 %v8282_v4, %v1690_v38  ;;  %v8705_v34 = vadd.f32 %v8675_v56, %v1293_v63  ;;  %v1295_v47 = vadd.f32 %v8254_v6, %v12776_v19  ;;  %v1300_v38 = vadd.f32 %v12779_v37, %v8254_v6 }
 0x1f3   : > { %v1692_v29 = vmax.f32 %v1564_v30, 0.0  ;;  %v12780_v30 = vld [vmem:[#allocation22_spill] sm:$0xff]  ;;  %v2044_v63 = vsel %vm1354_vm1, %v1826_v32, 0.0  ;;  %v8728_v19 = vadd.f32 %v8675_v56, %v1296_v36 }
 0x1f4   : > { %v2041_v57 = vsel %vm1354_vm1, %v1825_v54, 0.0  ;;  %v8742_v32 = vadd.f32 %v8675_v56, %v1300_v38  ;;  %v12783_v38 = vld [vmem:[#allocation25_spill] sm:$0xff] }
 0x1f5   : > { %2024 = vadd.xlane.f32.xlu0 %v2023_v61  ;;  %2027 = vadd.xlane.f32.xlu1 %v2026_v11  ;;  %v1583_v61 = vadd.f32 %v8453_v44, %v1276_v18  ;;  %v2038_v11 = vsel %vm1354_vm1, %v1824_v50, 0.0  ;;  %v1693_v44 = vmax.f32 %v1565_v41, 0.0  ;;  %v1298_v18 = vadd.f32 %v12777_v25, %v8254_v6 }
 0x1f6   : > { %v1710_v50 = vmax.f32 %v1582_v21, 0.0  ;;  %v1827_v41 = vmul.f32 %v8282_v4, %v1692_v29  ;;  %v8731_v21 = vadd.f32 %v8675_v56, %v1295_v47  ;;  %v1712_v25 = vmax.f32 %v8487_v58, 0.0 }
 0x1f7   : > { %v1711_v51 = vmax.f32 %v1583_v61, 0.0  ;;  %v8734_v54 = vadd.f32 %v8675_v56, %v1298_v18  ;;  %v1475_v61 = vcombine.high %v8256_v52, %v8256_v52  ;;  %v8751_v18 = vadd.f32 %v8675_v56, %v1302_v33 }
 0x1f8   : > { %v2047_v36 = vsel %vm1354_vm1, %v1827_v41, 0.0  ;;  %v1845_v47 = vmul.f32 %v8282_v4, %v1710_v50  ;;  %v12785_v50 = vld [vmem:[#allocation27_spill] sm:$0xff]  ;;  %v12786_v41 = vld [vmem:[#allocation28_spill] sm:$0xff] }
 0x1f9   : > { %2030 = vadd.xlane.f32.xlu0 %v2029_v5  ;;  %2033 = vadd.xlane.f32.xlu1 %v2032_v9  ;;  %v1297_v5 = vadd.f32 %v8254_v6, %v12778_v40  ;;  %v1299_v9 = vadd.f32 %v8254_v6, %v12780_v30  ;;  %v1846_v40 = vmul.f32 %v8282_v4, %v1711_v51 }
 0x1fa   : > { %v1304_v30 = vadd.f32 %v12783_v38, %v8254_v6  ;;  %v1305_v15 = vadd.f32 %v8254_v6, %v12786_v41  ;;  %v8768_v33 = vrot.slane %v1475_v61, %v8247_v0  ;;  %v1715_v61 = vmax.f32 %v8490_v20, 0.0  ;;  %v12790_v41 = vld [vmem:[#allocation32_spill] sm:$0xff] }
 0x1fb   : > { %v8739_v29 = vadd.f32 %v8675_v56, %v1297_v5  ;;  %v1713_v5 = vmax.f32 %v8479_v26, 0.0  ;;  %v12787_v26 = vld [vmem:[#allocation29_spill] sm:$0xff] }
 0x1fc   : > { %v1308_v51 = vadd.f32 %v12787_v26, %v8254_v6 }
 0x1fd   : > { %2036 = vadd.xlane.f32.xlu0 %v2035_v39  ;;  %2039 = vadd.xlane.f32.xlu1 %v2038_v11  ;;  %v1828_v39 = vmul.f32 %v8282_v4, %v1693_v44  ;;  %v12782_v11 = vld [vmem:[#allocation24_spill] sm:$0xff]  ;;  %v8745_v44 = vadd.f32 %v8675_v56, %v1299_v9  ;;  %v12784_v9 = vld [vmem:[#allocation26_spill] sm:$0xff]  ;;  %v1848_v38 = vmul.f32 %v8282_v4, %v1713_v5 }
 0x1fe   : > { %v1301_v12 = vadd.f32 %v8254_v6, %v12782_v11  ;;  %v1303_v58 = vadd.f32 %v8254_v6, %v12784_v9  ;;  %v1714_v11 = vmax.f32 %v8493_v43, 0.0  ;;  %v12789_v9 = vld [vmem:[#allocation31_spill] sm:$0xff]  ;;  %v8794_v5 = vadd.f32 %v8675_v56, %v1305_v15 }
 0x1ff   : > { %v2050_v52 = vsel %vm1354_vm1, %v1828_v39, 0.0  ;;  %v1847_v39 = vmul.f32 %v8282_v4, %v1712_v25  ;;  %v8797_v20 = vadd.f32 %v8768_v33, %v1308_v51  ;;  %v1717_v15 = vmax.f32 %v8496_v10, 0.0  ;;  %v12797_v10 = vld [vmem:[#allocation42_spill] sm:$0xff] }
 0x200   : > { %v8757_v37 = vadd.f32 %v8675_v56, %v1301_v12  ;;  %v12788_v12 = vld [vmem:[#allocation30_spill] sm:$0xff]  ;;  %v8786_v25 = vadd.f32 %v8675_v56, %v1303_v58  ;;  %v1849_v58 = vmul.f32 %v8282_v4, %v1714_v11  ;;  %v12794_v11 = vld [vmem:[#allocation36_spill] sm:$0xff] }
 0x201   : > { %2042 = vadd.xlane.f32.xlu0 %v2041_v57  ;;  %2045 = vadd.xlane.f32.xlu1 %v2044_v63  ;;  %v1306_v57 = vadd.f32 %v12785_v50, %v8254_v6  ;;  %v2101_v63 = vsel %vm1354_vm1, %v1845_v47, 0.0  ;;  %v1310_v50 = vadd.f32 %v12789_v9, %v8254_v6  ;;  %v8783_v47 = vadd.f32 %v8675_v56, %v1304_v30 }
 0x202   : > { %v2107_v30 = vsel %vm1354_vm1, %v1847_v39, 0.0 }
 0x203   : > { %v8789_v43 = vadd.f32 %v8675_v56, %v1306_v57  ;;  %v8806_v57 = vadd.f32 %v8768_v33, %v1310_v50  ;;  %v1850_v56 = vmul.f32 %v8282_v4, %v1715_v61  ;;  %v12796_v50 = vld [vmem:[#allocation40_spill] sm:$0xff]  ;;  %v1718_v61 = vmax.f32 %v8506_v13, 0.0 }
 0x204   : > { %v1719_v13 = vmax.f32 %v8503_v28, 0.0 }
 0x205   : > { %2048 = vadd.xlane.f32.xlu0 %v2047_v36  ;;  %2051 = vadd.xlane.f32.xlu1 %v2050_v52  ;;  %v1307_v36 = vadd.f32 %v8254_v6, %v12788_v12  ;;  %v2104_v52 = vsel %vm1354_vm1, %v1846_v40, 0.0  ;;  %v1309_v40 = vadd.f32 %v8254_v6, %v12790_v41  ;;  %12791 = vst [vmem:[#allocation33_spill] sm:$0xff] %v8806_v57  ;;  %v2110_v12 = vsel %vm1354_vm1, %v1848_v38, 0.0 }
 0x206   : > { %v1313_v38 = vadd.f32 %v8254_v6, %v12796_v50  ;;  %v1316_v41 = vadd.f32 %v12797_v10, %v8254_v6  ;;  %v1852_v50 = vmul.f32 %v8282_v4, %v1717_v15 }
 0x207   : > { %v8800_v26 = vadd.f32 %v8768_v33, %v1307_v36  ;;  %v8812_v51 = vadd.f32 %v8768_v33, %v1309_v40  ;;  %v12793_v36 = vld [vmem:[#allocation34_spill] sm:$0xff]  ;;  %v12798_v40 = vld [vmem:[#allocation44_spill] sm:$0xff] }
 0x208   : > { %v1312_v39 = vadd.f32 %v12793_v36, %v8254_v6  ;;  %v2113_v36 = vsel %vm1354_vm1, %v1849_v58, 0.0  ;;  %v8849_v28 = vadd.f32 %v8768_v33, %v1313_v38  ;;  %v8852_v15 = vadd.f32 %v8768_v33, %v1316_v41 }
 0x209   : > { %2102 = vadd.xlane.f32.xlu0 %v2101_v63  ;;  %2105 = vadd.xlane.f32.xlu1 %v2104_v52  ;;  %v1716_v63 = vmax.f32 %v8500_v14, 0.0  ;;  %12792 = vst [vmem:[#allocation35_spill] sm:$0xff] %v8812_v51  ;;  %v1311_v14 = vadd.f32 %v8254_v6, %v12794_v11  ;;  %v12795_v52 = vld [vmem:[#allocation38_spill] sm:$0xff]  ;;  %v12800_v51 = vld [vmem:[#allocation48_spill] sm:$0xff]  ;;  %v1721_v38 = vmax.f32 %v8533_v7, 0.0 }
 0x20a   : > { %v1314_v9 = vadd.f32 %v12795_v52, %v8254_v6  ;;  %v12799_v11 = vld [vmem:[#allocation46_spill] sm:$0xff]  ;;  %v2116_v52 = vsel %vm1354_vm1, %v1850_v56, 0.0  ;;  %v1317_v10 = vadd.f32 %v8254_v6, %v12800_v51  ;;  %v8839_v58 = vadd.f32 %v8768_v33, %v1312_v39  ;;  %12801 = vst [vmem:[#allocation12_spill] sm:$0xff] %v8852_v15 }
 0x20b   : > { %v1318_v57 = vadd.f32 %v12799_v11, %v8254_v6  ;;  %v1853_v56 = vmul.f32 %v8282_v4, %v1718_v61  ;;  %v1720_v51 = vmax.f32 %v8538_v45, 0.0  ;;  %v2122_v61 = vsel %vm1354_vm1, %v1852_v50, 0.0  ;;  %v12805_v45 = vld [vmem:[#allocation52_spill] sm:$0xff]  ;;  %v12808_v7 = vld [vmem:[#allocation58_spill] sm:$0xff] }
 0x20c   : > { %v8866_v41 = vadd.f32 %v8768_v33, %v1317_v10  ;;  %v1324_v10 = vadd.f32 %v12808_v7, %v8254_v6  ;;  %v12811_v7 = vld [vmem:[#allocation64_spill] sm:$0xff] }
 0x20d   : > { %2108 = vadd.xlane.f32.xlu0 %v2107_v30  ;;  %2111 = vadd.xlane.f32.xlu1 %v2110_v12  ;;  %v1315_v30 = vadd.f32 %v8254_v6, %v12798_v40  ;;  %v1851_v12 = vmul.f32 %v8282_v4, %v1716_v63  ;;  %v1477_v40 = vcombine.high %v12772_v62, %v12772_v62 }
 0x20e   : > { %v8842_v63 = vadd.f32 %v8768_v33, %v1311_v14  ;;  %v8860_v14 = vadd.f32 %v8768_v33, %v1318_v57  ;;  %12803 = vst [vmem:[#allocation39_spill] sm:$0xff] %v8866_v41  ;;  %v12806_v57 = vld [vmem:[#allocation54_spill] sm:$0xff]  ;;  %v12809_v41 = vld [vmem:[#allocation60_spill] sm:$0xff] }
 0x20f   : > { %v2119_v62 = vsel %vm1354_vm1, %v1851_v12, 0.0  ;;  %v8857_v39 = vadd.f32 %v8768_v33, %v1315_v30  ;;  %v12804_v12 = vld [vmem:[#allocation50_spill] sm:$0xff]  ;;  %v1319_v30 = vadd.f32 %v8254_v6, %v12805_v45  ;;  %v1323_v45 = vadd.f32 %v8254_v6, %v12809_v41 }
 0x210   : > { %12802 = vst [vmem:[#allocation37_spill] sm:$0xff] %v8860_v14  ;;  %v1320_v11 = vadd.f32 %v12804_v12, %v8254_v6  ;;  %v12807_v14 = vld [vmem:[#allocation56_spill] sm:$0xff]  ;;  %v1855_v12 = vmul.f32 %v8282_v4, %v1720_v51 }
 0x211   : > { %2114 = vadd.xlane.f32.xlu0 %v2113_v36  ;;  %2117 = vadd.xlane.f32.xlu1 %v2116_v52  ;;  %v8846_v36 = vadd.f32 %v8768_v33, %v1314_v9  ;;  %v1854_v9 = vmul.f32 %v8282_v4, %v1719_v13  ;;  %v1322_v52 = vadd.f32 %v12806_v57, %v8254_v6 }
 0x212   : > { %v1321_v50 = vadd.f32 %v8254_v6, %v12807_v14  ;;  %v8877_v13 = vrot.slane %v1477_v40, %v8247_v0  ;;  %v1856_v14 = vmul.f32 %v8282_v4, %v1721_v38  ;;  %v1723_v40 = vmax.f32 %v8543_v27, 0.0  ;;  %v12810_v0 = vld [vmem:[#allocation62_spill] sm:$0xff] }
 0x213   : > { %v2128_v57 = vsel %vm1354_vm1, %v1854_v9, 0.0  ;;  %v1326_v15 = vadd.f32 %v12810_v0, %v8254_v6  ;;  %v8894_v51 = vadd.f32 %v8768_v33, %v1320_v11  ;;  %v1724_v9 = vmax.f32 %v8553_v23, 0.0 }
 0x214   : > { %v8901_v41 = vadd.f32 %v8768_v33, %v1322_v52  ;;  %v8904_v27 = vadd.f32 %v8768_v33, %v1321_v50  ;;  %v8907_v0 = vadd.f32 %v8877_v13, %v1324_v10  ;;  %v2131_v38 = vsel %vm1354_vm1, %v1855_v12, 0.0  ;;  %v12815_v12 = vld [vmem:[#allocation66_spill] sm:$0xff] }
 0x215   : > { %2120 = vadd.xlane.f32.xlu0 %v2119_v62  ;;  %2123 = vadd.xlane.f32.xlu1 %v2122_v61  ;;  %v2125_v62 = vsel %vm1354_vm1, %v1853_v56, 0.0  ;;  %v1722_v61 = vmax.f32 %v8546_v16, 0.0  ;;  %v1325_v56 = vadd.f32 %v8254_v6, %v12811_v7  ;;  %v8897_v16 = vadd.f32 %v8768_v33, %v1319_v30 }
 0x216   : > { %12812 = vst [vmem:[#allocation41_spill] sm:$0xff] %v8907_v0  ;;  %v8912_v11 = vadd.f32 %v8877_v13, %v1323_v45  ;;  %v8915_v30 = vadd.f32 %v8877_v13, %v1326_v15  ;;  %v2134_v23 = vsel %vm1354_vm1, %v1856_v14, 0.0  ;;  %v1858_v52 = vmul.f32 %v8282_v4, %v1723_v40  ;;  %v12816_v45 = vld [vmem:[#allocation68_spill] sm:$0xff]  ;;  %v12817_v14 = vld [vmem:[#allocation70_spill] sm:$0xff] }
 0x217   : > { %v1725_v33 = vmax.f32 %v8549_v35, 0.0  ;;  %v8921_v50 = vadd.f32 %v8877_v13, %v1325_v56  ;;  %v1694_v10 = vmax.f32 %v8559_v59, 0.0  ;;  %v1327_v15 = vadd.f32 %v8254_v6, %v12816_v45  ;;  %v12818_v40 = vld [vmem:[#allocation72_spill] sm:$0xff]  ;;  %v12819_v56 = vld [vmem:[#allocation74_spill] sm:$0xff] }
 0x218   : > { %12813 = vst [vmem:[#allocation43_spill] sm:$0xff] %v8915_v30  ;;  %v1330_v7 = vadd.f32 %v12817_v14, %v8254_v6  ;;  %v1329_v35 = vadd.f32 %v8254_v6, %v12818_v40  ;;  %v12820_v59 = vld [vmem:[#allocation76_spill] sm:$0xff]  ;;  %v12821_v40 = vld [vmem:[#allocation78_spill] sm:$0xff] }
 0x219   : > { %2126 = vadd.xlane.f32.xlu0 %v2125_v62  ;;  %2129 = vadd.xlane.f32.xlu1 %v2128_v57  ;;  %v1857_v62 = vmul.f32 %v8282_v4, %v1722_v61  ;;  %12814 = vst [vmem:[#allocation65_spill] sm:$0xff] %v8921_v50  ;;  %v1328_v61 = vadd.f32 %v12815_v12, %v8254_v6  ;;  %v2140_v12 = vsel %vm1354_vm1, %v1858_v52, 0.0  ;;  %v7363_v14 = vld [vmem:[%s12336_s3] ss:$0 sm:$0xff] }
 0x21a   : > { %v1859_v57 = vmul.f32 %v8282_v4, %v1724_v9  ;;  %v1331_v30 = vadd.f32 %v8254_v6, %v12820_v59  ;;  %v1860_v45 = vmul.f32 %v8282_v4, %v1725_v33  ;;  %v1695_v9 = vmax.f32 %v8556_v17, 0.0  ;;  %v12822_v0 = vld [vmem:[#allocation80_spill] sm:$0xff] }
 0x21b   : > { %v1334_v50 = vadd.f32 %v7363_v14, %v12821_v40  ;;  %v8952_v33 = vadd.f32 %v8877_v13, %v1327_v15  ;;  %v8955_v17 = vadd.f32 %v8877_v13, %v1330_v7  ;;  %v1696_v59 = vmax.f32 %v8594_v22, 0.0  ;;  %v8974_v15 = vld [vmem:[%s12339_s6] ss:$0 sm:$0xff] }
 0x21c   : > { %v2143_v52 = vsel %vm1354_vm1, %v1859_v57, 0.0  ;;  %v1830_v57 = vmul.f32 %v8974_v15, %v1695_v9  ;;  %v1697_v22 = vmax.f32 %v8587_v42, 0.0 }
 0x21d   : > { %2132 = vadd.xlane.f32.xlu0 %v2131_v38  ;;  %2135 = vadd.xlane.f32.xlu1 %v2134_v23  ;;  %v1332_v38 = vadd.f32 %v12819_v56, %v8254_v6  ;;  %v2137_v23 = vsel %vm1354_vm1, %v1857_v62, 0.0  ;;  %v1333_v56 = vadd.f32 %v7363_v14, %v12822_v0  ;;  %v1829_v62 = vmul.f32 %v8282_v4, %v1694_v10 }
 0x21e   : > { %v8948_v6 = vadd.f32 %v8877_v13, %v1328_v61  ;;  %v8965_v4 = vadd.f32 %v8877_v13, %v1331_v30  ;;  %v8968_v10 = vadd.f32 %v8877_v13, %v1334_v50  ;;  %v2146_v61 = vsel %vm1354_vm1, %v1860_v45, 0.0  ;;  %v12825_v30 = vld [vmem:[#allocation82_spill] sm:$0xff]  ;;  %v12826_v50 = vld [vmem:[#allocation84_spill] sm:$0xff] }
 0x21f   : > { %v8962_v0 = vadd.f32 %v8877_v13, %v1332_v38  ;;  %v8979_v7 = vadd.f32 %v8877_v13, %v1333_v56  ;;  %v1335_v38 = vadd.f32 %v7363_v14, %v12826_v50  ;;  %v2053_v40 = vsel %vm1354_vm1, %v1829_v62, 0.0 }
 0x220   : > { %12824 = vst [vmem:[#allocation69_spill] sm:$0xff] %v8968_v10  ;;  %v1698_v10 = vmax.f32 %v8602_v31, 0.0  ;;  %v2056_v42 = vsel %vm1354_vm1, %v1830_v57, 0.0  ;;  %v1832_v56 = vmul.f32 %v8974_v15, %v1697_v22  ;;  %v1701_v22 = vmax.f32 %v8606_v48, 0.0 }
 0x221   : > { %2138 = vadd.xlane.f32.xlu0 %v2137_v23  ;;  %2141 = vadd.xlane.f32.xlu1 %v2140_v12  ;;  %v8958_v23 = vadd.f32 %v8877_v13, %v1329_v35  ;;  %12823 = vst [vmem:[#allocation67_spill] sm:$0xff] %v8962_v0  ;;  %v1336_v35 = vadd.f32 %v7363_v14, %v12825_v30  ;;  %v12827_v12 = vld [vmem:[#allocation87_spill] sm:$0xff]  ;;  %v12828_v0 = vld [vmem:[#allocation89_spill] sm:$0xff] }
 0x222   : > { %v1338_v45 = vadd.f32 %v7363_v14, %v12827_v12  ;;  %v1337_v9 = vadd.f32 %v7363_v14, %v12828_v0  ;;  %v8995_v50 = vadd.f32 %v8877_v13, %v1335_v38  ;;  %v1700_v0 = vmax.f32 %v8609_v2, 0.0 }
 0x223   : > { %v8992_v30 = vadd.f32 %v8877_v13, %v1336_v35  ;;  %v1836_v2 = vmul.f32 %v8974_v15, %v1701_v22  ;;  %v1707_v22 = vmax.f32 %v8664_v3, 0.0 }
 0x224   : > { %v8998_v62 = vadd.f32 %v8877_v13, %v1338_v45  ;;  %v9001_v31 = vadd.f32 %v8877_v13, %v1337_v9  ;;  %v1835_v38 = vmul.f32 %v8974_v15, %v1700_v0  ;;  %v1702_v13 = vmax.f32 %v8643_v60, 0.0 }
 0x225   : > { %2144 = vadd.xlane.f32.xlu0 %v2143_v52  ;;  %2147 = vadd.xlane.f32.xlu1 %v2146_v61  ;;  %v1831_v52 = vmul.f32 %v8974_v15, %v1696_v59  ;;  %v1699_v61 = vmax.f32 %v8599_v55, 0.0  ;;  %v1833_v59 = vmul.f32 %v8974_v15, %v1698_v10  ;;  %v2062_v55 = vsel %vm1354_vm1, %v1832_v56, 0.0 }
 0x226   : > { %v1703_v45 = vmax.f32 %v8637_v46, 0.0  ;;  %v2071_v48 = vsel %vm1354_vm1, %v1835_v38, 0.0  ;;  %v1704_v9 = vmax.f32 %v8651_v53, 0.0  ;;  %v2074_v60 = vsel %vm1354_vm1, %v1836_v2, 0.0  ;;  %v12836_v38 = vld [vmem:[#allocation95_spill] sm:$0xff] }
 0x227   : > { %v2059_v14 = vsel %vm1354_vm1, %v1831_v52, 0.0  ;;  %v1834_v57 = vmul.f32 %v8974_v15, %v1699_v61  ;;  %v2065_v35 = vsel %vm1354_vm1, %v1833_v59, 0.0  ;;  %v1837_v52 = vmul.f32 %v8974_v15, %v1702_v13 }
 0x228   : > { %v1705_v56 = vmax.f32 %v8648_v24, 0.0  ;;  %v1708_v13 = vmax.f32 %v12836_v38, 0.0 }
 0x229   : > { %2054 = vadd.xlane.f32.xlu0 %v2053_v40  ;;  %2057 = vadd.xlane.f32.xlu1 %v2056_v42  ;;  %v2068_v12 = vsel %vm1354_vm1, %v1834_v57, 0.0  ;;  %v1838_v42 = vmul.f32 %v8974_v15, %v1703_v45  ;;  %v2077_v0 = vsel %vm1354_vm1, %v1837_v52, 0.0  ;;  %v12837_v45 = vld [vmem:[#allocation94_spill] sm:$0xff] }
 0x22a   : > { %v1840_v57 = vmul.f32 %v8974_v15, %v1705_v56  ;;  %v1843_v56 = vmul.f32 %v8974_v15, %v1708_v13  ;;  %v1728_v13 = vmax.f32 %v8705_v34, 0.0 }
 0x22b   : > { %v2080_v53 = vsel %vm1354_vm1, %v1838_v42, 0.0 }
 0x22c   : > { %v2086_v52 = vsel %vm1354_vm1, %v1840_v57, 0.0 }
 0x22d   : > { %2060 = vadd.xlane.f32.xlu0 %v2059_v14  ;;  %2063 = vadd.xlane.f32.xlu1 %v2062_v55  ;;  %v12833_v14 = vld [vmem:[#allocation93_spill] sm:$0xff]  ;;  %v1839_v55 = vmul.f32 %v8974_v15, %v1704_v9  ;;  %v1842_v9 = vmul.f32 %v8974_v15, %v1707_v22  ;;  %v2095_v22 = vsel %vm1354_vm1, %v1843_v56, 0.0  ;;  %v1731_v56 = vmax.f32 %v8728_v19, 0.0 }
 0x22e   : > { %v1706_v59 = vmax.f32 %v12833_v14, 0.0  ;;  %v1726_v14 = vmax.f32 %v8695_v49, 0.0 }
 0x230   : > { %v1841_v2 = vmul.f32 %v8974_v15, %v1706_v59  ;;  %v2092_v59 = vsel %vm1354_vm1, %v1842_v9, 0.0  ;;  %v1861_v38 = vmul.f32 %v8974_v15, %v1726_v14  ;;  %v1730_v9 = vmax.f32 %v8731_v21, 0.0 }
 0x231   : > { %2066 = vadd.xlane.f32.xlu0 %v2065_v35  ;;  %v9013_v10 = vpop.xlane.xlu0 %1910  ;;  %2069 = vadd.xlane.f32.xlu1 %v2068_v12  ;;  %v2083_v12 = vsel %vm1354_vm1, %v1839_v55, 0.0  ;;  %v1727_v55 = vmax.f32 %v8692_v8, 0.0 }
 0x232   : > { %12829 = vst [vmem:[#allocation45_spill] sm:$0xff] %v9013_v10  ;;  %v9017_v40 = vpop.xlane.xlu1 %1916  ;;  %v2089_v42 = vsel %vm1354_vm1, %v1841_v2, 0.0  ;;  %v1729_v2 = vmax.f32 %v8700_v1, 0.0 }
 0x233   : > { %12830 = vst [vmem:[#allocation47_spill] sm:$0xff] %v9017_v40 }
 0x235   : > { %2072 = vadd.xlane.f32.xlu0 %v2071_v48  ;;  %2075 = vadd.xlane.f32.xlu1 %v2074_v60  ;;  %v1709_v48 = vmax.f32 %v12837_v45, 0.0 }
 0x236   : > { %v9025_v61 = vpop.xlane.xlu0 %1913  ;;  %v9027_v46 = vpop.xlane.xlu1 %1919 }
 0x237   : > { %12831 = vst [vmem:[#allocation71_spill] sm:$0xff] %v9025_v61  ;;  %12832 = vst [vmem:[#allocation73_spill] sm:$0xff] %v9027_v46 }
 0x239   : > { %2078 = vadd.xlane.f32.xlu0 %v2077_v0  ;;  %2081 = vadd.xlane.f32.xlu1 %v2080_v53  ;;  %v1844_v0 = vmul.f32 %v8974_v15, %v1709_v48  ;;  %v2149_v48 = vsel %vm1354_vm1, %v1861_v38, 0.0  ;;  %v1733_v38 = vmax.f32 %v8734_v54, 0.0 }
 0x23a   : > { %v9035_v24 = vpop.xlane.xlu0 %1922  ;;  %v9037_v35 = vpop.xlane.xlu1 %1925 }
 0x23b   : > { %12834 = vst [vmem:[#allocation75_spill] sm:$0xff] %v9035_v24  ;;  %12835 = vst [vmem:[#allocation77_spill] sm:$0xff] %v9037_v35  ;;  %v2098_v49 = vsel %vm1354_vm1, %v1844_v0, 0.0  ;;  %v1865_v0 = vmul.f32 %v8974_v15, %v1730_v9 }
 0x23d   : > { %2084 = vadd.xlane.f32.xlu0 %v2083_v12  ;;  %2087 = vadd.xlane.f32.xlu1 %v2086_v52  ;;  %v1862_v12 = vmul.f32 %v8974_v15, %v1727_v55  ;;  %v1863_v52 = vmul.f32 %v8974_v15, %v1728_v13  ;;  %v1732_v55 = vmax.f32 %v8739_v29, 0.0 }
 0x23e   : > { %v9045_v3 = vpop.xlane.xlu0 %1928  ;;  %v9047_v60 = vpop.xlane.xlu1 %1931 }
 0x23f   : > { %12838 = vst [vmem:[#allocation79_spill] sm:$0xff] %v9045_v3  ;;  %12839 = vst [vmem:[#allocation49_spill] sm:$0xff] %v9047_v60  ;;  %v2152_v34 = vsel %vm1354_vm1, %v1862_v12, 0.0  ;;  %v1867_v12 = vmul.f32 %v8974_v15, %v1732_v55 }
 0x241   : > { %2090 = vadd.xlane.f32.xlu0 %v2089_v42  ;;  %2093 = vadd.xlane.f32.xlu1 %v2092_v59  ;;  %v1864_v42 = vmul.f32 %v8974_v15, %v1729_v2  ;;  %v2155_v59 = vsel %vm1354_vm1, %v1863_v52, 0.0  ;;  %v1734_v2 = vmax.f32 %v8745_v44, 0.0  ;;  %v1735_v52 = vmax.f32 %v8742_v32, 0.0 }
 0x242   : > { %v9055_v53 = vpop.xlane.xlu0 %1934  ;;  %v9057_v57 = vpop.xlane.xlu1 %1937 }
 0x243   : > { %12840 = vst [vmem:[#allocation51_spill] sm:$0xff] %v9057_v57  ;;  %v2158_v21 = vsel %vm1354_vm1, %v1864_v42, 0.0  ;;  %v1869_v42 = vmul.f32 %v8974_v15, %v1734_v2 }
 0x245   : > { %2096 = vadd.xlane.f32.xlu0 %v2095_v22  ;;  %2099 = vadd.xlane.f32.xlu1 %v2098_v49  ;;  %v1866_v22 = vmul.f32 %v8974_v15, %v1731_v56  ;;  %v2161_v49 = vsel %vm1354_vm1, %v1865_v0, 0.0  ;;  %v1736_v56 = vmax.f32 %v8757_v37, 0.0  ;;  %v1737_v0 = vmax.f32 %v8751_v18, 0.0 }
 0x246   : > { %v9065_v8 = vpop.xlane.xlu0 %1940  ;;  %v9067_v45 = vpop.xlane.xlu1 %1943 }
 0x247   : > { %12841 = vst [vmem:[#allocation53_spill] sm:$0xff] %v9067_v45  ;;  %v2164_v29 = vsel %vm1354_vm1, %v1866_v22, 0.0  ;;  %v1871_v22 = vmul.f32 %v8974_v15, %v1736_v56 }
 0x249   : > { %2150 = vadd.xlane.f32.xlu0 %v2149_v48  ;;  %2153 = vadd.xlane.f32.xlu1 %v2152_v34  ;;  %v1868_v48 = vmul.f32 %v8974_v15, %v1733_v38  ;;  %v2167_v34 = vsel %vm1354_vm1, %v1867_v12, 0.0  ;;  %v1738_v38 = vmax.f32 %v8786_v25, 0.0  ;;  %v1739_v12 = vmax.f32 %v8783_v47, 0.0 }
 0x24a   : > { %v9075_v1 = vpop.xlane.xlu0 %1946  ;;  %v9077_v14 = vpop.xlane.xlu1 %1949 }
 0x24b   : > { %12842 = vst [vmem:[#allocation81_spill] sm:$0xff] %v9077_v14  ;;  %v2170_v44 = vsel %vm1354_vm1, %v1868_v48, 0.0  ;;  %v1873_v48 = vmul.f32 %v8974_v15, %v1738_v38 }
 0x24d   : > { %2156 = vadd.xlane.f32.xlu0 %v2155_v59  ;;  %2159 = vadd.xlane.f32.xlu1 %v2158_v21  ;;  %v1870_v59 = vmul.f32 %v8974_v15, %v1735_v52  ;;  %v2173_v21 = vsel %vm1354_vm1, %v1869_v42, 0.0  ;;  %v1740_v52 = vmax.f32 %v8794_v5, 0.0  ;;  %v1741_v42 = vmax.f32 %v8789_v43, 0.0 }
 0x24e   : > { %v9085_v19 = vpop.xlane.xlu0 %1952  ;;  %v9087_v13 = vpop.xlane.xlu1 %1955 }
 0x24f   : > { %12843 = vst [vmem:[#allocation55_spill] sm:$0xff] %v9085_v19  ;;  %12844 = vst [vmem:[#allocation83_spill] sm:$0xff] %v9087_v13  ;;  %v2176_v37 = vsel %vm1354_vm1, %v1870_v59, 0.0  ;;  %v1875_v59 = vmul.f32 %v8974_v15, %v1740_v52  ;;  %v12854_v52 = vld [vmem:[#allocation33_spill] sm:$0xff] }
 0x251   : > { %2162 = vadd.xlane.f32.xlu0 %v2161_v49  ;;  %2165 = vadd.xlane.f32.xlu1 %v2164_v29  ;;  %v1872_v49 = vmul.f32 %v8974_v15, %v1737_v0  ;;  %v2179_v29 = vsel %vm1354_vm1, %v1871_v22, 0.0  ;;  %v1742_v0 = vmax.f32 %v8800_v26, 0.0  ;;  %v1743_v22 = vmax.f32 %v8797_v20, 0.0 }
 0x252   : > { %v9095_v54 = vpop.xlane.xlu0 %1958  ;;  %v9097_v9 = vpop.xlane.xlu1 %1961 }
 0x253   : > { %12845 = vst [vmem:[#allocation85_spill] sm:$0xff] %v9095_v54  ;;  %12846 = vst [vmem:[#allocation88_spill] sm:$0xff] %v9097_v9  ;;  %v2182_v25 = vsel %vm1354_vm1, %v1872_v49, 0.0  ;;  %v1877_v49 = vmul.f32 %v8974_v15, %v1742_v0 }
 0x255   : > { %2168 = vadd.xlane.f32.xlu0 %v2167_v34  ;;  %2171 = vadd.xlane.f32.xlu1 %v2170_v44  ;;  %v1874_v34 = vmul.f32 %v8974_v15, %v1739_v12  ;;  %v2185_v44 = vsel %vm1354_vm1, %v1873_v48, 0.0  ;;  %v12853_v12 = vld [vmem:[#allocation35_spill] sm:$0xff]  ;;  %v1878_v48 = vmul.f32 %v8974_v15, %v1743_v22 }
 0x256   : > { %v9105_v32 = vpop.xlane.xlu0 %1964  ;;  %v9107_v55 = vpop.xlane.xlu1 %1967 }
 0x257   : > { %12847 = vst [vmem:[#allocation57_spill] sm:$0xff] %v9105_v32  ;;  %12848 = vst [vmem:[#allocation59_spill] sm:$0xff] %v9107_v55  ;;  %v2188_v5 = vsel %vm1354_vm1, %v1874_v34, 0.0  ;;  %v2200_v0 = vsel %vm1354_vm1, %v1878_v48, 0.0  ;;  %v1749_v48 = vmax.f32 %v8846_v36, 0.0 }
 0x259   : > { %2174 = vadd.xlane.f32.xlu0 %v2173_v21  ;;  %2177 = vadd.xlane.f32.xlu1 %v2176_v37  ;;  %v1876_v21 = vmul.f32 %v8974_v15, %v1741_v42  ;;  %v2191_v37 = vsel %vm1354_vm1, %v1875_v59, 0.0  ;;  %v2197_v42 = vsel %vm1354_vm1, %v1877_v49, 0.0  ;;  %v1746_v59 = vmax.f32 %v8842_v63, 0.0 }
 0x25a   : > { %v9115_v18 = vpop.xlane.xlu0 %1970  ;;  %v9117_v2 = vpop.xlane.xlu1 %1973 }
 0x25b   : > { %12849 = vst [vmem:[#allocation90_spill] sm:$0xff] %v9115_v18  ;;  %12850 = vst [vmem:[#allocation61_spill] sm:$0xff] %v9117_v2  ;;  %v2194_v26 = vsel %vm1354_vm1, %v1876_v21, 0.0  ;;  %v1747_v21 = vmax.f32 %v8839_v58, 0.0  ;;  %v1881_v49 = vmul.f32 %v8974_v15, %v1746_v59  ;;  %v1884_v59 = vmul.f32 %v8974_v15, %v1749_v48 }
 0x25d   : > { %2180 = vadd.xlane.f32.xlu0 %v2179_v29  ;;  %2183 = vadd.xlane.f32.xlu1 %v2182_v25  ;;  %v1744_v29 = vmax.f32 %v12853_v12, 0.0  ;;  %v1745_v25 = vmax.f32 %v12854_v52, 0.0 }
 0x25e   : > { %v9125_v47 = vpop.xlane.xlu0 %1976  ;;  %v9127_v56 = vpop.xlane.xlu1 %1979 }
 0x25f   : > { %12851 = vst [vmem:[#allocation63_spill] sm:$0xff] %v9127_v56 }
 0x261   : > { %2186 = vadd.xlane.f32.xlu0 %v2185_v44  ;;  %2189 = vadd.xlane.f32.xlu1 %v2188_v5  ;;  %v1879_v44 = vmul.f32 %v8974_v15, %v1744_v29  ;;  %v1880_v5 = vmul.f32 %v8974_v15, %v1745_v25  ;;  %v1748_v29 = vmax.f32 %v8849_v28, 0.0  ;;  %v2209_v25 = vsel %vm1354_vm1, %v1881_v49, 0.0 }
 0x262   : > { %v9135_v43 = vpop.xlane.xlu0 %1982  ;;  %v9137_v38 = vpop.xlane.xlu1 %1985 }
 0x263   : > { %12852 = vst [vmem:[#allocation13_spill] sm:$0xff] %v9137_v38  ;;  %v2203_v12 = vsel %vm1354_vm1, %v1879_v44, 0.0  ;;  %v2206_v63 = vsel %vm1354_vm1, %v1880_v5, 0.0  ;;  %v1750_v44 = vmax.f32 %v8857_v39, 0.0  ;;  %v2218_v39 = vsel %vm1354_vm1, %v1884_v59, 0.0 }
 0x265   : > { %2192 = vadd.xlane.f32.xlu0 %v2191_v37  ;;  %2195 = vadd.xlane.f32.xlu1 %v2194_v26  ;;  %v1882_v26 = vmul.f32 %v8974_v15, %v1747_v21  ;;  %v1885_v49 = vmul.f32 %v8974_v15, %v1750_v44  ;;  %v1754_v44 = vmax.f32 %v8897_v16, 0.0 }
 0x266   : > { %v9145_v20 = vpop.xlane.xlu0 %1988  ;;  %v9147_v34 = vpop.xlane.xlu1 %1991 }
 0x267   : > { %12855 = vst [vmem:[#allocation14_spill] sm:$0xff] %v9145_v20  ;;  %12856 = vst [vmem:[#allocation92_spill] sm:$0xff] %v9147_v34  ;;  %v2212_v28 = vsel %vm1354_vm1, %v1882_v26, 0.0 }
 0x269   : > { %2198 = vadd.xlane.f32.xlu0 %v2197_v42  ;;  %2201 = vadd.xlane.f32.xlu1 %v2200_v0  ;;  %v1883_v42 = vmul.f32 %v8974_v15, %v1748_v29  ;;  %v12861_v0 = vld [vmem:[#allocation12_spill] sm:$0xff] }
 0x26a   : > { %v9155_v22 = vpop.xlane.xlu0 %1994  ;;  %v9157_v37 = vpop.xlane.xlu1 %1997  ;;  %v1751_v5 = vmax.f32 %v12861_v0, 0.0 }
 0x26b   : > { %12857 = vst [vmem:[#allocation15_spill] sm:$0xff] %v9155_v22  ;;  %12858 = vst [vmem:[#allocation16_spill] sm:$0xff] %v9157_v37 }
 0x26c   : > { %v1886_v26 = vmul.f32 %v8974_v15, %v1751_v5  ;;  %v1755_v5 = vmax.f32 %v8894_v51, 0.0 }
 0x26d   : > { %2204 = vadd.xlane.f32.xlu0 %v2203_v12  ;;  %2207 = vadd.xlane.f32.xlu1 %v2206_v63  ;;  %v2215_v12 = vsel %vm1354_vm1, %v1883_v42, 0.0  ;;  %v12864_v63 = vld [vmem:[#allocation39_spill] sm:$0xff] }
 0x26e   : > { %v9165_v58 = vpop.xlane.xlu0 %2000  ;;  %v9167_v52 = vpop.xlane.xlu1 %2003  ;;  %v1752_v29 = vmax.f32 %v12864_v63, 0.0  ;;  %v2224_v63 = vsel %vm1354_vm1, %v1886_v26, 0.0  ;;  %v1757_v26 = vmax.f32 %v8901_v41, 0.0 }
 0x26f   : > { %12859 = vst [vmem:[#allocation17_spill] sm:$0xff] %v9165_v58  ;;  %12860 = vst [vmem:[#allocation18_spill] sm:$0xff] %v9167_v52  ;;  %v2221_v52 = vsel %vm1354_vm1, %v1885_v49, 0.0  ;;  %v1889_v49 = vmul.f32 %v8974_v15, %v1754_v44  ;;  %v1758_v44 = vmax.f32 %v8912_v11, 0.0  ;;  %v12875_v58 = vld [vmem:[#allocation65_spill] sm:$0xff] }
 0x270   : > { %v1887_v42 = vmul.f32 %v8974_v15, %v1752_v29  ;;  %v1756_v29 = vmax.f32 %v8904_v27, 0.0 }
 0x271   : > { %2210 = vadd.xlane.f32.xlu0 %v2209_v25  ;;  %2213 = vadd.xlane.f32.xlu1 %v2212_v28  ;;  %v12865_v25 = vld [vmem:[#allocation37_spill] sm:$0xff] }
 0x272   : > { %v9175_v36 = vpop.xlane.xlu0 %2006  ;;  %v9177_v21 = vpop.xlane.xlu1 %2009  ;;  %v1753_v48 = vmax.f32 %v12865_v25, 0.0  ;;  %v2227_v25 = vsel %vm1354_vm1, %v1887_v42, 0.0  ;;  %v1891_v42 = vmul.f32 %v8974_v15, %v1756_v29  ;;  %v1760_v29 = vmax.f32 %v12875_v58, 0.0 }
 0x273   : > { %12862 = vst [vmem:[#allocation19_spill] sm:$0xff] %v9175_v36  ;;  %12863 = vst [vmem:[#allocation20_spill] sm:$0xff] %v9177_v21 }
 0x274   : > { %v1888_v59 = vmul.f32 %v8974_v15, %v1753_v48  ;;  %v2239_v13 = vsel %vm1354_vm1, %v1891_v42, 0.0  ;;  %v1895_v42 = vmul.f32 %v8974_v15, %v1760_v29  ;;  %v1764_v29 = vmax.f32 %v8958_v23, 0.0 }
 0x275   : > { %2216 = vadd.xlane.f32.xlu0 %v2215_v12  ;;  %2219 = vadd.xlane.f32.xlu1 %v2218_v39 }
 0x276   : > { %v9185_v0 = vpop.xlane.xlu0 %2012  ;;  %v9187_v28 = vpop.xlane.xlu1 %2015  ;;  %v2230_v16 = vsel %vm1354_vm1, %v1888_v59, 0.0  ;;  %v1892_v59 = vmul.f32 %v8974_v15, %v1757_v26 }
 0x277   : > { %12866 = vst [vmem:[#allocation21_spill] sm:$0xff] %v9185_v0  ;;  %12867 = vst [vmem:[#allocation22_spill] sm:$0xff] %v9187_v28 }
 0x278   : > { %v2242_v11 = vsel %vm1354_vm1, %v1892_v59, 0.0  ;;  %v1763_v59 = vmax.f32 %v8948_v6, 0.0 }
 0x279   : > { %2222 = vadd.xlane.f32.xlu0 %v2221_v52  ;;  %2225 = vadd.xlane.f32.xlu1 %v2224_v63  ;;  %v1890_v52 = vmul.f32 %v8974_v15, %v1755_v5  ;;  %v2233_v63 = vsel %vm1354_vm1, %v1889_v49, 0.0  ;;  %v1893_v49 = vmul.f32 %v8974_v15, %v1758_v44  ;;  %v1762_v44 = vmax.f32 %v8952_v33, 0.0 }
 0x27a   : > { %v9195_v12 = vpop.xlane.xlu0 %2018  ;;  %v9197_v39 = vpop.xlane.xlu1 %2021 }
 0x27b   : > { %12868 = vst [vmem:[#allocation23_spill] sm:$0xff] %v9195_v12  ;;  %12869 = vst [vmem:[#allocation24_spill] sm:$0xff] %v9197_v39  ;;  %v2236_v27 = vsel %vm1354_vm1, %v1890_v52, 0.0  ;;  %v2245_v19 = vsel %vm1354_vm1, %v1893_v49, 0.0  ;;  %v1897_v49 = vmul.f32 %v8974_v15, %v1762_v44  ;;  %v1766_v44 = vmax.f32 %v8965_v4, 0.0 }
 0x27d   : > { %2228 = vadd.xlane.f32.xlu0 %v2227_v25  ;;  %2231 = vadd.xlane.f32.xlu1 %v2230_v16  ;;  %v12872_v25 = vld [vmem:[#allocation41_spill] sm:$0xff] }
 0x27e   : > { %v9205_v51 = vpop.xlane.xlu0 %2024  ;;  %v9207_v48 = vpop.xlane.xlu1 %2027  ;;  %v1759_v5 = vmax.f32 %v12872_v25, 0.0 }
 0x27f   : > { %12870 = vst [vmem:[#allocation25_spill] sm:$0xff] %v9205_v51  ;;  %12871 = vst [vmem:[#allocation26_spill] sm:$0xff] %v9207_v48 }
 0x280   : > { %v1894_v52 = vmul.f32 %v8974_v15, %v1759_v5 }
 0x281   : > { %2234 = vadd.xlane.f32.xlu0 %v2233_v63  ;;  %2237 = vadd.xlane.f32.xlu1 %v2236_v27  ;;  %v12876_v63 = vld [vmem:[#allocation43_spill] sm:$0xff] }
 0x282   : > { %v9215_v41 = vpop.xlane.xlu0 %2030  ;;  %v9217_v16 = vpop.xlane.xlu1 %2033  ;;  %v1761_v26 = vmax.f32 %v12876_v63, 0.0  ;;  %v2248_v58 = vsel %vm1354_vm1, %v1894_v52, 0.0  ;;  %v2251_v63 = vsel %vm1354_vm1, %v1895_v42, 0.0  ;;  %v1765_v52 = vmax.f32 %v8955_v17, 0.0 }
 0x283   : > { %12873 = vst [vmem:[#allocation27_spill] sm:$0xff] %v9215_v41  ;;  %12874 = vst [vmem:[#allocation28_spill] sm:$0xff] %v9217_v16  ;;  %v1899_v42 = vmul.f32 %v8974_v15, %v1764_v29  ;;  %v1768_v29 = vmax.f32 %v8979_v7, 0.0 }
 0x285   : > { %2240 = vadd.xlane.f32.xlu0 %v2239_v13  ;;  %2243 = vadd.xlane.f32.xlu1 %v2242_v11  ;;  %v1896_v13 = vmul.f32 %v8974_v15, %v1761_v26 }
 0x286   : > { %v9225_v25 = vpop.xlane.xlu0 %2036  ;;  %v9227_v27 = vpop.xlane.xlu1 %2039 }
 0x287   : > { %12877 = vst [vmem:[#allocation29_spill] sm:$0xff] %v9225_v25  ;;  %12878 = vst [vmem:[#allocation30_spill] sm:$0xff] %v9227_v27  ;;  %v2254_v33 = vsel %vm1354_vm1, %v1896_v13, 0.0  ;;  %v1900_v13 = vmul.f32 %v8974_v15, %v1765_v52 }
 0x289   : > { %2246 = vadd.xlane.f32.xlu0 %v2245_v19  ;;  %2249 = vadd.xlane.f32.xlu1 %v2248_v58  ;;  %v1898_v19 = vmul.f32 %v8974_v15, %v1763_v59  ;;  %v2257_v58 = vsel %vm1354_vm1, %v1897_v49, 0.0  ;;  %v1901_v49 = vmul.f32 %v8974_v15, %v1766_v44  ;;  %v2266_v4 = vsel %vm1354_vm1, %v1900_v13, 0.0 }
 0x28a   : > { %v9235_v5 = vpop.xlane.xlu0 %2042  ;;  %v9237_v11 = vpop.xlane.xlu1 %2045  ;;  %v1770_v44 = vmax.f32 %v8995_v50, 0.0  ;;  %v1771_v13 = vmax.f32 %v8992_v30, 0.0 }
 0x28b   : > { %12879 = vst [vmem:[#allocation31_spill] sm:$0xff] %v9235_v5  ;;  %12880 = vst [vmem:[#allocation32_spill] sm:$0xff] %v9237_v11  ;;  %v2260_v23 = vsel %vm1354_vm1, %v1898_v19, 0.0 }
 0x28d   : > { %2252 = vadd.xlane.f32.xlu0 %v2251_v63  ;;  %2255 = vadd.xlane.f32.xlu1 %v2254_v33  ;;  %v12883_v63 = vld [vmem:[#allocation67_spill] sm:$0xff] }
 0x28e   : > { %v9245_v6 = vpop.xlane.xlu0 %2048  ;;  %v9247_v26 = vpop.xlane.xlu1 %2051  ;;  %v1767_v59 = vmax.f32 %v12883_v63, 0.0 }
 0x28f   : > { %12881 = vst [vmem:[#allocation34_spill] sm:$0xff] %v9245_v6  ;;  %12882 = vst [vmem:[#allocation36_spill] sm:$0xff] %v9247_v26  ;;  %v2263_v26 = vsel %vm1354_vm1, %v1899_v42, 0.0  ;;  %v2269_v6 = vsel %vm1354_vm1, %v1901_v49, 0.0  ;;  %v1903_v42 = vmul.f32 %v8974_v15, %v1768_v29  ;;  %v1905_v49 = vmul.f32 %v8974_v15, %v1770_v44 }
 0x290   : > { %v1902_v19 = vmul.f32 %v8974_v15, %v1767_v59  ;;  %v1772_v29 = vmax.f32 %v9001_v31, 0.0 }
 0x291   : > { %2258 = vadd.xlane.f32.xlu0 %v2257_v58  ;;  %2261 = vadd.xlane.f32.xlu1 %v2260_v23  ;;  %v12886_v58 = vld [vmem:[#allocation69_spill] sm:$0xff] }
 0x292   : > { %v9255_v17 = vpop.xlane.xlu0 %2102  ;;  %v9257_v33 = vpop.xlane.xlu1 %2105  ;;  %v1769_v52 = vmax.f32 %v12886_v58, 0.0  ;;  %v2272_v7 = vsel %vm1354_vm1, %v1902_v19, 0.0  ;;  %v2275_v58 = vsel %vm1354_vm1, %v1903_v42, 0.0  ;;  %v1773_v19 = vmax.f32 %v8998_v62, 0.0 }
 0x293   : > { %12884 = vst [vmem:[#allocation38_spill] sm:$0xff] %v9255_v17  ;;  %12885 = vst [vmem:[#allocation40_spill] sm:$0xff] %v9257_v33  ;;  %v1907_v42 = vmul.f32 %v8974_v15, %v1772_v29 }
 0x294   : > { %v1908_v31 = vmul.f32 %v8974_v15, %v1773_v19 }
 0x295   : > { %2264 = vadd.xlane.f32.xlu0 %v2263_v26  ;;  %2267 = vadd.xlane.f32.xlu1 %v2266_v4  ;;  %v1904_v26 = vmul.f32 %v8974_v15, %v1769_v52  ;;  %v2287_v62 = vsel %vm1354_vm1, %v1907_v42, 0.0 }
 0x296   : > { %v9265_v63 = vpop.xlane.xlu0 %2108  ;;  %v9267_v23 = vpop.xlane.xlu1 %2111 }
 0x297   : > { %12887 = vst [vmem:[#allocation42_spill] sm:$0xff] %v9265_v63  ;;  %12888 = vst [vmem:[#allocation44_spill] sm:$0xff] %v9267_v23  ;;  %v2278_v50 = vsel %vm1354_vm1, %v1904_v26, 0.0 }
 0x299   : > { %2270 = vadd.xlane.f32.xlu0 %v2269_v6  ;;  %2273 = vadd.xlane.f32.xlu1 %v2272_v7  ;;  %v1906_v6 = vmul.f32 %v8974_v15, %v1771_v13  ;;  %v2281_v7 = vsel %vm1354_vm1, %v1905_v49, 0.0 }
 0x29a   : > { %v9275_v59 = vpop.xlane.xlu0 %2114  ;;  %v9277_v4 = vpop.xlane.xlu1 %2117 }
 0x29b   : > { %12889 = vst [vmem:[#allocation46_spill] sm:$0xff] %v9275_v59  ;;  %12890 = vst [vmem:[#allocation48_spill] sm:$0xff] %v9277_v4  ;;  %v2284_v44 = vsel %vm1354_vm1, %v1906_v6, 0.0 }
 0x29d   : > { %2276 = vadd.xlane.f32.xlu0 %v2275_v58  ;;  %2279 = vadd.xlane.f32.xlu1 %v2278_v50  ;;  %v2290_v58 = vsel %vm1354_vm1, %v1908_v31, 0.0  ;;  %vm12459_vm1 = vcmask 1041409  }
 0x29e   : > { %v9285_v30 = vpop.xlane.xlu0 %2120  ;;  %v9287_v52 = vpop.xlane.xlu1 %2123 }
 0x29f   : > { %12891 = vst [vmem:[#allocation50_spill] sm:$0xff] %v9285_v30  ;;  %12892 = vst [vmem:[#allocation52_spill] sm:$0xff] %v9287_v52 }
 0x2a1   : > { %2282 = vadd.xlane.f32.xlu0 %v2281_v7  ;;  %2285 = vadd.xlane.f32.xlu1 %v2284_v44 }
 0x2a2   : > { %v9293_v26 = vpop.xlane.xlu0 %2126  ;;  %v9295_v13 = vpop.xlane.xlu1 %2129 }
 0x2a3   : > { %12893 = vst [vmem:[#allocation54_spill] sm:$0xff] %v9293_v26  ;;  %12894 = vst [vmem:[#allocation56_spill] sm:$0xff] %v9295_v13 }
 0x2a5   : > { %2288 = vadd.xlane.f32.xlu0 %v2287_v62  ;;  %2291 = vadd.xlane.f32.xlu1 %v2290_v58 }
 0x2a6   : > { %v9299_v50 = vpop.xlane.xlu0 %2132  ;;  %v9301_v49 = vpop.xlane.xlu1 %2135 }
 0x2a7   : > { %12895 = vst [vmem:[#allocation58_spill] sm:$0xff] %v9299_v50  ;;  %12896 = vst [vmem:[#allocation60_spill] sm:$0xff] %v9301_v49 }
 0x2aa   : > { %v9303_v29 = vpop.xlane.xlu0 %2138  ;;  %v9305_v6 = vpop.xlane.xlu1 %2141 }
 0x2ab   : > { %12897 = vst [vmem:[#allocation62_spill] sm:$0xff] %v9303_v29  ;;  %12898 = vst [vmem:[#allocation64_spill] sm:$0xff] %v9305_v6 }
 0x2ae   : > { %v9307_v15 = vpop.xlane.xlu0 %2144  ;;  %v9309_v19 = vpop.xlane.xlu1 %2147 }
 0x2af   : > { %12899 = vst [vmem:[#allocation66_spill] sm:$0xff] %v9307_v15  ;;  %12900 = vst [vmem:[#allocation68_spill] sm:$0xff] %v9309_v19 }
 0x2b2   : > { %v9311_v7 = vpop.xlane.xlu0 %2054  ;;  %v9313_v44 = vpop.xlane.xlu1 %2057 }
 0x2b3   : > { %12901 = vst [vmem:[#allocation70_spill] sm:$0xff] %v9311_v7  ;;  %12902 = vst [vmem:[#allocation72_spill] sm:$0xff] %v9313_v44 }
 0x2b6   : > { %v9315_v42 = vpop.xlane.xlu0 %2060  ;;  %v9317_v31 = vpop.xlane.xlu1 %2063 }
 0x2b7   : > { %12903 = vst [vmem:[#allocation74_spill] sm:$0xff] %v9315_v42  ;;  %12904 = vst [vmem:[#allocation76_spill] sm:$0xff] %v9317_v31 }
 0x2ba   : > { %v9319_v62 = vpop.xlane.xlu0 %2066  ;;  %v9321_v58 = vpop.xlane.xlu1 %2069 }
 0x2bb   : > { %12905 = vst [vmem:[#allocation78_spill] sm:$0xff] %v9319_v62  ;;  %12906 = vst [vmem:[#allocation80_spill] sm:$0xff] %v9321_v58 }
 0x2be   : > { %v9323_v49 = vpop.xlane.xlu0 %2072  ;;  %v9325_v29 = vpop.xlane.xlu1 %2075 }
 0x2bf   : > { %12907 = vst [vmem:[#allocation82_spill] sm:$0xff] %v9323_v49  ;;  %12908 = vst [vmem:[#allocation84_spill] sm:$0xff] %v9325_v29 }
 0x2c2   : > { %v9327_v6 = vpop.xlane.xlu0 %2078  ;;  %v9329_v15 = vpop.xlane.xlu1 %2081 }
 0x2c3   : > { %12909 = vst [vmem:[#allocation87_spill] sm:$0xff] %v9327_v6  ;;  %12910 = vst [vmem:[#allocation89_spill] sm:$0xff] %v9329_v15  ;;  %v12920_v6 = vlaneseq }
 0x2c5   : > { %v9350_v15 = vand.u32 127, %v12920_v6 }
 0x2c6   : > { %v9331_v19 = vpop.xlane.xlu0 %2084  ;;  %v9333_v50 = vpop.xlane.xlu1 %2087 }
 0x2c7   : > { %12911 = vst [vmem:[#allocation93_spill] sm:$0xff] %v9331_v19  ;;  %12912 = vst [vmem:[#allocation95_spill] sm:$0xff] %v9333_v50  ;;  %v2427_v50 = vadd.s32 4294967288, %v9350_v15 }
 0x2ca   : > { %v9335_v13 = vpop.xlane.xlu0 %2090  ;;  %v9337_v26 = vpop.xlane.xlu1 %2093 }
 0x2cb   : > { %12913 = vst [vmem:[#allocation94_spill] sm:$0xff] %v9335_v13  ;;  %12914 = vst [vmem:[#allocation35_spill] sm:$0xff] %v9337_v26 }
 0x2ce   : > { %v9339_v52 = vpop.xlane.xlu0 %2096  ;;  %v9341_v62 = vpop.xlane.xlu1 %2099 }
 0x2cf   : > { %12915 = vst [vmem:[#allocation33_spill] sm:$0xff] %v9339_v52  ;;  %12916 = vst [vmem:[#allocation12_spill] sm:$0xff] %v9341_v62  ;;  %v12924_v52 = vld [vmem:[#allocation86_spill] sm:$0xff]  ;;  %v2434_v62 = vadd.s32 4294967280, %v9350_v15 }
 0x2d0   : > { %v9360_v31 = vsub.s32 %v2427_v50, %v12924_v52  ;;  %v2448_v50 = vadd.s32 4294967264, %v9350_v15 }
 0x2d2   : > { %v9343_v58 = vpop.xlane.xlu0 %2150  ;;  %v9345_v49 = vpop.xlane.xlu1 %2153  ;;  %12925 = vst [vmem:[#allocation69_spill] sm:$0xff] %v9360_v31  ;;  %v9392_v11 = vsub.s32 %v2448_v50, %v12924_v52  ;;  %v2476_v50 = vadd.s32 4294967232, %v9350_v15 }
 0x2d3   : > { %12917 = vst [vmem:[#allocation39_spill] sm:$0xff] %v9343_v58  ;;  %12918 = vst [vmem:[#allocation37_spill] sm:$0xff] %v9345_v49 }
 0x2d4   : > { %12933 = vst [vmem:[#allocation103_spill] sm:$0xff] %v9392_v11  ;;  %v2554_v44 = vrot.slane %v9115_v18, %v9392_v11 }
 0x2d6   : > { %v9347_v29 = vpop.xlane.xlu0 %2156  ;;  %v9352_v19 = vpop.xlane.xlu1 %2159 }
 0x2d7   : > { %12919 = vst [vmem:[#allocation41_spill] sm:$0xff] %v9347_v29  ;;  %12921 = vst [vmem:[#allocation65_spill] sm:$0xff] %v9352_v19  ;;  %v9367_v29 = vsub.s32 %v9350_v15, %v12924_v52  ;;  %v2431_v19 = vrot.slane %v9025_v61, %v9360_v31 }
 0x2d9   : > { %12927 = vst [vmem:[#allocation97_spill] sm:$0xff] %v9367_v29 }
 0x2da   : > { %v9355_v13 = vpop.xlane.xlu0 %2162  ;;  %v9357_v26 = vpop.xlane.xlu1 %2165 }
 0x2db   : > { %12922 = vst [vmem:[#allocation43_spill] sm:$0xff] %v9355_v13  ;;  %12923 = vst [vmem:[#allocation67_spill] sm:$0xff] %v9357_v26  ;;  %v2441_v13 = vadd.s32 4294967272, %v9350_v15  ;;  %v9375_v26 = vsub.s32 %v2434_v62, %v12924_v52 }
 0x2dd   : > { %12929 = vst [vmem:[#allocation99_spill] sm:$0xff] %v9375_v26  ;;  %v9387_v61 = vsub.s32 %v2441_v13, %v12924_v52  ;;  %v2438_v62 = vrot.slane %v9017_v40, %v9375_v26  ;;  %v2469_v13 = vadd.s32 4294967240, %v9350_v15  ;;  %v2539_v40 = vrot.slane %v9097_v9, %v9360_v31 }
 0x2de   : > { %v9363_v58 = vpop.xlane.xlu0 %2168  ;;  %v9369_v6 = vpop.xlane.xlu1 %2171  ;;  %v2483_v9 = vadd.s32 4294967224, %v9350_v15 }
 0x2df   : > { %12926 = vst [vmem:[#allocation96_spill] sm:$0xff] %v9363_v58  ;;  %12928 = vst [vmem:[#allocation98_spill] sm:$0xff] %v9369_v6  ;;  %v2426_v58 = vrot.slane %v9013_v10, %v9367_v29  ;;  %v2455_v6 = vadd.s32 4294967256, %v9350_v15 }
 0x2e0   : > { %12932 = vst [vmem:[#allocation102_spill] sm:$0xff] %v9387_v61 }
 0x2e1   : > { %v2433_v4 = vsel %vm2432_vm2, %v2431_v19, %v2426_v58  ;;  %v9401_v19 = vsub.s32 %v2455_v6, %v12924_v52  ;;  %v2445_v58 = vrot.slane %v9027_v46, %v9387_v61  ;;  %v2544_v6 = vrot.slane %v9105_v32, %v9375_v26 }
 0x2e2   : > { %v9378_v49 = vpop.xlane.xlu0 %2174  ;;  %v9382_v30 = vpop.xlane.xlu1 %2177 }
 0x2e3   : > { %12930 = vst [vmem:[#allocation100_spill] sm:$0xff] %v9378_v49  ;;  %12931 = vst [vmem:[#allocation101_spill] sm:$0xff] %v9382_v30  ;;  %v2462_v49 = vadd.s32 4294967248, %v9350_v15  ;;  %v2440_v30 = vsel %vm2439_vm3, %v2438_v62, %v2433_v4  ;;  %v2452_v4 = vrot.slane %v9035_v24, %v9392_v11  ;;  %v2459_v32 = vrot.slane %v9037_v35, %v9401_v19 }
 0x2e4   : > { %12936 = vst [vmem:[#allocation106_spill] sm:$0xff] %v9401_v19  ;;  %v2447_v46 = vsel %vm2446_vm4, %v2445_v58, %v2440_v30  ;;  %v9431_v24 = vsub.s32 %v2476_v50, %v12924_v52  ;;  %v2549_v58 = vrot.slane %v9107_v55, %v9387_v61  ;;  %v9445_v50 = vsub.s32 %v2483_v9, %v12924_v52 }
 0x2e5   : > { %v9414_v62 = vsub.s32 %v2462_v49, %v12924_v52  ;;  %v2490_v49 = vadd.s32 4294967216, %v9350_v15  ;;  %v2623_v9 = vrot.slane %v9185_v0, %v9375_v26 }
 0x2e6   : > { %v9395_v42 = vpop.xlane.xlu0 %2180  ;;  %v9397_v10 = vpop.xlane.xlu1 %2183  ;;  %12941 = vst [vmem:[#allocation111_spill] sm:$0xff] %v9431_v24  ;;  %12942 = vst [vmem:[#allocation112_spill] sm:$0xff] %v9445_v50 }
 0x2e7   : > { %12934 = vst [vmem:[#allocation104_spill] sm:$0xff] %v9395_v42  ;;  %12935 = vst [vmem:[#allocation105_spill] sm:$0xff] %v9397_v10  ;;  %v2535_v42 = vrot.slane %v9095_v54, %v9367_v29  ;;  %v9425_v54 = vsub.s32 %v2469_v13, %v12924_v52  ;;  %v2466_v13 = vrot.slane %v9045_v3, %v9414_v62 }
 0x2e8   : > { %12937 = vst [vmem:[#allocation107_spill] sm:$0xff] %v9414_v62  ;;  %v2564_v0 = vrot.slane %v9125_v47, %v9414_v62 }
 0x2e9   : > { %12940 = vst [vmem:[#allocation110_spill] sm:$0xff] %v9425_v54  ;;  %v2540_v30 = vsel %vm2432_vm2, %v2539_v40, %v2535_v42  ;;  %v2497_v40 = vadd.s32 4294967208, %v9350_v15  ;;  %v2618_v42 = vrot.slane %v9177_v21, %v9360_v31  ;;  %v2473_v55 = vrot.slane %v9047_v60, %v9425_v54 }
 0x2ea   : > { %v9418_v10 = vpop.xlane.xlu0 %2186  ;;  %v9422_v7 = vpop.xlane.xlu1 %2189  ;;  %v2559_v21 = vrot.slane %v9117_v2, %v9401_v19 }
 0x2eb   : > { %12938 = vst [vmem:[#allocation108_spill] sm:$0xff] %v9418_v10  ;;  %12939 = vst [vmem:[#allocation109_spill] sm:$0xff] %v9422_v7  ;;  %v2454_v7 = vsel %vm2453_vm5, %v2452_v4, %v2447_v46  ;;  %v2545_v10 = vsel %vm2439_vm3, %v2544_v6, %v2540_v30  ;;  %v2614_v46 = vrot.slane %v9175_v36, %v9367_v29  ;;  %v2504_v30 = vadd.s32 4294967200, %v9350_v15 }
 0x2ec   : > { %v9455_v6 = vsub.s32 %v2490_v49, %v12924_v52  ;;  %v2461_v18 = vsel %vm2460_vm6, %v2459_v32, %v2454_v7  ;;  %v2550_v36 = vsel %vm2446_vm4, %v2549_v58, %v2545_v10  ;;  %v2480_v49 = vrot.slane %v9055_v53, %v9431_v24 }
 0x2ed   : > { %v2468_v3 = vsel %vm12638_vm7, %v2466_v13, %v2461_v18  ;;  %v2555_v35 = vsel %vm2453_vm5, %v2554_v44, %v2550_v36  ;;  %v9475_v60 = vsub.s32 %v2497_v40, %v12924_v52  ;;  %v2619_v32 = vsel %vm2432_vm2, %v2618_v42, %v2614_v46 }
 0x2ee   : > { %v9442_v59 = vpop.xlane.xlu0 %2192  ;;  %v9452_v4 = vpop.xlane.xlu1 %2195  ;;  %12944 = vst [vmem:[#allocation114_spill] sm:$0xff] %v9455_v6  ;;  %v2628_v10 = vrot.slane %v9187_v28, %v9387_v61  ;;  %v2511_v7 = vadd.s32 4294967192, %v9350_v15  ;;  %v9484_v36 = vsub.s32 %v2504_v30, %v12924_v52  ;;  %v2624_v44 = vsel %vm2439_vm3, %v2623_v9, %v2619_v32 }
 0x2ef   : > { %12943 = vst [vmem:[#allocation113_spill] sm:$0xff] %v9452_v4  ;;  %12946 = vst [vmem:[#allocation116_spill] sm:$0xff] %v9475_v60  ;;  %v2633_v58 = vrot.slane %v9195_v12, %v9392_v11  ;;  %v2487_v13 = vrot.slane %v9057_v57, %v9445_v50  ;;  %v2475_v40 = vsel %vm12637_vm8, %v2473_v55, %v2468_v3 }
 0x2f0   : > { %v2569_v42 = vrot.slane %v9127_v56, %v9425_v54  ;;  %v2560_v46 = vsel %vm2460_vm6, %v2559_v21, %v2555_v35  ;;  %v2482_v28 = vsel %vm2481_vm9, %v2480_v49, %v2475_v40  ;;  %v2494_v30 = vrot.slane %v9065_v8, %v9455_v6 }
 0x2f1   : > { %v2565_v9 = vsel %vm12638_vm7, %v2564_v0, %v2560_v46  ;;  %v2574_v32 = vrot.slane %v9135_v43, %v9431_v24  ;;  %v2638_v3 = vrot.slane %v9197_v39, %v9401_v19  ;;  %v2629_v55 = vsel %vm2446_vm4, %v2628_v10, %v2624_v44 }
 0x2f2   : > { %v9472_v4 = vpop.xlane.xlu0 %2198  ;;  %v9480_v18 = vpop.xlane.xlu1 %2201  ;;  %v9509_v21 = vsub.s32 %v2511_v7, %v12924_v52  ;;  %v2518_v49 = vadd.s32 4294967184, %v9350_v15  ;;  %v2634_v0 = vsel %vm2453_vm5, %v2633_v58, %v2629_v55  ;;  %v2643_v40 = vrot.slane %v9205_v51, %v9414_v62 }
 0x2f3   : > { %12945 = vst [vmem:[#allocation115_spill] sm:$0xff] %v9472_v4  ;;  %12947 = vst [vmem:[#allocation117_spill] sm:$0xff] %v9480_v18  ;;  %v2501_v46 = vrot.slane %v9067_v45, %v9475_v60  ;;  %v2489_v56 = vsel %vm12487_vm10, %v2487_v13, %v2482_v28  ;;  %v2579_v10 = vrot.slane %v9137_v38, %v9445_v50  ;;  %v12983_v45 = vld [vmem:[#allocation65_spill] sm:$0xff] }
 0x2f4   : > { %v2570_v44 = vsel %vm12637_vm8, %v2569_v42, %v2565_v9  ;;  %v2496_v7 = vsel %vm12489_vm11, %v2494_v30, %v2489_v56  ;;  %v2508_v39 = vrot.slane %v9075_v1, %v9484_v36  ;;  %v2584_v55 = vrot.slane %v9145_v20, %v9455_v6 }
 0x2f5   : > { %v2575_v58 = vsel %vm2481_vm9, %v2574_v32, %v2570_v44  ;;  %v2648_v28 = vrot.slane %v9207_v48, %v9425_v54  ;;  %v2639_v13 = vsel %vm2460_vm6, %v2638_v3, %v2634_v0  ;;  %v2525_v56 = vadd.s32 4294967176, %v9350_v15 }
 0x2f6   : > { %v9501_v2 = vpop.xlane.xlu0 %2204  ;;  %v9506_v35 = vpop.xlane.xlu1 %2207  ;;  %v2644_v42 = vsel %vm12638_vm7, %v2643_v40, %v2639_v13  ;;  %v2653_v30 = vrot.slane %v9215_v41, %v9431_v24  ;;  %v2503_v9 = vsel %vm12490_vm12, %v2501_v46, %v2496_v7  ;;  %v9540_v32 = vsub.s32 %v2518_v49, %v12924_v52 }
 0x2f7   : > { %12948 = vst [vmem:[#allocation118_spill] sm:$0xff] %v9501_v2  ;;  %12949 = vst [vmem:[#allocation119_spill] sm:$0xff] %v9506_v35  ;;  %v2589_v44 = vrot.slane %v9147_v34, %v9475_v60  ;;  %v2580_v3 = vsel %vm12487_vm10, %v2579_v10, %v2575_v58  ;;  %v2515_v0 = vrot.slane %v9077_v14, %v9509_v21  ;;  %v12969_v14 = vld [vmem:[#allocation50_spill] sm:$0xff] }
 0x2f8   : > { %v2510_v15 = vsel %vm2509_vm13, %v2508_v39, %v2503_v9  ;;  %v2585_v40 = vsel %vm12489_vm11, %v2584_v55, %v2580_v3  ;;  %v2594_v13 = vrot.slane %v9155_v22, %v9484_v36  ;;  %v2658_v49 = vrot.slane %v9217_v16, %v9445_v50 }
 0x2f9   : > { %v2649_v46 = vsel %vm12637_vm8, %v2648_v28, %v2644_v42  ;;  %v2776_v10 = vrot.slane %v9257_v33, %v9360_v31  ;;  %v2772_v7 = vrot.slane %v9255_v17, %v9367_v29  ;;  %v9563_v39 = vsub.s32 %v2525_v56, %v12924_v52  ;;  %v12954_v56 = vld [vmem:[#allocation55_spill] sm:$0xff] }
 0x2fa   : > { %v9527_v51 = vpop.xlane.xlu0 %2210  ;;  %v9532_v38 = vpop.xlane.xlu1 %2213  ;;  %v2654_v55 = vsel %vm2481_vm9, %v2653_v30, %v2649_v46  ;;  %v2663_v9 = vrot.slane %v9225_v25, %v9455_v6  ;;  %v2781_v3 = vrot.slane %v9265_v63, %v9375_v26  ;;  %v2599_v28 = vrot.slane %v9157_v37, %v9509_v21  ;;  %v12955_v46 = vld [vmem:[#allocation17_spill] sm:$0xff] }
 0x2fb   : > { %12950 = vst [vmem:[#allocation120_spill] sm:$0xff] %v9527_v51  ;;  %12951 = vst [vmem:[#allocation121_spill] sm:$0xff] %v9532_v38  ;;  %v2590_v42 = vsel %vm12490_vm12, %v2589_v44, %v2585_v40  ;;  %v2517_v33 = vsel %vm2516_vm14, %v2515_v0, %v2510_v15  ;;  %v2522_v17 = vrot.slane %v12954_v56, %v9540_v32 }
 0x2fc   : > { %12953 = vst [vmem:[#allocation123_spill] sm:$0xff] %v9563_v39  ;;  %v2595_v30 = vsel %vm2509_vm13, %v2594_v13, %v2590_v42  ;;  %v2604_v16 = vrot.slane %v12955_v46, %v9540_v32  ;;  %v2668_v63 = vrot.slane %v9227_v27, %v9475_v60  ;;  %v2659_v25 = vsel %vm12487_vm10, %v2658_v49, %v2654_v55  ;;  %v12958_v42 = vld [vmem:[#allocation46_spill] sm:$0xff]  ;;  %v12959_v27 = vld [vmem:[#allocation83_spill] sm:$0xff] }
 0x2fd   : > { %v2777_v37 = vsel %vm2432_vm2, %v2776_v10, %v2772_v7  ;;  %v2786_v44 = vrot.slane %v9267_v23, %v9387_v61  ;;  %v2664_v15 = vsel %vm12489_vm11, %v2663_v9, %v2659_v25  ;;  %v2673_v40 = vrot.slane %v9235_v5, %v9484_v36  ;;  %v12960_v7 = vld [vmem:[#allocation72_spill] sm:$0xff]  ;;  %v12961_v23 = vld [vmem:[#allocation70_spill] sm:$0xff] }
 0x2fe   : > { %v9551_v48 = vpop.xlane.xlu0 %2216  ;;  %v9560_v58 = vpop.xlane.xlu1 %2219  ;;  %v2782_v13 = vsel %vm2439_vm3, %v2781_v3, %v2777_v37  ;;  %v2791_v41 = vrot.slane %v12958_v42, %v9392_v11  ;;  %v2529_v49 = vrot.slane %v12959_v27, %v9563_v39  ;;  %v2600_v10 = vsel %vm2516_vm14, %v2599_v28, %v2595_v30  ;;  %v12962_v9 = vld [vmem:[#allocation18_spill] sm:$0xff]  ;;  %v12965_v28 = vld [vmem:[#allocation32_spill] sm:$0xff] }
 0x2ff   : > { %12952 = vst [vmem:[#allocation122_spill] sm:$0xff] %v9560_v58  ;;  %v2697_v55 = vrot.slane %v12960_v7, %v9360_v31  ;;  %v2693_v12 = vrot.slane %v12961_v23, %v9367_v29  ;;  %v2524_v25 = vsel %vm2523_vm15, %v2522_v17, %v2517_v33  ;;  %v2609_v5 = vrot.slane %v12962_v9, %v9563_v39  ;;  %v12963_v3 = vld [vmem:[#allocation74_spill] sm:$0xff]  ;;  %v12966_v27 = vld [vmem:[#allocation48_spill] sm:$0xff] }
 0x300   : > { %v2605_v37 = vsel %vm2523_vm15, %v2604_v16, %v2600_v10  ;;  %v2702_v42 = vrot.slane %v12963_v3, %v9375_v26  ;;  %v2678_v30 = vrot.slane %v12965_v28, %v9509_v21  ;;  %v2669_v7 = vsel %vm12490_vm12, %v2668_v63, %v2664_v15  ;;  %v12968_v16 = vld [vmem:[#allocation34_spill] sm:$0xff]  ;;  %v12970_v63 = vld [vmem:[#allocation76_spill] sm:$0xff] }
 0x301   : > { %v2796_v23 = vrot.slane %v12966_v27, %v9401_v19  ;;  %v2787_v17 = vsel %vm2446_vm4, %v2786_v44, %v2782_v13  ;;  %v2674_v9 = vsel %vm2509_vm13, %v2673_v40, %v2669_v7  ;;  %v2683_v10 = vrot.slane %v12968_v16, %v9540_v32  ;;  %v12971_v40 = vld [vmem:[#allocation78_spill] sm:$0xff] }
 0x302   : > { %v9579_v34 = vpop.xlane.xlu0 %2222  ;;  %v9587_v0 = vpop.xlane.xlu1 %2225  ;;  %v2792_v3 = vsel %vm2453_vm5, %v2791_v41, %v2787_v17  ;;  %v2801_v22 = vrot.slane %v12969_v14, %v9414_v62  ;;  %v2698_v28 = vsel %vm2432_vm2, %v2697_v55, %v2693_v12  ;;  %v2707_v15 = vrot.slane %v12970_v63, %v9387_v61  ;;  %v12972_v14 = vld [vmem:[#allocation52_spill] sm:$0xff] }
 0x303   : > { %12956 = vst [vmem:[#allocation55_spill] sm:$0xff] %v9579_v34  ;;  %12957 = vst [vmem:[#allocation124_spill] sm:$0xff] %v9587_v0  ;;  %v2531_v27 = vsel %vm2530_vm0, %v2529_v49, %v2524_v25  ;;  %v2703_v44 = vsel %vm2439_vm3, %v2702_v42, %v2698_v28  ;;  %v2712_v13 = vrot.slane %v12971_v40, %v9392_v11  ;;  %v12973_v49 = vld [vmem:[#allocation36_spill] sm:$0xff]  ;;  %v12974_v40 = vld [vmem:[#allocation54_spill] sm:$0xff] }
 0x304   : > { %v2610_v41 = vsel %vm2530_vm0, %v2609_v5, %v2605_v37  ;;  %v2679_v17 = vsel %vm2516_vm14, %v2678_v30, %v2674_v9  ;;  %v2806_v12 = vrot.slane %v12972_v14, %v9425_v54  ;;  %v2797_v55 = vsel %vm2460_vm6, %v2796_v23, %v2792_v3  ;;  %v12975_v5 = vld [vmem:[#allocation80_spill] sm:$0xff]  ;;  %v12976_v30 = vld [vmem:[#allocation37_spill] sm:$0xff]  ;;  %v12977_v3 = vld [vmem:[#allocation39_spill] sm:$0xff] }
 0x305   : > { %v2688_v25 = vrot.slane %v12973_v49, %v9563_v39  ;;  %v2684_v42 = vsel %vm2523_vm15, %v2683_v10, %v2679_v17  ;;  %v2802_v28 = vsel %vm12638_vm7, %v2801_v22, %v2797_v55  ;;  %v2811_v16 = vrot.slane %v12974_v40, %v9431_v24  ;;  %v12978_v22 = vld [vmem:[#allocation82_spill] sm:$0xff]  ;;  %v12979_v55 = vld [vmem:[#allocation41_spill] sm:$0xff] }
 0x306   : > { %v9608_v46 = vpop.xlane.xlu0 %2228  ;;  %v9616_v33 = vpop.xlane.xlu1 %2231  ;;  %v2717_v9 = vrot.slane %v12975_v5, %v9401_v19  ;;  %v2708_v37 = vsel %vm2446_vm4, %v2707_v15, %v2703_v44  ;;  %v2855_v23 = vrot.slane %v12976_v30, %v9360_v31  ;;  %v2851_v14 = vrot.slane %v12977_v3, %v9367_v29  ;;  %v12980_v15 = vld [vmem:[#allocation56_spill] sm:$0xff] }
 0x307   : > { %12964 = vst [vmem:[#allocation125_spill] sm:$0xff] %v9608_v46  ;;  %12967 = vst [vmem:[#allocation126_spill] sm:$0xff] %v9616_v33  ;;  %v9654_v49 = vsel %vm12459_vm1, %v2610_v41, %v2531_v27  ;;  %v2713_v10 = vsel %vm2453_vm5, %v2712_v13, %v2708_v37  ;;  %v2722_v17 = vrot.slane %v12978_v22, %v9414_v62  ;;  %vm12488_vm1 = vcmask 1042434  }
 0x308   : > { %v2860_v40 = vrot.slane %v12979_v55, %v9375_v26  ;;  %v2816_v44 = vrot.slane %v12980_v15, %v9445_v50  ;;  %v2807_v30 = vsel %vm12637_vm8, %v2806_v12, %v2802_v28  ;;  %v2934_v3 = vrot.slane %v9480_v18, %v9360_v31  ;;  %v12981_v55 = vld [vmem:[#allocation58_spill] sm:$0xff]  ;;  %v12982_v12 = vld [vmem:[#allocation84_spill] sm:$0xff] }
 0x309   : > { %v2930_v27 = vrot.slane %v9472_v4, %v9367_v29  ;;  %v9673_v41 = vsel %vm2530_vm0, %v2688_v25, %v2684_v42  ;;  %v2812_v37 = vsel %vm2481_vm9, %v2811_v16, %v2807_v30  ;;  %v2821_v22 = vrot.slane %v12981_v55, %v9455_v6  ;;  %v12984_v16 = vld [vmem:[#allocation87_spill] sm:$0xff] }
 0x30a   : > { %v9631_v7 = vpop.xlane.xlu0 %2234  ;;  %v9638_v63 = vpop.xlane.xlu1 %2237  ;;  %v2939_v15 = vrot.slane %v9501_v2, %v9375_v26  ;;  %v2727_v28 = vrot.slane %v12982_v12, %v9425_v54  ;;  %v2718_v18 = vsel %vm2460_vm6, %v2717_v9, %v2713_v10  ;;  %v2856_v4 = vsel %vm2432_vm2, %v2855_v23, %v2851_v14  ;;  %v12985_v55 = vld [vmem:[#allocation43_spill] sm:$0xff]  ;;  %v12987_v12 = vld [vmem:[#allocation60_spill] sm:$0xff] }
 0x30b   : > { %v2865_v20 = vrot.slane %v12983_v45, %v9387_v61  ;;  %v2723_v25 = vsel %vm12638_vm7, %v2722_v17, %v2718_v18  ;;  %v2732_v42 = vrot.slane %v12984_v16, %v9431_v24  ;;  %v2861_v30 = vsel %vm2439_vm3, %v2860_v40, %v2856_v4 }
 0x30c   : > { %v2870_v2 = vrot.slane %v12985_v55, %v9392_v11  ;;  %v2826_v9 = vrot.slane %v12987_v12, %v9475_v60  ;;  %v2817_v14 = vsel %vm12487_vm10, %v2816_v44, %v2812_v37  ;;  %v2935_v23 = vsel %vm2432_vm2, %v2934_v3, %v2930_v27  ;;  %v12989_v27 = vld [vmem:[#allocation67_spill] sm:$0xff] }
 0x30d   : > { %v2944_v18 = vrot.slane %v9506_v35, %v9387_v61  ;;  %v2940_v17 = vsel %vm2439_vm3, %v2939_v15, %v2935_v23  ;;  %v2949_v4 = vrot.slane %v9527_v51, %v9392_v11  ;;  %v2822_v44 = vsel %vm12489_vm11, %v2821_v22, %v2817_v14  ;;  %v12990_v15 = vld [vmem:[#allocation89_spill] sm:$0xff] }
 0x30e   : > { %v9661_v5 = vpop.xlane.xlu0 %2240  ;;  %v9670_v13 = vpop.xlane.xlu1 %2243  ;;  %v2728_v3 = vsel %vm12637_vm8, %v2727_v28, %v2723_v25  ;;  %v2875_v37 = vrot.slane %v12989_v27, %v9401_v19  ;;  %v2866_v35 = vsel %vm2446_vm4, %v2865_v20, %v2861_v30  ;;  %v2737_v23 = vrot.slane %v12990_v15, %v9445_v50  ;;  %v12993_v22 = vld [vmem:[#allocation93_spill] sm:$0xff] }
 0x30f   : > { %v2733_v51 = vsel %vm2481_vm9, %v2732_v42, %v2728_v3  ;;  %v2871_v12 = vsel %vm2453_vm5, %v2870_v2, %v2866_v35  ;;  %v2742_v28 = vrot.slane %v12993_v22, %v9455_v6  ;;  %v2954_v25 = vrot.slane %v9532_v38, %v9401_v19  ;;  %v12995_v38 = vld [vmem:[#allocation98_spill] sm:$0xff] }
 0x310   : > { %v2945_v20 = vsel %vm2446_vm4, %v2944_v18, %v2940_v17  ;;  %v2959_v35 = vrot.slane %v9551_v48, %v9414_v62  ;;  %v2885_v18 = vrot.slane %v12995_v38, %v9425_v54  ;;  %v2876_v17 = vsel %vm2460_vm6, %v2875_v37, %v2871_v12 }
 0x311   : > { %v2950_v2 = vsel %vm2453_vm5, %v2949_v4, %v2945_v20  ;;  %v2738_v20 = vsel %vm12487_vm10, %v2737_v23, %v2733_v51 }
 0x312   : > { %v9692_v57 = vpop.xlane.xlu0 %2246  ;;  %v9700_v10 = vpop.xlane.xlu1 %2249  ;;  %v2955_v12 = vsel %vm2460_vm6, %v2954_v25, %v2950_v2  ;;  %v13001_v25 = vld [vmem:[#allocation101_spill] sm:$0xff] }
 0x313   : > { %12986 = vst [vmem:[#allocation87_spill] sm:$0xff] %v9692_v57  ;;  %12988 = vst [vmem:[#allocation43_spill] sm:$0xff] %v9700_v10  ;;  %v3013_v40 = vrot.slane %v9700_v10, %v9360_v31  ;;  %v3009_v45 = vrot.slane %v9692_v57, %v9367_v29  ;;  %v12991_v31 = vld [vmem:[#allocation96_spill] sm:$0xff]  ;;  %v2827_v57 = vsel %vm12490_vm12, %v2826_v9, %v2822_v44 }
 0x314   : > { %v2880_v10 = vrot.slane %v12991_v31, %v9414_v62  ;;  %v2743_v9 = vsel %vm12489_vm11, %v2742_v28, %v2738_v20  ;;  %v2964_v44 = vrot.slane %v9560_v58, %v9425_v54  ;;  %v2960_v51 = vsel %vm12638_vm7, %v2959_v35, %v2955_v12  ;;  %v13002_v35 = vld [vmem:[#allocation64_spill] sm:$0xff] }
 0x315   : > { %v3014_v14 = vsel %vm2432_vm2, %v3013_v40, %v3009_v45  ;;  %v12997_v45 = vld [vmem:[#allocation100_spill] sm:$0xff]  ;;  %v2895_v2 = vrot.slane %v13001_v25, %v9445_v50  ;;  %v2836_v12 = vrot.slane %v13002_v35, %v9509_v21 }
 0x316   : > { %v9720_v29 = vpop.xlane.xlu0 %2252  ;;  %v9727_v30 = vpop.xlane.xlu1 %2255  ;;  %v2890_v40 = vrot.slane %v12997_v45, %v9431_v24 }
 0x317   : > { %12992 = vst [vmem:[#allocation89_spill] sm:$0xff] %v9720_v29  ;;  %12994 = vst [vmem:[#allocation96_spill] sm:$0xff] %v9727_v30  ;;  %v3018_v42 = vrot.slane %v9720_v29, %v9375_v26  ;;  %v3023_v3 = vrot.slane %v9727_v30, %v9387_v61  ;;  %v12996_v26 = vld [vmem:[#allocation95_spill] sm:$0xff]  ;;  %v2881_v29 = vsel %vm12638_vm7, %v2880_v10, %v2876_v17  ;;  %v13003_v30 = vld [vmem:[#allocation94_spill] sm:$0xff] }
 0x318   : > { %v2747_v4 = vrot.slane %v12996_v26, %v9475_v60  ;;  %v2969_v10 = vrot.slane %v9579_v34, %v9431_v24  ;;  %v2886_v20 = vsel %vm12637_vm8, %v2885_v18, %v2881_v29  ;;  %v2752_v58 = vrot.slane %v13003_v30, %v9484_v36 }
 0x319   : > { %v3019_v27 = vsel %vm2439_vm3, %v3018_v42, %v3014_v14  ;;  %v13000_v14 = vld [vmem:[#allocation62_spill] sm:$0xff]  ;;  %v2974_v29 = vrot.slane %v9587_v0, %v9445_v50  ;;  %v2965_v18 = vsel %vm12637_vm8, %v2964_v44, %v2960_v51  ;;  %v13008_v44 = vld [vmem:[#allocation105_spill] sm:$0xff] }
 0x31a   : > { %v9748_v61 = vpop.xlane.xlu0 %2258  ;;  %v9754_v37 = vpop.xlane.xlu1 %2261  ;;  %v3024_v28 = vsel %vm2446_vm4, %v3023_v3, %v3019_v27  ;;  %v2831_v17 = vrot.slane %v13000_v14, %v9484_v36  ;;  %v13004_v27 = vld [vmem:[#allocation104_spill] sm:$0xff]  ;;  %v2970_v25 = vsel %vm2481_vm9, %v2969_v10, %v2965_v18  ;;  %v2905_v51 = vrot.slane %v13008_v44, %v9475_v60  ;;  %v13009_v18 = vld [vmem:[#allocation33_spill] sm:$0xff] }
 0x31b   : > { %12998 = vst [vmem:[#allocation93_spill] sm:$0xff] %v9748_v61  ;;  %12999 = vst [vmem:[#allocation98_spill] sm:$0xff] %v9754_v37  ;;  %v3028_v42 = vrot.slane %v9748_v61, %v9392_v11  ;;  %v3033_v23 = vrot.slane %v9754_v37, %v9401_v19  ;;  %v2891_v19 = vsel %vm2481_vm9, %v2890_v40, %v2886_v20 }
 0x31c   : > { %v2900_v3 = vrot.slane %v13004_v27, %v9455_v6  ;;  %v2748_v61 = vsel %vm12490_vm12, %v2747_v4, %v2743_v9  ;;  %v2979_v40 = vrot.slane %v9608_v46, %v9455_v6  ;;  %v13007_v9 = vld [vmem:[#allocation35_spill] sm:$0xff]  ;;  %v2896_v34 = vsel %vm12487_vm10, %v2895_v2, %v2891_v19 }
 0x31d   : > { %v3029_v11 = vsel %vm2453_vm5, %v3028_v42, %v3024_v28  ;;  %v2757_v0 = vrot.slane %v13007_v9, %v9509_v21  ;;  %v2753_v10 = vsel %vm2509_vm13, %v2752_v58, %v2748_v61  ;;  %v2984_v44 = vrot.slane %v9616_v33, %v9475_v60  ;;  %v13015_v33 = vld [vmem:[#allocation109_spill] sm:$0xff] }
 0x31e   : > { %v9777_v37 = vpop.xlane.xlu0 %2264  ;;  %v9783_v42 = vpop.xlane.xlu1 %2267  ;;  %v3034_v4 = vsel %vm2460_vm6, %v3033_v23, %v3029_v11  ;;  %v2901_v46 = vsel %vm12489_vm11, %v2900_v3, %v2896_v34  ;;  %v2975_v19 = vsel %vm12487_vm10, %v2974_v29, %v2970_v25  ;;  %v2989_v34 = vrot.slane %v9631_v7, %v9484_v36 }
 0x31f   : > { %13005 = vst [vmem:[#allocation95_spill] sm:$0xff] %v9777_v37  ;;  %13006 = vst [vmem:[#allocation100_spill] sm:$0xff] %v9783_v42  ;;  %v3038_v28 = vrot.slane %v9777_v37, %v9414_v62  ;;  %v3043_v20 = vrot.slane %v9783_v42, %v9425_v54  ;;  %v2762_v37 = vrot.slane %v13009_v18, %v9540_v32  ;;  %v13010_v54 = vld [vmem:[#allocation108_spill] sm:$0xff] }
 0x320   : > { %v2910_v11 = vrot.slane %v13010_v54, %v9484_v36  ;;  %v2832_v42 = vsel %vm2509_vm13, %v2831_v17, %v2827_v57  ;;  %v2980_v58 = vsel %vm12489_vm11, %v2979_v40, %v2975_v19  ;;  %v13013_v17 = vld [vmem:[#allocation66_spill] sm:$0xff]  ;;  %v2758_v25 = vsel %vm2516_vm14, %v2757_v0, %v2753_v10 }
 0x321   : > { %v3039_v62 = vsel %vm12638_vm7, %v3038_v28, %v3034_v4  ;;  %v2841_v28 = vrot.slane %v13013_v17, %v9540_v32  ;;  %v2906_v29 = vsel %vm12490_vm12, %v2905_v51, %v2901_v46  ;;  %v2763_v19 = vsel %vm2523_vm15, %v2762_v37, %v2758_v25 }
 0x322   : > { %v9805_v23 = vpop.xlane.xlu0 %2270  ;;  %v9811_v2 = vpop.xlane.xlu1 %2273  ;;  %v3044_v57 = vsel %vm12637_vm8, %v3043_v20, %v3039_v62  ;;  %v2920_v20 = vrot.slane %v9442_v59, %v9540_v32  ;;  %v2994_v46 = vrot.slane %v9638_v63, %v9509_v21  ;;  %v2985_v0 = vsel %vm12490_vm12, %v2984_v44, %v2980_v58  ;;  %v13017_v44 = vld [vmem:[#allocation68_spill] sm:$0xff] }
 0x323   : > { %13011 = vst [vmem:[#allocation62_spill] sm:$0xff] %v9805_v23  ;;  %13012 = vst [vmem:[#allocation64_spill] sm:$0xff] %v9811_v2  ;;  %v3048_v61 = vrot.slane %v9805_v23, %v9431_v24  ;;  %v3053_v3 = vrot.slane %v9811_v2, %v9445_v50  ;;  %v13014_v24 = vld [vmem:[#allocation12_spill] sm:$0xff]  ;;  %v2915_v23 = vrot.slane %v13015_v33, %v9509_v21 }
 0x324   : > { %v2767_v40 = vrot.slane %v13014_v24, %v9563_v39  ;;  %v2911_v50 = vsel %vm2509_vm13, %v2910_v11, %v2906_v29  ;;  %v2990_v10 = vsel %vm2509_vm13, %v2989_v34, %v2985_v0  ;;  %v2999_v11 = vrot.slane %v9661_v5, %v9540_v32  ;;  %v13018_v0 = vld [vmem:[#allocation113_spill] sm:$0xff] }
 0x325   : > { %v3049_v4 = vsel %vm2481_vm9, %v3048_v61, %v3044_v57  ;;  %v3088_v25 = vsel %vm12488_vm1, %v9673_v41, %v9654_v49  ;;  %v2846_v58 = vrot.slane %v13017_v44, %v9563_v39  ;;  %v2837_v29 = vsel %vm2516_vm14, %v2836_v12, %v2832_v42 }
 0x326   : > { %v9832_v62 = vpop.xlane.xlu0 %2276  ;;  %v9839_v51 = vpop.xlane.xlu1 %2279  ;;  %v3054_v57 = vsel %vm12487_vm10, %v3053_v3, %v3049_v4  ;;  %v2768_v34 = vsel %vm2530_vm0, %v2767_v40, %v2763_v19  ;;  %v2925_v2 = vrot.slane %v13018_v0, %v9563_v39  ;;  %vm12491_vm10 = vcmask 1043459  }
 0x327   : > { %13016 = vst [vmem:[#allocation94_spill] sm:$0xff] %v9839_v51  ;;  %v3058_v37 = vrot.slane %v9832_v62, %v9455_v6  ;;  %v3063_v61 = vrot.slane %v9839_v51, %v9475_v60  ;;  %v2916_v60 = vsel %vm2516_vm14, %v2915_v23, %v2911_v50  ;;  %v3004_v49 = vrot.slane %v9670_v13, %v9563_v39 }
 0x328   : > { %v2921_v3 = vsel %vm2523_vm15, %v2920_v20, %v2916_v60  ;;  %v2995_v41 = vsel %vm2516_vm14, %v2994_v46, %v2990_v10  ;;  %v2842_v4 = vsel %vm2523_vm15, %v2841_v28, %v2837_v29  ;;  %v3090_v19 = vsel %vm12491_vm10, %v2768_v34, %v3088_v25 }
 0x329   : > { %v3059_v6 = vsel %vm12489_vm11, %v3058_v37, %v3054_v57  ;;  %v3000_v40 = vsel %vm2523_vm15, %v2999_v11, %v2995_v41  ;;  %vm3091_vm1 = vcmask 1044484   ;;  %v2926_v46 = vsel %vm2530_vm0, %v2925_v2, %v2921_v3  ;;  %v13019_v41 = vld [vmem:[#allocation91_spill] sm:$0xff] }
 0x32a   : > { %v9860_v51 = vpop.xlane.xlu0 %2282  ;;  %v9866_v12 = vpop.xlane.xlu1 %2285  ;;  %v3064_v23 = vsel %vm12490_vm12, %v3063_v61, %v3059_v6  ;;  %vm12636_vm11 = vcmask 1045509   ;;  %v2847_v37 = vsel %vm2530_vm0, %v2846_v58, %v2842_v4  ;;  %v3005_v11 = vsel %vm2530_vm0, %v3004_v49, %v3000_v40  ;;  %v13020_v4 = vld [vmem:[#allocation71_spill] sm:$0xff] }
 0x32b   : > { %v3068_v42 = vrot.slane %v9860_v51, %v9484_v36  ;;  %v3073_v50 = vrot.slane %v9866_v12, %v9509_v21  ;;  %vm12635_vm12 = vcmask 1046534   ;;  %v3092_v57 = vsel %vm3091_vm1, %v2847_v37, %v3090_v19  ;;  %v13022_v19 = vld [vmem:[#allocation47_spill] sm:$0xff] }
 0x32c   : > { %vm12634_vm10 = vcmask 1047559   ;;  %v3094_v25 = vsel %vm12636_vm11, %v2926_v46, %v3092_v57  ;;  %v7623_v3 = vmov 0   ;;  %vm13309_vm11 = vcmask 786112  }
 0x32d   : > { %v3069_v60 = vsel %vm2509_vm13, %v3068_v42, %v3064_v23  ;;  %v3096_v29 = vsel %vm12635_vm12, %v3005_v11, %v3094_v25  ;;  %7104 = vset.pattern.permute.xlu0 %v7623_v3  ;;  %7103 = vset.pattern.permute.xlu1 %v7623_v3  ;;  %v12492_v11 = vsub.s32 1, %v12924_v52  ;;  %v13024_v3 = vld [vmem:[#allocation75_spill] sm:$0xff]  ;;  %vm13308_vm12 = vcmask 654912  }
 0x32e   : > { %v9877_v20 = vpop.xlane.xlu0 %2288  ;;  %v9881_v28 = vpop.xlane.xlu1 %2291  ;;  %v3074_v61 = vsel %vm2516_vm14, %v3073_v50, %v3069_v60  ;;  %v13021_v50 = vld [vmem:[#allocation45_spill] sm:$0xff] }
 0x32f   : > { %v3078_v10 = vrot.slane %v9877_v20, %v9540_v32  ;;  %v3083_v6 = vrot.slane %v9881_v28, %v9563_v39 }
 0x331   : > { %v3079_v2 = vsel %vm2523_vm15, %v3078_v10, %v3074_v61 }
 0x332   : > { %v3084_v58 = vsel %vm2530_vm0, %v3083_v6, %v3079_v2  ;;  %v13023_v2 = vld [vmem:[#allocation73_spill] sm:$0xff] }
 0x333   : > { %v3098_v34 = vsel %vm12634_vm10, %v3084_v58, %v3096_v29  ;;  %vm13304_vm10 = vcmask 654912  }
 0x334   : > { %3100 = vmax.xlane.f32.xlu0 %v3098_v34 }
 0x3bd   : > { %v9895_v49 = vpop.xlane.xlu0 %3100 }
 0x3be   : > { %v9899_v42 = vrot.slane %v9895_v49, %v13019_v41 }
 0x3c0   : > { %v3144_v40 = vsub.f32 %v13020_v4, %v9899_v42  ;;  %v3143_v23 = vsub.f32 %v13021_v50, %v9899_v42  ;;  %v3153_v60 = vsub.f32 %v9065_v8, %v9899_v42  ;;  %v3145_v46 = vsub.f32 %v13022_v19, %v9899_v42 }
 0x3c1   : > { %v3155_v61 = vsub.f32 %v9075_v1, %v9899_v42  ;;  %v3146_v25 = vsub.f32 %v13023_v2, %v9899_v42  ;;  %v9917_v8 = vrot.slane %v9895_v49, %v12492_v11  ;;  %v3157_v29 = vsub.f32 %v12954_v56, %v9899_v42  ;;  %v13050_v11 = vld [vmem:[#allocation83_spill] sm:$0xff] }
 0x3c2   : > { %v3273_v37 = vmul.f32 1.442695, %v3144_v40  ;;  %v3271_v10 = vmul.f32 1.442695, %v3143_v23  ;;  %v3291_v6 = vmul.f32 1.442695, %v3153_v60  ;;  %v3147_v1 = vsub.f32 %v13024_v3, %v9899_v42 }
 0x3c3   : > { %v3275_v57 = vmul.f32 1.442695, %v3145_v46  ;;  %v3295_v58 = vmul.f32 1.442695, %v3155_v61  ;;  %v3277_v34 = vmul.f32 1.442695, %v3146_v25 }
 0x3c4   : > { %7105 = vpow2.f32 %v3273_v37  ;;  %v3299_v4 = vmul.f32 1.442695, %v3157_v29  ;;  %v13025_v40 = vld [vmem:[#allocation85_spill] sm:$0xff]  ;;  %v3279_v23 = vmul.f32 1.442695, %v3147_v1  ;;  %v13029_v61 = vld [vmem:[#allocation79_spill] sm:$0xff] }
 0x3c5   : > { %7107 = vpow2.f32 %v3271_v10  ;;  %v3159_v50 = vsub.f32 %v13025_v40, %v9917_v8  ;;  %v13026_v60 = vld [vmem:[#allocation77_spill] sm:$0xff] }
 0x3c6   : > { %7109 = vpow2.f32 %v3291_v6  ;;  %v3148_v19 = vsub.f32 %v13026_v60, %v9899_v42  ;;  %v13027_v37 = vld [vmem:[#allocation57_spill] sm:$0xff] }
 0x3c7   : > { %7111 = vpow2.f32 %v3275_v57  ;;  %v3303_v46 = vmul.f32 1.442695, %v3159_v50  ;;  %v3161_v56 = vsub.f32 %v13027_v37, %v9917_v8  ;;  %v3149_v57 = vsub.f32 %v13029_v61, %v9899_v42  ;;  %v13033_v1 = vld [vmem:[#allocation49_spill] sm:$0xff] }
 0x3c8   : > { %7113 = vpow2.f32 %v3295_v58  ;;  %v3281_v6 = vmul.f32 1.442695, %v3148_v19  ;;  %v13031_v58 = vld [vmem:[#allocation90_spill] sm:$0xff] }
 0x3c9   : > { %7115 = vpow2.f32 %v3277_v34  ;;  %v3307_v25 = vmul.f32 1.442695, %v3161_v56  ;;  %v3163_v29 = vsub.f32 %v13031_v58, %v9917_v8  ;;  %v3283_v3 = vmul.f32 1.442695, %v3149_v57  ;;  %v13038_v57 = vld [vmem:[#allocation51_spill] sm:$0xff] }
 0x3ca   : > { %7117 = vpow2.f32 %v3299_v4  ;;  %v3150_v4 = vsub.f32 %v13033_v1, %v9899_v42 }
 0x3cb   : > { %7119 = vpow2.f32 %v3279_v23  ;;  %v3311_v50 = vmul.f32 1.442695, %v3163_v29  ;;  %v3165_v23 = vsub.f32 %v9125_v47, %v9917_v8  ;;  %v13040_v29 = vld [vmem:[#allocation14_spill] sm:$0xff] }
 0x3cc   : > { %7121 = vpow2.f32 %v3303_v46  ;;  %v3285_v19 = vmul.f32 1.442695, %v3150_v4  ;;  %v3151_v46 = vsub.f32 %v9055_v53, %v9899_v42  ;;  %v13042_v4 = vld [vmem:[#allocation53_spill] sm:$0xff] }
 0x3cd   : > { %7123 = vpow2.f32 %v3281_v6  ;;  %v3315_v56 = vmul.f32 1.442695, %v3165_v23  ;;  %v3167_v6 = vsub.f32 %v9135_v43, %v9917_v8 }
 0x3ce   : > { %7125 = vpow2.f32 %v3307_v25  ;;  %v3287_v47 = vmul.f32 1.442695, %v3151_v46  ;;  %v3152_v25 = vsub.f32 %v13038_v57, %v9899_v42 }
 0x3cf   : > { %7127 = vpow2.f32 %v3283_v3  ;;  %v3319_v53 = vmul.f32 1.442695, %v3167_v6  ;;  %v3169_v3 = vsub.f32 %v13040_v29, %v9917_v8 }
 0x3d0   : > { %7129 = vpow2.f32 %v3311_v50  ;;  %v3289_v43 = vmul.f32 1.442695, %v3152_v25  ;;  %v3154_v50 = vsub.f32 %v13042_v4, %v9899_v42  ;;  %v13046_v25 = vld [vmem:[#allocation81_spill] sm:$0xff] }
 0x3d1   : > { %v9929_v10 = vpop.eup %7105  ;;  %7131 = vpow2.f32 %v3285_v19  ;;  %v12495_v19 = vsub.s32 2, %v12924_v52  ;;  %v3323_v46 = vmul.f32 1.442695, %v3169_v3  ;;  %v3156_v29 = vsub.f32 %v13046_v25, %v9899_v42 }
 0x3d2   : > { %13028 = vst [vmem:[#allocation104_spill] sm:$0xff] %v9929_v10  ;;  %v9933_v2 = vpop.eup %7107  ;;  %3659 = vperm.xlu0 %7104, %v9929_v10   ;;  %7133 = vpow2.f32 %v3315_v56  ;;  %v13044_v56 = vld [vmem:[#allocation15_spill] sm:$0xff] }
 0x3d3   : > { %13030 = vst [vmem:[#allocation35_spill] sm:$0xff] %v9933_v2  ;;  %3656 = vperm.xlu1 %7103, %v9933_v2   ;;  %v9939_v34 = vpop.eup %7109  ;;  %7135 = vpow2.f32 %v3287_v47  ;;  %v3171_v6 = vsub.f32 %v13044_v56, %v9917_v8  ;;  %v3293_v47 = vmul.f32 1.442695, %v3154_v50  ;;  %v13048_v56 = vld [vmem:[#allocation17_spill] sm:$0xff]  ;;  %v3297_v25 = vmul.f32 1.442695, %v3156_v29 }
 0x3d4   : > { %13032 = vst [vmem:[#allocation33_spill] sm:$0xff] %v9939_v34  ;;  %v9943_v40 = vpop.eup %7111  ;;  %7137 = vpow2.f32 %v3319_v53  ;;  %v9991_v53 = vrot.slane %v9895_v49, %v12495_v19 }
 0x3d5   : > { %13034 = vst [vmem:[#allocation108_spill] sm:$0xff] %v9943_v40  ;;  %v9949_v60 = vpop.eup %7113  ;;  %7139 = vpow2.f32 %v3289_v43  ;;  %v3327_v3 = vmul.f32 1.442695, %v3171_v6  ;;  %v3173_v43 = vsub.f32 %v13048_v56, %v9917_v8 }
 0x3d6   : > { %3686 = vperm.xlu0 %7104, %v9939_v34   ;;  %13035 = vst [vmem:[#allocation66_spill] sm:$0xff] %v9949_v60  ;;  %v9953_v37 = vpop.eup %7115  ;;  %7141 = vpow2.f32 %v3323_v46  ;;  %v13052_v46 = vld [vmem:[#allocation19_spill] sm:$0xff] }
 0x3d7   : > { %3662 = vperm.xlu1 %7103, %v9943_v40   ;;  %13036 = vst [vmem:[#allocation12_spill] sm:$0xff] %v9953_v37  ;;  %v9959_v61 = vpop.eup %7117  ;;  %7143 = vpow2.f32 %v3293_v47  ;;  %v3331_v19 = vmul.f32 1.442695, %v3173_v43  ;;  %v3175_v6 = vsub.f32 %v13052_v46, %v9991_v53  ;;  %v13054_v47 = vld [vmem:[#allocation88_spill] sm:$0xff] }
 0x3d8   : > { %13037 = vst [vmem:[#allocation109_spill] sm:$0xff] %v9959_v61  ;;  %v9963_v58 = vpop.eup %7119  ;;  %7145 = vpow2.f32 %v3327_v3  ;;  %v3160_v29 = vsub.f32 %v13054_v47, %v9917_v8 }
 0x3d9   : > { %13039 = vst [vmem:[#allocation68_spill] sm:$0xff] %v9963_v58  ;;  %v9969_v1 = vpop.eup %7121  ;;  %7147 = vpow2.f32 %v3297_v25 }
 0x3da   : > { %3692 = vperm.xlu0 %7104, %v9949_v60   ;;  %13041 = vst [vmem:[#allocation113_spill] sm:$0xff] %v9969_v1  ;;  %v9973_v23 = vpop.eup %7123  ;;  %v3158_v60 = vsub.f32 %v13050_v11, %v9899_v42  ;;  %7149 = vpow2.f32 %v3331_v19  ;;  %v3335_v42 = vmul.f32 1.442695, %v3175_v6  ;;  %v13056_v11 = vld [vmem:[#allocation21_spill] sm:$0xff]  ;;  %v3305_v46 = vmul.f32 1.442695, %v3160_v29 }
 0x3db   : > { %3665 = vperm.xlu1 %7103, %v9953_v37   ;;  %13043 = vst [vmem:[#allocation71_spill] sm:$0xff] %v9973_v23  ;;  %v9980_v57 = vpop.eup %7125  ;;  %v3177_v3 = vsub.f32 %v13056_v11, %v9991_v53  ;;  %v13060_v19 = vld [vmem:[#allocation23_spill] sm:$0xff] }
 0x3dc   : > { %13045 = vst [vmem:[#allocation45_spill] sm:$0xff] %v9980_v57  ;;  %v9984_v4 = vpop.eup %7127  ;;  %v3301_v56 = vmul.f32 1.442695, %v3158_v60  ;;  %v13058_v60 = vld [vmem:[#allocation59_spill] sm:$0xff]  ;;  %v3179_v6 = vsub.f32 %v13060_v19, %v9991_v53 }
 0x3dd   : > { %13047 = vst [vmem:[#allocation47_spill] sm:$0xff] %v9984_v4  ;;  %v9995_v50 = vpop.eup %7129  ;;  %v3162_v25 = vsub.f32 %v13058_v60, %v9917_v8  ;;  %v3339_v47 = vmul.f32 1.442695, %v3177_v3 }
 0x3de   : > { %3698 = vperm.xlu0 %7104, %v9959_v61   ;;  %13049 = vst [vmem:[#allocation73_spill] sm:$0xff] %v9995_v50  ;;  %v9999_v34 = vpop.eup %7131  ;;  %7151 = vpow2.f32 %v3301_v56  ;;  %v13062_v56 = vld [vmem:[#allocation61_spill] sm:$0xff]  ;;  %v3343_v60 = vmul.f32 1.442695, %v3179_v6 }
 0x3df   : > { %3668 = vperm.xlu1 %7103, %v9963_v58   ;;  %13051 = vst [vmem:[#allocation75_spill] sm:$0xff] %v9999_v34  ;;  %7153 = vpow2.f32 %v3335_v42  ;;  %v3309_v11 = vmul.f32 1.442695, %v3162_v25  ;;  %v3164_v29 = vsub.f32 %v13062_v56, %v9917_v8  ;;  %v13064_v42 = vld [vmem:[#allocation25_spill] sm:$0xff] }
 0x3e0   : > { %7155 = vpow2.f32 %v3305_v46  ;;  %v3181_v3 = vsub.f32 %v13064_v42, %v9991_v53  ;;  %v13066_v46 = vld [vmem:[#allocation63_spill] sm:$0xff] }
 0x3e1   : > { %7157 = vpow2.f32 %v3339_v47  ;;  %v3313_v19 = vmul.f32 1.442695, %v3164_v29  ;;  %v3166_v25 = vsub.f32 %v13066_v46, %v9917_v8  ;;  %v13068_v47 = vld [vmem:[#allocation27_spill] sm:$0xff] }
 0x3e2   : > { %3704 = vperm.xlu0 %7104, %v9969_v1   ;;  %7159 = vpow2.f32 %v3309_v11  ;;  %v3347_v56 = vmul.f32 1.442695, %v3181_v3  ;;  %v3183_v6 = vsub.f32 %v13068_v47, %v9991_v53  ;;  %v13070_v11 = vld [vmem:[#allocation13_spill] sm:$0xff] }
 0x3e3   : > { %3671 = vperm.xlu1 %7103, %v9973_v23   ;;  %7161 = vpow2.f32 %v3343_v60  ;;  %v3317_v42 = vmul.f32 1.442695, %v3166_v25  ;;  %v3168_v29 = vsub.f32 %v13070_v11, %v9917_v8  ;;  %v13072_v60 = vld [vmem:[#allocation29_spill] sm:$0xff]  ;;  %v12512_v11 = vsub.s32 3, %v12924_v52 }
 0x3e4   : > { %7163 = vpow2.f32 %v3313_v19  ;;  %v3351_v46 = vmul.f32 1.442695, %v3183_v6  ;;  %v3185_v3 = vsub.f32 %v13072_v60, %v9991_v53  ;;  %v13074_v19 = vld [vmem:[#allocation92_spill] sm:$0xff]  ;;  %v13076_v6 = vld [vmem:[#allocation31_spill] sm:$0xff] }
 0x3e5   : > { %v3321_v47 = vmul.f32 1.442695, %v3168_v29  ;;  %v3170_v25 = vsub.f32 %v13074_v19, %v9917_v8  ;;  %v3187_v60 = vsub.f32 %v13076_v6, %v9991_v53  ;;  %v13078_v29 = vld [vmem:[#allocation16_spill] sm:$0xff]  ;;  %v13080_v6 = vld [vmem:[#allocation34_spill] sm:$0xff] }
 0x3e6   : > { %3710 = vperm.xlu0 %7104, %v9980_v57   ;;  %v3172_v19 = vsub.f32 %v13078_v29, %v9917_v8 }
 0x3e7   : > { %3674 = vperm.xlu1 %7103, %v9984_v4   ;;  %v10005_v4 = vpop.eup %7133  ;;  %7165 = vpow2.f32 %v3347_v56  ;;  %v3355_v56 = vmul.f32 1.442695, %v3185_v3  ;;  %v3359_v3 = vmul.f32 1.442695, %v3187_v60 }
 0x3e8   : > { %13053 = vst [vmem:[#allocation85_spill] sm:$0xff] %v10005_v4  ;;  %v10009_v23 = vpop.eup %7135  ;;  %7167 = vpow2.f32 %v3317_v42  ;;  %v3325_v42 = vmul.f32 1.442695, %v3170_v25  ;;  %v3329_v29 = vmul.f32 1.442695, %v3172_v19 }
 0x3e9   : > { %13055 = vst [vmem:[#allocation77_spill] sm:$0xff] %v10009_v23  ;;  %v10015_v43 = vpop.eup %7137  ;;  %7169 = vpow2.f32 %v3351_v46  ;;  %v10077_v46 = vrot.slane %v9895_v49, %v12512_v11 }
 0x3ea   : > { %3716 = vperm.xlu0 %7104, %v9995_v50   ;;  %13057 = vst [vmem:[#allocation57_spill] sm:$0xff] %v10015_v43 }
 0x3eb   : > { %3677 = vperm.xlu1 %7103, %v9999_v34   ;;  %v10019_v34 = vpop.eup %7139  ;;  %7171 = vpow2.f32 %v3321_v47  ;;  %v3189_v47 = vsub.f32 %v13080_v6, %v9991_v53 }
 0x3ec   : > { %13059 = vst [vmem:[#allocation79_spill] sm:$0xff] %v10019_v34 }
 0x3ed   : > { %v3363_v11 = vmul.f32 1.442695, %v3189_v47 }
 0x3ee   : > { %3722 = vperm.xlu0 %7104, %v10005_v4   ;;  %v10025_v4 = vpop.eup %7141  ;;  %7173 = vpow2.f32 %v3355_v56  ;;  %v13084_v56 = vld [vmem:[#allocation70_spill] sm:$0xff] }
 0x3ef   : > { %3680 = vperm.xlu1 %7103, %v10009_v23   ;;  %13061 = vst [vmem:[#allocation90_spill] sm:$0xff] %v10025_v4  ;;  %v10029_v58 = vpop.eup %7143  ;;  %7175 = vpow2.f32 %v3325_v42  ;;  %v3191_v60 = vsub.f32 %v13084_v56, %v10077_v46  ;;  %v13086_v42 = vld [vmem:[#allocation20_spill] sm:$0xff] }
 0x3f0   : > { %13063 = vst [vmem:[#allocation49_spill] sm:$0xff] %v10029_v58  ;;  %v3176_v19 = vsub.f32 %v13086_v42, %v9991_v53 }
 0x3f2   : > { %3728 = vperm.xlu0 %7104, %v10015_v43   ;;  %v3337_v56 = vmul.f32 1.442695, %v3176_v19 }
 0x3f3   : > { %3683 = vperm.xlu1 %7103, %v10019_v34   ;;  %v10035_v34 = vpop.eup %7145  ;;  %7177 = vpow2.f32 %v3359_v3 }
 0x3f4   : > { %13065 = vst [vmem:[#allocation51_spill] sm:$0xff] %v10035_v34  ;;  %v10039_v43 = vpop.eup %7147  ;;  %7179 = vpow2.f32 %v3329_v29 }
 0x3f5   : > { %13067 = vst [vmem:[#allocation14_spill] sm:$0xff] %v10039_v43 }
 0x3f6   : > { %3734 = vperm.xlu0 %7104, %v10025_v4  }
 0x3f7   : > { %3689 = vperm.xlu1 %7103, %v10029_v58   ;;  %v10045_v58 = vpop.eup %7149  ;;  %7181 = vpow2.f32 %v3363_v11  ;;  %v13092_v11 = vld [vmem:[#allocation78_spill] sm:$0xff] }
 0x3f8   : > { %13069 = vst [vmem:[#allocation53_spill] sm:$0xff] %v10045_v58  ;;  %v10049_v4 = vpop.eup %7151 }
 0x3f9   : > { %13071 = vst [vmem:[#allocation15_spill] sm:$0xff] %v10049_v4 }
 0x3fa   : > { %3740 = vperm.xlu0 %7104, %v10035_v34  }
 0x3fb   : > { %3695 = vperm.xlu1 %7103, %v10039_v43   ;;  %v10055_v43 = vpop.eup %7153 }
 0x3fc   : > { %13073 = vst [vmem:[#allocation81_spill] sm:$0xff] %v10055_v43  ;;  %v10059_v34 = vpop.eup %7155 }
 0x3fd   : > { %13075 = vst [vmem:[#allocation17_spill] sm:$0xff] %v10059_v34 }
 0x3fe   : > { %3746 = vperm.xlu0 %7104, %v10045_v58  }
 0x3ff   : > { %3701 = vperm.xlu1 %7103, %v10049_v4   ;;  %v10066_v4 = vpop.eup %7157 }
 0x400   : > { %13077 = vst [vmem:[#allocation83_spill] sm:$0xff] %v10066_v4  ;;  %v10070_v58 = vpop.eup %7159 }
 0x401   : > { %13079 = vst [vmem:[#allocation19_spill] sm:$0xff] %v10070_v58  ;;  %v10081_v25 = vpop.eup %7161 }
 0x402   : > { %3752 = vperm.xlu0 %7104, %v10055_v43   ;;  %13081 = vst [vmem:[#allocation88_spill] sm:$0xff] %v10081_v25 }
 0x403   : > { %3707 = vperm.xlu1 %7103, %v10059_v34   ;;  %v13082_v34 = vld [vmem:[#allocation18_spill] sm:$0xff] }
 0x404   : > { %v3174_v43 = vsub.f32 %v13082_v34, %v9917_v8  ;;  %v3367_v8 = vmul.f32 1.442695, %v3191_v60  ;;  %v13088_v34 = vld [vmem:[#allocation74_spill] sm:$0xff]  ;;  %v3195_v60 = vsub.f32 %v13092_v11, %v10077_v46 }
 0x405   : > { %v3193_v3 = vsub.f32 %v13088_v34, %v10077_v46 }
 0x406   : > { %3758 = vperm.xlu0 %7104, %v10066_v4   ;;  %v10085_v4 = vpop.eup %7163  ;;  %v3333_v6 = vmul.f32 1.442695, %v3174_v43  ;;  %v13090_v43 = vld [vmem:[#allocation22_spill] sm:$0xff] }
 0x407   : > { %3713 = vperm.xlu1 %7103, %v10070_v58   ;;  %13083 = vst [vmem:[#allocation21_spill] sm:$0xff] %v10085_v4  ;;  %v10091_v58 = vpop.eup %7165  ;;  %v3178_v29 = vsub.f32 %v13090_v43, %v9991_v53  ;;  %v3371_v42 = vmul.f32 1.442695, %v3193_v3  ;;  %v3375_v43 = vmul.f32 1.442695, %v3195_v60 }
 0x408   : > { %13085 = vst [vmem:[#allocation59_spill] sm:$0xff] %v10091_v58  ;;  %v10095_v50 = vpop.eup %7167  ;;  %7183 = vpow2.f32 %v3333_v6  ;;  %v13094_v6 = vld [vmem:[#allocation24_spill] sm:$0xff] }
 0x409   : > { %13087 = vst [vmem:[#allocation23_spill] sm:$0xff] %v10095_v50  ;;  %v10101_v47 = vpop.eup %7169  ;;  %7185 = vpow2.f32 %v3367_v8  ;;  %v3341_v34 = vmul.f32 1.442695, %v3178_v29  ;;  %v3180_v19 = vsub.f32 %v13094_v6, %v9991_v53  ;;  %v13096_v8 = vld [vmem:[#allocation82_spill] sm:$0xff] }
 0x40a   : > { %3764 = vperm.xlu0 %7104, %v10081_v25   ;;  %13089 = vst [vmem:[#allocation61_spill] sm:$0xff] %v10101_v47  ;;  %7187 = vpow2.f32 %v3337_v56  ;;  %v3197_v3 = vsub.f32 %v13096_v8, %v10077_v46  ;;  %v13098_v56 = vld [vmem:[#allocation26_spill] sm:$0xff] }
 0x40b   : > { %3719 = vperm.xlu1 %7103, %v10085_v4   ;;  %v10105_v4 = vpop.eup %7171  ;;  %7189 = vpow2.f32 %v3371_v42  ;;  %v3345_v11 = vmul.f32 1.442695, %v3180_v19  ;;  %v3182_v29 = vsub.f32 %v13098_v56, %v9991_v53  ;;  %v3199_v42 = vsub.f32 %v12984_v16, %v10077_v46 }
 0x40c   : > { %13091 = vst [vmem:[#allocation25_spill] sm:$0xff] %v10105_v4  ;;  %7191 = vpow2.f32 %v3341_v34  ;;  %v3379_v6 = vmul.f32 1.442695, %v3197_v3  ;;  %v13101_v34 = vld [vmem:[#allocation28_spill] sm:$0xff] }
 0x40d   : > { %7193 = vpow2.f32 %v3375_v43  ;;  %v3349_v8 = vmul.f32 1.442695, %v3182_v29  ;;  %v3184_v19 = vsub.f32 %v13101_v34, %v9991_v53  ;;  %v3383_v56 = vmul.f32 1.442695, %v3199_v42 }
 0x40e   : > { %3770 = vperm.xlu0 %7104, %v10091_v58   ;;  %7195 = vpow2.f32 %v3345_v11  ;;  %v3201_v43 = vsub.f32 %v12993_v22, %v10077_v46  ;;  %v13104_v11 = vld [vmem:[#allocation30_spill] sm:$0xff]  ;;  %v12525_v34 = vsub.s32 4, %v12924_v52  ;;  %v3203_v22 = vsub.f32 %v13003_v30, %v10077_v46 }
 0x40f   : > { %3725 = vperm.xlu1 %7103, %v10095_v50   ;;  %v10111_v50 = vpop.eup %7173  ;;  %7197 = vpow2.f32 %v3379_v6  ;;  %v3353_v16 = vmul.f32 1.442695, %v3184_v19  ;;  %v3186_v29 = vsub.f32 %v13104_v11, %v9991_v53  ;;  %v13107_v19 = vld [vmem:[#allocation32_spill] sm:$0xff] }
 0x410   : > { %13093 = vst [vmem:[#allocation63_spill] sm:$0xff] %v10111_v50  ;;  %v10115_v58 = vpop.eup %7175  ;;  %7199 = vpow2.f32 %v3349_v8  ;;  %v3387_v6 = vmul.f32 1.442695, %v3201_v43  ;;  %v3188_v11 = vsub.f32 %v13107_v19, %v9991_v53  ;;  %v3391_v30 = vmul.f32 1.442695, %v3203_v22  ;;  %v13110_v19 = vld [vmem:[#allocation36_spill] sm:$0xff] }
 0x411   : > { %13095 = vst [vmem:[#allocation27_spill] sm:$0xff] %v10115_v58  ;;  %7201 = vpow2.f32 %v3383_v56  ;;  %v3357_v8 = vmul.f32 1.442695, %v3186_v29  ;;  %v10163_v56 = vrot.slane %v9895_v49, %v12525_v34  ;;  %v3205_v43 = vsub.f32 %v13009_v18, %v10077_v46 }
 0x412   : > { %3776 = vperm.xlu0 %7104, %v10101_v47   ;;  %7203 = vpow2.f32 %v3353_v16  ;;  %v3361_v29 = vmul.f32 1.442695, %v3188_v11 }
 0x413   : > { %3731 = vperm.xlu1 %7103, %v10105_v4   ;;  %v10121_v4 = vpop.eup %7177  ;;  %7205 = vpow2.f32 %v3387_v6  ;;  %v3395_v34 = vmul.f32 1.442695, %v3205_v43  ;;  %v13112_v6 = vld [vmem:[#allocation38_spill] sm:$0xff] }
 0x414   : > { %13097 = vst [vmem:[#allocation13_spill] sm:$0xff] %v10121_v4  ;;  %v10125_v47 = vpop.eup %7179  ;;  %7207 = vpow2.f32 %v3357_v8  ;;  %v3207_v22 = vsub.f32 %v13112_v6, %v10163_v56  ;;  %v13114_v8 = vld [vmem:[#allocation72_spill] sm:$0xff] }
 0x415   : > { %13099 = vst [vmem:[#allocation29_spill] sm:$0xff] %v10125_v47  ;;  %v10131_v60 = vpop.eup %7181  ;;  %7209 = vpow2.f32 %v3391_v30  ;;  %v3192_v11 = vsub.f32 %v13114_v8, %v10077_v46  ;;  %v13116_v30 = vld [vmem:[#allocation42_spill] sm:$0xff] }
 0x416   : > { %3782 = vperm.xlu0 %7104, %v10111_v50   ;;  %13100 = vst [vmem:[#allocation92_spill] sm:$0xff] %v10131_v60  ;;  %7211 = vpow2.f32 %v3361_v29  ;;  %v3209_v43 = vsub.f32 %v13116_v30, %v10163_v56 }
 0x417   : > { %3737 = vperm.xlu1 %7103, %v10115_v58   ;;  %v10135_v58 = vpop.eup %7183  ;;  %7213 = vpow2.f32 %v3395_v34  ;;  %v3369_v6 = vmul.f32 1.442695, %v3192_v11  ;;  %v13120_v34 = vld [vmem:[#allocation46_spill] sm:$0xff] }
 0x418   : > { %13102 = vst [vmem:[#allocation31_spill] sm:$0xff] %v10135_v58  ;;  %v10141_v3 = vpop.eup %7185  ;;  %v3403_v8 = vmul.f32 1.442695, %v3209_v43 }
 0x419   : > { %13103 = vst [vmem:[#allocation16_spill] sm:$0xff] %v10141_v3 }
 0x41a   : > { %3788 = vperm.xlu0 %7104, %v10121_v4  }
 0x41b   : > { %3743 = vperm.xlu1 %7103, %v10125_v47   ;;  %v10145_v47 = vpop.eup %7187 }
 0x41c   : > { %13105 = vst [vmem:[#allocation34_spill] sm:$0xff] %v10145_v47  ;;  %v10152_v42 = vpop.eup %7189 }
 0x41d   : > { %13106 = vst [vmem:[#allocation18_spill] sm:$0xff] %v10152_v42 }
 0x41e   : > { %3794 = vperm.xlu0 %7104, %v10131_v60  }
 0x41f   : > { %3749 = vperm.xlu1 %7103, %v10135_v58   ;;  %v10156_v58 = vpop.eup %7191 }
 0x420   : > { %13108 = vst [vmem:[#allocation70_spill] sm:$0xff] %v10156_v58  ;;  %v10167_v16 = vpop.eup %7193 }
 0x421   : > { %13109 = vst [vmem:[#allocation20_spill] sm:$0xff] %v10167_v16 }
 0x422   : > { %3800 = vperm.xlu0 %7104, %v10141_v3  }
 0x423   : > { %3755 = vperm.xlu1 %7103, %v10145_v47   ;;  %v3190_v47 = vsub.f32 %v13110_v19, %v9991_v53  ;;  %v3399_v53 = vmul.f32 1.442695, %v3207_v22  ;;  %v3211_v22 = vsub.f32 %v13120_v34, %v10163_v56 }
 0x425   : > { %v3365_v18 = vmul.f32 1.442695, %v3190_v47  ;;  %v13118_v47 = vld [vmem:[#allocation76_spill] sm:$0xff] }
 0x426   : > { %3806 = vperm.xlu0 %7104, %v10152_v42   ;;  %v10171_v42 = vpop.eup %7195  ;;  %v3194_v29 = vsub.f32 %v13118_v47, %v10077_v46  ;;  %v3407_v47 = vmul.f32 1.442695, %v3211_v22 }
 0x427   : > { %3761 = vperm.xlu1 %7103, %v10156_v58   ;;  %13111 = vst [vmem:[#allocation74_spill] sm:$0xff] %v10171_v42  ;;  %v10177_v58 = vpop.eup %7197  ;;  %7215 = vpow2.f32 %v3365_v18  ;;  %v13122_v18 = vld [vmem:[#allocation80_spill] sm:$0xff] }
 0x428   : > { %13113 = vst [vmem:[#allocation22_spill] sm:$0xff] %v10177_v58  ;;  %v10181_v3 = vpop.eup %7199  ;;  %7217 = vpow2.f32 %v3399_v53  ;;  %v3373_v30 = vmul.f32 1.442695, %v3194_v29  ;;  %v3196_v11 = vsub.f32 %v13122_v18, %v10077_v46  ;;  %v13124_v53 = vld [vmem:[#allocation50_spill] sm:$0xff] }
 0x429   : > { %13115 = vst [vmem:[#allocation78_spill] sm:$0xff] %v10181_v3  ;;  %v10187_v19 = vpop.eup %7201  ;;  %7219 = vpow2.f32 %v3369_v6  ;;  %v3213_v43 = vsub.f32 %v13124_v53, %v10163_v56  ;;  %v13126_v6 = vld [vmem:[#allocation84_spill] sm:$0xff] }
 0x42a   : > { %3812 = vperm.xlu0 %7104, %v10167_v16   ;;  %13117 = vst [vmem:[#allocation24_spill] sm:$0xff] %v10187_v19  ;;  %7221 = vpow2.f32 %v3403_v8  ;;  %v3377_v34 = vmul.f32 1.442695, %v3196_v11  ;;  %v3198_v29 = vsub.f32 %v13126_v6, %v10077_v46  ;;  %v13128_v8 = vld [vmem:[#allocation54_spill] sm:$0xff] }
 0x42b   : > { %3767 = vperm.xlu1 %7103, %v10171_v42   ;;  %v10191_v42 = vpop.eup %7203  ;;  %7223 = vpow2.f32 %v3373_v30  ;;  %v3411_v18 = vmul.f32 1.442695, %v3213_v43  ;;  %v3215_v22 = vsub.f32 %v13128_v8, %v10163_v56  ;;  %v3200_v30 = vsub.f32 %v12990_v15, %v10077_v46 }
 0x42c   : > { %13119 = vst [vmem:[#allocation82_spill] sm:$0xff] %v10191_v42  ;;  %7225 = vpow2.f32 %v3407_v47  ;;  %v3381_v53 = vmul.f32 1.442695, %v3198_v29  ;;  %v13131_v47 = vld [vmem:[#allocation58_spill] sm:$0xff]  ;;  %v12536_v15 = vsub.s32 5, %v12924_v52 }
 0x42d   : > { %7227 = vpow2.f32 %v3377_v34  ;;  %v3415_v6 = vmul.f32 1.442695, %v3215_v22  ;;  %v3217_v43 = vsub.f32 %v13131_v47, %v10163_v56  ;;  %v3385_v8 = vmul.f32 1.442695, %v3200_v30 }
 0x42e   : > { %3818 = vperm.xlu0 %7104, %v10177_v58   ;;  %7229 = vpow2.f32 %v3411_v18  ;;  %v3202_v34 = vsub.f32 %v12996_v26, %v10077_v46  ;;  %v3219_v22 = vsub.f32 %v13000_v14, %v10163_v56  ;;  %v3204_v26 = vsub.f32 %v13007_v9, %v10077_v46 }
 0x42f   : > { %3773 = vperm.xlu1 %7103, %v10181_v3   ;;  %v10197_v3 = vpop.eup %7205  ;;  %7231 = vpow2.f32 %v3381_v53  ;;  %v3419_v18 = vmul.f32 1.442695, %v3217_v43  ;;  %v3221_v43 = vsub.f32 %v13013_v17, %v10163_v56 }
 0x430   : > { %13121 = vst [vmem:[#allocation26_spill] sm:$0xff] %v10197_v3  ;;  %v10201_v58 = vpop.eup %7207  ;;  %7233 = vpow2.f32 %v3415_v6  ;;  %v3389_v53 = vmul.f32 1.442695, %v3202_v34  ;;  %v10249_v6 = vrot.slane %v9895_v49, %v12536_v15  ;;  %v3423_v14 = vmul.f32 1.442695, %v3219_v22 }
 0x431   : > { %13123 = vst [vmem:[#allocation28_spill] sm:$0xff] %v10201_v58  ;;  %7235 = vpow2.f32 %v3385_v8  ;;  %v3393_v9 = vmul.f32 1.442695, %v3204_v26  ;;  %v3206_v34 = vsub.f32 %v13014_v24, %v10077_v46  ;;  %v3427_v15 = vmul.f32 1.442695, %v3221_v43  ;;  %v13140_v26 = vld [vmem:[#allocation40_spill] sm:$0xff] }
 0x432   : > { %3824 = vperm.xlu0 %7104, %v10187_v19   ;;  %7237 = vpow2.f32 %v3419_v18  ;;  %v13138_v18 = vld [vmem:[#allocation39_spill] sm:$0xff]  ;;  %v3208_v24 = vsub.f32 %v13140_v26, %v10163_v56  ;;  %v13142_v43 = vld [vmem:[#allocation41_spill] sm:$0xff]  ;;  %v13144_v26 = vld [vmem:[#allocation44_spill] sm:$0xff] }
 0x433   : > { %3779 = vperm.xlu1 %7103, %v10191_v42   ;;  %v10207_v42 = vpop.eup %7209  ;;  %7239 = vpow2.f32 %v3389_v53  ;;  %v3223_v22 = vsub.f32 %v13138_v18, %v10249_v6  ;;  %v3397_v53 = vmul.f32 1.442695, %v3206_v34  ;;  %v3225_v18 = vsub.f32 %v13142_v43, %v10249_v6 }
 0x434   : > { %13125 = vst [vmem:[#allocation30_spill] sm:$0xff] %v10207_v42  ;;  %v10211_v19 = vpop.eup %7211  ;;  %7241 = vpow2.f32 %v3423_v14  ;;  %v3401_v34 = vmul.f32 1.442695, %v3208_v24 }
 0x435   : > { %13127 = vst [vmem:[#allocation32_spill] sm:$0xff] %v10211_v19  ;;  %7243 = vpow2.f32 %v3393_v9  ;;  %v3431_v14 = vmul.f32 1.442695, %v3223_v22  ;;  %v3227_v22 = vsub.f32 %v12985_v55, %v10249_v6  ;;  %v3229_v55 = vsub.f32 %v12991_v31, %v10249_v6 }
 0x436   : > { %3830 = vperm.xlu0 %7104, %v10197_v3   ;;  %v3231_v31 = vsub.f32 %v12997_v45, %v10249_v6  ;;  %v3233_v45 = vsub.f32 %v13004_v27, %v10249_v6 }
 0x437   : > { %3785 = vperm.xlu1 %7103, %v10201_v58   ;;  %v10217_v58 = vpop.eup %7213  ;;  %7245 = vpow2.f32 %v3427_v15  ;;  %v3435_v15 = vmul.f32 1.442695, %v3225_v18 }
 0x438   : > { %13129 = vst [vmem:[#allocation36_spill] sm:$0xff] %v10217_v58  ;;  %v10221_v11 = vpop.eup %7215  ;;  %7247 = vpow2.f32 %v3397_v53  ;;  %v3451_v27 = vmul.f32 1.442695, %v3233_v45 }
 0x439   : > { %13130 = vst [vmem:[#allocation38_spill] sm:$0xff] %v10221_v11 }
 0x43a   : > { %3836 = vperm.xlu0 %7104, %v10207_v42  }
 0x43b   : > { %3791 = vperm.xlu1 %7103, %v10211_v19   ;;  %v10227_v19 = vpop.eup %7217  ;;  %7249 = vpow2.f32 %v3431_v14  ;;  %v3439_v14 = vmul.f32 1.442695, %v3227_v22 }
 0x43c   : > { %13132 = vst [vmem:[#allocation72_spill] sm:$0xff] %v10227_v19  ;;  %v10231_v29 = vpop.eup %7219  ;;  %7251 = vpow2.f32 %v3401_v34 }
 0x43d   : > { %13133 = vst [vmem:[#allocation42_spill] sm:$0xff] %v10231_v29  ;;  %v10238_v47 = vpop.eup %7221  ;;  %7253 = vpow2.f32 %v3435_v15  ;;  %v3443_v15 = vmul.f32 1.442695, %v3229_v55 }
 0x43e   : > { %3842 = vperm.xlu0 %7104, %v10217_v58   ;;  %13134 = vst [vmem:[#allocation76_spill] sm:$0xff] %v10238_v47  ;;  %v10242_v30 = vpop.eup %7223 }
 0x43f   : > { %3797 = vperm.xlu1 %7103, %v10221_v11   ;;  %13135 = vst [vmem:[#allocation46_spill] sm:$0xff] %v10242_v30  ;;  %v10253_v8 = vpop.eup %7225 }
 0x440   : > { %13136 = vst [vmem:[#allocation80_spill] sm:$0xff] %v10253_v8 }
 0x442   : > { %3848 = vperm.xlu0 %7104, %v10227_v19  }
 0x443   : > { %3803 = vperm.xlu1 %7103, %v10231_v29   ;;  %v10257_v29 = vpop.eup %7227 }
 0x444   : > { %13137 = vst [vmem:[#allocation50_spill] sm:$0xff] %v10257_v29 }
 0x446   : > { %3854 = vperm.xlu0 %7104, %v10238_v47  }
 0x447   : > { %3809 = vperm.xlu1 %7103, %v10242_v30   ;;  %v10263_v30 = vpop.eup %7229 }
 0x448   : > { %13139 = vst [vmem:[#allocation84_spill] sm:$0xff] %v10263_v30  ;;  %v10269_v46 = vpop.eup %7231 }
 0x449   : > { %13141 = vst [vmem:[#allocation54_spill] sm:$0xff] %v10269_v46 }
 0x44a   : > { %3860 = vperm.xlu0 %7104, %v10253_v8   ;;  %v3210_v8 = vsub.f32 %v13144_v26, %v10163_v56  ;;  %v13147_v26 = vld [vmem:[#allocation48_spill] sm:$0xff] }
 0x44b   : > { %3815 = vperm.xlu1 %7103, %v10257_v29   ;;  %v10277_v29 = vpop.eup %7233 }
 0x44c   : > { %13143 = vst [vmem:[#allocation58_spill] sm:$0xff] %v10277_v29  ;;  %v10283_v47 = vpop.eup %7235  ;;  %v3405_v24 = vmul.f32 1.442695, %v3210_v8 }
 0x44d   : > { %v10265_v17 = vpop.permute.xlu0 %3659  ;;  %13145 = vst [vmem:[#allocation39_spill] sm:$0xff] %v10283_v47  ;;  %v10291_v43 = vpop.eup %7237 }
 0x44e   : > { %v10271_v11 = vpop.permute.xlu1 %3656  ;;  %3866 = vperm.xlu0 %7104, %v10263_v30   ;;  %13146 = vst [vmem:[#allocation40_spill] sm:$0xff] %v10291_v43  ;;  %v10297_v30 = vpop.eup %7239  ;;  %7255 = vpow2.f32 %v3405_v24 }
 0x44f   : > { %3821 = vperm.xlu1 %7103, %v10269_v46   ;;  %v3212_v46 = vsub.f32 %v13147_v26, %v10163_v56  ;;  %13148 = vst [vmem:[#allocation41_spill] sm:$0xff] %v10297_v30  ;;  %v10305_v18 = vpop.eup %7241  ;;  %v13150_v26 = vld [vmem:[#allocation52_spill] sm:$0xff]  ;;  %7257 = vpow2.f32 %v3439_v14  ;;  %v3447_v14 = vmul.f32 1.442695, %v3231_v31  ;;  %v3235_v31 = vsub.f32 %v13010_v54, %v10249_v6 }
 0x450   : > { %13149 = vst [vmem:[#allocation44_spill] sm:$0xff] %v10305_v18 }
 0x451   : > { %v10279_v9 = vpop.permute.xlu0 %3686  ;;  %v3409_v8 = vmul.f32 1.442695, %v3212_v46 }
 0x452   : > { %v10285_v19 = vpop.permute.xlu1 %3662  ;;  %3872 = vperm.xlu0 %7104, %v10277_v29   ;;  %v10311_v29 = vpop.eup %7243 }
 0x453   : > { %3827 = vperm.xlu1 %7103, %v10283_v47   ;;  %v3214_v47 = vsub.f32 %v13150_v26, %v10163_v56  ;;  %13151 = vst [vmem:[#allocation48_spill] sm:$0xff] %v10311_v29  ;;  %v10319_v22 = vpop.eup %7245  ;;  %7259 = vpow2.f32 %v3409_v8  ;;  %v13153_v26 = vld [vmem:[#allocation56_spill] sm:$0xff] }
 0x454   : > { %13152 = vst [vmem:[#allocation52_spill] sm:$0xff] %v10319_v22  ;;  %7261 = vpow2.f32 %v3443_v15  ;;  %v12561_v15 = vsub.s32 6, %v12924_v52 }
 0x455   : > { %v10293_v53 = vpop.permute.xlu0 %3692  ;;  %v3413_v46 = vmul.f32 1.442695, %v3214_v47 }
 0x456   : > { %v10299_v58 = vpop.permute.xlu1 %3665  ;;  %3878 = vperm.xlu0 %7104, %v10291_v43   ;;  %v10325_v43 = vpop.eup %7247  ;;  %v10363_v54 = vrot.slane %v9895_v49, %v12561_v15 }
 0x457   : > { %3833 = vperm.xlu1 %7103, %v10297_v30   ;;  %v3216_v30 = vsub.f32 %v13153_v26, %v10163_v56  ;;  %13154 = vst [vmem:[#allocation56_spill] sm:$0xff] %v10325_v43  ;;  %v10333_v55 = vpop.eup %7249  ;;  %7263 = vpow2.f32 %v3413_v46  ;;  %v13156_v26 = vld [vmem:[#allocation60_spill] sm:$0xff] }
 0x458   : > { %13155 = vst [vmem:[#allocation127_spill] sm:$0xff] %v10333_v55  ;;  %7265 = vpow2.f32 %v3447_v14  ;;  %v3455_v14 = vmul.f32 1.442695, %v3235_v31 }
 0x459   : > { %v10307_v34 = vpop.permute.xlu0 %3698  ;;  %v3417_v47 = vmul.f32 1.442695, %v3216_v30 }
 0x45a   : > { %v10313_v42 = vpop.permute.xlu1 %3668  ;;  %3884 = vperm.xlu0 %7104, %v10305_v18   ;;  %v10339_v18 = vpop.eup %7251 }
 0x45b   : > { %3839 = vperm.xlu1 %7103, %v10311_v29   ;;  %v3218_v29 = vsub.f32 %v13156_v26, %v10163_v56  ;;  %13157 = vst [vmem:[#allocation60_spill] sm:$0xff] %v10339_v18  ;;  %v10348_v46 = vpop.eup %7253  ;;  %7267 = vpow2.f32 %v3417_v47 }
 0x45c   : > { %13158 = vst [vmem:[#allocation128_spill] sm:$0xff] %v10348_v46  ;;  %7269 = vpow2.f32 %v3451_v27 }
 0x45d   : > { %v10321_v24 = vpop.permute.xlu0 %3704  ;;  %v3421_v26 = vmul.f32 1.442695, %v3218_v29  ;;  %v3237_v29 = vsub.f32 %v9442_v59, %v10249_v6  ;;  %v13162_v59 = vld [vmem:[#allocation115_spill] sm:$0xff] }
 0x45e   : > { %v10327_v3 = vpop.permute.xlu1 %3671  ;;  %3890 = vperm.xlu0 %7104, %v10319_v22   ;;  %v10354_v22 = vpop.eup %7255  ;;  %v3239_v31 = vsub.f32 %v13162_v59, %v10363_v54 }
 0x45f   : > { %3845 = vperm.xlu1 %7103, %v10325_v43   ;;  %v3220_v43 = vsub.f32 %v13002_v35, %v10163_v56  ;;  %13159 = vst [vmem:[#allocation129_spill] sm:$0xff] %v10354_v22  ;;  %v10367_v45 = vpop.eup %7257  ;;  %7271 = vpow2.f32 %v3421_v26  ;;  %v3459_v27 = vmul.f32 1.442695, %v3237_v29  ;;  %v13166_v29 = vld [vmem:[#allocation118_spill] sm:$0xff] }
 0x460   : > { %13160 = vst [vmem:[#allocation130_spill] sm:$0xff] %v10367_v45  ;;  %7273 = vpow2.f32 %v3455_v14  ;;  %v3463_v14 = vmul.f32 1.442695, %v3239_v31  ;;  %v3241_v59 = vsub.f32 %v13166_v29, %v10363_v54  ;;  %v13170_v31 = vld [vmem:[#allocation120_spill] sm:$0xff] }
 0x461   : > { %v10335_v8 = vpop.permute.xlu0 %3710  ;;  %v3425_v47 = vmul.f32 1.442695, %v3220_v43  ;;  %v3243_v29 = vsub.f32 %v13170_v31, %v10363_v54 }
 0x462   : > { %v10341_v16 = vpop.permute.xlu1 %3674  ;;  %3896 = vperm.xlu0 %7104, %v10333_v55  }
 0x463   : > { %3851 = vperm.xlu1 %7103, %v10339_v18   ;;  %v3222_v18 = vsub.f32 %v13017_v44, %v10163_v56  ;;  %7275 = vpow2.f32 %v3425_v47  ;;  %v13164_v44 = vld [vmem:[#allocation37_spill] sm:$0xff] }
 0x464   : > { %v3224_v56 = vsub.f32 %v13164_v44, %v10249_v6  ;;  %7277 = vpow2.f32 %v3459_v27  ;;  %v13168_v44 = vld [vmem:[#allocation65_spill] sm:$0xff]  ;;  %v3467_v27 = vmul.f32 1.442695, %v3241_v59  ;;  %v3245_v59 = vsub.f32 %v9551_v48, %v10363_v54  ;;  %v13178_v48 = vld [vmem:[#allocation55_spill] sm:$0xff] }
 0x465   : > { %v10350_v30 = vpop.permute.xlu0 %3716  ;;  %v3429_v43 = vmul.f32 1.442695, %v3222_v18 }
 0x466   : > { %v10356_v55 = vpop.permute.xlu1 %3677  ;;  %3902 = vperm.xlu0 %7104, %v10348_v46   ;;  %v3433_v18 = vmul.f32 1.442695, %v3224_v56 }
 0x467   : > { %3857 = vperm.xlu1 %7103, %v10354_v22   ;;  %v10373_v22 = vpop.eup %7259  ;;  %7279 = vpow2.f32 %v3429_v43 }
 0x468   : > { %13161 = vst [vmem:[#allocation131_spill] sm:$0xff] %v10373_v22  ;;  %v10381_v15 = vpop.eup %7261  ;;  %7281 = vpow2.f32 %v3463_v14  ;;  %v3471_v14 = vmul.f32 1.442695, %v3243_v29  ;;  %v3247_v29 = vsub.f32 %v13178_v48, %v10363_v54 }
 0x469   : > { %v10369_v35 = vpop.permute.xlu0 %3722  ;;  %13163 = vst [vmem:[#allocation115_spill] sm:$0xff] %v10381_v15  ;;  %v10387_v60 = vpop.eup %7263  ;;  %7283 = vpow2.f32 %v3433_v18 }
 0x46a   : > { %v10375_v46 = vpop.permute.xlu1 %3680  ;;  %3908 = vperm.xlu0 %7104, %v10367_v45   ;;  %13165 = vst [vmem:[#allocation37_spill] sm:$0xff] %v10387_v60  ;;  %v3226_v45 = vsub.f32 %v13168_v44, %v10249_v6  ;;  %v13172_v44 = vld [vmem:[#allocation67_spill] sm:$0xff]  ;;  %7285 = vpow2.f32 %v3467_v27  ;;  %v3475_v27 = vmul.f32 1.442695, %v3245_v59  ;;  %v13182_v59 = vld [vmem:[#allocation125_spill] sm:$0xff] }
 0x46b   : > { %3863 = vperm.xlu1 %7103, %v10373_v22   ;;  %v10395_v22 = vpop.eup %7265  ;;  %v3249_v48 = vsub.f32 %v13182_v59, %v10363_v54  ;;  %v3251_v59 = vsub.f32 %v9631_v7, %v10363_v54 }
 0x46c   : > { %13167 = vst [vmem:[#allocation118_spill] sm:$0xff] %v10395_v22  ;;  %v10401_v50 = vpop.eup %7267  ;;  %v3437_v56 = vmul.f32 1.442695, %v3226_v45 }
 0x46d   : > { %v10383_v26 = vpop.permute.xlu0 %3728  ;;  %13169 = vst [vmem:[#allocation65_spill] sm:$0xff] %v10401_v50 }
 0x46e   : > { %v10389_v4 = vpop.permute.xlu1 %3683  ;;  %3914 = vperm.xlu0 %7104, %v10381_v15   ;;  %v3228_v15 = vsub.f32 %v13172_v44, %v10249_v6  ;;  %7287 = vpow2.f32 %v3437_v56  ;;  %v3230_v44 = vsub.f32 %v12995_v38, %v10249_v6  ;;  %v13180_v38 = vld [vmem:[#allocation101_spill] sm:$0xff] }
 0x46f   : > { %3869 = vperm.xlu1 %7103, %v10387_v60   ;;  %v10409_v60 = vpop.eup %7269  ;;  %7289 = vpow2.f32 %v3471_v14  ;;  %v3479_v14 = vmul.f32 1.442695, %v3247_v29  ;;  %v3483_v29 = vmul.f32 1.442695, %v3249_v48 }
 0x470   : > { %13171 = vst [vmem:[#allocation120_spill] sm:$0xff] %v10409_v60  ;;  %v10415_v37 = vpop.eup %7271  ;;  %v3441_v45 = vmul.f32 1.442695, %v3228_v15  ;;  %v3445_v15 = vmul.f32 1.442695, %v3230_v44 }
 0x471   : > { %v10397_v47 = vpop.permute.xlu0 %3734  ;;  %13173 = vst [vmem:[#allocation67_spill] sm:$0xff] %v10415_v37  ;;  %v10423_v31 = vpop.eup %7273 }
 0x472   : > { %v10403_v25 = vpop.permute.xlu1 %3689  ;;  %3920 = vperm.xlu0 %7104, %v10395_v22   ;;  %13174 = vst [vmem:[#allocation132_spill] sm:$0xff] %v10423_v31  ;;  %7291 = vpow2.f32 %v3441_v45 }
 0x473   : > { %3875 = vperm.xlu1 %7103, %v10401_v50   ;;  %v10429_v50 = vpop.eup %7275  ;;  %7293 = vpow2.f32 %v3475_v27  ;;  %v12588_v27 = vsub.s32 7, %v12924_v52 }
 0x474   : > { %13176 = vst [vmem:[#allocation134_spill] sm:$0xff] %v10429_v50  ;;  %7295 = vpow2.f32 %v3445_v15 }
 0x475   : > { %v10411_v43 = vpop.permute.xlu0 %3740  ;;  %7297 = vpow2.f32 %v3479_v14  ;;  %v10481_v7 = vrot.slane %v9895_v49, %v12588_v27  ;;  %v3487_v14 = vmul.f32 1.442695, %v3251_v59 }
 0x476   : > { %v10417_v57 = vpop.permute.xlu1 %3695  ;;  %3926 = vperm.xlu0 %7104, %v10409_v60   ;;  %v3232_v60 = vsub.f32 %v13180_v38, %v10249_v6  ;;  %v13184_v38 = vld [vmem:[#allocation105_spill] sm:$0xff] }
 0x477   : > { %3881 = vperm.xlu1 %7103, %v10415_v37   ;;  %v10437_v37 = vpop.eup %7277 }
 0x478   : > { %13179 = vst [vmem:[#allocation55_spill] sm:$0xff] %v10437_v37  ;;  %v10443_v40 = vpop.eup %7279  ;;  %v3449_v44 = vmul.f32 1.442695, %v3232_v60 }
 0x479   : > { %v10425_v18 = vpop.permute.xlu0 %3746  ;;  %13181 = vst [vmem:[#allocation101_spill] sm:$0xff] %v10443_v40 }
 0x47a   : > { %13175 = vst [vmem:[#allocation133_spill] sm:$0xff] %v10425_v18  ;;  %v10431_v22 = vpop.permute.xlu1 %3701  ;;  %3932 = vperm.xlu0 %7104, %v10423_v31   ;;  %v3234_v31 = vsub.f32 %v13184_v38, %v10249_v6  ;;  %7299 = vpow2.f32 %v3449_v44 }
 0x47b   : > { %13177 = vst [vmem:[#allocation135_spill] sm:$0xff] %v10431_v22  ;;  %3887 = vperm.xlu1 %7103, %v10429_v50   ;;  %v10451_v50 = vpop.eup %7281  ;;  %7301 = vpow2.f32 %v3483_v29 }
 0x47c   : > { %13183 = vst [vmem:[#allocation125_spill] sm:$0xff] %v10451_v50  ;;  %v10457_v10 = vpop.eup %7283  ;;  %v3453_v38 = vmul.f32 1.442695, %v3234_v31  ;;  %v3253_v31 = vsub.f32 %v9661_v5, %v10363_v54  ;;  %v13190_v5 = vld [vmem:[#allocation87_spill] sm:$0xff] }
 0x47d   : > { %v10439_v56 = vpop.permute.xlu0 %3752  ;;  %13185 = vst [vmem:[#allocation105_spill] sm:$0xff] %v10457_v10  ;;  %v10466_v15 = vpop.eup %7285  ;;  %v3255_v29 = vsub.f32 %v13190_v5, %v10481_v7 }
 0x47e   : > { %v10445_v1 = vpop.permute.xlu1 %3707  ;;  %3938 = vperm.xlu0 %7104, %v10437_v37   ;;  %13186 = vst [vmem:[#allocation136_spill] sm:$0xff] %v10466_v15  ;;  %v10472_v37 = vpop.eup %7287  ;;  %7303 = vpow2.f32 %v3453_v38  ;;  %v3491_v49 = vmul.f32 1.442695, %v3253_v31  ;;  %v13194_v31 = vld [vmem:[#allocation89_spill] sm:$0xff] }
 0x47f   : > { %3893 = vperm.xlu1 %7103, %v10443_v40   ;;  %v3236_v40 = vsub.f32 %v13015_v33, %v10249_v6  ;;  %13187 = vst [vmem:[#allocation137_spill] sm:$0xff] %v10472_v37  ;;  %v10485_v48 = vpop.eup %7289  ;;  %7305 = vpow2.f32 %v3487_v14  ;;  %v3495_v14 = vmul.f32 1.442695, %v3255_v29  ;;  %v3257_v5 = vsub.f32 %v13194_v31, %v10481_v7  ;;  %v13198_v29 = vld [vmem:[#allocation93_spill] sm:$0xff] }
 0x480   : > { %13188 = vst [vmem:[#allocation138_spill] sm:$0xff] %v10485_v48  ;;  %v3259_v31 = vsub.f32 %v13198_v29, %v10481_v7 }
 0x481   : > { %v10453_v45 = vpop.permute.xlu0 %3758  ;;  %v3457_v44 = vmul.f32 1.442695, %v3236_v40 }
 0x482   : > { %v10459_v61 = vpop.permute.xlu1 %3713  ;;  %3944 = vperm.xlu0 %7104, %v10451_v50  }
 0x483   : > { %3899 = vperm.xlu1 %7103, %v10457_v10   ;;  %v3238_v10 = vsub.f32 %v13018_v0, %v10249_v6  ;;  %7307 = vpow2.f32 %v3457_v44  ;;  %v13192_v0 = vld [vmem:[#allocation117_spill] sm:$0xff] }
 0x484   : > { %v3240_v6 = vsub.f32 %v13192_v0, %v10363_v54  ;;  %7309 = vpow2.f32 %v3491_v49  ;;  %v13196_v0 = vld [vmem:[#allocation119_spill] sm:$0xff]  ;;  %v3499_v49 = vmul.f32 1.442695, %v3257_v5 }
 0x485   : > { %v10468_v60 = vpop.permute.xlu0 %3764  ;;  %v3461_v40 = vmul.f32 1.442695, %v3238_v10  ;;  %v13203_v5 = vld [vmem:[#allocation95_spill] sm:$0xff] }
 0x486   : > { %v10474_v50 = vpop.permute.xlu1 %3719  ;;  %3950 = vperm.xlu0 %7104, %v10466_v15   ;;  %v3465_v10 = vmul.f32 1.442695, %v3240_v6  ;;  %v3261_v29 = vsub.f32 %v13203_v5, %v10481_v7 }
 0x487   : > { %3905 = vperm.xlu1 %7103, %v10472_v37   ;;  %v10491_v37 = vpop.eup %7291  ;;  %7311 = vpow2.f32 %v3461_v40 }
 0x488   : > { %13189 = vst [vmem:[#allocation139_spill] sm:$0xff] %v10491_v37  ;;  %v10499_v59 = vpop.eup %7293  ;;  %7313 = vpow2.f32 %v3495_v14  ;;  %v3503_v14 = vmul.f32 1.442695, %v3259_v31  ;;  %v13209_v31 = vld [vmem:[#allocation62_spill] sm:$0xff] }
 0x489   : > { %v10487_v33 = vpop.permute.xlu0 %3770  ;;  %13191 = vst [vmem:[#allocation87_spill] sm:$0xff] %v10499_v59  ;;  %v10505_v27 = vpop.eup %7295  ;;  %7315 = vpow2.f32 %v3465_v10  ;;  %v3263_v5 = vsub.f32 %v13209_v31, %v10481_v7 }
 0x48a   : > { %v10493_v15 = vpop.permute.xlu1 %3725  ;;  %3956 = vperm.xlu0 %7104, %v10485_v48   ;;  %13193 = vst [vmem:[#allocation117_spill] sm:$0xff] %v10505_v27  ;;  %v3242_v48 = vsub.f32 %v13196_v0, %v10363_v54  ;;  %v13201_v0 = vld [vmem:[#allocation121_spill] sm:$0xff]  ;;  %7317 = vpow2.f32 %v3499_v49  ;;  %v3507_v49 = vmul.f32 1.442695, %v3261_v29  ;;  %v3265_v29 = vsub.f32 %v9832_v62, %v10481_v7 }
 0x48b   : > { %3911 = vperm.xlu1 %7103, %v10491_v37   ;;  %v10513_v37 = vpop.eup %7297  ;;  %v3267_v62 = vsub.f32 %v9860_v51, %v10481_v7  ;;  %v3269_v51 = vsub.f32 %v9877_v20, %v10481_v7 }
 0x48c   : > { %13195 = vst [vmem:[#allocation89_spill] sm:$0xff] %v10513_v37  ;;  %v10519_v2 = vpop.eup %7299  ;;  %v3469_v6 = vmul.f32 1.442695, %v3242_v48 }
 0x48d   : > { %v10501_v38 = vpop.permute.xlu0 %3776  ;;  %13197 = vst [vmem:[#allocation119_spill] sm:$0xff] %v10519_v2 }
 0x48e   : > { %v10507_v52 = vpop.permute.xlu1 %3731  ;;  %3962 = vperm.xlu0 %7104, %v10499_v59   ;;  %v3244_v59 = vsub.f32 %v13201_v0, %v10363_v54  ;;  %7319 = vpow2.f32 %v3469_v6  ;;  %v13206_v0 = vld [vmem:[#allocation122_spill] sm:$0xff] }
 0x48f   : > { %3917 = vperm.xlu1 %7103, %v10505_v27   ;;  %v10527_v27 = vpop.eup %7301  ;;  %7321 = vpow2.f32 %v3503_v14  ;;  %v3511_v14 = vmul.f32 1.442695, %v3263_v5 }
 0x490   : > { %13199 = vst [vmem:[#allocation93_spill] sm:$0xff] %v10527_v27  ;;  %v10533_v41 = vpop.eup %7303  ;;  %v3473_v48 = vmul.f32 1.442695, %v3244_v59 }
 0x491   : > { %v10515_v44 = vpop.permute.xlu0 %3782  ;;  %13202 = vst [vmem:[#allocation121_spill] sm:$0xff] %v10533_v41 }
 0x492   : > { %v10521_v23 = vpop.permute.xlu1 %3737  ;;  %3968 = vperm.xlu0 %7104, %v10513_v37   ;;  %v3246_v37 = vsub.f32 %v13206_v0, %v10363_v54  ;;  %7323 = vpow2.f32 %v3473_v48  ;;  %v13211_v0 = vld [vmem:[#allocation124_spill] sm:$0xff] }
 0x493   : > { %3923 = vperm.xlu1 %7103, %v10519_v2   ;;  %v10541_v2 = vpop.eup %7305  ;;  %7325 = vpow2.f32 %v3507_v49  ;;  %v3515_v49 = vmul.f32 1.442695, %v3265_v29 }
 0x494   : > { %13204 = vst [vmem:[#allocation95_spill] sm:$0xff] %v10541_v2  ;;  %v3477_v59 = vmul.f32 1.442695, %v3246_v37 }
 0x495   : > { %v10529_v40 = vpop.permute.xlu0 %3788 }
 0x496   : > { %13200 = vst [vmem:[#allocation140_spill] sm:$0xff] %v10529_v40  ;;  %v10535_v18 = vpop.permute.xlu1 %3743  ;;  %3974 = vperm.xlu0 %7104, %v10527_v27   ;;  %v10547_v40 = vpop.eup %7307  ;;  %7327 = vpow2.f32 %v3477_v59 }
 0x497   : > { %3929 = vperm.xlu1 %7103, %v10533_v41   ;;  %13207 = vst [vmem:[#allocation122_spill] sm:$0xff] %v10547_v40  ;;  %v10555_v27 = vpop.eup %7309  ;;  %v3248_v41 = vsub.f32 %v13211_v0, %v10363_v54  ;;  %v13214_v0 = vld [vmem:[#allocation126_spill] sm:$0xff]  ;;  %7329 = vpow2.f32 %v3511_v14  ;;  %v3519_v14 = vmul.f32 1.442695, %v3267_v62 }
 0x498   : > { %13210 = vst [vmem:[#allocation62_spill] sm:$0xff] %v10555_v27 }
 0x499   : > { %v10543_v10 = vpop.permute.xlu0 %3794  ;;  %v3481_v37 = vmul.f32 1.442695, %v3248_v41 }
 0x49a   : > { %13205 = vst [vmem:[#allocation141_spill] sm:$0xff] %v10543_v10  ;;  %v10549_v22 = vpop.permute.xlu1 %3749  ;;  %3980 = vperm.xlu0 %7104, %v10541_v2   ;;  %v10561_v10 = vpop.eup %7311  ;;  %v3250_v2 = vsub.f32 %v13214_v0, %v10363_v54  ;;  %v3252_v0 = vsub.f32 %v9638_v63, %v10363_v54  ;;  %v3254_v63 = vsub.f32 %v9670_v13, %v10363_v54 }
 0x49b   : > { %13208 = vst [vmem:[#allocation142_spill] sm:$0xff] %v10549_v22  ;;  %3935 = vperm.xlu1 %7103, %v10547_v40   ;;  %13212 = vst [vmem:[#allocation124_spill] sm:$0xff] %v10561_v10  ;;  %v10569_v31 = vpop.eup %7313  ;;  %7331 = vpow2.f32 %v3481_v37 }
 0x49c   : > { %13213 = vst [vmem:[#allocation143_spill] sm:$0xff] %v10569_v31  ;;  %v10575_v40 = vpop.eup %7315  ;;  %v3485_v41 = vmul.f32 1.442695, %v3250_v2  ;;  %7333 = vpow2.f32 %v3515_v49  ;;  %v3489_v2 = vmul.f32 1.442695, %v3252_v0  ;;  %v13223_v0 = vld [vmem:[#allocation43_spill] sm:$0xff] }
 0x49d   : > { %v10557_v6 = vpop.permute.xlu0 %3800  ;;  %13215 = vst [vmem:[#allocation126_spill] sm:$0xff] %v10575_v40  ;;  %v10583_v5 = vpop.eup %7317  ;;  %v3523_v49 = vmul.f32 1.442695, %v3269_v51 }
 0x49e   : > { %v10563_v22 = vpop.permute.xlu1 %3755  ;;  %3986 = vperm.xlu0 %7104, %v10555_v27   ;;  %13216 = vst [vmem:[#allocation144_spill] sm:$0xff] %v10583_v5  ;;  %v10589_v27 = vpop.eup %7319  ;;  %7335 = vpow2.f32 %v3485_v41  ;;  %v3493_v41 = vmul.f32 1.442695, %v3254_v63 }
 0x49f   : > { %3941 = vperm.xlu1 %7103, %v10561_v10   ;;  %13217 = vst [vmem:[#allocation145_spill] sm:$0xff] %v10589_v27  ;;  %v10597_v29 = vpop.eup %7321  ;;  %7337 = vpow2.f32 %v3519_v14 }
 0x4a0   : > { %13218 = vst [vmem:[#allocation146_spill] sm:$0xff] %v10597_v29  ;;  %7339 = vpow2.f32 %v3489_v2  ;;  %v13227_v2 = vld [vmem:[#allocation96_spill] sm:$0xff] }
 0x4a1   : > { %v10571_v48 = vpop.permute.xlu0 %3806  ;;  %7341 = vpow2.f32 %v3523_v49  ;;  %v3258_v63 = vsub.f32 %v13227_v2, %v10481_v7 }
 0x4a2   : > { %v10577_v39 = vpop.permute.xlu1 %3761  ;;  %3992 = vperm.xlu0 %7104, %v10569_v31   ;;  %v10603_v31 = vpop.eup %7323  ;;  %7343 = vpow2.f32 %v3493_v41  ;;  %v13231_v41 = vld [vmem:[#allocation98_spill] sm:$0xff] }
 0x4a3   : > { %3947 = vperm.xlu1 %7103, %v10575_v40   ;;  %13220 = vst [vmem:[#allocation148_spill] sm:$0xff] %v10603_v31  ;;  %v10609_v20 = vpop.eup %7325 }
 0x4a4   : > { %13221 = vst [vmem:[#allocation149_spill] sm:$0xff] %v10609_v20  ;;  %v10615_v13 = vpop.eup %7327 }
 0x4a5   : > { %v10585_v59 = vpop.permute.xlu0 %3812  ;;  %13224 = vst [vmem:[#allocation43_spill] sm:$0xff] %v10615_v13  ;;  %v10621_v14 = vpop.eup %7329 }
 0x4a6   : > { %v10591_v10 = vpop.permute.xlu1 %3767  ;;  %3998 = vperm.xlu0 %7104, %v10583_v5   ;;  %v3256_v5 = vsub.f32 %v13223_v0, %v10481_v7  ;;  %13225 = vst [vmem:[#allocation151_spill] sm:$0xff] %v10621_v14 }
 0x4a7   : > { %3953 = vperm.xlu1 %7103, %v10589_v27  }
 0x4a8   : > { %v10627_v27 = vpop.eup %7331 }
 0x4a9   : > { %v10599_v37 = vpop.permute.xlu0 %3818  ;;  %13228 = vst [vmem:[#allocation96_spill] sm:$0xff] %v10627_v27 }
 0x4aa   : > { %13219 = vst [vmem:[#allocation147_spill] sm:$0xff] %v10599_v37  ;;  %v10605_v40 = vpop.permute.xlu1 %3773  ;;  %4004 = vperm.xlu0 %7104, %v10597_v29   ;;  %v3497_v29 = vmul.f32 1.442695, %v3256_v5  ;;  %v3260_v5 = vsub.f32 %v13231_v41, %v10481_v7  ;;  %v13298_v37 = vld [vmem:[#allocation103_spill] sm:$0xff] }
 0x4ab   : > { %3959 = vperm.xlu1 %7103, %v10603_v31  }
 0x4ac   : > { %7345 = vpow2.f32 %v3497_v29  ;;  %v13236_v29 = vld [vmem:[#allocation100_spill] sm:$0xff] }
 0x4ad   : > { %v10611_v62 = vpop.permute.xlu0 %3824 }
 0x4ae   : > { %13222 = vst [vmem:[#allocation150_spill] sm:$0xff] %v10611_v62  ;;  %v10617_v54 = vpop.permute.xlu1 %3779  ;;  %4010 = vperm.xlu0 %7104, %v10609_v20   ;;  %v10633_v20 = vpop.eup %7333 }
 0x4af   : > { %3965 = vperm.xlu1 %7103, %v10615_v13   ;;  %13229 = vst [vmem:[#allocation153_spill] sm:$0xff] %v10633_v20  ;;  %v3501_v13 = vmul.f32 1.442695, %v3258_v63  ;;  %v10639_v31 = vpop.eup %7335  ;;  %v3262_v63 = vsub.f32 %v13236_v29, %v10481_v7 }
 0x4b0   : > { %13232 = vst [vmem:[#allocation98_spill] sm:$0xff] %v10639_v31 }
 0x4b1   : > { %v10623_v51 = vpop.permute.xlu0 %3830  ;;  %7347 = vpow2.f32 %v3501_v13  ;;  %v3509_v62 = vmul.f32 1.442695, %v3262_v63  ;;  %v13241_v13 = vld [vmem:[#allocation64_spill] sm:$0xff] }
 0x4b2   : > { %13226 = vst [vmem:[#allocation152_spill] sm:$0xff] %v10623_v51  ;;  %v10629_v0 = vpop.permute.xlu1 %3785  ;;  %4016 = vperm.xlu0 %7104, %v10621_v14   ;;  %v10645_v14 = vpop.eup %7337  ;;  %v3505_v51 = vmul.f32 1.442695, %v3260_v5  ;;  %v3264_v5 = vsub.f32 %v13241_v13, %v10481_v7 }
 0x4b3   : > { %3971 = vperm.xlu1 %7103, %v10627_v27   ;;  %13234 = vst [vmem:[#allocation156_spill] sm:$0xff] %v10645_v14 }
 0x4b4   : > { %7349 = vpow2.f32 %v3505_v51 }
 0x4b5   : > { %v10635_v49 = vpop.permute.xlu0 %3836  ;;  %7351 = vpow2.f32 %v3509_v62 }
 0x4b6   : > { %13230 = vst [vmem:[#allocation154_spill] sm:$0xff] %v10635_v49  ;;  %v10641_v2 = vpop.permute.xlu1 %3791  ;;  %4022 = vperm.xlu0 %7104, %v10633_v20   ;;  %v10651_v49 = vpop.eup %7339 }
 0x4b7   : > { %13233 = vst [vmem:[#allocation155_spill] sm:$0xff] %v10641_v2  ;;  %3977 = vperm.xlu1 %7103, %v10639_v31   ;;  %13237 = vst [vmem:[#allocation100_spill] sm:$0xff] %v10651_v49  ;;  %v10657_v20 = vpop.eup %7341 }
 0x4b8   : > { %13239 = vst [vmem:[#allocation159_spill] sm:$0xff] %v10657_v20 }
 0x4b9   : > { %v10647_v27 = vpop.permute.xlu0 %3842 }
 0x4ba   : > { %13235 = vst [vmem:[#allocation157_spill] sm:$0xff] %v10647_v27  ;;  %v10653_v41 = vpop.permute.xlu1 %3797  ;;  %4028 = vperm.xlu0 %7104, %v10645_v14   ;;  %v10663_v27 = vpop.eup %7343 }
 0x4bb   : > { %13238 = vst [vmem:[#allocation158_spill] sm:$0xff] %v10653_v41  ;;  %3983 = vperm.xlu1 %7103, %v10651_v49   ;;  %13242 = vst [vmem:[#allocation64_spill] sm:$0xff] %v10663_v27  ;;  %v3513_v49 = vmul.f32 1.442695, %v3264_v5  ;;  %v13244_v41 = vld [vmem:[#allocation94_spill] sm:$0xff]  ;;  %v10673_v51 = vpop.eup %7345 }
 0x4bc   : > { %13245 = vst [vmem:[#allocation94_spill] sm:$0xff] %v10673_v51 }
 0x4bd   : > { %v10659_v31 = vpop.permute.xlu0 %3848  ;;  %7353 = vpow2.f32 %v3513_v49 }
 0x4be   : > { %13240 = vst [vmem:[#allocation160_spill] sm:$0xff] %v10659_v31  ;;  %v10665_v29 = vpop.permute.xlu1 %3803  ;;  %4034 = vperm.xlu0 %7104, %v10657_v20   ;;  %v3266_v31 = vsub.f32 %v13244_v41, %v10481_v7  ;;  %v3268_v20 = vsub.f32 %v9866_v12, %v10481_v7 }
 0x4bf   : > { %3989 = vperm.xlu1 %7103, %v10663_v27   ;;  %v10682_v27 = vpop.eup %7347 }
 0x4c0   : > { %v3517_v2 = vmul.f32 1.442695, %v3266_v31  ;;  %13247 = vst [vmem:[#allocation163_spill] sm:$0xff] %v10682_v27  ;;  %v3521_v5 = vmul.f32 1.442695, %v3268_v20 }
 0x4c1   : > { %v10669_v14 = vpop.permute.xlu0 %3854 }
 0x4c2   : > { %13243 = vst [vmem:[#allocation161_spill] sm:$0xff] %v10669_v14  ;;  %v10675_v63 = vpop.permute.xlu1 %3809  ;;  %7355 = vpow2.f32 %v3517_v2  ;;  %v10691_v14 = vpop.eup %7349 }
 0x4c3   : > { %3995 = vperm.xlu1 %7103, %v10673_v51   ;;  %v3270_v51 = vsub.f32 %v9881_v28, %v10481_v7  ;;  %13249 = vst [vmem:[#allocation165_spill] sm:$0xff] %v10691_v14  ;;  %7357 = vpow2.f32 %v3521_v5 }
 0x4c5   : > { %v10678_v13 = vpop.permute.xlu0 %3860  ;;  %v3525_v31 = vmul.f32 1.442695, %v3270_v51 }
 0x4c6   : > { %13246 = vst [vmem:[#allocation162_spill] sm:$0xff] %v10678_v13  ;;  %v10684_v62 = vpop.permute.xlu1 %3815  ;;  %v10698_v13 = vpop.eup %7351 }
 0x4c7   : > { %4001 = vperm.xlu1 %7103, %v10682_v27   ;;  %13252 = vst [vmem:[#allocation168_spill] sm:$0xff] %v10698_v13  ;;  %7359 = vpow2.f32 %v3525_v31 }
 0x4c9   : > { %v10687_v41 = vpop.permute.xlu0 %3866 }
 0x4ca   : > { %13248 = vst [vmem:[#allocation164_spill] sm:$0xff] %v10687_v41  ;;  %v10693_v49 = vpop.permute.xlu1 %3821  ;;  %v10705_v28 = vpop.eup %7353 }
 0x4cb   : > { %13250 = vst [vmem:[#allocation166_spill] sm:$0xff] %v10693_v49  ;;  %4007 = vperm.xlu1 %7103, %v10691_v14   ;;  %13255 = vst [vmem:[#allocation171_spill] sm:$0xff] %v10705_v28 }
 0x4cd   : > { %v10696_v12 = vpop.permute.xlu0 %3872 }
 0x4ce   : > { %13251 = vst [vmem:[#allocation167_spill] sm:$0xff] %v10696_v12  ;;  %v10700_v27 = vpop.permute.xlu1 %3827 }
 0x4cf   : > { %13253 = vst [vmem:[#allocation169_spill] sm:$0xff] %v10700_v27  ;;  %4013 = vperm.xlu1 %7103, %v10698_v13   ;;  %v10712_v14 = vpop.eup %7355 }
 0x4d0   : > { %13258 = vst [vmem:[#allocation174_spill] sm:$0xff] %v10712_v14  ;;  %v10719_v13 = vpop.eup %7357 }
 0x4d1   : > { %v10703_v20 = vpop.permute.xlu0 %3878  ;;  %13261 = vst [vmem:[#allocation177_spill] sm:$0xff] %v10719_v13 }
 0x4d2   : > { %13254 = vst [vmem:[#allocation170_spill] sm:$0xff] %v10703_v20  ;;  %v10707_v7 = vpop.permute.xlu1 %3833 }
 0x4d3   : > { %13256 = vst [vmem:[#allocation172_spill] sm:$0xff] %v10707_v7  ;;  %4019 = vperm.xlu1 %7103, %v10705_v28  }
 0x4d4   : > { %v10726_v12 = vpop.eup %7359 }
 0x4d5   : > { %v10710_v2 = vpop.permute.xlu0 %3884  ;;  %13264 = vst [vmem:[#allocation180_spill] sm:$0xff] %v10726_v12 }
 0x4d6   : > { %13257 = vst [vmem:[#allocation173_spill] sm:$0xff] %v10710_v2  ;;  %v10714_v51 = vpop.permute.xlu1 %3839 }
 0x4d7   : > { %13259 = vst [vmem:[#allocation175_spill] sm:$0xff] %v10714_v51  ;;  %4025 = vperm.xlu1 %7103, %v10712_v14  }
 0x4d9   : > { %v10717_v5 = vpop.permute.xlu0 %3890 }
 0x4da   : > { %13260 = vst [vmem:[#allocation176_spill] sm:$0xff] %v10717_v5  ;;  %v10721_v20 = vpop.permute.xlu1 %3845 }
 0x4db   : > { %13262 = vst [vmem:[#allocation178_spill] sm:$0xff] %v10721_v20  ;;  %4031 = vperm.xlu1 %7103, %v10719_v13  }
 0x4dd   : > { %v10724_v31 = vpop.permute.xlu0 %3896 }
 0x4de   : > { %13263 = vst [vmem:[#allocation179_spill] sm:$0xff] %v10724_v31  ;;  %v10728_v28 = vpop.permute.xlu1 %3851 }
 0x4df   : > { %13265 = vst [vmem:[#allocation181_spill] sm:$0xff] %v10728_v28  ;;  %4037 = vperm.xlu1 %7103, %v10726_v12  }
 0x4e1   : > { %v10731_v2 = vpop.permute.xlu0 %3902 }
 0x4e2   : > { %13266 = vst [vmem:[#allocation182_spill] sm:$0xff] %v10731_v2  ;;  %v10733_v51 = vpop.permute.xlu1 %3857 }
 0x4e3   : > { %13267 = vst [vmem:[#allocation183_spill] sm:$0xff] %v10733_v51 }
 0x4e5   : > { %v10735_v14 = vpop.permute.xlu0 %3908 }
 0x4e6   : > { %13268 = vst [vmem:[#allocation184_spill] sm:$0xff] %v10735_v14  ;;  %v10737_v5 = vpop.permute.xlu1 %3863 }
 0x4e7   : > { %13269 = vst [vmem:[#allocation185_spill] sm:$0xff] %v10737_v5 }
 0x4e9   : > { %v10739_v41 = vpop.permute.xlu0 %3914 }
 0x4ea   : > { %13270 = vst [vmem:[#allocation186_spill] sm:$0xff] %v10739_v41  ;;  %v10741_v20 = vpop.permute.xlu1 %3869 }
 0x4eb   : > { %13271 = vst [vmem:[#allocation187_spill] sm:$0xff] %v10741_v20 }
 0x4ed   : > { %v10743_v13 = vpop.permute.xlu0 %3920 }
 0x4ee   : > { %13272 = vst [vmem:[#allocation188_spill] sm:$0xff] %v10743_v13  ;;  %v10745_v31 = vpop.permute.xlu1 %3875 }
 0x4ef   : > { %13273 = vst [vmem:[#allocation189_spill] sm:$0xff] %v10745_v31 }
 0x4f1   : > { %v10747_v7 = vpop.permute.xlu0 %3926 }
 0x4f2   : > { %13274 = vst [vmem:[#allocation190_spill] sm:$0xff] %v10747_v7  ;;  %v10749_v28 = vpop.permute.xlu1 %3881 }
 0x4f3   : > { %13275 = vst [vmem:[#allocation191_spill] sm:$0xff] %v10749_v28 }
 0x4f5   : > { %v10751_v12 = vpop.permute.xlu0 %3932 }
 0x4f6   : > { %13276 = vst [vmem:[#allocation192_spill] sm:$0xff] %v10751_v12  ;;  %v10753_v2 = vpop.permute.xlu1 %3887 }
 0x4f7   : > { %13277 = vst [vmem:[#allocation193_spill] sm:$0xff] %v10753_v2 }
 0x4f9   : > { %v10755_v51 = vpop.permute.xlu0 %3938 }
 0x4fa   : > { %13278 = vst [vmem:[#allocation194_spill] sm:$0xff] %v10755_v51  ;;  %v10757_v14 = vpop.permute.xlu1 %3893 }
 0x4fb   : > { %13279 = vst [vmem:[#allocation195_spill] sm:$0xff] %v10757_v14 }
 0x4fd   : > { %v10759_v5 = vpop.permute.xlu0 %3944 }
 0x4fe   : > { %13280 = vst [vmem:[#allocation196_spill] sm:$0xff] %v10759_v5  ;;  %v10761_v41 = vpop.permute.xlu1 %3899 }
 0x4ff   : > { %13281 = vst [vmem:[#allocation197_spill] sm:$0xff] %v10761_v41  ;;  %v13292_v41 = vld [vmem:[#allocation69_spill] sm:$0xff] }
 0x501   : > { %v10765_v13 = vpop.permute.xlu0 %3950 }
 0x502   : > { %v10763_v20 = vpop.permute.xlu1 %3905  ;;  %13283 = vst [vmem:[#allocation199_spill] sm:$0xff] %v10765_v13  ;;  %v13293_v13 = vld [vmem:[#allocation97_spill] sm:$0xff] }
 0x503   : > { %13282 = vst [vmem:[#allocation198_spill] sm:$0xff] %v10763_v20  ;;  %v4125_v20 = vrot.slane %v10445_v1, %v13292_v41  ;;  %v13296_v1 = vld [vmem:[#allocation102_spill] sm:$0xff] }
 0x504   : > { %v4135_v27 = vrot.slane %v10459_v61, %v13296_v1 }
 0x505   : > { %v10769_v7 = vpop.permute.xlu0 %3956 }
 0x506   : > { %v10767_v31 = vpop.permute.xlu1 %3911  ;;  %13285 = vst [vmem:[#allocation201_spill] sm:$0xff] %v10769_v7  ;;  %v4042_v7 = vrot.slane %v10271_v11, %v13293_v13  ;;  %v4056_v11 = vrot.slane %v10299_v58, %v13296_v1  ;;  %v4214_v58 = vrot.slane %v10577_v39, %v13296_v1  ;;  %v4140_v39 = vrot.slane %v10350_v30, %v13298_v37 }
 0x507   : > { %13284 = vst [vmem:[#allocation200_spill] sm:$0xff] %v10767_v31  ;;  %v4046_v31 = vrot.slane %v10265_v17, %v13292_v41 }
 0x509   : > { %v10775_v2 = vpop.permute.xlu0 %3962 }
 0x50a   : > { %v10771_v28 = vpop.permute.xlu1 %3917  ;;  %13288 = vst [vmem:[#allocation204_spill] sm:$0xff] %v10775_v2 }
 0x50b   : > { %13286 = vst [vmem:[#allocation202_spill] sm:$0xff] %v10771_v28  ;;  %v13294_v28 = vld [vmem:[#allocation99_spill] sm:$0xff] }
 0x50c   : > { %v4051_v2 = vrot.slane %v10285_v19, %v13294_v28  ;;  %v4200_v19 = vrot.slane %v10439_v56, %v13293_v13  ;;  %v4209_v56 = vrot.slane %v10453_v45, %v13294_v28 }
 0x50d   : > { %v10779_v14 = vpop.permute.xlu0 %3968 }
 0x50e   : > { %v10773_v12 = vpop.permute.xlu1 %3923  ;;  %13290 = vst [vmem:[#allocation206_spill] sm:$0xff] %v10779_v14 }
 0x50f   : > { %13287 = vst [vmem:[#allocation203_spill] sm:$0xff] %v10773_v12  ;;  %v4121_v12 = vrot.slane %v10321_v24, %v13293_v13  ;;  %v4130_v24 = vrot.slane %v10335_v8, %v13294_v28  ;;  %v13299_v8 = vld [vmem:[#allocation106_spill] sm:$0xff] }
 0x510   : > { %v4066_v49 = vrot.slane %v10327_v3, %v13299_v8 }
 0x511   : > { %v10800_v17 = vpop.permute.xlu0 %3974 }
 0x512   : > { %v10777_v51 = vpop.permute.xlu1 %3929  ;;  %13297 = vst [vmem:[#allocation97_spill] sm:$0xff] %v10800_v17 }
 0x513   : > { %13289 = vst [vmem:[#allocation205_spill] sm:$0xff] %v10777_v51  ;;  %v4204_v51 = vrot.slane %v10563_v22, %v13292_v41  ;;  %v4047_v22 = vsel %vm2432_vm2, %v4046_v31, %v4042_v7 }
 0x516   : > { %v10781_v5 = vpop.permute.xlu1 %3935 }
 0x517   : > { %13291 = vst [vmem:[#allocation207_spill] sm:$0xff] %v10781_v5  ;;  %v4126_v5 = vsel %vm2432_vm2, %v4125_v20, %v4121_v12  ;;  %v4052_v12 = vsel %vm2439_vm3, %v4051_v2, %v4047_v22  ;;  %v4205_v20 = vsel %vm2432_vm2, %v4204_v51, %v4200_v19  ;;  %v10834_v19 = vpop.permute.xlu0 %3980 }
 0x518   : > { %v4131_v61 = vsel %vm2439_vm3, %v4130_v24, %v4126_v5  ;;  %v4057_v2 = vsel %vm2446_vm4, %v4056_v11, %v4052_v12  ;;  %v13300_v5 = vld [vmem:[#allocation107_spill] sm:$0xff]  ;;  %v13301_v24 = vld [vmem:[#allocation110_spill] sm:$0xff]  ;;  %v4210_v45 = vsel %vm2439_vm3, %v4209_v56, %v4205_v20 }
 0x519   : > { %v4136_v7 = vsel %vm2446_vm4, %v4135_v27, %v4131_v61  ;;  %v4071_v51 = vrot.slane %v10341_v16, %v13300_v5  ;;  %v4076_v3 = vrot.slane %v10356_v55, %v13301_v24  ;;  %v13302_v27 = vld [vmem:[#allocation111_spill] sm:$0xff]  ;;  %v4215_v22 = vsel %vm2446_vm4, %v4214_v58, %v4210_v45  ;;  %v13303_v58 = vld [vmem:[#allocation112_spill] sm:$0xff] }
 0x51a   : > { %v10795_v14 = vpop.permute.xlu1 %3941  ;;  %v4141_v11 = vsel %vm2453_vm5, %v4140_v39, %v4136_v7  ;;  %v4224_v16 = vrot.slane %v10591_v10, %v13299_v8  ;;  %v4219_v55 = vrot.slane %v10468_v60, %v13298_v37  ;;  %v4155_v61 = vrot.slane %v10493_v15, %v13301_v24  ;;  %v13305_v45 = vld [vmem:[#allocation116_spill] sm:$0xff] }
 0x51b   : > { %13295 = vst [vmem:[#allocation69_spill] sm:$0xff] %v10795_v14  ;;  %v4061_v14 = vrot.slane %v10313_v42, %v13298_v37  ;;  %v4145_v42 = vrot.slane %v10474_v50, %v13299_v8  ;;  %v4081_v50 = vrot.slane %v10375_v46, %v13302_v27  ;;  %v4150_v20 = vrot.slane %v10369_v35, %v13300_v5 }
 0x51c   : > { %v4086_v10 = vrot.slane %v10389_v4, %v13303_v58  ;;  %v4283_v60 = vrot.slane %v10665_v29, %v13292_v41  ;;  %v4229_v4 = vrot.slane %v10487_v33, %v13300_v5  ;;  %v4165_v39 = vrot.slane %v10507_v52, %v13303_v58 }
 0x51d   : > { %v4062_v31 = vsel %vm2453_vm5, %v4061_v14, %v4057_v2  ;;  %v4146_v12 = vsel %vm2460_vm6, %v4145_v42, %v4141_v11  ;;  %v4234_v2 = vrot.slane %v10605_v40, %v13301_v24  ;;  %v4279_v29 = vrot.slane %v10557_v6, %v13293_v13  ;;  %v13306_v11 = vld [vmem:[#allocation114_spill] sm:$0xff] }
 0x51e   : > { %v10816_v17 = vpop.permute.xlu1 %3947  ;;  %v4067_v14 = vsel %vm2460_vm6, %v4066_v49, %v4062_v31  ;;  %v4220_v49 = vsel %vm2453_vm5, %v4219_v55, %v4215_v22  ;;  %v4151_v42 = vsel %vm12638_vm7, %v4150_v20, %v4146_v12  ;;  %v10873_v31 = vpop.permute.xlu0 %3986  ;;  %v4091_v33 = vrot.slane %v10279_v9, %v13306_v11 }
 0x51f   : > { %v4072_v46 = vsel %vm12638_vm7, %v4071_v51, %v4067_v14  ;;  %v4225_v15 = vsel %vm2460_vm6, %v4224_v16, %v4220_v49  ;;  %v4156_v51 = vsel %vm12637_vm8, %v4155_v61, %v4151_v42  ;;  %v4284_v52 = vsel %vm2432_vm2, %v4283_v60, %v4279_v29  ;;  %v13313_v29 = vld [vmem:[#allocation166_spill] sm:$0xff] }
 0x520   : > { %v4077_v56 = vsel %vm12637_vm8, %v4076_v3, %v4072_v46  ;;  %v4160_v3 = vrot.slane %v10383_v26, %v13302_v27  ;;  %v4230_v22 = vsel %vm12638_vm7, %v4229_v4, %v4225_v15  ;;  %v4293_v6 = vrot.slane %v10675_v63, %v13296_v1 }
 0x521   : > { %v4082_v7 = vsel %vm2481_vm9, %v4081_v50, %v4077_v56  ;;  %v4096_v50 = vrot.slane %v10403_v25, %v13305_v45  ;;  %v4288_v26 = vrot.slane %v10571_v48, %v13294_v28  ;;  %v4235_v14 = vsel %vm12637_vm8, %v4234_v2, %v4230_v22 }
 0x522   : > { %v10842_v30 = vpop.permute.xlu1 %3953  ;;  %v4087_v40 = vsel %vm13304_vm10, %v4086_v10, %v4082_v7  ;;  %v4161_v16 = vsel %vm2481_vm9, %v4160_v3, %v4156_v51  ;;  %v4244_v25 = vrot.slane %v10617_v54, %v13303_v58  ;;  %vm13307_vm10 = vcmask 720512   ;;  %v10912_v49 = vpop.permute.xlu0 %3992 }
 0x523   : > { %v4092_v9 = vsel %vm13307_vm10, %v4091_v33, %v4087_v40  ;;  %v4239_v12 = vrot.slane %v10501_v38, %v13302_v27  ;;  %v4166_v61 = vsel %vm13308_vm12, %v4165_v39, %v4161_v16  ;;  %v4175_v63 = vrot.slane %v10521_v23, %v13305_v45  ;;  %vm13310_vm12 = vmmov %vm13307_vm10 }
 0x524   : > { %v4101_v48 = vrot.slane %v10293_v53, %v9484_v36  ;;  %v4170_v46 = vrot.slane %v10397_v47, %v13306_v11  ;;  %v4097_v54 = vsel %vm13309_vm11, %v4096_v50, %v4092_v9  ;;  %v4289_v20 = vsel %vm2439_vm3, %v4288_v26, %v4284_v52  ;;  %v13316_v50 = vld [vmem:[#allocation155_spill] sm:$0xff]  ;;  %v13319_v26 = vld [vmem:[#allocation140_spill] sm:$0xff]  ;;  %v13320_v9 = vld [vmem:[#allocation142_spill] sm:$0xff] }
 0x525   : > { %v4106_v10 = vrot.slane %v10417_v57, %v9509_v21  ;;  %v4240_v38 = vsel %vm2481_vm9, %v4239_v12, %v4235_v14  ;;  %v4294_v56 = vsel %vm2446_vm4, %v4293_v6, %v4289_v20  ;;  %v4303_v23 = vrot.slane %v10684_v62, %v13299_v8  ;;  %v13317_v52 = vld [vmem:[#allocation123_spill] sm:$0xff] }
 0x526   : > { %v10864_v35 = vpop.permute.xlu1 %3959  ;;  %v4171_v53 = vsel %vm13310_vm12, %v4170_v46, %v4166_v61  ;;  %v4298_v47 = vrot.slane %v10585_v59, %v13298_v37  ;;  %vm13311_vm11 = vcmask 654912   ;;  %v4254_v7 = vrot.slane %v10629_v0, %v13305_v45  ;;  %v13318_v6 = vld [vmem:[#allocation135_spill] sm:$0xff]  ;;  %v10953_v61 = vpop.permute.xlu0 %3998 }
 0x527   : > { %v4245_v60 = vsel %vm13311_vm11, %v4244_v25, %v4240_v38  ;;  %v4249_v42 = vrot.slane %v10515_v44, %v13306_v11  ;;  %vm13312_vm10 = vcmask 786112   ;;  %v4185_v62 = vrot.slane %v10535_v18, %v9509_v21  ;;  %v13322_v38 = vld [vmem:[#allocation169_spill] sm:$0xff] }
 0x528   : > { %v4176_v15 = vsel %vm13312_vm10, %v4175_v63, %v4171_v53  ;;  %v4111_v2 = vrot.slane %v10307_v34, %v9540_v32  ;;  %v4180_v59 = vrot.slane %v10411_v43, %v9484_v36  ;;  %v4102_v4 = vsel %vm2509_vm13, %v4101_v48, %v4097_v54  ;;  %v13314_v34 = vld [vmem:[#allocation147_spill] sm:$0xff]  ;;  %vm13315_vm11 = vmmov %vm13312_vm10  ;;  %v13321_v63 = vld [vmem:[#allocation133_spill] sm:$0xff] }
 0x529   : > { %v4299_v0 = vsel %vm2453_vm5, %v4298_v47, %v4294_v56  ;;  %v4107_v51 = vsel %vm2516_vm14, %v4106_v10, %v4102_v4  ;;  %v4250_v39 = vsel %vm13310_vm12, %v4249_v42, %v4245_v60  ;;  %v4313_v3 = vrot.slane %v13313_v29, %v13301_v24  ;;  %v13323_v53 = vld [vmem:[#allocation150_spill] sm:$0xff]  ;;  %v13328_v29 = vld [vmem:[#allocation157_spill] sm:$0xff] }
 0x52a   : > { %v10892_v55 = vpop.permute.xlu1 %3965  ;;  %v4304_v44 = vsel %vm2460_vm6, %v4303_v23, %v4299_v0  ;;  %v4181_v18 = vsel %vm2509_vm13, %v4180_v59, %v4176_v15  ;;  %v4308_v40 = vrot.slane %v13314_v34, %v13300_v5  ;;  %v4255_v43 = vsel %vm13315_vm11, %v4254_v7, %v4250_v39  ;;  %v13324_v7 = vld [vmem:[#allocation158_spill] sm:$0xff]  ;;  %v13326_v0 = vld [vmem:[#allocation152_spill] sm:$0xff]  ;;  %v13329_v34 = vld [vmem:[#allocation181_spill] sm:$0xff] }
 0x52b   : > { %v4264_v33 = vrot.slane %v13316_v50, %v9509_v21  ;;  %v4116_v16 = vrot.slane %v13318_v6, %v13317_v52  ;;  %v4259_v14 = vrot.slane %v13319_v26, %v9484_v36  ;;  %v4186_v25 = vsel %vm2516_vm14, %v4185_v62, %v4181_v18  ;;  %v13327_v39 = vld [vmem:[#allocation154_spill] sm:$0xff] }
 0x52c   : > { %v4195_v12 = vrot.slane %v13320_v9, %v13317_v52  ;;  %v4190_v48 = vrot.slane %v13321_v63, %v9540_v32  ;;  %v4309_v46 = vsel %vm12638_vm7, %v4308_v40, %v4304_v44  ;;  %v4112_v54 = vsel %vm2523_vm15, %v4111_v2, %v4107_v51  ;;  %v13325_v2 = vld [vmem:[#allocation141_spill] sm:$0xff]  ;;  %v13333_v9 = vld [vmem:[#allocation160_spill] sm:$0xff] }
 0x52d   : > { %v4260_v20 = vsel %vm2509_vm13, %v4259_v14, %v4255_v43  ;;  %v4314_v10 = vsel %vm12637_vm8, %v4313_v3, %v4309_v46  ;;  %v4323_v56 = vrot.slane %v13322_v38, %v13303_v58  ;;  %v4318_v47 = vrot.slane %v13323_v53, %v13302_v27  ;;  %v10994_v14 = vpop.permute.xlu0 %4004  ;;  %v13334_v63 = vld [vmem:[#allocation161_spill] sm:$0xff]  ;;  %v13336_v38 = vld [vmem:[#allocation164_spill] sm:$0xff] }
 0x52e   : > { %v10920_v57 = vpop.permute.xlu1 %3971  ;;  %v4191_v23 = vsel %vm2523_vm15, %v4190_v48, %v4186_v25  ;;  %v4265_v60 = vsel %vm2516_vm14, %v4264_v33, %v4260_v20  ;;  %v4274_v42 = vrot.slane %v13324_v7, %v13317_v52  ;;  %v10972_v62 = vsel %vm2530_vm0, %v4116_v16, %v4112_v54  ;;  %v13331_v33 = vld [vmem:[#allocation172_spill] sm:$0xff]  ;;  %v13332_v16 = vld [vmem:[#allocation197_spill] sm:$0xff]  ;;  %v13335_v20 = vld [vmem:[#allocation162_spill] sm:$0xff] }
 0x52f   : > { %v4269_v59 = vrot.slane %v13325_v2, %v9540_v32  ;;  %v10977_v4 = vsel %vm2530_vm0, %v4195_v12, %v4191_v23  ;;  %v4328_v51 = vrot.slane %v13326_v0, %v13306_v11  ;;  %v4338_v44 = vrot.slane %v13327_v39, %v9484_v36  ;;  %v13337_v23 = vld [vmem:[#allocation167_spill] sm:$0xff]  ;;  %v13341_v39 = vld [vmem:[#allocation170_spill] sm:$0xff] }
 0x530   : > { %v4348_v3 = vrot.slane %v13328_v29, %v9540_v32  ;;  %v4319_v18 = vsel %vm2481_vm9, %v4318_v47, %v4314_v10  ;;  %v4362_v40 = vrot.slane %v13329_v34, %v13292_v41  ;;  %vm13330_vm10 = vcmask 654912   ;;  %v13338_v47 = vld [vmem:[#allocation179_spill] sm:$0xff] }
 0x531   : > { %v4270_v43 = vsel %vm2523_vm15, %v4269_v59, %v4265_v60  ;;  %v4324_v50 = vsel %vm13330_vm10, %v4323_v56, %v4319_v18  ;;  %v4333_v6 = vrot.slane %v13331_v33, %v13305_v45  ;;  %v4441_v26 = vrot.slane %v13332_v16, %v13292_v41  ;;  %v13340_v59 = vld [vmem:[#allocation196_spill] sm:$0xff]  ;;  %v13342_v33 = vld [vmem:[#allocation198_spill] sm:$0xff] }
 0x532   : > { %v10944_v22 = vpop.permute.xlu1 %3977  ;;  %v10997_v25 = vsel %vm2530_vm0, %v4274_v42, %v4270_v43  ;;  %v4358_v12 = vrot.slane %v13333_v9, %v13293_v13  ;;  %v4367_v48 = vrot.slane %v13334_v63, %v13294_v28  ;;  %v4520_v46 = vrot.slane %v10816_v17, %v13292_v41  ;;  %v13339_v17 = vld [vmem:[#allocation183_spill] sm:$0xff] }
 0x533   : > { %v4377_v10 = vrot.slane %v13335_v20, %v13298_v37  ;;  %v4387_v56 = vrot.slane %v13336_v38, %v13300_v5  ;;  %v4397_v53 = vrot.slane %v13337_v23, %v13302_v27  ;;  %v4437_v60 = vrot.slane %v13338_v47, %v13293_v13  ;;  %v13362_v23 = vld [vmem:[#allocation205_spill] sm:$0xff] }
 0x534   : > { %v4329_v7 = vsel %vm13310_vm12, %v4328_v51, %v4324_v50  ;;  %v4363_v42 = vsel %vm2432_vm2, %v4362_v40, %v4358_v12  ;;  %v4372_v2 = vrot.slane %v13339_v17, %v13296_v1  ;;  %v4516_v0 = vrot.slane %v13340_v59, %v13293_v13  ;;  %v13343_v51 = vld [vmem:[#allocation173_spill] sm:$0xff]  ;;  %v13344_v40 = vld [vmem:[#allocation182_spill] sm:$0xff]  ;;  %vm13361_vm12 = vmmov %vm13330_vm10 }
 0x535   : > { %v4407_v18 = vrot.slane %v13341_v39, %v13306_v11  ;;  %v4334_v34 = vsel %vm13315_vm11, %v4333_v6, %v4329_v7  ;;  %v4442_v43 = vsel %vm2432_vm2, %v4441_v26, %v4437_v60  ;;  %v4451_v16 = vrot.slane %v13342_v33, %v13296_v1  ;;  %v13345_v6 = vld [vmem:[#allocation199_spill] sm:$0xff]  ;;  %v4011_v60 = vpop.permute.xlu0 %4010  ;;  %vm13364_vm11 = vmmov %vm13330_vm10 }
 0x536   : > { %v10969_v15 = vpop.permute.xlu1 %3983  ;;  %v4417_v50 = vrot.slane %v13343_v51, %v9484_v36  ;;  %v4446_v9 = vrot.slane %v13344_v40, %v13294_v28  ;;  %v4521_v12 = vsel %vm2432_vm2, %v4520_v46, %v4516_v0  ;;  %v4530_v63 = vrot.slane %v10842_v30, %v13296_v1  ;;  %v13346_v46 = vld [vmem:[#allocation185_spill] sm:$0xff]  ;;  %v13371_v39 = vld [vmem:[#allocation207_spill] sm:$0xff] }
 0x537   : > { %v4368_v38 = vsel %vm2439_vm3, %v4367_v48, %v4363_v42  ;;  %v4525_v26 = vrot.slane %v13345_v6, %v13294_v28  ;;  %v4595_v47 = vrot.slane %v10912_v49, %v13293_v13  ;;  %v4339_v17 = vsel %vm2509_vm13, %v4338_v44, %v4334_v34  ;;  %v13347_v42 = vld [vmem:[#allocation200_spill] sm:$0xff]  ;;  %v13378_v51 = vld [vmem:[#allocation69_spill] sm:$0xff] }
 0x538   : > { %v4373_v59 = vsel %vm2446_vm4, %v4372_v2, %v4368_v38  ;;  %v4382_v0 = vrot.slane %v13346_v46, %v13299_v8  ;;  %v4447_v30 = vsel %vm2439_vm3, %v4446_v9, %v4442_v43  ;;  %v4461_v33 = vrot.slane %v13347_v42, %v13299_v8  ;;  %v13352_v42 = vld [vmem:[#allocation202_spill] sm:$0xff] }
 0x539   : > { %v4452_v48 = vsel %vm2446_vm4, %v4451_v16, %v4447_v30  ;;  %v4526_v40 = vsel %vm2439_vm3, %v4525_v26, %v4521_v12  ;;  %v4604_v44 = vrot.slane %v10953_v61, %v13294_v28  ;;  %v4540_v34 = vrot.slane %v10864_v35, %v13299_v8  ;;  %v13349_v16 = vld [vmem:[#allocation175_spill] sm:$0xff]  ;;  %v13350_v12 = vld [vmem:[#allocation201_spill] sm:$0xff] }
 0x53a   : > { %v11005_v54 = vpop.permute.xlu1 %3989  ;;  %v4531_v2 = vsel %vm2446_vm4, %v4530_v63, %v4526_v40  ;;  %v4343_v9 = vrot.slane %v13349_v16, %v9509_v21  ;;  %v4378_v38 = vsel %vm2453_vm5, %v4377_v10, %v4373_v59  ;;  %v4535_v26 = vrot.slane %v13350_v12, %v13298_v37  ;;  %v13351_v61 = vld [vmem:[#allocation187_spill] sm:$0xff]  ;;  %v4017_v59 = vpop.permute.xlu0 %4016 }
 0x53b   : > { %v4392_v46 = vrot.slane %v13351_v61, %v13301_v24  ;;  %v4471_v40 = vrot.slane %v13352_v42, %v13301_v24  ;;  %v4614_v16 = vrot.slane %v10994_v14, %v13298_v37 }
 0x53c   : > { %v4536_v10 = vsel %vm2453_vm5, %v4535_v26, %v4531_v2  ;;  %v13354_v2 = vld [vmem:[#allocation204_spill] sm:$0xff] }
 0x53e   : > { %v3996_v20 = vpop.permute.xlu1 %3995 }
 0x53f   : > { %v4599_v7 = vrot.slane %v3996_v20, %v13292_v41  ;;  %v13348_v20 = vld [vmem:[#allocation184_spill] sm:$0xff] }
 0x540   : > { %v4456_v6 = vrot.slane %v13348_v20, %v13298_v37 }
 0x541   : > { %v4600_v49 = vsel %vm2432_vm2, %v4599_v7, %v4595_v47  ;;  %v4383_v7 = vsel %vm2460_vm6, %v4382_v0, %v4378_v38  ;;  %v4545_v38 = vrot.slane %v13354_v2, %v13300_v5 }
 0x542   : > { %v4002_v43 = vpop.permute.xlu1 %4001  ;;  %v4457_v63 = vsel %vm2453_vm5, %v4456_v6, %v4452_v48  ;;  %v4605_v35 = vsel %vm2439_vm3, %v4604_v44, %v4600_v49  ;;  %v4541_v48 = vsel %vm2460_vm6, %v4540_v34, %v4536_v10  ;;  %v4550_v49 = vrot.slane %v10892_v55, %v13301_v24 }
 0x543   : > { %v4609_v47 = vrot.slane %v4002_v43, %v13296_v1  ;;  %v4462_v30 = vsel %vm2460_vm6, %v4461_v33, %v4457_v63  ;;  %v13353_v43 = vld [vmem:[#allocation186_spill] sm:$0xff]  ;;  %v4344_v6 = vsel %vm2516_vm14, %v4343_v9, %v4339_v17  ;;  %v4388_v44 = vsel %vm12638_vm7, %v4387_v56, %v4383_v7  ;;  %v13356_v17 = vld [vmem:[#allocation203_spill] sm:$0xff]  ;;  %v13357_v63 = vld [vmem:[#allocation188_spill] sm:$0xff] }
 0x544   : > { %v4466_v0 = vrot.slane %v13353_v43, %v13300_v5  ;;  %v4393_v26 = vsel %vm12637_vm8, %v4392_v46, %v4388_v44  ;;  %v4481_v9 = vrot.slane %v13356_v17, %v13303_v58  ;;  %v4546_v56 = vsel %vm12638_vm7, %v4545_v38, %v4541_v48  ;;  %v4023_v48 = vpop.permute.xlu0 %4022 }
 0x545   : > { %v4610_v20 = vsel %vm2446_vm4, %v4609_v47, %v4605_v35  ;;  %v13355_v47 = vld [vmem:[#allocation189_spill] sm:$0xff]  ;;  %v4476_v35 = vrot.slane %v13357_v63, %v13302_v27  ;;  %v4624_v46 = vrot.slane %v4011_v60, %v13300_v5  ;;  %v4551_v42 = vsel %vm12637_vm8, %v4550_v49, %v4546_v56 }
 0x546   : > { %v4008_v33 = vpop.permute.xlu1 %4007  ;;  %v4402_v14 = vrot.slane %v13355_v47, %v13303_v58  ;;  %v4467_v34 = vsel %vm12638_vm7, %v4466_v0, %v4462_v30  ;;  %v4615_v61 = vsel %vm2453_vm5, %v4614_v16, %v4610_v20  ;;  %v4560_v30 = vrot.slane %v10920_v57, %v13303_v58  ;;  %v13359_v0 = vld [vmem:[#allocation206_spill] sm:$0xff] }
 0x547   : > { %v4619_v12 = vrot.slane %v4008_v33, %v13299_v8  ;;  %v4472_v55 = vsel %vm12637_vm8, %v4471_v40, %v4467_v34  ;;  %v13358_v40 = vld [vmem:[#allocation176_spill] sm:$0xff]  ;;  %v4398_v43 = vsel %vm2481_vm9, %v4397_v53, %v4393_v26  ;;  %v4555_v16 = vrot.slane %v13359_v0, %v13302_v27  ;;  %v13360_v33 = vld [vmem:[#allocation191_spill] sm:$0xff]  ;;  %v13363_v47 = vld [vmem:[#allocation190_spill] sm:$0xff] }
 0x548   : > { %v4427_v20 = vrot.slane %v13358_v40, %v9540_v32  ;;  %v4403_v49 = vsel %vm13330_vm10, %v4402_v14, %v4398_v43  ;;  %v4412_v57 = vrot.slane %v13360_v33, %v13305_v45  ;;  %v4477_v44 = vsel %vm2481_vm9, %v4476_v35, %v4472_v55  ;;  %v13373_v40 = vld [vmem:[#allocation192_spill] sm:$0xff]  ;;  %v13375_v33 = vld [vmem:[#allocation178_spill] sm:$0xff] }
 0x549   : > { %v4620_v7 = vsel %vm2460_vm6, %v4619_v12, %v4615_v61  ;;  %v4482_v38 = vsel %vm13361_vm12, %v4481_v9, %v4477_v44  ;;  %v4491_v53 = vrot.slane %v13362_v23, %v13305_v45  ;;  %v4556_v12 = vsel %vm2481_vm9, %v4555_v16, %v4551_v42  ;;  %v13376_v23 = vld [vmem:[#allocation195_spill] sm:$0xff] }
 0x54a   : > { %v4014_v10 = vpop.permute.xlu1 %4013  ;;  %v4625_v2 = vsel %vm12638_vm7, %v4624_v46, %v4620_v7  ;;  %v4486_v34 = vrot.slane %v13363_v47, %v13306_v11  ;;  %v4634_v14 = vrot.slane %v4017_v59, %v13302_v27  ;;  %v4561_v61 = vsel %vm13364_vm11, %v4560_v30, %v4556_v12  ;;  %v13366_v7 = vld [vmem:[#allocation97_spill] sm:$0xff]  ;;  %v4029_v30 = vpop.permute.xlu0 %4028 }
 0x54b   : > { %v4629_v60 = vrot.slane %v4014_v10, %v13301_v24  ;;  %v4570_v55 = vrot.slane %v10944_v22, %v13305_v45  ;;  %v4349_v9 = vsel %vm2523_vm15, %v4348_v3, %v4344_v6  ;;  %vm13365_vm10 = vcmask 720512   ;;  %v13368_v22 = vld [vmem:[#allocation193_spill] sm:$0xff] }
 0x54c   : > { %v4408_v56 = vsel %vm13365_vm10, %v4407_v18, %v4403_v49  ;;  %v4565_v63 = vrot.slane %v13366_v7, %v13306_v11  ;;  %vm13367_vm12 = vcmask 786112   ;;  %v4422_v46 = vrot.slane %v13368_v22, %v9509_v21  ;;  %vm13369_vm11 = vmmov %vm13365_vm10 }
 0x54d   : > { %v4630_v26 = vsel %vm12637_vm8, %v4629_v60, %v4625_v2  ;;  %v4413_v35 = vsel %vm13367_vm12, %v4412_v57, %v4408_v56  ;;  %v4487_v42 = vsel %vm13369_vm11, %v4486_v34, %v4482_v38  ;;  %vm13370_vm8 = vmmov %vm13367_vm12  ;;  %v4501_v6 = vrot.slane %v13371_v39, %v9509_v21  ;;  %v13379_v34 = vld [vmem:[#allocation194_spill] sm:$0xff] }
 0x54e   : > { %v4020_v17 = vpop.permute.xlu1 %4019  ;;  %v4635_v29 = vsel %vm2481_vm9, %v4634_v14, %v4630_v26  ;;  %v4492_v3 = vsel %vm13370_vm8, %v4491_v53, %v4487_v42  ;;  %v4566_v18 = vsel %vm13365_vm10, %v4565_v63, %v4561_v61  ;;  %vm13372_vm7 = vcmask 654912   ;;  %vm13374_vm12 = vmmov %vm13370_vm8 }
 0x54f   : > { %v4639_v59 = vrot.slane %v4020_v17, %v13303_v58  ;;  %v4496_v43 = vrot.slane %v13373_v40, %v9484_v36  ;;  %v4644_v0 = vrot.slane %v4023_v48, %v13306_v11  ;;  %v4571_v16 = vsel %vm13374_vm12, %v4570_v55, %v4566_v18 }
 0x550   : > { %v4580_v60 = vrot.slane %v10969_v15, %v9509_v21  ;;  %v4353_v57 = vrot.slane %v13375_v33, %v13317_v52  ;;  %v4418_v44 = vsel %vm2509_vm13, %v4417_v50, %v4413_v35  ;;  %v4575_v2 = vrot.slane %v10834_v19, %v9484_v36  ;;  %v4035_v35 = vpop.permute.xlu0 %4034 }
 0x551   : > { %v4640_v10 = vsel %vm13372_vm7, %v4639_v59, %v4635_v29  ;;  %v4423_v48 = vsel %vm2516_vm14, %v4422_v46, %v4418_v44  ;;  %v4432_v53 = vrot.slane %v13376_v23, %v13317_v52  ;;  %v4497_v15 = vsel %vm2509_vm13, %v4496_v43, %v4492_v3  ;;  %vm13377_vm7 = vmmov %vm13365_vm10  ;;  %v13386_v44 = vld [vmem:[#allocation91_spill] sm:$0xff] }
 0x552   : > { %v4026_v49 = vpop.permute.xlu1 %4025  ;;  %v4645_v12 = vsel %vm13377_vm7, %v4644_v0, %v4640_v10  ;;  %v4502_v26 = vsel %vm2516_vm14, %v4501_v6, %v4497_v15  ;;  %v4511_v47 = vrot.slane %v13378_v51, %v13317_v52  ;;  %v4576_v50 = vsel %vm2509_vm13, %v4575_v2, %v4571_v16  ;;  %v13388_v23 = vld [vmem:[#allocation35_spill] sm:$0xff]  ;;  %v13389_v15 = vld [vmem:[#allocation86_spill] sm:$0xff]  ;;  %v13391_v51 = vld [vmem:[#allocation109_spill] sm:$0xff] }
 0x553   : > { %v4649_v38 = vrot.slane %v4026_v49, %v13305_v45  ;;  %v4506_v14 = vrot.slane %v13379_v34, %v9540_v32  ;;  %v4654_v61 = vrot.slane %v4029_v30, %v9484_v36  ;;  %v4581_v55 = vsel %vm2516_vm14, %v4580_v60, %v4576_v50  ;;  %v13392_v50 = vld [vmem:[#allocation104_spill] sm:$0xff]  ;;  %v13393_v34 = vld [vmem:[#allocation113_spill] sm:$0xff] }
 0x554   : > { %v4590_v17 = vrot.slane %v11005_v54, %v13317_v52  ;;  %v4354_v7 = vsel %vm2530_vm0, %v4353_v57, %v4349_v9  ;;  %v4428_v63 = vsel %vm2523_vm15, %v4427_v20, %v4423_v48  ;;  %v4585_v59 = vrot.slane %v10873_v31, %v9540_v32 }
 0x555   : > { %v4650_v19 = vsel %vm13370_vm8, %v4649_v38, %v4645_v12  ;;  %vm13380_vm11 = vcmask 1041409   ;;  %v4433_v42 = vsel %vm2530_vm0, %v4432_v53, %v4428_v63  ;;  %v4507_v29 = vsel %vm2523_vm15, %v4506_v14, %v4502_v26  ;;  %v13387_v38 = vld [vmem:[#allocation77_spill] sm:$0xff] }
 0x556   : > { %v4032_v56 = vpop.permute.xlu1 %4031  ;;  %v4671_v46 = vsel %vm13380_vm11, %v10977_v4, %v10972_v62  ;;  %v4655_v54 = vsel %vm2509_vm13, %v4654_v61, %v4650_v19  ;;  %vm13381_vm10 = vcmask 1042434   ;;  %v4512_v20 = vsel %vm2530_vm0, %v4511_v47, %v4507_v29  ;;  %v13394_v61 = vld [vmem:[#allocation108_spill] sm:$0xff] }
 0x557   : > { %v4659_v22 = vrot.slane %v4032_v56, %v9509_v21  ;;  %v4672_v9 = vsel %vm13381_vm10, %v10997_v25, %v4671_v46  ;;  %v4586_v3 = vsel %vm2523_vm15, %v4585_v59, %v4581_v55  ;;  %vm13382_vm12 = vcmask 1043459   ;;  %v13397_v59 = vld [vmem:[#allocation73_spill] sm:$0xff] }
 0x558   : > { %v4673_v39 = vsel %vm13382_vm12, %v4354_v7, %v4672_v9  ;;  %v4664_v6 = vrot.slane %v4035_v35, %v9540_v32  ;;  %v4591_v4 = vsel %vm2530_vm0, %v4590_v17, %v4586_v3  ;;  %vm13383_vm7 = vcmask 1045509   ;;  %v13395_v17 = vld [vmem:[#allocation45_spill] sm:$0xff]  ;;  %v13396_v7 = vld [vmem:[#allocation12_spill] sm:$0xff]  ;;  %v13402_v3 = vld [vmem:[#allocation47_spill] sm:$0xff] }
 0x559   : > { %v4660_v31 = vsel %vm2516_vm14, %v4659_v22, %v4655_v54  ;;  %v4674_v30 = vsel %vm3091_vm1, %v4433_v42, %v4673_v39  ;;  %vm13384_vm8 = vcmask 1046534   ;;  %vm13385_vm11 = vcmask 1047559   ;;  %v13398_v22 = vld [vmem:[#allocation68_spill] sm:$0xff]  ;;  %v13399_v42 = vld [vmem:[#allocation85_spill] sm:$0xff]  ;;  %v13400_v54 = vld [vmem:[#allocation71_spill] sm:$0xff] }
 0x55a   : > { %v4038_v62 = vpop.permute.xlu1 %4037  ;;  %v4665_v10 = vsel %vm2523_vm15, %v4664_v6, %v4660_v31  ;;  %v4675_v25 = vsel %vm13383_vm7, %v4512_v20, %v4674_v30  ;;  %v13390_v12 = vsub.s32 1, %v13389_v15  ;;  %v13401_v20 = vld [vmem:[#allocation57_spill] sm:$0xff]  ;;  %v13403_v6 = vld [vmem:[#allocation90_spill] sm:$0xff]  ;;  %v13405_v30 = vld [vmem:[#allocation51_spill] sm:$0xff]  ;;  %vm13498_vm10 = vcmask 458112  }
 0x55b   : > { %v4669_v18 = vrot.slane %v4038_v62, %v13317_v52  ;;  %v4676_v43 = vsel %vm13384_vm8, %v4591_v4, %v4675_v25  ;;  %v13404_v4 = vld [vmem:[#allocation75_spill] sm:$0xff]  ;;  %vm13499_vm12 = vcmask 523712   ;;  %vm13503_vm7 = vcmask 654912  }
 0x55c   : > { %v13406_v25 = vld [vmem:[#allocation79_spill] sm:$0xff]  ;;  %vm13507_vm8 = vcmask 720512  }
 0x55d   : > { %v4670_v40 = vsel %vm2530_vm0, %v4669_v18, %v4665_v10 }
 0x55e   : > { %v4677_v0 = vsel %vm13385_vm11, %v4670_v40, %v4676_v43  ;;  %v13407_v43 = vsub.s32 2, %v13389_v15  ;;  %vm13508_vm11 = vcmask 786112  }
 0x55f   : > { %4679 = vadd.xlane.f32.xlu0 %v4677_v0 }
 0x5e8   : > { %v4680_v16 = vpop.xlane.xlu0 %4679 }
 0x5e9   : > { %7361 = vrcp.f32 %v4680_v16 }
 0x5f6   : > { %v7362_v60 = vpop.eup %7361 }
 0x5f7   : > { %v4682_v49 = vmul.f32 %v7362_v60, %v4680_v16  ;;  %v13408_v16 = vld [vmem:[#allocation53_spill] sm:$0xff] }
 0x5f9   : > { %v4683_v33 = vsub.f32 2.0, %v4682_v49  ;;  %v13409_v49 = vld [vmem:[#allocation33_spill] sm:$0xff] }
 0x5fb   : > { %v11204_v57 = vmul.f32 %v7362_v60, %v4683_v33 }
 0x5fd   : > { %v4689_v2 = vrot.slane %v11204_v57, %v13386_v44  ;;  %v11213_v26 = vrot.slane %v11204_v57, %v13390_v12  ;;  %v11241_v0 = vrot.slane %v11204_v57, %v13407_v43  ;;  %v13410_v44 = vld [vmem:[#allocation81_spill] sm:$0xff] }
 0x5ff   : > { %v4734_v48 = vmul.f32 %v13387_v38, %v4689_v2  ;;  %v4726_v53 = vmul.f32 %v13388_v23, %v4689_v2  ;;  %v4740_v47 = vmul.f32 %v13391_v51, %v4689_v2  ;;  %v4727_v19 = vmul.f32 %v13392_v50, %v4689_v2  ;;  %v13413_v51 = vld [vmem:[#allocation66_spill] sm:$0xff]  ;;  %v13414_v50 = vld [vmem:[#allocation88_spill] sm:$0xff] }
 0x600   : > { %v4742_v14 = vmul.f32 %v13393_v34, %v11213_v26  ;;  %v4728_v55 = vmul.f32 %v13394_v61, %v4689_v2  ;;  %v4744_v56 = vmul.f32 %v13395_v17, %v11213_v26  ;;  %v4729_v63 = vmul.f32 %v13396_v7, %v4689_v2  ;;  %v13415_v34 = vld [vmem:[#allocation14_spill] sm:$0xff]  ;;  %v13416_v61 = vld [vmem:[#allocation59_spill] sm:$0xff]  ;;  %v13418_v7 = vld [vmem:[#allocation61_spill] sm:$0xff] }
 0x601   : > { %5007 = vperm.xlu0 %7104, %v4734_v48   ;;  %4983 = vperm.xlu1 %7103, %v4726_v53   ;;  %v4746_v35 = vmul.f32 %v13397_v59, %v11213_v26  ;;  %v4730_v46 = vmul.f32 %v13398_v22, %v4689_v2  ;;  %v4748_v29 = vmul.f32 %v13399_v42, %v11213_v26  ;;  %v13411_v48 = vld [vmem:[#allocation49_spill] sm:$0xff]  ;;  %v13412_v53 = vld [vmem:[#allocation83_spill] sm:$0xff] }
 0x602   : > { %v4731_v9 = vmul.f32 %v13400_v54, %v4689_v2  ;;  %v4750_v31 = vmul.f32 %v13401_v20, %v11213_v26  ;;  %v4732_v39 = vmul.f32 %v13402_v3, %v4689_v2  ;;  %v4752_v62 = vmul.f32 %v13403_v6, %v11213_v26  ;;  %v13417_v17 = vld [vmem:[#allocation15_spill] sm:$0xff]  ;;  %v13419_v59 = vld [vmem:[#allocation17_spill] sm:$0xff] }
 0x603   : > { %v4733_v18 = vmul.f32 %v13404_v4, %v4689_v2  ;;  %v4754_v10 = vmul.f32 %v13405_v30, %v11213_v26  ;;  %v4735_v40 = vmul.f32 %v13406_v25, %v4689_v2  ;;  %v4756_v60 = vmul.f32 %v13408_v16, %v11213_v26  ;;  %v13420_v22 = vld [vmem:[#allocation63_spill] sm:$0xff] }
 0x604   : > { %v4736_v33 = vmul.f32 %v13409_v49, %v4689_v2  ;;  %v4758_v38 = vmul.f32 %v13410_v44, %v11241_v0  ;;  %v4737_v23 = vmul.f32 %v13411_v48, %v4689_v2  ;;  %v4760_v12 = vmul.f32 %v13412_v53, %v11241_v0  ;;  %v13421_v42 = vld [vmem:[#allocation19_spill] sm:$0xff]  ;;  %v13431_v49 = vld [vmem:[#allocation20_spill] sm:$0xff]  ;;  %v13432_v44 = vld [vmem:[#allocation29_spill] sm:$0xff] }
 0x605   : > { %5025 = vperm.xlu0 %7104, %v4740_v47   ;;  %4986 = vperm.xlu1 %7103, %v4727_v19   ;;  %v4738_v47 = vmul.f32 %v13413_v51, %v4689_v2  ;;  %v4762_v19 = vmul.f32 %v13414_v50, %v11241_v0  ;;  %v13430_v16 = vld [vmem:[#allocation27_spill] sm:$0xff]  ;;  %v13433_v48 = vld [vmem:[#allocation22_spill] sm:$0xff]  ;;  %v13435_v51 = vld [vmem:[#allocation24_spill] sm:$0xff] }
 0x606   : > { %v13434_v53 = vld [vmem:[#allocation31_spill] sm:$0xff]  ;;  %v13436_v50 = vld [vmem:[#allocation34_spill] sm:$0xff] }
 0x609   : > { %5031 = vperm.xlu0 %7104, %v4742_v14   ;;  %4989 = vperm.xlu1 %7103, %v4728_v55   ;;  %v4739_v14 = vmul.f32 %v13415_v34, %v4689_v2  ;;  %v4764_v55 = vmul.f32 %v13416_v61, %v11241_v0  ;;  %v13437_v34 = vld [vmem:[#allocation26_spill] sm:$0xff] }
 0x60a   : > { %v13438_v61 = vld [vmem:[#allocation70_spill] sm:$0xff] }
 0x60d   : > { %5037 = vperm.xlu0 %7104, %v4744_v56   ;;  %4992 = vperm.xlu1 %7103, %v4729_v63   ;;  %v4741_v56 = vmul.f32 %v13417_v17, %v4689_v2  ;;  %v4766_v63 = vmul.f32 %v13418_v7, %v11241_v0  ;;  %v13422_v2 = vld [vmem:[#allocation13_spill] sm:$0xff] }
 0x60e   : > { %v4770_v54 = vmul.f32 %v13422_v2, %v11241_v0 }
 0x611   : > { %5043 = vperm.xlu0 %7104, %v4746_v35   ;;  %4995 = vperm.xlu1 %7103, %v4730_v46   ;;  %v4743_v35 = vmul.f32 %v13419_v59, %v11213_v26  ;;  %v4768_v46 = vmul.f32 %v13420_v22, %v11241_v0 }
 0x615   : > { %5049 = vperm.xlu0 %7104, %v4748_v29   ;;  %4998 = vperm.xlu1 %7103, %v4731_v9   ;;  %v4745_v29 = vmul.f32 %v13421_v42, %v11213_v26  ;;  %v13423_v9 = vld [vmem:[#allocation21_spill] sm:$0xff] }
 0x616   : > { %v4747_v20 = vmul.f32 %v13423_v9, %v11213_v26 }
 0x619   : > { %5055 = vperm.xlu0 %7104, %v4750_v31   ;;  %5001 = vperm.xlu1 %7103, %v4732_v39   ;;  %v13424_v31 = vsub.s32 3, %v13389_v15  ;;  %v13425_v39 = vld [vmem:[#allocation92_spill] sm:$0xff] }
 0x61a   : > { %v4772_v6 = vmul.f32 %v13425_v39, %v11241_v0  ;;  %v13447_v39 = vld [vmem:[#allocation28_spill] sm:$0xff] }
 0x61b   : > { %v11273_v3 = vrot.slane %v11204_v57, %v13424_v31 }
 0x61d   : > { %5061 = vperm.xlu0 %7104, %v4752_v62   ;;  %5004 = vperm.xlu1 %7103, %v4733_v18   ;;  %v13426_v62 = vld [vmem:[#allocation23_spill] sm:$0xff]  ;;  %v13427_v18 = vld [vmem:[#allocation16_spill] sm:$0xff] }
 0x61e   : > { %v4749_v4 = vmul.f32 %v13426_v62, %v11213_v26  ;;  %v4774_v30 = vmul.f32 %v13427_v18, %v11273_v3  ;;  %v13448_v62 = vld [vmem:[#allocation80_spill] sm:$0xff] }
 0x61f   : > { %v13449_v18 = vld [vmem:[#allocation32_spill] sm:$0xff] }
 0x621   : > { %5067 = vperm.xlu0 %7104, %v4754_v10   ;;  %5010 = vperm.xlu1 %7103, %v4735_v40   ;;  %v13428_v10 = vld [vmem:[#allocation25_spill] sm:$0xff]  ;;  %v13429_v40 = vld [vmem:[#allocation18_spill] sm:$0xff] }
 0x622   : > { %v4751_v25 = vmul.f32 %v13428_v10, %v11213_v26  ;;  %v4776_v43 = vmul.f32 %v13429_v40, %v11273_v3  ;;  %v13450_v10 = vld [vmem:[#allocation84_spill] sm:$0xff]  ;;  %v13451_v40 = vld [vmem:[#allocation38_spill] sm:$0xff] }
 0x625   : > { %5073 = vperm.xlu0 %7104, %v4756_v60   ;;  %5013 = vperm.xlu1 %7103, %v4736_v33   ;;  %v4753_v60 = vmul.f32 %v13430_v16, %v11213_v26  ;;  %v4778_v33 = vmul.f32 %v13431_v49, %v11273_v3  ;;  %v13452_v16 = vld [vmem:[#allocation58_spill] sm:$0xff] }
 0x626   : > { %v13453_v49 = vld [vmem:[#allocation42_spill] sm:$0xff] }
 0x629   : > { %5079 = vperm.xlu0 %7104, %v4758_v38   ;;  %5016 = vperm.xlu1 %7103, %v4737_v23   ;;  %v4755_v38 = vmul.f32 %v13432_v44, %v11213_v26  ;;  %v4780_v23 = vmul.f32 %v13433_v48, %v11273_v3  ;;  %v13454_v44 = vld [vmem:[#allocation40_spill] sm:$0xff] }
 0x62d   : > { %5085 = vperm.xlu0 %7104, %v4760_v12   ;;  %5019 = vperm.xlu1 %7103, %v4738_v47   ;;  %v4757_v12 = vmul.f32 %v13434_v53, %v11213_v26  ;;  %v4782_v47 = vmul.f32 %v13435_v51, %v11273_v3  ;;  %v13439_v26 = vld [vmem:[#allocation30_spill] sm:$0xff] }
 0x62e   : > { %v4786_v17 = vmul.f32 %v13439_v26, %v11273_v3  ;;  %v13455_v53 = vld [vmem:[#allocation46_spill] sm:$0xff] }
 0x631   : > { %5091 = vperm.xlu0 %7104, %v4762_v19   ;;  %5022 = vperm.xlu1 %7103, %v4739_v14   ;;  %v4759_v19 = vmul.f32 %v13436_v50, %v11241_v0  ;;  %v4784_v14 = vmul.f32 %v13437_v34, %v11273_v3 }
 0x635   : > { %5097 = vperm.xlu0 %7104, %v4764_v55   ;;  %5028 = vperm.xlu1 %7103, %v4741_v56   ;;  %v4761_v55 = vmul.f32 %v13438_v61, %v11241_v0  ;;  %v13440_v56 = vld [vmem:[#allocation74_spill] sm:$0xff] }
 0x636   : > { %v4763_v7 = vmul.f32 %v13440_v56, %v11241_v0 }
 0x639   : > { %5103 = vperm.xlu0 %7104, %v4766_v63   ;;  %5034 = vperm.xlu1 %7103, %v4743_v35   ;;  %v13441_v63 = vsub.s32 4, %v13389_v15  ;;  %v13442_v35 = vld [vmem:[#allocation36_spill] sm:$0xff] }
 0x63a   : > { %v4788_v22 = vmul.f32 %v13442_v35, %v11273_v3  ;;  %v13461_v35 = vld [vmem:[#allocation127_spill] sm:$0xff] }
 0x63b   : > { %v11310_v59 = vrot.slane %v11204_v57, %v13441_v63 }
 0x63d   : > { %5109 = vperm.xlu0 %7104, %v4768_v46   ;;  %5040 = vperm.xlu1 %7103, %v4745_v29   ;;  %v13443_v46 = vld [vmem:[#allocation78_spill] sm:$0xff]  ;;  %v13444_v29 = vld [vmem:[#allocation72_spill] sm:$0xff] }
 0x63e   : > { %v4765_v42 = vmul.f32 %v13443_v46, %v11241_v0  ;;  %v4790_v2 = vmul.f32 %v13444_v29, %v11310_v59  ;;  %v13462_v29 = vld [vmem:[#allocation39_spill] sm:$0xff] }
 0x641   : > { %5115 = vperm.xlu0 %7104, %v4770_v54   ;;  %5046 = vperm.xlu1 %7103, %v4747_v20   ;;  %v13445_v54 = vld [vmem:[#allocation82_spill] sm:$0xff]  ;;  %v13446_v20 = vld [vmem:[#allocation76_spill] sm:$0xff] }
 0x642   : > { %v4767_v9 = vmul.f32 %v13445_v54, %v11241_v0  ;;  %v4792_v31 = vmul.f32 %v13446_v20, %v11310_v59  ;;  %v13463_v54 = vld [vmem:[#allocation128_spill] sm:$0xff] }
 0x645   : > { %5121 = vperm.xlu0 %7104, %v4772_v6   ;;  %5052 = vperm.xlu1 %7103, %v4749_v4   ;;  %v4769_v6 = vmul.f32 %v13447_v39, %v11241_v0  ;;  %v4794_v4 = vmul.f32 %v13448_v62, %v11310_v59  ;;  %v13464_v39 = vld [vmem:[#allocation41_spill] sm:$0xff]  ;;  %v13465_v62 = vld [vmem:[#allocation130_spill] sm:$0xff] }
 0x649   : > { %5127 = vperm.xlu0 %7104, %v4774_v30   ;;  %5058 = vperm.xlu1 %7103, %v4751_v25   ;;  %v4771_v30 = vmul.f32 %v13449_v18, %v11241_v0  ;;  %v4796_v25 = vmul.f32 %v13450_v10, %v11310_v59  ;;  %v13466_v10 = vld [vmem:[#allocation48_spill] sm:$0xff] }
 0x64d   : > { %5133 = vperm.xlu0 %7104, %v4776_v43   ;;  %5064 = vperm.xlu1 %7103, %v4753_v60   ;;  %v4773_v43 = vmul.f32 %v13451_v40, %v11241_v0  ;;  %v4798_v60 = vmul.f32 %v13452_v16, %v11310_v59  ;;  %v4777_v0 = vmul.f32 %v13455_v53, %v11273_v3  ;;  %v13467_v40 = vld [vmem:[#allocation115_spill] sm:$0xff] }
 0x651   : > { %5139 = vperm.xlu0 %7104, %v4778_v33   ;;  %5070 = vperm.xlu1 %7103, %v4755_v38   ;;  %v4775_v33 = vmul.f32 %v13453_v49, %v11273_v3  ;;  %v4800_v38 = vmul.f32 %v13454_v44, %v11310_v59  ;;  %v13468_v49 = vld [vmem:[#allocation56_spill] sm:$0xff]  ;;  %v13469_v44 = vld [vmem:[#allocation118_spill] sm:$0xff] }
 0x655   : > { %5145 = vperm.xlu0 %7104, %v4780_v23   ;;  %5076 = vperm.xlu1 %7103, %v4757_v12   ;;  %v13456_v12 = vld [vmem:[#allocation44_spill] sm:$0xff] }
 0x656   : > { %v4802_v51 = vmul.f32 %v13456_v12, %v11310_v59  ;;  %v13470_v12 = vld [vmem:[#allocation60_spill] sm:$0xff] }
 0x659   : > { %5151 = vperm.xlu0 %7104, %v4782_v47   ;;  %5082 = vperm.xlu1 %7103, %v4759_v19   ;;  %v13457_v19 = vld [vmem:[#allocation50_spill] sm:$0xff] }
 0x65a   : > { %v4779_v34 = vmul.f32 %v13457_v19, %v11273_v3  ;;  %v13471_v19 = vld [vmem:[#allocation120_spill] sm:$0xff] }
 0x65d   : > { %5157 = vperm.xlu0 %7104, %v4784_v14   ;;  %5088 = vperm.xlu1 %7103, %v4761_v55   ;;  %v13458_v14 = vsub.s32 5, %v13389_v15  ;;  %v13459_v55 = vld [vmem:[#allocation52_spill] sm:$0xff] }
 0x65e   : > { %v4804_v26 = vmul.f32 %v13459_v55, %v11310_v59  ;;  %v13472_v55 = vld [vmem:[#allocation129_spill] sm:$0xff] }
 0x65f   : > { %v11355_v61 = vrot.slane %v11204_v57, %v13458_v14 }
 0x661   : > { %5163 = vperm.xlu0 %7104, %v4786_v17   ;;  %5094 = vperm.xlu1 %7103, %v4763_v7   ;;  %v13460_v7 = vld [vmem:[#allocation54_spill] sm:$0xff] }
 0x662   : > { %v4781_v63 = vmul.f32 %v13460_v7, %v11273_v3  ;;  %v13473_v7 = vld [vmem:[#allocation132_spill] sm:$0xff] }
 0x665   : > { %5169 = vperm.xlu0 %7104, %v4788_v22   ;;  %5100 = vperm.xlu1 %7103, %v4765_v42   ;;  %v4806_v22 = vmul.f32 %v13461_v35, %v11355_v61 }
 0x669   : > { %5175 = vperm.xlu0 %7104, %v4790_v2   ;;  %5106 = vperm.xlu1 %7103, %v4767_v9   ;;  %v4783_v2 = vmul.f32 %v13462_v29, %v11273_v3  ;;  %v4808_v9 = vmul.f32 %v13463_v54, %v11355_v61  ;;  %v13474_v29 = vld [vmem:[#allocation131_spill] sm:$0xff]  ;;  %v13475_v54 = vsub.s32 6, %v13389_v15 }
 0x66d   : > { %5181 = vperm.xlu0 %7104, %v4792_v31   ;;  %5112 = vperm.xlu1 %7103, %v4769_v6   ;;  %v4785_v6 = vmul.f32 %v13464_v39, %v11273_v3  ;;  %v13476_v39 = vld [vmem:[#allocation55_spill] sm:$0xff] }
 0x671   : > { %5187 = vperm.xlu0 %7104, %v4794_v4   ;;  %5118 = vperm.xlu1 %7103, %v4771_v30   ;;  %v4810_v4 = vmul.f32 %v13465_v62, %v11355_v61 }
 0x675   : > { %5193 = vperm.xlu0 %7104, %v4796_v25   ;;  %5124 = vperm.xlu1 %7103, %v4773_v43   ;;  %v4787_v25 = vmul.f32 %v13466_v10, %v11273_v3  ;;  %v4812_v43 = vmul.f32 %v13467_v40, %v11355_v61  ;;  %v13477_v10 = vld [vmem:[#allocation37_spill] sm:$0xff] }
 0x676   : > { %v13478_v40 = vld [vmem:[#allocation125_spill] sm:$0xff] }
 0x679   : > { %5199 = vperm.xlu0 %7104, %v4798_v60   ;;  %5130 = vperm.xlu1 %7103, %v4775_v33   ;;  %v4789_v33 = vmul.f32 %v13468_v49, %v11273_v3 }
 0x67c   : > { %v11338_v48 = vpop.permute.xlu0 %5007  ;;  %v11340_v23 = vpop.permute.xlu1 %4983 }
 0x67d   : > { %5205 = vperm.xlu0 %7104, %v4800_v38   ;;  %5136 = vperm.xlu1 %7103, %v4777_v0   ;;  %v4814_v38 = vmul.f32 %v13469_v44, %v11355_v61  ;;  %v13479_v44 = vld [vmem:[#allocation65_spill] sm:$0xff] }
 0x680   : > { %v11346_v47 = vpop.permute.xlu0 %5025  ;;  %v11348_v50 = vpop.permute.xlu1 %4986 }
 0x681   : > { %5211 = vperm.xlu0 %7104, %v4802_v51   ;;  %5142 = vperm.xlu1 %7103, %v4779_v34   ;;  %v4791_v51 = vmul.f32 %v13470_v12, %v11310_v59  ;;  %v4816_v34 = vmul.f32 %v13471_v19, %v11355_v61  ;;  %v13480_v12 = vld [vmem:[#allocation136_spill] sm:$0xff] }
 0x684   : > { %v11359_v17 = vpop.permute.xlu0 %5031  ;;  %v11361_v56 = vpop.permute.xlu1 %4989 }
 0x685   : > { %5217 = vperm.xlu0 %7104, %v4804_v26   ;;  %5148 = vperm.xlu1 %7103, %v4781_v63   ;;  %v4793_v26 = vmul.f32 %v13472_v55, %v11310_v59  ;;  %v4818_v63 = vmul.f32 %v13473_v7, %v11355_v61  ;;  %v13481_v55 = vld [vmem:[#allocation67_spill] sm:$0xff]  ;;  %v13482_v7 = vsub.s32 7, %v13389_v15 }
 0x688   : > { %v11367_v46 = vpop.permute.xlu0 %5037  ;;  %v11369_v42 = vpop.permute.xlu1 %4992 }
 0x689   : > { %5223 = vperm.xlu0 %7104, %v4806_v22   ;;  %5154 = vperm.xlu1 %7103, %v4783_v2   ;;  %v4795_v2 = vmul.f32 %v13474_v29, %v11310_v59  ;;  %v13483_v29 = vld [vmem:[#allocation138_spill] sm:$0xff] }
 0x68c   : > { %v11375_v20 = vpop.permute.xlu0 %5043  ;;  %v11377_v31 = vpop.permute.xlu1 %4995 }
 0x68d   : > { %5229 = vperm.xlu0 %7104, %v4808_v9   ;;  %5160 = vperm.xlu1 %7103, %v4785_v6   ;;  %v11424_v9 = vrot.slane %v11204_v57, %v13475_v54  ;;  %v4820_v6 = vmul.f32 %v13476_v39, %v11355_v61 }
 0x690   : > { %v11383_v18 = vpop.permute.xlu0 %5049  ;;  %v11385_v30 = vpop.permute.xlu1 %4998 }
 0x691   : > { %5235 = vperm.xlu0 %7104, %v4810_v4   ;;  %5166 = vperm.xlu1 %7103, %v4787_v25   ;;  %v4797_v25 = vmul.f32 %v13477_v10, %v11310_v59 }
 0x694   : > { %v11391_v16 = vpop.permute.xlu0 %5055  ;;  %v11393_v60 = vpop.permute.xlu1 %5001 }
 0x695   : > { %5241 = vperm.xlu0 %7104, %v4812_v43   ;;  %5172 = vperm.xlu1 %7103, %v4789_v33   ;;  %v4822_v43 = vmul.f32 %v13478_v40, %v11424_v9 }
 0x698   : > { %v11399_v53 = vpop.permute.xlu0 %5061  ;;  %v11401_v0 = vpop.permute.xlu1 %5004 }
 0x699   : > { %5247 = vperm.xlu0 %7104, %v4814_v38   ;;  %5178 = vperm.xlu1 %7103, %v4791_v51   ;;  %v4799_v38 = vmul.f32 %v13479_v44, %v11310_v59  ;;  %v4824_v51 = vmul.f32 %v13480_v12, %v11424_v9  ;;  %v7365_v12 = vld [vmem:[%s7772_s23 + $0x80] sm:$0xff] }
 0x69c   : > { %v11407_v14 = vpop.permute.xlu0 %5067  ;;  %v11409_v3 = vpop.permute.xlu1 %5010 }
 0x69d   : > { %5253 = vperm.xlu0 %7104, %v4816_v34   ;;  %5184 = vperm.xlu1 %7103, %v4793_v26   ;;  %v4801_v26 = vmul.f32 %v13481_v55, %v11310_v59 }
 0x6a0   : > { %v11415_v35 = vpop.permute.xlu0 %5073  ;;  %v11417_v22 = vpop.permute.xlu1 %5013 }
 0x6a1   : > { %5259 = vperm.xlu0 %7104, %v4818_v63   ;;  %5190 = vperm.xlu1 %7103, %v4795_v2   ;;  %v11453_v63 = vrot.slane %v11204_v57, %v13482_v7  ;;  %v4826_v2 = vmul.f32 %v13483_v29, %v11424_v9  ;;  %v7367_v29 = vld [vmem:[%s7772_s23 + $0x90] sm:$0xff] }
 0x6a4   : > { %v11428_v62 = vpop.permute.xlu0 %5079  ;;  %v11430_v4 = vpop.permute.xlu1 %5016 }
 0x6a5   : > { %5265 = vperm.xlu0 %7104, %v4820_v6   ;;  %5196 = vperm.xlu1 %7103, %v4797_v25   ;;  %v13485_v6 = vld [vmem:[#allocation134_spill] sm:$0xff] }
 0x6a6   : > { %v4803_v10 = vmul.f32 %v13485_v6, %v11310_v59  ;;  %v13486_v25 = vld [vmem:[#allocation94_spill] sm:$0xff] }
 0x6a7   : > { %v4839_v15 = vmul.f32 %v13486_v25, %v11453_v63 }
 0x6a8   : > { %v11436_v49 = vpop.permute.xlu0 %5085  ;;  %v11438_v33 = vpop.permute.xlu1 %5019 }
 0x6a9   : > { %5271 = vperm.xlu0 %7104, %v4822_v43   ;;  %5202 = vperm.xlu1 %7103, %v4799_v38   ;;  %v13488_v43 = vld [vmem:[#allocation101_spill] sm:$0xff]  ;;  %v5448_v38 = vrot.slane %v11359_v17, %v13293_v13 }
 0x6aa   : > { %v4805_v44 = vmul.f32 %v13488_v43, %v11310_v59  ;;  %v13489_v59 = vld [vmem:[#allocation163_spill] sm:$0xff] }
 0x6ab   : > { %v4841_v25 = vmul.f32 %v13489_v59, %v11453_v63  ;;  %v5467_v59 = vrot.slane %v11375_v20, %v13298_v37 }
 0x6ac   : > { %v11444_v19 = vpop.permute.xlu0 %5091  ;;  %v11446_v34 = vpop.permute.xlu1 %5022 }
 0x6ad   : > { %5277 = vperm.xlu0 %7104, %v4824_v51   ;;  %5208 = vperm.xlu1 %7103, %v4801_v26   ;;  %v6151_v51 = vmul.f32 %v7365_v12, %v11359_v17  ;;  %v7366_v26 = vld [vmem:[%s7772_s23 + $0x88] sm:$0xff]  ;;  %v5457_v17 = vrot.slane %v11367_v46, %v13294_v28 }
 0x6b0   : > { %v11457_v54 = vpop.permute.xlu0 %5097  ;;  %v11459_v39 = vpop.permute.xlu1 %5028 }
 0x6b1   : > { %13484 = vst [vmem:[#allocation99_spill] sm:$0xff] %v11459_v39  ;;  %5283 = vperm.xlu0 %7104, %v4826_v2   ;;  %5214 = vperm.xlu1 %7103, %v4803_v10   ;;  %v6153_v2 = vmul.f32 %v7367_v29, %v11367_v46  ;;  %v13492_v46 = vld [vmem:[#allocation148_spill] sm:$0xff] }
 0x6b2   : > { %v4827_v29 = vmul.f32 %v13492_v46, %v11424_v9 }
 0x6b4   : > { %v11465_v40 = vpop.permute.xlu0 %5103  ;;  %v5035_v57 = vpop.permute.xlu1 %5034 }
 0x6b5   : > { %13487 = vst [vmem:[#allocation102_spill] sm:$0xff] %v11465_v40  ;;  %v5452_v55 = vrot.slane %v5035_v57, %v13292_v41  ;;  %v6152_v7 = vmul.f32 %v7366_v26, %v5035_v57  ;;  %5322 = vperm.xlu0 %7104, %v4839_v15   ;;  %5220 = vperm.xlu1 %7103, %v4805_v44   ;;  %v13491_v57 = vld [vmem:[#allocation105_spill] sm:$0xff] }
 0x6b6   : > { %v4807_v15 = vmul.f32 %v13491_v57, %v11355_v61 }
 0x6b7   : > { %v5453_v6 = vsel %vm2432_vm2, %v5452_v55, %v5448_v38  ;;  %v6284_v10 = vadd.f32 %v6152_v7, %v6151_v51  ;;  %v7368_v51 = vld [vmem:[%s7772_s23 + $0x98] sm:$0xff] }
 0x6b8   : > { %v11482_v43 = vpop.permute.xlu0 %5109  ;;  %v5041_v12 = vpop.permute.xlu1 %5040  ;;  %v5458_v38 = vsel %vm2439_vm3, %v5457_v17, %v5453_v6  ;;  %v13494_v17 = vld [vmem:[#allocation137_spill] sm:$0xff] }
 0x6b9   : > { %13490 = vst [vmem:[#allocation103_spill] sm:$0xff] %v11482_v43  ;;  %v6285_v44 = vadd.f32 %v6284_v10, %v6153_v2  ;;  %v5462_v26 = vrot.slane %v5041_v12, %v13296_v1  ;;  %5328 = vperm.xlu0 %7104, %v4841_v25   ;;  %v6154_v55 = vmul.f32 %v7368_v51, %v5041_v12  ;;  %v7369_v2 = vld [vmem:[%s7772_s23 + $0xa0] sm:$0xff]  ;;  %v7371_v51 = vld [vmem:[%s7772_s23 + $0xa8] sm:$0xff] }
 0x6ba   : > { %5226 = vperm.xlu1 %7103, %v4807_v15   ;;  %v6155_v10 = vmul.f32 %v7369_v2, %v11375_v20  ;;  %v4809_v12 = vmul.f32 %v13494_v17, %v11355_v61  ;;  %v7370_v15 = vld [vmem:[%s7772_s23 + $0x8] sm:$0xff]  ;;  %v7373_v2 = vld [vmem:[%s7772_s23 + $0x10] sm:$0xff] }
 0x6bb   : > { %v5463_v7 = vsel %vm2446_vm4, %v5462_v26, %v5458_v38  ;;  %v6286_v25 = vadd.f32 %v6285_v44, %v6154_v55  ;;  %v6136_v26 = vmul.f32 %v7370_v15, %v11348_v50  ;;  %v7372_v44 = vld [vmem:[%s7772_s23] sm:$0xff]  ;;  %v6137_v17 = vmul.f32 %v7373_v2, %v11361_v56  ;;  %v13495_v15 = vld [vmem:[#allocation87_spill] sm:$0xff] }
 0x6bc   : > { %v11496_v57 = vpop.permute.xlu0 %5115  ;;  %v5047_v6 = vpop.permute.xlu1 %5046  ;;  %v5468_v43 = vsel %vm2453_vm5, %v5467_v59, %v5463_v7  ;;  %v6135_v55 = vmul.f32 %v7372_v44, %v11340_v23  ;;  %v4828_v39 = vmul.f32 %v13495_v15, %v11424_v9  ;;  %v7376_v15 = vld [vmem:[%s7772_s23 + $0xb8] sm:$0xff] }
 0x6bd   : > { %13493 = vst [vmem:[#allocation106_spill] sm:$0xff] %v11496_v57  ;;  %v5472_v38 = vrot.slane %v5047_v6, %v13299_v8  ;;  %v6156_v46 = vmul.f32 %v7371_v51, %v5047_v6  ;;  %5286 = vperm.xlu0 %7104, %v4827_v29   ;;  %v6287_v20 = vadd.f32 %v6286_v25, %v6155_v10  ;;  %v7374_v6 = vld [vmem:[%s7772_s23 + $0xb0] sm:$0xff] }
 0x6be   : > { %5232 = vperm.xlu1 %7103, %v4809_v12   ;;  %v5477_v29 = vrot.slane %v11383_v18, %v13300_v5  ;;  %v6157_v7 = vmul.f32 %v7374_v6, %v11383_v18  ;;  %v13497_v12 = vld [vmem:[#allocation139_spill] sm:$0xff]  ;;  %v6263_v44 = vadd.f32 %v6136_v26, %v6135_v55 }
 0x6bf   : > { %v5473_v57 = vsel %vm2460_vm6, %v5472_v38, %v5468_v43  ;;  %v6288_v59 = vadd.f32 %v6287_v20, %v6156_v46  ;;  %v4811_v51 = vmul.f32 %v13497_v12, %v11355_v61  ;;  %v7375_v43 = vld [vmem:[%s7772_s23 + $0x18] sm:$0xff]  ;;  %v7377_v20 = vld [vmem:[%s7772_s23 + $0x20] sm:$0xff] }
 0x6c0   : > { %v11516_v10 = vpop.permute.xlu0 %5121  ;;  %v5053_v25 = vpop.permute.xlu1 %5052  ;;  %v6138_v38 = vmul.f32 %v7375_v43, %v11369_v42  ;;  %v5478_v18 = vsel %vm13498_vm10, %v5477_v29, %v5473_v57  ;;  %v6264_v46 = vadd.f32 %v6263_v44, %v6137_v17  ;;  %v6139_v12 = vmul.f32 %v7377_v20, %v11377_v31  ;;  %v13500_v55 = vld [vmem:[#allocation43_spill] sm:$0xff]  ;;  %v13502_v17 = vld [vmem:[#allocation117_spill] sm:$0xff] }
 0x6c1   : > { %13496 = vst [vmem:[#allocation107_spill] sm:$0xff] %v11516_v10  ;;  %v5482_v2 = vrot.slane %v5053_v25, %v13301_v24  ;;  %v6158_v40 = vmul.f32 %v7376_v15, %v5053_v25  ;;  %5289 = vperm.xlu0 %7104, %v4828_v39   ;;  %v6289_v6 = vadd.f32 %v6288_v59, %v6157_v7  ;;  %v7378_v25 = vld [vmem:[%s7772_s23 + $0xc0] sm:$0xff] }
 0x6c2   : > { %5238 = vperm.xlu1 %7103, %v4811_v51   ;;  %v4829_v43 = vmul.f32 %v13500_v55, %v11424_v9  ;;  %v5487_v10 = vrot.slane %v11391_v16, %v13302_v27  ;;  %v6159_v39 = vmul.f32 %v7378_v25, %v11391_v16  ;;  %v4813_v59 = vmul.f32 %v13502_v17, %v11355_v61  ;;  %v13504_v25 = vld [vmem:[#allocation89_spill] sm:$0xff] }
 0x6c3   : > { %v5483_v26 = vsel %vm13499_vm12, %v5482_v2, %v5478_v18  ;;  %v6290_v57 = vadd.f32 %v6289_v6, %v6158_v40  ;;  %v6265_v51 = vadd.f32 %v6264_v46, %v6138_v38  ;;  %v7379_v2 = vld [vmem:[%s7772_s23 + $0xc8] sm:$0xff]  ;;  %v4830_v38 = vmul.f32 %v13504_v25, %v11424_v9  ;;  %v13505_v46 = vld [vmem:[#allocation119_spill] sm:$0xff]  ;;  %vm13526_vm12 = vmmov %vm13498_vm10 }
 0x6c4   : > { %v11534_v29 = vpop.permute.xlu0 %5127  ;;  %v5059_v7 = vpop.permute.xlu1 %5058  ;;  %v7380_v18 = vld [vmem:[%s7772_s23 + $0x28] sm:$0xff]  ;;  %v5488_v16 = vsel %vm2481_vm9, %v5487_v10, %v5483_v26  ;;  %v4815_v17 = vmul.f32 %v13505_v46, %v11355_v61  ;;  %v7382_v10 = vld [vmem:[%s7772_s23 + $0xd0] sm:$0xff] }
 0x6c5   : > { %13501 = vst [vmem:[#allocation110_spill] sm:$0xff] %v11534_v29  ;;  %v5492_v44 = vrot.slane %v5059_v7, %v13303_v58  ;;  %v6160_v15 = vmul.f32 %v7379_v2, %v5059_v7  ;;  %5292 = vperm.xlu0 %7104, %v4829_v43   ;;  %v6140_v20 = vmul.f32 %v7380_v18, %v11385_v30  ;;  %v7381_v7 = vld [vmem:[%s7772_s23 + $0x30] sm:$0xff] }
 0x6c6   : > { %v6291_v40 = vadd.f32 %v6290_v57, %v6159_v39  ;;  %5244 = vperm.xlu1 %7103, %v4813_v59   ;;  %v6266_v6 = vadd.f32 %v6265_v51, %v6139_v12  ;;  %v6141_v43 = vmul.f32 %v7381_v7, %v11393_v60  ;;  %v5497_v2 = vrot.slane %v11399_v53, %v13306_v11  ;;  %v7383_v51 = vld [vmem:[%s7772_s23 + $0xd8] sm:$0xff] }
 0x6c7   : > { %v5493_v55 = vsel %vm13503_vm7, %v5492_v44, %v5488_v16  ;;  %v6161_v26 = vmul.f32 %v7382_v10, %v11399_v53  ;;  %v7384_v16 = vld [vmem:[%s7772_s23 + $0x38] sm:$0xff]  ;;  %v13510_v10 = vld [vmem:[#allocation121_spill] sm:$0xff]  ;;  %vm13528_vm7 = vcmask 523712  }
 0x6c8   : > { %v6292_v39 = vadd.f32 %v6291_v40, %v6160_v15  ;;  %v11554_v12 = vpop.permute.xlu0 %5133  ;;  %v5065_v57 = vpop.permute.xlu1 %5064  ;;  %v6267_v18 = vadd.f32 %v6266_v6, %v6140_v20  ;;  %v6142_v25 = vmul.f32 %v7384_v16, %v11401_v0  ;;  %v5498_v46 = vsel %vm13507_vm8, %v5497_v2, %v5493_v55  ;;  %v13509_v15 = vld [vmem:[#allocation96_spill] sm:$0xff]  ;;  %v13512_v16 = vld [vmem:[#allocation122_spill] sm:$0xff]  ;;  %vm13529_vm8 = vmmov %vm13528_vm7 }
 0x6c9   : > { %13506 = vst [vmem:[#allocation111_spill] sm:$0xff] %v11554_v12  ;;  %v5502_v59 = vrot.slane %v5065_v57, %v13305_v45  ;;  %v6162_v44 = vmul.f32 %v7383_v51, %v5065_v57  ;;  %5295 = vperm.xlu0 %7104, %v4830_v38   ;;  %v4831_v40 = vmul.f32 %v13509_v15, %v11424_v9  ;;  %v7385_v6 = vld [vmem:[%s7772_s23 + $0xe0] sm:$0xff] }
 0x6ca   : > { %v6293_v7 = vadd.f32 %v6292_v39, %v6161_v26  ;;  %5250 = vperm.xlu1 %7103, %v4815_v17   ;;  %v4817_v12 = vmul.f32 %v13510_v10, %v11355_v61  ;;  %v6268_v29 = vadd.f32 %v6267_v18, %v6141_v43  ;;  %v5507_v20 = vrot.slane %v11407_v14, %v9484_v36  ;;  %v7386_v26 = vld [vmem:[%s7772_s23 + $0xe8] sm:$0xff] }
 0x6cb   : > { %v5503_v53 = vsel %vm13508_vm11, %v5502_v59, %v5498_v46  ;;  %v6163_v38 = vmul.f32 %v7385_v6, %v11407_v14  ;;  %v13511_v14 = vld [vmem:[#allocation93_spill] sm:$0xff]  ;;  %v4819_v46 = vmul.f32 %v13512_v16, %v11355_v61  ;;  %v7389_v6 = vld [vmem:[%s7772_s23 + $0xf8] sm:$0xff]  ;;  %vm13532_vm11 = vcmask 654912  }
 0x6cc   : > { %v6294_v57 = vadd.f32 %v6293_v7, %v6162_v44  ;;  %v11570_v55 = vpop.permute.xlu0 %5139  ;;  %v5071_v17 = vpop.permute.xlu1 %5070  ;;  %v6269_v59 = vadd.f32 %v6268_v29, %v6142_v25  ;;  %v5508_v43 = vsel %vm2509_vm13, %v5507_v20, %v5503_v53  ;;  %v4832_v44 = vmul.f32 %v13511_v14, %v11424_v9  ;;  %v7387_v7 = vld [vmem:[%s7772_s23 + $0x40] sm:$0xff]  ;;  %v7388_v25 = vld [vmem:[%s7772_s23 + $0xf0] sm:$0xff] }
 0x6cd   : > { %v5512_v2 = vrot.slane %v5071_v17, %v9509_v21  ;;  %v6164_v39 = vmul.f32 %v7386_v26, %v5071_v17  ;;  %5298 = vperm.xlu0 %7104, %v4831_v40   ;;  %v6143_v15 = vmul.f32 %v7387_v7, %v11338_v48  ;;  %v5517_v29 = vrot.slane %v11415_v35, %v9540_v32  ;;  %v7390_v17 = vld [vmem:[%s7772_s23 + $0x48] sm:$0xff]  ;;  %v13515_v14 = vld [vmem:[#allocation124_spill] sm:$0xff]  ;;  %v7391_v7 = vld [vmem:[%s7772_s23 + $0x50] sm:$0xff] }
 0x6ce   : > { %v6295_v51 = vadd.f32 %v6294_v57, %v6163_v38  ;;  %5256 = vperm.xlu1 %7103, %v4817_v12   ;;  %v6165_v53 = vmul.f32 %v7388_v25, %v11415_v35  ;;  %v4821_v16 = vmul.f32 %v13515_v14, %v11355_v61  ;;  %v5527_v61 = vrot.slane %v11428_v62, %v13293_v13  ;;  %v13520_v14 = vld [vmem:[#allocation145_spill] sm:$0xff] }
 0x6cf   : > { %v5513_v18 = vsel %vm2516_vm14, %v5512_v2, %v5508_v43  ;;  %v6270_v57 = vadd.f32 %v6269_v59, %v6143_v15  ;;  %v6144_v2 = vmul.f32 %v7390_v17, %v11409_v3  ;;  %v13516_v59 = vld [vmem:[#allocation95_spill] sm:$0xff]  ;;  %v6145_v15 = vmul.f32 %v7391_v7, %v11417_v22  ;;  %v7393_v17 = vld [vmem:[%s7772_s23 + $0x108] sm:$0xff]  ;;  %v13521_v7 = vld [vmem:[#allocation62_spill] sm:$0xff] }
 0x6d0   : > { %v6296_v40 = vadd.f32 %v6295_v51, %v6164_v39  ;;  %v11586_v12 = vpop.permute.xlu0 %5145  ;;  %v5077_v10 = vpop.permute.xlu1 %5076  ;;  %v5518_v26 = vsel %vm2523_vm15, %v5517_v29, %v5513_v18  ;;  %v13514_v39 = vld [vmem:[#allocation98_spill] sm:$0xff] }
 0x6d1   : > { %13513 = vst [vmem:[#allocation112_spill] sm:$0xff] %v11586_v12  ;;  %v5522_v20 = vrot.slane %v5077_v10, %v13317_v52  ;;  %v6166_v38 = vmul.f32 %v7389_v6, %v5077_v10  ;;  %5301 = vperm.xlu0 %7104, %v4832_v44   ;;  %v4833_v51 = vmul.f32 %v13514_v39, %v11424_v9  ;;  %v13518_v29 = vld [vmem:[#allocation126_spill] sm:$0xff] }
 0x6d2   : > { %v6297_v43 = vadd.f32 %v6296_v40, %v6165_v53  ;;  %5262 = vperm.xlu1 %7103, %v4819_v46   ;;  %v4834_v44 = vmul.f32 %v13516_v59, %v11424_v9  ;;  %v4823_v53 = vmul.f32 %v13518_v29, %v11424_v9  ;;  %v13519_v40 = vld [vmem:[#allocation100_spill] sm:$0xff]  ;;  %v5536_v39 = vrot.slane %v11436_v49, %v13294_v28 }
 0x6d3   : > { %v11594_v35 = vsel %vm2530_vm0, %v5522_v20, %v5518_v26  ;;  %v4835_v10 = vmul.f32 %v13519_v40, %v11424_v9  ;;  %v7392_v20 = vld [vmem:[%s7772_s23 + $0x100] sm:$0xff]  ;;  %v4825_v59 = vmul.f32 %v13520_v14, %v11424_v9  ;;  %v11624_v29 = vmul.f32 %v13521_v7, %v11424_v9  ;;  %v7394_v40 = vld [vmem:[%s7772_s23 + $0x58] sm:$0xff] }
 0x6d4   : > { %v11604_v25 = vadd.f32 %v6297_v43, %v6166_v38  ;;  %v11606_v18 = vpop.permute.xlu0 %5151  ;;  %v5083_v46 = vpop.permute.xlu1 %5082  ;;  %v6167_v6 = vmul.f32 %v7392_v20, %v11428_v62  ;;  %v6271_v43 = vadd.f32 %v6270_v57, %v6144_v2  ;;  %v6146_v62 = vmul.f32 %v7394_v40, %v11430_v4  ;;  %v7395_v20 = vld [vmem:[%s7772_s23 + $0x110] sm:$0xff]  ;;  %v13522_v7 = vld [vmem:[#allocation143_spill] sm:$0xff]  ;;  %v13523_v40 = vld [vmem:[#allocation64_spill] sm:$0xff] }
 0x6d5   : > { %13517 = vst [vmem:[#allocation116_spill] sm:$0xff] %v11606_v18  ;;  %v5531_v38 = vrot.slane %v5083_v46, %v13292_v41  ;;  %v6168_v26 = vmul.f32 %v7393_v17, %v5083_v46  ;;  %5304 = vperm.xlu0 %7104, %v4833_v51   ;;  %v6169_v46 = vmul.f32 %v7395_v20, %v11436_v49 }
 0x6d6   : > { %5268 = vperm.xlu1 %7103, %v4821_v16   ;;  %v5373_v51 = vrot.slane %v11348_v50, %v13292_v41  ;;  %v4838_v18 = vmul.f32 %v13522_v7, %v11453_v63  ;;  %v11640_v12 = vmul.f32 %v13523_v40, %v11424_v9  ;;  %v6272_v49 = vadd.f32 %v6271_v43, %v6145_v15  ;;  %v7397_v9 = vld [vmem:[%s7772_s23 + $0x118] sm:$0xff]  ;;  %v7399_v7 = vld [vmem:[%s7772_s23 + $0x120] sm:$0xff] }
 0x6d7   : > { %v5532_v57 = vsel %vm2432_vm2, %v5531_v38, %v5527_v61  ;;  %v6305_v2 = vadd.f32 %v6168_v26, %v6167_v6  ;;  %v7396_v61 = vld [vmem:[%s7772_s23 + $0x60] sm:$0xff]  ;;  %v5369_v26 = vrot.slane %v11340_v23, %v13293_v13  ;;  %v5546_v20 = vrot.slane %v11444_v19, %v13298_v37 }
 0x6d8   : > { %v11633_v16 = vpop.permute.xlu0 %5157  ;;  %v5537_v17 = vsel %vm2439_vm3, %v5536_v39, %v5532_v57  ;;  %v5089_v14 = vpop.permute.xlu1 %5088  ;;  %v6147_v6 = vmul.f32 %v7396_v61, %v11438_v33  ;;  %v5378_v39 = vrot.slane %v11361_v56, %v13294_v28  ;;  %v5383_v15 = vrot.slane %v11369_v42, %v13296_v1 }
 0x6d9   : > { %v6306_v38 = vadd.f32 %v6305_v2, %v6169_v46  ;;  %v5541_v50 = vrot.slane %v5089_v14, %v13296_v1  ;;  %5307 = vperm.xlu0 %7104, %v4834_v44   ;;  %v6170_v57 = vmul.f32 %v7397_v9, %v5089_v14  ;;  %v6273_v43 = vadd.f32 %v6272_v49, %v6146_v62  ;;  %v7398_v46 = vld [vmem:[%s7772_s23 + $0x68] sm:$0xff] }
 0x6da   : > { %5274 = vperm.xlu1 %7103, %v4823_v53   ;;  %v6148_v44 = vmul.f32 %v7398_v46, %v11446_v34  ;;  %v5374_v23 = vsel %vm2432_vm2, %v5373_v51, %v5369_v26  ;;  %v6171_v56 = vmul.f32 %v7399_v7, %v11444_v19  ;;  %v5388_v42 = vrot.slane %v11377_v31, %v13298_v37  ;;  %v7400_v9 = vld [vmem:[%s7772_s23 + $0x128] sm:$0xff]  ;;  %v13524_v7 = vld [vmem:[#allocation102_spill] sm:$0xff] }
 0x6db   : > { %v5542_v2 = vsel %vm2446_vm4, %v5541_v50, %v5537_v17  ;;  %v6307_v40 = vadd.f32 %v6306_v38, %v6170_v57  ;;  %v6274_v62 = vadd.f32 %v6273_v43, %v6147_v6  ;;  %v5379_v51 = vsel %vm2439_vm3, %v5378_v39, %v5374_v23  ;;  %v7403_v23 = vld [vmem:[%s7772_s23 + $0x138] sm:$0xff] }
 0x6dc   : > { %v11660_v61 = vpop.permute.xlu0 %5163  ;;  %v5547_v53 = vsel %vm2453_vm5, %v5546_v20, %v5542_v2  ;;  %v5095_v14 = vpop.permute.xlu1 %5094  ;;  %v5393_v19 = vrot.slane %v11385_v30, %v13299_v8  ;;  %v5556_v38 = vrot.slane %v11457_v54, %v13300_v5  ;;  %v5384_v31 = vsel %vm2446_vm4, %v5383_v15, %v5379_v51  ;;  %v7401_v20 = vld [vmem:[%s7772_s23 + $0x130] sm:$0xff] }
 0x6dd   : > { %v5551_v49 = vrot.slane %v5095_v14, %v13299_v8  ;;  %v6172_v17 = vmul.f32 %v7400_v9, %v5095_v14  ;;  %5310 = vperm.xlu0 %7104, %v4835_v10   ;;  %v6308_v50 = vadd.f32 %v6307_v40, %v6171_v56  ;;  %v5398_v6 = vrot.slane %v11393_v60, %v13300_v5  ;;  %v7402_v15 = vld [vmem:[%s7772_s23 + $0x70] sm:$0xff]  ;;  %v13527_v9 = vld [vmem:[#allocation99_spill] sm:$0xff] }
 0x6de   : > { %5280 = vperm.xlu1 %7103, %v4825_v59   ;;  %v6275_v26 = vadd.f32 %v6274_v62, %v6148_v44  ;;  %v5403_v39 = vrot.slane %v11401_v0, %v13301_v24  ;;  %v6173_v30 = vmul.f32 %v7401_v20, %v11457_v54  ;;  %v6149_v2 = vmul.f32 %v7402_v15, %v11346_v47  ;;  %v7406_v20 = vld [vmem:[%s7772_s23 + $0x148] sm:$0xff]  ;;  %v13531_v15 = vld [vmem:[#allocation146_spill] sm:$0xff] }
 0x6df   : > { %v5552_v10 = vsel %vm2460_vm6, %v5551_v49, %v5547_v53  ;;  %v6309_v57 = vadd.f32 %v6308_v50, %v6172_v17  ;;  %v5389_v60 = vsel %vm2453_vm5, %v5388_v42, %v5384_v31  ;;  %v5566_v56 = vrot.slane %v13524_v7, %v13302_v27  ;;  %v13525_v53 = vld [vmem:[#allocation144_spill] sm:$0xff]  ;;  %v7404_v49 = vld [vmem:[%s7772_s23 + $0x78] sm:$0xff] }
 0x6e0   : > { %v11680_v43 = vpop.permute.xlu0 %5169  ;;  %v5557_v59 = vsel %vm13498_vm10, %v5556_v38, %v5552_v10  ;;  %v5101_v46 = vpop.permute.xlu1 %5100  ;;  %v5394_v54 = vsel %vm2460_vm6, %v5393_v19, %v5389_v60  ;;  %v4840_v14 = vmul.f32 %v13525_v53, %v11453_v63  ;;  %v6276_v62 = vadd.f32 %v6275_v26, %v6149_v2  ;;  %v7405_v19 = vld [vmem:[%s7772_s23 + $0x140] sm:$0xff] }
 0x6e1   : > { %v5561_v44 = vrot.slane %v5101_v46, %v13301_v24  ;;  %v6174_v0 = vmul.f32 %v7403_v23, %v5101_v46  ;;  %5313 = vperm.xlu0 %7104, %v11624_v29   ;;  %v6310_v40 = vadd.f32 %v6309_v57, %v6173_v30  ;;  %v5399_v42 = vsel %vm13526_vm12, %v5398_v6, %v5394_v54  ;;  %v13530_v57 = vld [vmem:[#allocation103_spill] sm:$0xff]  ;;  %v7407_v23 = vld [vmem:[%s7772_s23 + $0x150] sm:$0xff]  ;;  %vm13534_vm12 = vmmov %vm13532_vm11 }
 0x6e2   : > { %5319 = vperm.xlu1 %7103, %v4838_v18   ;;  %v6150_v17 = vmul.f32 %v7404_v49, %v13527_v9  ;;  %v5404_v29 = vsel %vm13529_vm8, %v5403_v39, %v5399_v42  ;;  %v6175_v38 = vmul.f32 %v7405_v19, %v13524_v7  ;;  %v5408_v6 = vrot.slane %v11338_v48, %v13302_v27  ;;  %v7408_v42 = vld [vmem:[%s7772_s23 + $0x158] sm:$0xff] }
 0x6e3   : > { %v5562_v51 = vsel %vm13528_vm7, %v5561_v44, %v5557_v59  ;;  %v6311_v50 = vadd.f32 %v6310_v40, %v6174_v0  ;;  %v5413_v39 = vrot.slane %v11409_v3, %v13303_v58  ;;  %v5576_v59 = vrot.slane %v13530_v57, %v13306_v11 }
 0x6e4   : > { %v11701_v31 = vpop.permute.xlu0 %5175  ;;  %v5567_v18 = vsel %vm2481_vm9, %v5566_v56, %v5562_v51  ;;  %v5107_v10 = vpop.permute.xlu1 %5106  ;;  %v4842_v2 = vmul.f32 %v13531_v15, %v11453_v63  ;;  %v5409_v48 = vsel %vm2481_vm9, %v5408_v6, %v5404_v29  ;;  %v5418_v60 = vrot.slane %v11417_v22, %v13306_v11  ;;  %v7409_v6 = vld [vmem:[%s7772_s23 + $0x160] sm:$0xff]  ;;  %v7410_v15 = vld [vmem:[%s7772_s23 + $0x168] sm:$0xff] }
 0x6e5   : > { %v5571_v26 = vrot.slane %v5107_v10, %v13303_v58  ;;  %v6176_v30 = vmul.f32 %v7406_v20, %v5107_v10  ;;  %5316 = vperm.xlu0 %7104, %v11640_v12   ;;  %v6312_v46 = vadd.f32 %v6311_v50, %v6175_v38  ;;  %v6277_v44 = vadd.f32 %v6276_v62, %v6150_v17  ;;  %v13535_v17 = vld [vmem:[#allocation106_spill] sm:$0xff]  ;;  %v13538_v50 = vld [vmem:[#allocation165_spill] sm:$0xff] }
 0x6e6   : > { %5325 = vperm.xlu1 %7103, %v4840_v14   ;;  %v5423_v3 = vrot.slane %v11430_v4, %v13305_v45  ;;  %v6177_v0 = vmul.f32 %v7407_v23, %v13530_v57  ;;  %vm13533_vm10 = vcmask 720512   ;;  %v5428_v53 = vrot.slane %v11438_v33, %v9484_v36 }
 0x6e7   : > { %v5572_v12 = vsel %vm13532_vm11, %v5571_v26, %v5567_v18  ;;  %v6313_v54 = vadd.f32 %v6312_v46, %v6176_v30  ;;  %v6299_v22 = vrot.slane %v11604_v25, 4  ;;  %v5414_v4 = vsel %vm13534_vm12, %v5413_v39, %v5409_v48  ;;  %vm13536_vm7 = vmmov %vm13533_vm10 }
 0x6e8   : > { %v11723_v7 = vpop.permute.xlu0 %5181  ;;  %v5577_v56 = vsel %vm13533_vm10, %v5576_v59, %v5572_v12  ;;  %v5113_v40 = vpop.permute.xlu1 %5112  ;;  %v5433_v49 = vrot.slane %v11446_v34, %v9509_v21  ;;  %v5586_v51 = vrot.slane %v13535_v17, %v9484_v36  ;;  %v5419_v19 = vsel %vm13536_vm7, %v5418_v60, %v5414_v4  ;;  %v13540_v12 = vld [vmem:[#allocation107_spill] sm:$0xff] }
 0x6e9   : > { %v5581_v14 = vrot.slane %v5113_v40, %v13305_v45  ;;  %v6178_v62 = vmul.f32 %v7408_v42, %v5113_v40  ;;  %v6314_v29 = vadd.f32 %v6313_v54, %v6177_v0  ;;  %v6278_v33 = vrot.slane %v6277_v44, 4  ;;  %v13541_v42 = vld [vmem:[#allocation149_spill] sm:$0xff] }
 0x6ea   : > { %5331 = vperm.xlu1 %7103, %v4842_v2   ;;  %vm13537_vm8 = vcmask 786112   ;;  %v4843_v18 = vmul.f32 %v13538_v50, %v11453_v63  ;;  %v6179_v26 = vmul.f32 %v7409_v6, %v13535_v17  ;;  %v6300_v59 = vadd.f32 %v6299_v22, %v11604_v25  ;;  %v13543_v50 = vld [vmem:[#allocation110_spill] sm:$0xff] }
 0x6eb   : > { %v5582_v38 = vsel %vm13537_vm8, %v5581_v14, %v5577_v56  ;;  %vm13539_vm11 = vmmov %vm13537_vm8  ;;  %v6315_v34 = vadd.f32 %v6314_v29, %v6178_v62  ;;  %v5443_v60 = vrot.slane %v13527_v9, %v13317_v52  ;;  %v5438_v0 = vrot.slane %v11346_v47, %v9540_v32  ;;  %v7411_v56 = vld [vmem:[%s7772_s23 + $0x170] sm:$0xff] }
 0x6ec   : > { %v5424_v10 = vsel %vm13539_vm11, %v5423_v3, %v5419_v19  ;;  %v11743_v20 = vpop.permute.xlu0 %5187  ;;  %v5587_v30 = vsel %vm2509_vm13, %v5586_v51, %v5582_v38  ;;  %v5119_v39 = vpop.permute.xlu1 %5118  ;;  %v5596_v3 = vrot.slane %v13540_v12, %v9540_v32  ;;  %v6279_v54 = vadd.f32 %v6278_v33, %v6277_v44  ;;  %v7412_v44 = vld [vmem:[%s7772_s23 + $0x178] sm:$0xff] }
 0x6ed   : > { %v5429_v57 = vsel %vm2509_vm13, %v5428_v53, %v5424_v10  ;;  %v5591_v46 = vrot.slane %v5119_v39, %v9509_v21  ;;  %v6180_v2 = vmul.f32 %v7410_v15, %v5119_v39  ;;  %v6316_v23 = vadd.f32 %v6315_v34, %v6179_v26 }
 0x6ee   : > { %v5434_v48 = vsel %vm2516_vm14, %v5433_v49, %v5429_v57  ;;  %5334 = vperm.xlu1 %7103, %v4843_v18   ;;  %v6181_v40 = vmul.f32 %v7411_v56, %v13540_v12  ;;  %v4844_v62 = vmul.f32 %v13541_v42, %v11453_v63  ;;  %v6301_v49 = vrot.slane %v6300_v59, 2  ;;  %v7413_v57 = vld [vmem:[%s7772_s23 + $0x180] sm:$0xff] }
 0x6ef   : > { %v5592_v25 = vsel %vm2516_vm14, %v5591_v46, %v5587_v30  ;;  %v6317_v53 = vadd.f32 %v6316_v23, %v6180_v2  ;;  %v5439_v4 = vsel %vm2523_vm15, %v5438_v0, %v5434_v48  ;;  %v6280_v19 = vrot.slane %v6279_v54, 2  ;;  %v13545_v30 = vld [vmem:[#allocation168_spill] sm:$0xff]  ;;  %v7414_v2 = vld [vmem:[%s7772_s23 + $0x188] sm:$0xff]  ;;  %v7415_v0 = vld [vmem:[%s7772_s23 + $0x190] sm:$0xff] }
 0x6f0   : > { %v11760_v22 = vpop.permute.xlu0 %5193  ;;  %v5597_v9 = vsel %vm2523_vm15, %v5596_v3, %v5592_v25  ;;  %v5125_v14 = vpop.permute.xlu1 %5124  ;;  %v5444_v51 = vsel %vm2530_vm0, %v5443_v60, %v5439_v4  ;;  %vm13542_vm10 = vcmask 1041409   ;;  %v5606_v18 = vrot.slane %v13543_v50, %v13293_v13  ;;  %v13546_v60 = vld [vmem:[#allocation111_spill] sm:$0xff] }
 0x6f1   : > { %v5601_v47 = vrot.slane %v5125_v14, %v13317_v52  ;;  %v6182_v17 = vmul.f32 %v7412_v44, %v5125_v14  ;;  %v6318_v29 = vadd.f32 %v6317_v53, %v6181_v40  ;;  %v5998_v33 = vsel %vm13542_vm10, %v11594_v35, %v5444_v51  ;;  %v13547_v14 = vld [vmem:[#allocation151_spill] sm:$0xff]  ;;  %vm13551_vm7 = vmmov %vm13542_vm10 }
 0x6f2   : > { %5337 = vperm.xlu1 %7103, %v4844_v62   ;;  %vm13544_vm12 = vcmask 1042434   ;;  %v4845_v39 = vmul.f32 %v13545_v30, %v11453_v63  ;;  %v6183_v46 = vmul.f32 %v7413_v57, %v13543_v50  ;;  %v6302_v35 = vadd.f32 %v6301_v49, %v6300_v59  ;;  %v7416_v44 = vld [vmem:[%s7772_s23 + $0x198] sm:$0xff] }
 0x6f3   : > { %v5602_v38 = vsel %vm2530_vm0, %v5601_v47, %v5597_v9  ;;  %v6319_v6 = vadd.f32 %v6318_v29, %v6182_v17  ;;  %v5615_v12 = vrot.slane %v13546_v60, %v13294_v28  ;;  %v6281_v23 = vadd.f32 %v6280_v19, %v6279_v54  ;;  %v13548_v19 = vld [vmem:[#allocation171_spill] sm:$0xff]  ;;  %vm13553_vm11 = vmmov %vm13544_vm12 }
 0x6f4   : > { %v11775_v10 = vsel %vm13544_vm12, %v5602_v38, %v5998_v33  ;;  %v11777_v26 = vpop.permute.xlu0 %5199  ;;  %v5131_v34 = vpop.permute.xlu1 %5130  ;;  %v6185_v25 = vmul.f32 %v7415_v0, %v13546_v60  ;;  %v4846_v42 = vmul.f32 %v13547_v14, %v11453_v63  ;;  %v6303_v62 = vrot.slane %v6302_v35, 1  ;;  %v7417_v38 = vld [vmem:[%s7772_s23 + $0x1a0] sm:$0xff]  ;;  %v7418_v60 = vld [vmem:[%s7772_s23 + $0x1a8] sm:$0xff] }
 0x6f5   : > { %v5610_v15 = vrot.slane %v5131_v34, %v13292_v41  ;;  %v6184_v48 = vmul.f32 %v7414_v2, %v5131_v34  ;;  %v6320_v3 = vrot.slane %v6319_v6, 4  ;;  %v6282_v51 = vrot.slane %v6281_v23, 1 }
 0x6f6   : > { %5340 = vperm.xlu1 %7103, %v4845_v39   ;;  %v5625_v29 = vrot.slane %v11570_v55, %v13298_v37  ;;  %v4847_v33 = vmul.f32 %v13548_v19, %v11453_v63  ;;  %v6187_v50 = vmul.f32 %v7417_v38, %v11570_v55  ;;  %v6304_v39 = vadd.f32 %v6303_v62, %v6302_v35  ;;  %v7421_v19 = vld [vmem:[%s7772_s23 + $0x1c0] sm:$0xff] }
 0x6f7   : > { %v5611_v56 = vsel %vm2432_vm2, %v5610_v15, %v5606_v18  ;;  %v6326_v40 = vadd.f32 %v6184_v48, %v6183_v46  ;;  %v6321_v53 = vadd.f32 %v6320_v3, %v6319_v6  ;;  %v6283_v55 = vadd.f32 %v6282_v51, %v6281_v23  ;;  %v13549_v3 = vld [vmem:[#allocation112_spill] sm:$0xff] }
 0x6f8   : > { %v11790_v59 = vpop.permute.xlu0 %5205  ;;  %v5616_v9 = vsel %vm2439_vm3, %v5615_v12, %v5611_v56  ;;  %v5137_v49 = vpop.permute.xlu1 %5136  ;;  %v5635_v0 = vrot.slane %v13549_v3, %v13300_v5  ;;  %vm13552_vm8 = vcmask 458112   ;;  %v13554_v51 = vld [vmem:[#allocation116_spill] sm:$0xff]  ;;  %vm13555_vm10 = vcmask 523712  }
 0x6f9   : > { %v6327_v4 = vadd.f32 %v6326_v40, %v6185_v25  ;;  %v6322_v47 = vrot.slane %v6321_v53, 2  ;;  %v5620_v54 = vrot.slane %v5137_v49, %v13296_v1  ;;  %v6186_v17 = vmul.f32 %v7416_v44, %v5137_v49  ;;  %v13550_v25 = vld [vmem:[#allocation153_spill] sm:$0xff]  ;;  %v7419_v40 = vld [vmem:[%s7772_s23 + $0x1b0] sm:$0xff]  ;;  %v7420_v44 = vld [vmem:[%s7772_s23 + $0x1b8] sm:$0xff] }
 0x6fa   : > { %5343 = vperm.xlu1 %7103, %v4846_v42   ;;  %v4848_v56 = vmul.f32 %v13550_v25, %v11453_v63  ;;  %v6189_v35 = vmul.f32 %v7419_v40, %v13549_v3  ;;  %v6439_v62 = vsel %vm13551_vm7, %v6304_v39, %v6283_v55  ;;  %vm13557_vm12 = vcmask 654912  }
 0x6fb   : > { %v6323_v18 = vadd.f32 %v6322_v47, %v6321_v53  ;;  %v5621_v6 = vsel %vm2446_vm4, %v5620_v54, %v5616_v9  ;;  %v6328_v34 = vadd.f32 %v6327_v4, %v6186_v17  ;;  %vm13559_vm7 = vcmask 720512  }
 0x6fc   : > { %v11804_v30 = vpop.permute.xlu0 %5211  ;;  %v5626_v57 = vsel %vm2453_vm5, %v5625_v29, %v5621_v6  ;;  %v5143_v46 = vpop.permute.xlu1 %5142  ;;  %v5645_v29 = vrot.slane %v13554_v51, %v13302_v27  ;;  %v13556_v6 = vld [vmem:[#allocation174_spill] sm:$0xff] }
 0x6fd   : > { %v6324_v15 = vrot.slane %v6323_v18, 1  ;;  %v6329_v2 = vadd.f32 %v6328_v34, %v6187_v50  ;;  %v5630_v48 = vrot.slane %v5143_v46, %v13299_v8  ;;  %v6188_v12 = vmul.f32 %v7418_v60, %v5143_v46 }
 0x6fe   : > { %5346 = vperm.xlu1 %7103, %v4847_v33   ;;  %v6191_v33 = vmul.f32 %v7421_v19, %v13554_v51  ;;  %v4849_v34 = vmul.f32 %v13556_v6, %v11453_v63  ;;  %v5655_v60 = vrot.slane %v11633_v16, %v13306_v11  ;;  %v13561_v51 = vld [vmem:[#allocation177_spill] sm:$0xff] }
 0x6ff   : > { %v6325_v53 = vadd.f32 %v6324_v15, %v6323_v18  ;;  %v5631_v9 = vsel %vm2460_vm6, %v5630_v48, %v5626_v57  ;;  %v6330_v14 = vadd.f32 %v6329_v2, %v6188_v12  ;;  %v7422_v2 = vld [vmem:[%s7772_s23 + $0x1c8] sm:$0xff]  ;;  %v7423_v12 = vld [vmem:[%s7772_s23 + $0x1d0] sm:$0xff] }
 0x700   : > { %v11816_v42 = vpop.permute.xlu0 %5217  ;;  %v5636_v23 = vsel %vm13552_vm8, %v5635_v0, %v5631_v9  ;;  %v5149_v4 = vpop.permute.xlu1 %5148  ;;  %v6193_v55 = vmul.f32 %v7423_v12, %v11633_v16  ;;  %v5665_v16 = vrot.slane %v11660_v61, %v9484_v36  ;;  %vm13560_vm8 = vcmask 786112   ;;  %v7426_v6 = vld [vmem:[%s7772_s23 + $0x1e8] sm:$0xff] }
 0x701   : > { %v11821_v49 = vsel %vm13553_vm11, %v6325_v53, %v6439_v62  ;;  %v6331_v47 = vadd.f32 %v6330_v14, %v6189_v35  ;;  %v5640_v54 = vrot.slane %v5149_v4, %v13301_v24  ;;  %v6190_v17 = vmul.f32 %v7420_v44, %v5149_v4  ;;  %v7424_v62 = vld [vmem:[%s7772_s23 + $0x1d8] sm:$0xff]  ;;  %v7425_v4 = vld [vmem:[%s7772_s23 + $0x1e0] sm:$0xff] }
 0x702   : > { %5349 = vperm.xlu1 %7103, %v4848_v56   ;;  %v13558_v56 = vld [vmem:[#allocation156_spill] sm:$0xff]  ;;  %vm13564_vm11 = vcmask 1043459  }
 0x703   : > { %v5641_v38 = vsel %vm13555_vm10, %v5640_v54, %v5636_v23  ;;  %v6332_v50 = vadd.f32 %v6331_v47, %v6190_v17  ;;  %v4850_v40 = vmul.f32 %v13558_v56, %v11453_v63  ;;  %v6195_v47 = vmul.f32 %v7425_v4, %v11660_v61  ;;  %v7428_v56 = vld [vmem:[%s7772_s23 + $0x1f8] sm:$0xff]  ;;  %v7429_v4 = vld [vmem:[%s7772_s23 + $0x200] sm:$0xff] }
 0x704   : > { %v11830_v18 = vpop.permute.xlu0 %5223  ;;  %v5646_v39 = vsel %vm2481_vm9, %v5645_v29, %v5641_v38  ;;  %v5155_v57 = vpop.permute.xlu1 %5154  ;;  %v4851_v29 = vmul.f32 %v13561_v51, %v11453_v63  ;;  %v5675_v61 = vrot.slane %v11680_v43, %v9540_v32  ;;  %v7430_v51 = vld [vmem:[%s7772_s23 + $0x208] sm:$0xff]  ;;  %vm13565_vm10 = vcmask 458112  }
 0x705   : > { %v6333_v46 = vadd.f32 %v6332_v50, %v6191_v33  ;;  %v5650_v15 = vrot.slane %v5155_v57, %v13303_v58  ;;  %v6192_v48 = vmul.f32 %v7422_v2, %v5155_v57 }
 0x706   : > { %5352 = vperm.xlu1 %7103, %v4849_v34  }
 0x707   : > { %v5651_v3 = vsel %vm13557_vm12, %v5650_v15, %v5646_v39  ;;  %v6334_v0 = vadd.f32 %v6333_v46, %v6192_v48  ;;  %v7427_v39 = vld [vmem:[%s7772_s23 + $0x1f0] sm:$0xff]  ;;  %v13562_v48 = vld [vmem:[#allocation159_spill] sm:$0xff]  ;;  %vm13566_vm12 = vmmov %vm13564_vm11 }
 0x708   : > { %v11842_v25 = vpop.permute.xlu0 %5229  ;;  %v5656_v35 = vsel %vm13559_vm7, %v5655_v60, %v5651_v3  ;;  %v5161_v53 = vpop.permute.xlu1 %5160  ;;  %v6197_v57 = vmul.f32 %v7427_v39, %v11680_v43  ;;  %v4852_v60 = vmul.f32 %v13562_v48, %v11453_v63  ;;  %v7433_v48 = vld [vmem:[%s7772_s23 + $0x220] sm:$0xff]  ;;  %vm13567_vm7 = vcmask 523712  }
 0x709   : > { %v6335_v9 = vadd.f32 %v6334_v0, %v6193_v55  ;;  %v5660_v14 = vrot.slane %v5161_v53, %v13305_v45  ;;  %v6194_v23 = vmul.f32 %v7424_v62, %v5161_v53  ;;  %v5685_v62 = vrot.slane %v11701_v31, %v13293_v13 }
 0x70a   : > { %5355 = vperm.xlu1 %7103, %v4850_v40  }
 0x70b   : > { %v5661_v54 = vsel %vm13560_vm8, %v5660_v14, %v5656_v35  ;;  %v6336_v44 = vadd.f32 %v6335_v9, %v6194_v23  ;;  %v13563_v9 = vld [vmem:[#allocation180_spill] sm:$0xff]  ;;  %vm13568_vm8 = vcmask 654912  }
 0x70c   : > { %v11854_v17 = vpop.permute.xlu0 %5235  ;;  %v5666_v19 = vsel %vm2509_vm13, %v5665_v16, %v5661_v54  ;;  %v5167_v33 = vpop.permute.xlu1 %5166  ;;  %v4853_v14 = vmul.f32 %v13563_v9, %v11453_v63  ;;  %v5694_v63 = vrot.slane %v11723_v7, %v13294_v28 }
 0x70d   : > { %v6337_v38 = vadd.f32 %v6336_v44, %v6195_v47  ;;  %v5670_v50 = vrot.slane %v5167_v33, %v9509_v21  ;;  %v6196_v34 = vmul.f32 %v7426_v6, %v5167_v33  ;;  %v6199_v47 = vmul.f32 %v7429_v4, %v11701_v31 }
 0x70e   : > { %5358 = vperm.xlu1 %7103, %v4851_v29  }
 0x70f   : > { %v5671_v46 = vsel %vm2516_vm14, %v5670_v50, %v5666_v19  ;;  %v6338_v15 = vadd.f32 %v6337_v38, %v6196_v34  ;;  %v7431_v19 = vld [vmem:[%s7772_s23 + $0x210] sm:$0xff] }
 0x710   : > { %v11866_v2 = vpop.permute.xlu0 %5241  ;;  %v5676_v12 = vsel %vm2523_vm15, %v5675_v61, %v5671_v46  ;;  %v5173_v55 = vpop.permute.xlu1 %5172  ;;  %v6201_v33 = vmul.f32 %v7431_v19, %v11723_v7  ;;  %v7432_v46 = vld [vmem:[%s7772_s23 + $0x218] sm:$0xff]  ;;  %v5704_v7 = vrot.slane %v11743_v20, %v13298_v37 }
 0x711   : > { %v6339_v3 = vadd.f32 %v6338_v15, %v6197_v57  ;;  %v5680_v0 = vrot.slane %v5173_v55, %v13317_v52  ;;  %v6198_v40 = vmul.f32 %v7428_v56, %v5173_v55 }
 0x712   : > { %5361 = vperm.xlu1 %7103, %v4852_v60   ;;  %v6203_v60 = vmul.f32 %v7433_v48, %v11743_v20  ;;  %v5714_v20 = vrot.slane %v11760_v22, %v13300_v5  ;;  %v7438_v48 = vld [vmem:[%s7772_s23 + $0x248] sm:$0xff] }
 0x713   : > { %v5681_v43 = vsel %vm2530_vm0, %v5680_v0, %v5676_v12  ;;  %v6340_v35 = vadd.f32 %v6339_v3, %v6198_v40 }
 0x714   : > { %v11874_v53 = vpop.permute.xlu0 %5247  ;;  %v11882_v23 = vsel %vm13564_vm11, %v5681_v43, %v11775_v10  ;;  %v5179_v16 = vpop.permute.xlu1 %5178  ;;  %vm13569_vm11 = vcmask 720512  }
 0x715   : > { %v6341_v54 = vrot.slane %v6340_v35, 4  ;;  %v5689_v44 = vrot.slane %v5179_v16, %v13292_v41  ;;  %v6200_v29 = vmul.f32 %v7430_v51, %v5179_v16  ;;  %v7435_v16 = vld [vmem:[%s7772_s23 + $0x230] sm:$0xff] }
 0x716   : > { %5364 = vperm.xlu1 %7103, %v4853_v14   ;;  %v7434_v14 = vld [vmem:[%s7772_s23 + $0x228] sm:$0xff]  ;;  %v6205_v4 = vmul.f32 %v7435_v16, %v11760_v22  ;;  %v7441_v16 = vld [vmem:[%s7772_s23 + $0x260] sm:$0xff] }
 0x717   : > { %v6342_v10 = vadd.f32 %v6341_v54, %v6340_v35  ;;  %v5690_v38 = vsel %vm2432_vm2, %v5689_v44, %v5685_v62  ;;  %v6347_v50 = vadd.f32 %v6200_v29, %v6199_v47 }
 0x718   : > { %v11893_v6 = vpop.permute.xlu0 %5253  ;;  %v5695_v31 = vsel %vm2439_vm3, %v5694_v63, %v5690_v38  ;;  %v5185_v34 = vpop.permute.xlu1 %5184  ;;  %v7436_v38 = vld [vmem:[%s7772_s23 + $0x238] sm:$0xff] }
 0x719   : > { %v6343_v61 = vrot.slane %v6342_v10, 2  ;;  %v6348_v39 = vadd.f32 %v6347_v50, %v6201_v33  ;;  %v5699_v57 = vrot.slane %v5185_v34, %v13296_v1  ;;  %v6202_v15 = vmul.f32 %v7432_v46, %v5185_v34 }
 0x71a   : > { %v5724_v50 = vrot.slane %v11777_v26, %v13302_v27 }
 0x71b   : > { %v6344_v12 = vadd.f32 %v6343_v61, %v6342_v10  ;;  %v5700_v55 = vsel %vm2446_vm4, %v5699_v57, %v5695_v31  ;;  %v6349_v3 = vadd.f32 %v6348_v39, %v6202_v15  ;;  %v7437_v31 = vld [vmem:[%s7772_s23 + $0x240] sm:$0xff] }
 0x71c   : > { %v11903_v0 = vpop.permute.xlu0 %5259  ;;  %v5705_v56 = vsel %vm2453_vm5, %v5704_v7, %v5700_v55  ;;  %v5191_v40 = vpop.permute.xlu1 %5190  ;;  %v6207_v34 = vmul.f32 %v7437_v31, %v11777_v26  ;;  %v7439_v55 = vld [vmem:[%s7772_s23 + $0x250] sm:$0xff] }
 0x71d   : > { %v6345_v43 = vrot.slane %v6344_v12, 1  ;;  %v6350_v35 = vadd.f32 %v6349_v3, %v6203_v60  ;;  %v5709_v9 = vrot.slane %v5191_v40, %v13299_v8  ;;  %v6204_v62 = vmul.f32 %v7434_v14, %v5191_v40  ;;  %v7440_v14 = vld [vmem:[%s7772_s23 + $0x258] sm:$0xff] }
 0x71e   : > { %v6209_v26 = vmul.f32 %v7439_v55, %v11790_v59 }
 0x71f   : > { %v6346_v47 = vadd.f32 %v6345_v43, %v6344_v12  ;;  %v5710_v54 = vsel %vm2460_vm6, %v5709_v9, %v5705_v56  ;;  %v6351_v44 = vadd.f32 %v6350_v35, %v6204_v62  ;;  %v5734_v12 = vrot.slane %v11790_v59, %v13306_v11 }
 0x720   : > { %v11913_v51 = vpop.permute.xlu0 %5265  ;;  %v5715_v29 = vsel %vm13565_vm10, %v5714_v20, %v5710_v54  ;;  %v5197_v63 = vpop.permute.xlu1 %5196  ;;  %v5744_v20 = vrot.slane %v11804_v30, %v9484_v36  ;;  %vm13570_vm10 = vcmask 786112  }
 0x721   : > { %v11918_v19 = vsel %vm13566_vm12, %v6346_v47, %v11821_v49  ;;  %v6352_v33 = vadd.f32 %v6351_v44, %v6205_v4  ;;  %v5719_v10 = vrot.slane %v5197_v63, %v13301_v24  ;;  %v6206_v22 = vmul.f32 %v7436_v38, %v5197_v63 }
 0x722   : > { %v6211_v4 = vmul.f32 %v7441_v16, %v11804_v30  ;;  %v5783_v16 = vrot.slane %v11854_v17, %v13298_v37  ;;  %vm13571_vm12 = vcmask 458112  }
 0x723   : > { %v5720_v61 = vsel %vm13567_vm7, %v5719_v10, %v5715_v29  ;;  %v6353_v39 = vadd.f32 %v6352_v33, %v6206_v22  ;;  %v7442_v10 = vld [vmem:[%s7772_s23 + $0x268] sm:$0xff]  ;;  %v5754_v22 = vrot.slane %v11816_v42, %v9540_v32 }
 0x724   : > { %v5725_v57 = vsel %vm2481_vm9, %v5724_v50, %v5720_v61  ;;  %v5203_v49 = vpop.permute.xlu1 %5202  ;;  %v11928_v46 = vpop.permute.xlu0 %5271  ;;  %v7443_v50 = vld [vmem:[%s7772_s23 + $0x270] sm:$0xff] }
 0x725   : > { %v6354_v15 = vadd.f32 %v6353_v39, %v6207_v34  ;;  %v5729_v7 = vrot.slane %v5203_v49, %v13303_v58  ;;  %v6208_v60 = vmul.f32 %v7438_v48, %v5203_v49  ;;  %v6213_v30 = vmul.f32 %v7443_v50, %v11816_v42 }
 0x727   : > { %v5730_v3 = vsel %vm13568_vm8, %v5729_v7, %v5725_v57  ;;  %v6355_v56 = vadd.f32 %v6354_v15, %v6208_v60  ;;  %v7444_v7 = vld [vmem:[%s7772_s23 + $0x278] sm:$0xff] }
 0x728   : > { %v5735_v40 = vsel %vm13569_vm11, %v5734_v12, %v5730_v3  ;;  %v5209_v43 = vpop.permute.xlu1 %5208  ;;  %v11944_v59 = vpop.permute.xlu0 %5277 }
 0x729   : > { %v6356_v35 = vadd.f32 %v6355_v56, %v6209_v26  ;;  %v5739_v9 = vrot.slane %v5209_v43, %v13305_v45  ;;  %v6210_v62 = vmul.f32 %v7440_v14, %v5209_v43  ;;  %v5764_v26 = vrot.slane %v11830_v18, %v13293_v13 }
 0x72b   : > { %v5740_v47 = vsel %vm13570_vm10, %v5739_v9, %v5735_v40  ;;  %v6357_v54 = vadd.f32 %v6356_v35, %v6210_v62  ;;  %v5773_v40 = vrot.slane %v11842_v25, %v13294_v28 }
 0x72c   : > { %v5745_v44 = vsel %vm2509_vm13, %v5744_v20, %v5740_v47  ;;  %v5215_v29 = vpop.permute.xlu1 %5214  ;;  %v11956_v57 = vpop.permute.xlu0 %5283 }
 0x72d   : > { %v6358_v63 = vadd.f32 %v6357_v54, %v6211_v4  ;;  %v5749_v33 = vrot.slane %v5215_v29, %v9509_v21  ;;  %v6212_v38 = vmul.f32 %v7442_v10, %v5215_v29  ;;  %v5793_v10 = vrot.slane %v11866_v2, %v13300_v5 }
 0x72f   : > { %v5750_v31 = vsel %vm2516_vm14, %v5749_v33, %v5745_v44  ;;  %v6359_v34 = vadd.f32 %v6358_v63, %v6212_v38 }
 0x730   : > { %v5755_v61 = vsel %vm2523_vm15, %v5754_v22, %v5750_v31  ;;  %v5221_v39 = vpop.permute.xlu1 %5220  ;;  %v11970_v43 = vpop.permute.xlu0 %5322 }
 0x731   : > { %v6360_v49 = vadd.f32 %v6359_v34, %v6213_v30  ;;  %v5759_v15 = vrot.slane %v5221_v39, %v13317_v52  ;;  %v6214_v48 = vmul.f32 %v7444_v7, %v5221_v39 }
 0x733   : > { %v5760_v60 = vsel %vm2530_vm0, %v5759_v15, %v5755_v61  ;;  %v6361_v12 = vadd.f32 %v6360_v49, %v6214_v48  ;;  %v5803_v61 = vrot.slane %v11874_v53, %v13302_v27 }
 0x734   : > { %v11963_v55 = vsel %vm3091_vm1, %v5760_v60, %v11882_v23  ;;  %v11979_v63 = vpop.permute.xlu0 %5328  ;;  %v7445_v60 = vld [vmem:[%s7772_s23 + $0x288] sm:$0xff] }
 0x735   : > { %v5227_v42 = vpop.permute.xlu1 %5226  ;;  %v6362_v3 = vrot.slane %v6361_v12, 4 }
 0x736   : > { %v5768_v56 = vrot.slane %v5227_v42, %v13292_v41 }
 0x737   : > { %v6363_v35 = vadd.f32 %v6362_v3, %v6361_v12  ;;  %v6216_v12 = vmul.f32 %v7445_v60, %v5227_v42  ;;  %v7446_v3 = vld [vmem:[%s7772_s23 + $0x280] sm:$0xff] }
 0x738   : > { %v5769_v9 = vsel %vm2432_vm2, %v5768_v56, %v5764_v26  ;;  %v11996_v39 = vpop.permute.xlu0 %5286  ;;  %v6215_v56 = vmul.f32 %v7446_v3, %v11830_v18 }
 0x739   : > { %v5774_v14 = vsel %vm2439_vm3, %v5773_v40, %v5769_v9  ;;  %v5233_v62 = vpop.permute.xlu1 %5232  ;;  %v6364_v23 = vrot.slane %v6363_v35, 2 }
 0x73a   : > { %v5778_v20 = vrot.slane %v5233_v62, %v13296_v1 }
 0x73b   : > { %v6365_v4 = vadd.f32 %v6364_v23, %v6363_v35  ;;  %v5823_v23 = vrot.slane %v11903_v0, %v9484_v36 }
 0x73c   : > { %v5779_v47 = vsel %vm2446_vm4, %v5778_v20, %v5774_v14  ;;  %v12013_v9 = vpop.permute.xlu0 %5289  ;;  %v6368_v20 = vadd.f32 %v6216_v12, %v6215_v56  ;;  %v7450_v12 = vld [vmem:[%s7772_s23 + $0x300] sm:$0xff]  ;;  %v7451_v56 = vld [vmem:[%s7772_s23 + $0x308] sm:$0xff] }
 0x73d   : > { %v5784_v54 = vsel %vm2453_vm5, %v5783_v16, %v5779_v47  ;;  %v5239_v44 = vpop.permute.xlu1 %5238  ;;  %v6366_v29 = vrot.slane %v6365_v4, 1  ;;  %v7447_v16 = vld [vmem:[%s7772_s23 + $0x290] sm:$0xff] }
 0x73e   : > { %v5788_v33 = vrot.slane %v5239_v44, %v13299_v8 }
 0x73f   : > { %v6367_v38 = vadd.f32 %v6366_v29, %v6365_v4  ;;  %v6217_v4 = vmul.f32 %v7447_v16, %v11842_v25 }
 0x740   : > { %v5789_v22 = vsel %vm2460_vm6, %v5788_v33, %v5784_v54  ;;  %v7448_v33 = vld [vmem:[%s7772_s23 + $0x298] sm:$0xff] }
 0x741   : > { %v5794_v50 = vsel %vm13571_vm12, %v5793_v10, %v5789_v22  ;;  %v11986_v30 = vpop.permute.xlu1 %5244  ;;  %v11990_v31 = vsel %vm3091_vm1, %v6367_v38, %v11918_v19  ;;  %v5813_v19 = vrot.slane %v11893_v6, %v13306_v11  ;;  %vm13572_vm1 = vmmov %vm13568_vm8  ;;  %v6369_v29 = vadd.f32 %v6368_v20, %v6217_v4  ;;  %v12028_v38 = vpop.permute.xlu0 %5292 }
 0x742   : > { %v5798_v34 = vrot.slane %v11986_v30, %v13301_v24  ;;  %vm13573_vm8 = vmmov %vm13569_vm11  ;;  %v6218_v10 = vmul.f32 %v7448_v33, %v5233_v62  ;;  %v7455_v33 = vld [vmem:[%s7772_s23 + $0x320] sm:$0xff] }
 0x743   : > { %vm13574_vm11 = vmmov %vm13570_vm10  ;;  %vm13575_vm10 = vcmask 1045509  }
 0x744   : > { %v5799_v49 = vsel %vm13567_vm7, %v5798_v34, %v5794_v50  ;;  %v5833_v50 = vrot.slane %v11913_v51, %v9540_v32 }
 0x745   : > { %v5804_v15 = vsel %vm2481_vm9, %v5803_v61, %v5799_v49  ;;  %v12000_v7 = vpop.permute.xlu1 %5250  ;;  %v6370_v61 = vadd.f32 %v6369_v29, %v6218_v10  ;;  %v12047_v3 = vpop.permute.xlu0 %5295  ;;  %v6235_v10 = vmul.f32 %v7455_v33, %v11956_v57 }
 0x746   : > { %v5808_v48 = vrot.slane %v12000_v7, %v13303_v58 }
 0x748   : > { %v5809_v26 = vsel %vm13572_vm1, %v5808_v48, %v5804_v15  ;;  %v7449_v15 = vld [vmem:[%s7772_s23 + $0x2a0] sm:$0xff] }
 0x749   : > { %v5814_v40 = vsel %vm13573_vm8, %v5813_v19, %v5809_v26  ;;  %v12011_v35 = vpop.permute.xlu1 %5256  ;;  %v6219_v48 = vmul.f32 %v7449_v15, %v11854_v17  ;;  %v6231_v26 = vmul.f32 %v7450_v12, %v11928_v46  ;;  %v7453_v17 = vld [vmem:[%s7772_s23 + $0x310] sm:$0xff]  ;;  %v7458_v12 = vld [vmem:[%s7772_s23 + $0x2b8] sm:$0xff] }
 0x74a   : > { %v5818_v14 = vrot.slane %v12011_v35, %v13305_v45 }
 0x74c   : > { %v5819_v42 = vsel %vm13574_vm11, %v5818_v14, %v5814_v40  ;;  %v6371_v14 = vadd.f32 %v6370_v61, %v6219_v48 }
 0x74d   : > { %v5824_v18 = vsel %vm2509_vm13, %v5823_v23, %v5819_v42  ;;  %v12023_v47 = vpop.permute.xlu1 %5262  ;;  %v7452_v23 = vld [vmem:[%s7772_s23 + $0x2a8] sm:$0xff]  ;;  %v6233_v42 = vmul.f32 %v7453_v17, %v11944_v59  ;;  %v7460_v17 = vld [vmem:[%s7772_s23 + $0x338] sm:$0xff] }
 0x74e   : > { %v5828_v54 = vrot.slane %v12023_v47, %v9509_v21  ;;  %v6220_v20 = vmul.f32 %v7452_v23, %v5239_v44  ;;  %v7456_v44 = vld [vmem:[%s7772_s23 + $0x2b0] sm:$0xff] }
 0x750   : > { %v5829_v22 = vsel %vm2516_vm14, %v5828_v54, %v5824_v18  ;;  %v7454_v18 = vld [vmem:[%s7772_s23 + $0x318] sm:$0xff]  ;;  %v6372_v29 = vadd.f32 %v6371_v14, %v6220_v20 }
 0x751   : > { %v12033_v25 = vpop.permute.xlu1 %5268  ;;  %v5834_v49 = vsel %vm2523_vm15, %v5833_v50, %v5829_v22  ;;  %v12056_v22 = vpop.permute.xlu0 %5298 }
 0x752   : > { %v5838_v34 = vrot.slane %v12033_v25, %v13317_v52 }
 0x754   : > { %v5839_v62 = vsel %vm2530_vm0, %v5838_v34, %v5834_v49  ;;  %v6221_v34 = vmul.f32 %v7456_v44, %v11866_v2  ;;  %v7457_v49 = vld [vmem:[%s7772_s23 + $0x328] sm:$0xff] }
 0x755   : > { %v12043_v19 = vsel %vm13575_vm10, %v5839_v62, %v11963_v55  ;;  %v5275_v60 = vpop.permute.xlu1 %5274  ;;  %v6236_v62 = vmul.f32 %v7457_v49, %v11996_v39  ;;  %v12070_v2 = vpop.permute.xlu0 %5301 }
 0x756   : > { %v6232_v40 = vmul.f32 %v7451_v56, %v5275_v60  ;;  %v6373_v48 = vadd.f32 %v6372_v29, %v6221_v34  ;;  %v7459_v56 = vld [vmem:[%s7772_s23 + $0x330] sm:$0xff]  ;;  %v7463_v34 = vld [vmem:[%s7772_s23 + $0x2c8] sm:$0xff] }
 0x757   : > { %v6224_v49 = vmul.f32 %v7463_v34, %v12000_v7 }
 0x758   : > { %v6389_v16 = vadd.f32 %v6232_v40, %v6231_v26  ;;  %v6222_v26 = vmul.f32 %v7458_v12, %v11986_v30  ;;  %v6237_v40 = vmul.f32 %v7459_v56, %v12013_v9  ;;  %v7464_v56 = vld [vmem:[%s7772_s23 + $0x348] sm:$0xff] }
 0x759   : > { %v5281_v55 = vpop.permute.xlu1 %5280  ;;  %v6240_v7 = vmul.f32 %v7464_v56, %v12056_v22 }
 0x75a   : > { %v6390_v4 = vadd.f32 %v6389_v16, %v6233_v42  ;;  %v6234_v54 = vmul.f32 %v7454_v18, %v5281_v55  ;;  %v6238_v42 = vmul.f32 %v7460_v17, %v12028_v38  ;;  %v6374_v16 = vadd.f32 %v6373_v48, %v6222_v26  ;;  %v7461_v18 = vld [vmem:[%s7772_s23 + $0x2c0] sm:$0xff] }
 0x75b   : > { %v6223_v30 = vmul.f32 %v7461_v18, %v11874_v53  ;;  %v5852_v53 = vrot.slane %v11944_v59, %v13294_v28  ;;  %v7465_v59 = vld [vmem:[%s7772_s23 + $0x2d0] sm:$0xff] }
 0x75c   : > { %v6391_v50 = vadd.f32 %v6390_v4, %v6234_v54  ;;  %v5847_v4 = vrot.slane %v5275_v60, %v13292_v41  ;;  %v5843_v54 = vrot.slane %v11928_v46, %v13293_v13  ;;  %v12089_v46 = vpop.permute.xlu0 %5304 }
 0x75d   : > { %v12060_v61 = vpop.permute.xlu1 %5319  ;;  %v6375_v44 = vadd.f32 %v6374_v16, %v6223_v30  ;;  %v7466_v30 = vld [vmem:[%s7772_s23 + $0x2d8] sm:$0xff] }
 0x75e   : > { %v6392_v15 = vadd.f32 %v6391_v50, %v6235_v10  ;;  %v7462_v10 = vld [vmem:[%s7772_s23 + $0x340] sm:$0xff]  ;;  %v5848_v60 = vsel %vm2432_vm2, %v5847_v4, %v5843_v54  ;;  %v5867_v4 = vrot.slane %v11996_v39, %v13299_v8  ;;  %v7467_v54 = vld [vmem:[%s7772_s23 + $0x350] sm:$0xff] }
 0x75f   : > { %v6239_v50 = vmul.f32 %v7462_v10, %v12047_v3  ;;  %v5853_v12 = vsel %vm2439_vm3, %v5852_v53, %v5848_v60  ;;  %v6376_v26 = vadd.f32 %v6375_v44, %v6224_v49  ;;  %v7469_v49 = vld [vmem:[%s7772_s23 + $0x388] sm:$0xff]  ;;  %v5872_v60 = vrot.slane %v12013_v9, %v13300_v5 }
 0x760   : > { %v6393_v14 = vadd.f32 %v6392_v15, %v6236_v62  ;;  %v5857_v62 = vrot.slane %v5281_v55, %v13296_v1  ;;  %v5862_v55 = vrot.slane %v11956_v57, %v13298_v37  ;;  %v6226_v57 = vmul.f32 %v7466_v30, %v12011_v35  ;;  %v7470_v35 = vld [vmem:[%s7772_s23 + $0x390] sm:$0xff]  ;;  %v7474_v30 = vld [vmem:[%s7772_s23 + $0x360] sm:$0xff] }
 0x761   : > { %v12068_v23 = vpop.permute.xlu1 %5325  ;;  %v6248_v39 = vmul.f32 %v7469_v49, %v11970_v43  ;;  %v5877_v9 = vrot.slane %v12028_v38, %v13301_v24  ;;  %v7476_v49 = vld [vmem:[%s7772_s23 + $0x3a0] sm:$0xff] }
 0x762   : > { %v6394_v20 = vadd.f32 %v6393_v14, %v6237_v40  ;;  %v5858_v40 = vsel %vm2446_vm4, %v5857_v62, %v5853_v12  ;;  %v6225_v14 = vmul.f32 %v7465_v59, %v11893_v6  ;;  %v6241_v6 = vmul.f32 %v7467_v54, %v12070_v2 }
 0x763   : > { %v5863_v16 = vsel %vm2453_vm5, %v5862_v55, %v5858_v40  ;;  %v6249_v62 = vmul.f32 %v7470_v35, %v12068_v23  ;;  %v7472_v40 = vld [vmem:[%s7772_s23 + $0x2e0] sm:$0xff] }
 0x764   : > { %v6395_v29 = vadd.f32 %v6394_v20, %v6238_v42  ;;  %v12103_v42 = vpop.permute.xlu0 %5307  ;;  %v6377_v18 = vadd.f32 %v6376_v26, %v6225_v14  ;;  %v6227_v55 = vmul.f32 %v7472_v40, %v11903_v0  ;;  %v7475_v0 = vld [vmem:[%s7772_s23 + $0x398] sm:$0xff] }
 0x765   : > { %v12079_v33 = vpop.permute.xlu1 %5331  ;;  %v6250_v38 = vmul.f32 %v7475_v0, %v11979_v63 }
 0x766   : > { %v6396_v15 = vadd.f32 %v6395_v29, %v6239_v50  ;;  %v7468_v29 = vld [vmem:[%s7772_s23 + $0x380] sm:$0xff]  ;;  %v5868_v50 = vsel %vm2460_vm6, %v5867_v4, %v5863_v16  ;;  %v6378_v53 = vadd.f32 %v6377_v18, %v6226_v57  ;;  %v7473_v4 = vld [vmem:[%s7772_s23 + $0x2e8] sm:$0xff]  ;;  %v6243_v57 = vmul.f32 %v7474_v30, %v12103_v42  ;;  %v7482_v30 = vld [vmem:[%s7772_s23 + $0x370] sm:$0xff] }
 0x767   : > { %v6247_v10 = vmul.f32 %v7468_v29, %v12060_v61  ;;  %v5873_v56 = vsel %vm13571_vm12, %v5872_v60, %v5868_v50  ;;  %v6228_v18 = vmul.f32 %v7473_v4, %v12023_v47  ;;  %v5887_v60 = vrot.slane %v12056_v22, %v13303_v58  ;;  %v7481_v4 = vld [vmem:[%s7772_s23 + $0x2f8] sm:$0xff] }
 0x768   : > { %v6397_v20 = vadd.f32 %v6396_v15, %v6240_v7  ;;  %v7471_v15 = vld [vmem:[%s7772_s23 + $0x358] sm:$0xff]  ;;  %v12125_v26 = vpop.permute.xlu0 %5310  ;;  %v6379_v16 = vadd.f32 %v6378_v53, %v6227_v55  ;;  %v5878_v54 = vsel %vm13567_vm7, %v5877_v9, %v5873_v56  ;;  %v7478_v53 = vld [vmem:[%s7772_s23 + $0x3a8] sm:$0xff]  ;;  %v5892_v22 = vrot.slane %v12070_v2, %v13306_v11 }
 0x769   : > { %v12091_v48 = vpop.permute.xlu1 %5334  ;;  %v6242_v12 = vmul.f32 %v7471_v15, %v12089_v46  ;;  %v6410_v7 = vadd.f32 %v6248_v39, %v6247_v10  ;;  %v6251_v39 = vmul.f32 %v7476_v49, %v12079_v33  ;;  %v5926_v49 = vrot.slane %v11970_v43, %v13292_v41 }
 0x76a   : > { %v6398_v44 = vadd.f32 %v6397_v20, %v6241_v6  ;;  %v5882_v6 = vrot.slane %v12047_v3, %v13302_v27  ;;  %v6380_v35 = vadd.f32 %v6379_v16, %v6228_v18  ;;  %v6252_v15 = vmul.f32 %v7478_v53, %v12091_v48  ;;  %v7486_v53 = vld [vmem:[%s7772_s23 + $0x3c8] sm:$0xff] }
 0x76b   : > { %v6411_v20 = vadd.f32 %v6410_v7, %v6249_v62  ;;  %v7477_v62 = vld [vmem:[%s7772_s23 + $0x368] sm:$0xff]  ;;  %v6230_v18 = vmul.f32 %v7481_v4, %v12033_v25  ;;  %v5936_v43 = vrot.slane %v11979_v63, %v13296_v1  ;;  %v5907_v1 = vrot.slane %v12125_v26, %v9509_v21  ;;  %v7488_v4 = vld [vmem:[%s7772_s23 + $0x3d8] sm:$0xff] }
 0x76c   : > { %v6399_v59 = vadd.f32 %v6398_v44, %v6242_v12  ;;  %v5883_v50 = vsel %vm2481_vm9, %v5882_v6, %v5878_v54  ;;  %v12146_v47 = vpop.permute.xlu0 %5313  ;;  %v6244_v3 = vmul.f32 %v7477_v62, %v12125_v26  ;;  %v7479_v12 = vld [vmem:[%s7772_s23 + $0x2f0] sm:$0xff]  ;;  %v5922_v54 = vrot.slane %v12060_v61, %v13293_v13  ;;  %v7484_v61 = vld [vmem:[%s7772_s23 + $0x3c0] sm:$0xff]  ;;  %v7485_v62 = vld [vmem:[%s7772_s23 + $0x378] sm:$0xff] }
 0x76d   : > { %v12101_v17 = vpop.permute.xlu1 %5337  ;;  %v6412_v44 = vadd.f32 %v6411_v20, %v6250_v38  ;;  %v6229_v56 = vmul.f32 %v7479_v12, %v11913_v51  ;;  %v5888_v7 = vsel %vm13572_vm1, %v5887_v60, %v5883_v50  ;;  %v6245_v51 = vmul.f32 %v7482_v30, %v12146_v47  ;;  %v7483_v38 = vld [vmem:[%s7772_s23 + $0x3b8] sm:$0xff] }
 0x76e   : > { %v6400_v29 = vadd.f32 %v6399_v59, %v6243_v57  ;;  %v7480_v59 = vld [vmem:[%s7772_s23 + $0x3b0] sm:$0xff]  ;;  %v5893_v57 = vsel %vm13573_vm8, %v5892_v22, %v5888_v7  ;;  %v5931_v50 = vrot.slane %v12068_v23, %v13294_v28  ;;  %v5927_v28 = vsel %vm2432_vm2, %v5926_v49, %v5922_v54  ;;  %vm13576_vm2 = vmmov %vm13571_vm12 }
 0x76f   : > { %v6413_v9 = vadd.f32 %v6412_v44, %v6251_v39  ;;  %v6253_v20 = vmul.f32 %v7480_v59, %v12101_v17  ;;  %v6381_v16 = vadd.f32 %v6380_v35, %v6229_v56  ;;  %v5941_v56 = vrot.slane %v12079_v33, %v13298_v37 }
 0x770   : > { %v6401_v40 = vadd.f32 %v6400_v29, %v6244_v3  ;;  %v12172_v0 = vpop.permute.xlu0 %5316  ;;  %v5897_v29 = vrot.slane %v12089_v46, %v13305_v45  ;;  %v5902_v3 = vrot.slane %v12103_v42, %v9484_v36  ;;  %v5932_v12 = vsel %vm2439_vm3, %v5931_v50, %v5927_v28  ;;  %vm13577_vm3 = vmmov %vm13567_vm7 }
 0x771   : > { %v12115_v34 = vpop.permute.xlu1 %5340  ;;  %v6414_v2 = vadd.f32 %v6413_v9, %v6252_v15  ;;  %v6382_v60 = vadd.f32 %v6381_v16, %v6230_v18  ;;  %v6246_v46 = vmul.f32 %v7485_v62, %v12172_v0  ;;  %v5946_v42 = vrot.slane %v12091_v48, %v13299_v8  ;;  %v7487_v9 = vld [vmem:[%s7772_s23 + $0x3d0] sm:$0xff] }
 0x772   : > { %v6254_v6 = vmul.f32 %v7483_v38, %v12115_v34  ;;  %v6402_v25 = vadd.f32 %v6401_v40, %v6245_v51  ;;  %v5898_v35 = vsel %vm13574_vm11, %v5897_v29, %v5893_v57  ;;  %v5951_v63 = vrot.slane %v12101_v17, %v13300_v5 }
 0x773   : > { %v6415_v13 = vadd.f32 %v6414_v2, %v6253_v20  ;;  %v5903_v40 = vsel %vm2509_vm13, %v5902_v3, %v5898_v35  ;;  %v6383_v20 = vrot.slane %v6382_v60, 4  ;;  %v5937_v37 = vsel %vm2446_vm4, %v5936_v43, %v5932_v12  ;;  %vm13578_vm4 = vmmov %vm13572_vm1 }
 0x774   : > { %v6403_v15 = vadd.f32 %v6402_v25, %v6246_v46  ;;  %v5956_v33 = vrot.slane %v12115_v34, %v13301_v24  ;;  %v5908_v48 = vsel %vm2516_vm14, %v5907_v1, %v5903_v40  ;;  %v5942_v30 = vsel %vm2453_vm5, %v5941_v56, %v5937_v37  ;;  %v7489_v34 = vld [vmem:[%s7772_s23 + $0x3e0] sm:$0xff]  ;;  %vm13579_vm5 = vmmov %vm13573_vm8 }
 0x775   : > { %v12132_v14 = vpop.permute.xlu1 %5343  ;;  %v6416_v23 = vadd.f32 %v6415_v13, %v6254_v6  ;;  %v5947_v5 = vsel %vm2460_vm6, %v5946_v42, %v5942_v30  ;;  %v6384_v54 = vadd.f32 %v6383_v20, %v6382_v60  ;;  %v5912_v2 = vrot.slane %v12146_v47, %v9540_v32  ;;  %vm13580_vm6 = vmmov %vm13574_vm11 }
 0x776   : > { %v6255_v39 = vmul.f32 %v7484_v61, %v12132_v14  ;;  %v6404_v18 = vrot.slane %v6403_v15, 4  ;;  %v5961_v26 = vrot.slane %v12132_v14, %v13302_v27  ;;  %v5952_v38 = vsel %vm13576_vm2, %v5951_v63, %v5947_v5 }
 0x777   : > { %v5957_v14 = vsel %vm13577_vm3, %v5956_v33, %v5952_v38  ;;  %v5913_v25 = vsel %vm2523_vm15, %v5912_v2, %v5908_v48 }
 0x778   : > { %v6417_v22 = vadd.f32 %v6416_v23, %v6255_v39  ;;  %v6405_v50 = vadd.f32 %v6404_v18, %v6403_v15  ;;  %v5962_v49 = vsel %vm2481_vm9, %v5961_v26, %v5957_v14  ;;  %v5917_v39 = vrot.slane %v12172_v0, %v13317_v52 }
 0x779   : > { %v12143_v10 = vpop.permute.xlu1 %5346  ;;  %vm13581_vm9 = vcmask 1046534  }
 0x77a   : > { %v6256_v41 = vmul.f32 %v7486_v53, %v12143_v10  ;;  %v5966_v17 = vrot.slane %v12143_v10, %v13303_v58  ;;  %v7490_v10 = vld [vmem:[%s7772_s23 + $0x3e8] sm:$0xff]  ;;  %v5918_v3 = vsel %vm2530_vm0, %v5917_v39, %v5913_v25  ;;  %v6406_v28 = vrot.slane %v6405_v50, 2 }
 0x77b   : > { %v6003_v56 = vsel %vm13581_vm9, %v5918_v3, %v12043_v19 }
 0x77c   : > { %v6418_v16 = vadd.f32 %v6417_v22, %v6256_v41  ;;  %v7492_v41 = vld [vmem:[%s7772_s23 + $0x3f8] sm:$0xff] }
 0x77d   : > { %v12159_v55 = vpop.permute.xlu1 %5349 }
 0x77e   : > { %v6257_v59 = vmul.f32 %v7487_v9, %v12159_v55  ;;  %v5971_v27 = vrot.slane %v12159_v55, %v13306_v11  ;;  %v5967_v11 = vsel %vm13578_vm4, %v5966_v17, %v5962_v49 }
 0x780   : > { %v6419_v24 = vadd.f32 %v6418_v16, %v6257_v59  ;;  %v5972_v60 = vsel %vm13579_vm5, %v5971_v27, %v5967_v11 }
 0x781   : > { %v12180_v44 = vpop.permute.xlu1 %5352 }
 0x782   : > { %v6258_v8 = vmul.f32 %v7488_v4, %v12180_v44  ;;  %v5976_v6 = vrot.slane %v12180_v44, %v13305_v45  ;;  %v7491_v45 = vld [vmem:[%s7772_s23 + $0x3f0] sm:$0xff]  ;;  %s6454_s23 = scalar_lea.sflag [#allocation7], %s7768_s14 }
 0x784   : > { %v6420_v58 = vadd.f32 %v6419_v24, %v6258_v8  ;;  %v5977_v62 = vsel %vm13580_vm6, %v5976_v6, %v5972_v60 }
 0x785   : > { %v5356_v7 = vpop.permute.xlu1 %5355 }
 0x786   : > { %v6259_v57 = vmul.f32 %v7489_v34, %v5356_v7  ;;  %v5981_v47 = vrot.slane %v5356_v7, %v9484_v36  ;;  %v6385_v36 = vrot.slane %v6384_v54, 2 }
 0x788   : > { %v6421_v55 = vadd.f32 %v6420_v58, %v6259_v57  ;;  %v6386_v12 = vadd.f32 %v6385_v36, %v6384_v54 }
 0x789   : > { %v5359_v51 = vpop.permute.xlu1 %5358 }
 0x78a   : > { %v6260_v29 = vmul.f32 %v7490_v10, %v5359_v51  ;;  %v5986_v61 = vrot.slane %v5359_v51, %v9509_v21  ;;  %v5982_v21 = vsel %vm2509_vm13, %v5981_v47, %v5977_v62  ;;  %vm13582_vm13 = vcmask 1047559  }
 0x78c   : > { %v6422_v46 = vadd.f32 %v6421_v55, %v6260_v29  ;;  %v5987_v0 = vsel %vm2516_vm14, %v5986_v61, %v5982_v21 }
 0x78d   : > { %v5362_v13 = vpop.permute.xlu1 %5361 }
 0x78e   : > { %v6261_v44 = vmul.f32 %v7491_v45, %v5362_v13  ;;  %v5991_v35 = vrot.slane %v5362_v13, %v9540_v32 }
 0x790   : > { %v6423_v53 = vadd.f32 %v6422_v46, %v6261_v44  ;;  %v5992_v15 = vsel %vm2523_vm15, %v5991_v35, %v5987_v0 }
 0x791   : > { %v5365_v23 = vpop.permute.xlu1 %5364 }
 0x792   : > { %v5996_v32 = vrot.slane %v5365_v23, %v13317_v52  ;;  %v6262_v43 = vmul.f32 %v7492_v41, %v5365_v23  ;;  %v6407_v52 = vadd.f32 %v6406_v28, %v6405_v50 }
 0x794   : > { %v5997_v7 = vsel %vm2530_vm0, %v5996_v32, %v5992_v15  ;;  %v6424_v40 = vadd.f32 %v6423_v53, %v6262_v43 }
 0x795   : > { %v6004_v42 = vsel %vm13582_vm13, %v5997_v7, %v6003_v56 }
 0x796   : > { %v6425_v22 = vrot.slane %v6424_v40, 4  ;;  %6006 = vst [vmem:[%s348_s25] sm:$0xff] %v6004_v42 }
 0x797   : > { %7534 = shalt.err (!%p7531_p0)
}
 0x798   : > { %s7535_s10 = scalar_lea.hbm %s12259_s22, 128  ;;  %s7539_s13 = scalar_lea.hbm %s12341_s8, 256 }
 0x799   : > { %p7536_p2 = scmp.ne.s32.totalorder %s12259_s22, %s7535_s10  ;;  %p7540_p3 = scmp.lt.s32.totalorder %s12259_s22, %s12341_s8 }
 0x79a   : > { %p7541_p6 = scmp.lt.s32.totalorder %s7539_s13, %s7535_s10 }
 0x79b   : > { %p7537_p9 = pnand %p7536_p2, %p13583_p13 }
 0x79c   : > { %p7542_p11 = por %p7541_p6, %p7540_p3 }
 0x79d   : > { %p7538_p1 = pneg %p7537_p9 }
 0x79f   : > { %p7543_p12 = pnand %p7542_p11, %p7538_p1 }
 0x7a1   : > { %7546 = shalt.err (!%p7543_p12)
}
 0x7a2   : > { %7049 = dma.vmem_to_hbm [thread:$0]  (%p13583_p13), %s12261_s16, 128, %s12259_s22, %s6454_s23   ;;  %v6387_v19 = vrot.slane %v6386_v12, 1  ;;  %v6426_v9 = vadd.f32 %v6425_v22, %v6424_v40  ;;  %v6408_v59 = vrot.slane %v6407_v52, 1  ;;  %vm13584_vm14 = vmmov %vm13575_vm10 }
 0x7a3   : > { %s341_s19 = scalar_lea.vmem [#allocation5], %s6603_s12  ;;  %vm13585_vm15 = vmmov %vm13581_vm9  ;;  %s13586_s16 = sshll.u32 %s7692_s9, 7 }
 0x7a4   : > { %v6427_v20 = vrot.slane %v6426_v9, 2  ;;  %v6388_v1 = vadd.f32 %v6387_v19, %v6386_v12  ;;  %v6409_v37 = vadd.f32 %v6408_v59, %v6407_v52  ;;  %s6467_s21 = sshll.u32 %s341_s19, 4  ;;  %s12295_s24 = scalar_lea.hbm %s12340_s7, %s13586_s16  ;;  %vm13587_vm0 = vmmov %vm13582_vm13  ;;  %s6468_s21 = int_to_ptr.vmem [resolvable:$true] %s6467_s21 }
 0x7a5   : > { %s6449_s26 = scalar_lea.sflag [#allocation4], %s7768_s14  ;;  %s7547_s10 = scalar_lea.vmem %s6468_s21, 128 }
 0x7a6   : > { %v6428_v63 = vadd.f32 %v6427_v20, %v6426_v9  ;;  %v6443_v4 = vsel %vm13584_vm14, %v6388_v1, %v11990_v31  ;;  %p7548_p4 = scmp.ne.s32.totalorder %s6468_s21, %s7547_s10  ;;  %s7625_s12 = smov [#allocation5]  }
 0x7a7   : > { %v6444_v8 = vsel %vm13585_vm15, %v6409_v37, %v6443_v4  ;;  %s7551_s25 = sshll.u32 %s7625_s12, 4  ;;  %s7552_s25 = int_to_ptr.vmem [resolvable:$false] %s7551_s25 }
 0x7a8   : > { %v6429_v33 = vrot.slane %v6428_v63, 1  ;;  %p7549_p5 = pnand %p7548_p4, %p13583_p13  ;;  %s7553_s20 = scalar_lea.vmem %s7552_s25, 256 }
 0x7a9   : > { %p7554_p8 = scmp.lt.s32.totalorder %s6468_s21, %s7552_s25  ;;  %p7555_p10 = scmp.lt.s32.totalorder %s7553_s20, %s7547_s10 }
 0x7aa   : > { %v6430_v16 = vadd.f32 %v6429_v33, %v6428_v63  ;;  %p7550_p7 = pneg %p7549_p5 }
 0x7ab   : > { %p7556_p0 = por %p7555_p10, %p7554_p8 }
 0x7ac   : > { %v6445_v48 = vsel %vm13587_vm0, %v6430_v16, %v6444_v8 }
 0x7ad   : > { %6447 = vst [vmem:[%s341_s19] sm:$0xff] %v6445_v48  ;;  %p7557_p2 = pnand %p7556_p0, %p7550_p7 }
 0x7af   : > { %7560 = shalt.err (!%p7557_p2)
}
 0x7b0   : > { %s7561_s9 = scalar_lea.hbm %s12295_s24, 128  ;;  %s7565_s15 = scalar_lea.hbm %s12340_s7, 256 }
 0x7b1   : > { %p7562_p9 = scmp.ne.s32.totalorder %s12295_s24, %s7561_s9  ;;  %p7566_p6 = scmp.lt.s32.totalorder %s12295_s24, %s12340_s7 }
 0x7b2   : > { %p7567_p11 = scmp.lt.s32.totalorder %s7565_s15, %s7561_s9 }
 0x7b3   : > { %p7563_p1 = pnand %p7562_p9, %p13583_p13 }
 0x7b4   : > { %p7568_p12 = por %p7567_p11, %p7566_p6 }
 0x7b5   : > { %p7564_p3 = pneg %p7563_p1 }
 0x7b7   : > { %p7569_p4 = pnand %p7568_p12, %p7564_p3 }
 0x7b9   : > { %7572 = shalt.err (!%p7569_p4)
}
 0x7ba   : > { %7048 = dma.vmem_to_hbm [thread:$0]  (%p13583_p13), %s6468_s21, 128, %s12295_s24, %s6449_s26  }
 0x7bb PF: > { %s6492_s22 = sand.u32 1, %s7603_s27   ;;  %p13588_p5 = scmp.ne.s32.totalorder %s12653_s18, 0 }
 0x7bc   : > { %p13589_p7 = scmp.ge.s32.totalorder %s7615_s30, 2  ;;  %s6493_s23 = scalar_lea.sflag [#allocation4], %s6492_s22 }
 0x7be   : > { %p7057_p8 = pnand %p13589_p7, %p13588_p5 }
 0x7c0   : > { %p7058_p10 = pneg %p7057_p8 }
 0x7c2   : > { %7594 = dma.done.wait (%p7058_p10), %s6493_s23, 128  }
 0x7c3   : > { %7596 = vsyncadd (%p7058_p10), %s6493_s23, 4294967168  ;;  %s6502_s10 = scalar_lea.sflag [#allocation7], %s6492_s22 }
 0x7c4   : > { %7598 = dma.done.wait (%p7058_p10), %s6502_s10, 128  }
 0x7c5   : > { %7600 = vsyncadd (%p7058_p10), %s6502_s10, 4294967168  ;;  %s13590_s17 = sld [smem:[#allocation11_spill]]  ;;  %p25_p13 = scmp.ge.s32.totalorder %s7696_s11, 4  }
 0x7c6   : > { %s13591_s27 = smov %s7607_s28  ;;  %s13592_s28 = smov %s7611_s29 }
 0x7c7   : > { %s13594_s30 = smov %s7696_s11  ;;  %27 = sbr.rel (!%p25_p13) target bundleno = 7 (0x7), region = 113 }
 0x7cb   : > { %s13593_s29 = smov %s13590_s17 }
 0x7cc   :  { %6507 = vsyncpa [#allocation3], 1 }
 0x7cd   :  { %6509 = vsyncpa [#allocation3 + $0x1], 1 }
 0x7ce   :  { %6510 = vsyncpa [#allocation4], 1 }
 0x7cf   :  { %6512 = vsyncpa [#allocation4 + $0x1], 1 }
 0x7d0   :  { %6513 = vsyncpa [#allocation7], 1 }
 0x7d1   :  { %6515 = vsyncpa [#allocation7 + $0x1], 1 }

</bundles_post_ra>
